<compile_context>
chip_gen: v7x
topology: tpu7x:2x2x1
jax: 0.10.0
libtpu: 0.0.40
codegen_flags: <defaults>
</compile_context>

<pallas_src>
import functools
import math

import jax
import jax.numpy as jnp
from jax.experimental import pallas as pl
from jax.experimental.pallas import tpu as pltpu

EPS = 1e-5                       # PyTorch BatchNorm2d default
LANE = 128                       # TPU lane width -> lane-dense channel padding
MM_DTYPE = jnp.bfloat16          # MXU operand dtype (accumulation is always f32)


# ------------------------------ Pallas kernels ------------------------------
def _conv1_kernel(x_ref, wg_ref, b1_ref, bsc_ref, h1_ref, hs_ref, st_ref, *,
                  groups, stride, b_imgs, s_flat, ho, wo, wph, cin_p, cout_p):
    """Pass 1: conv1 (3x3, stride s) as grouped tap matmuls over the flat phase-folded
    input, with the 1x1 shortcut fused into the centre-tap group's extra output
    columns, plus per-channel (sum, sum^2) BN partials for both conv1 and shortcut."""
    s = stride
    m_img = ho * wph                     # padded-width matmul M (pad cols dropped later)
    m = ho * wo

    sum1 = jnp.zeros((1, cout_p), jnp.float32)
    ssq1 = jnp.zeros((1, cout_p), jnp.float32)
    sums = jnp.zeros((1, cout_p), jnp.float32)
    ssqs = jnp.zeros((1, cout_p), jnp.float32)

    for k in range(b_imgs):
        base = k * s_flat
        acc = jnp.zeros((m_img, cout_p), jnp.float32)
        acc_s = None
        # Uninterrupted accumulation chain of grouped tap matmuls (bf16 operands).
        for g, (dy, dxs, klen, has_sc) in enumerate(groups):
            off = base + (dy // s) * wph + dxs              # static sublane offset
            ch0 = (dy % s) * s * cin_p                      # static, 128-aligned lanes
            lhs = x_ref[pl.ds(off, m_img), pl.ds(ch0, klen)]
            ncols = 2 * cout_p if has_sc else cout_p
            r = jnp.dot(lhs, wg_ref[g, :klen, :ncols],
                        preferred_element_type=jnp.float32)
            if has_sc:
                acc = acc + r[:, :cout_p]
                acc_s = r[:, cout_p:]
            else:
                acc = acc + r

        # Single compaction per image: drop the pad columns (replaces 9 gather copies).
        def compact(a):
            return a.reshape(ho, wph, cout_p)[:, :wo, :].reshape(m, cout_p)

        h1v = compact(acc) + b1_ref[...]
        hsv = compact(acc_s) + bsc_ref[...]
        h1_ref[k] = h1v.astype(h1_ref.dtype)        # bf16 HBM stream
        hs_ref[k] = hsv.astype(hs_ref.dtype)        # bf16 HBM stream
        # Single-sweep stats (E[x^2]-E[x]^2 finalized on the host): fine for O(1)
        # activations; could lose precision if |mean| >> std over a huge batch.
        sum1 = sum1 + jnp.sum(h1v, axis=0, keepdims=True)
        ssq1 = ssq1 + jnp.sum(h1v * h1v, axis=0, keepdims=True)
        sums = sums + jnp.sum(hsv, axis=0, keepdims=True)
        ssqs = ssqs + jnp.sum(hsv * hsv, axis=0, keepdims=True)

    st_ref[0] = jnp.concatenate([sum1, ssq1, sums, ssqs], axis=0)


def _conv2_kernel(h1_ref, aff1_ref, w2_ref, b2_ref, h2_ref, st_ref, ypad_ref, *,
                  b_imgs, ho, wo, cout_p, mm_dtype):
    """Pass 2: BN1+ReLU applied in-register to the conv1 pre-activations, written as a
    zero-padded-width slab into a flat VMEM scratch, then conv2 (3x3, s=1) as 9
    contiguous-slab tap matmuls + per-channel (sum, sum^2) partials.  y1 never touches
    HBM; only the thin halo of the scratch is zeroed per grid step."""
    w2w = wo + 2
    m = ho * wo
    m_pad = ho * w2w
    p2f = ypad_ref.shape[0]
    top = wo + 3                          # rows [0, top) are never written by the slab
    bot0 = (ho + 1) * w2w + 1             # rows [bot0, p2f) likewise
    ypad_ref[pl.ds(0, top), :] = jnp.zeros((top, cout_p), ypad_ref.dtype)
    ypad_ref[pl.ds(bot0, p2f - bot0), :] = jnp.zeros((p2f - bot0, cout_p),
                                                     ypad_ref.dtype)

    scale = aff1_ref[pl.ds(0, 1), :]
    shift = aff1_ref[pl.ds(1, 1), :]
    sum2 = jnp.zeros((1, cout_p), jnp.float32)
    ssq2 = jnp.zeros((1, cout_p), jnp.float32)

    for k in range(b_imgs):
        # BN1 + ReLU (note: h1 is bf16-rounded while aff1 came from the f32 stats;
        # the mismatch is O(bf16 eps) and acknowledged).
        y1 = jnp.maximum(h1_ref[k].astype(jnp.float32) * scale + shift, 0.0)
        # Width-padded slab: its two trailing zero columns land exactly on the scratch's
        # interior padding positions, so no per-step full re-zeroing is needed.
        slab = jnp.pad(y1.reshape(ho, wo, cout_p), ((0, 0), (0, 2), (0, 0)))
        ypad_ref[pl.ds(top, m_pad), :] = slab.reshape(m_pad, cout_p)

        acc = jnp.zeros((m_pad, cout_p), jnp.float32)
        for dy in range(3):
            for dx in range(3):
                lhs = ypad_ref[pl.ds(dy * w2w + dx, m_pad), :].astype(mm_dtype)
                acc = acc + jnp.dot(lhs, w2_ref[dy * 3 + dx],
                                    preferred_element_type=jnp.float32)

        h2v = acc.reshape(ho, w2w, cout_p)[:, :wo, :].reshape(m, cout_p) + b2_ref[...]
        h2_ref[k] = h2v.astype(h2_ref.dtype)        # bf16 HBM stream
        sum2 = sum2 + jnp.sum(h2v, axis=0, keepdims=True)
        ssq2 = ssq2 + jnp.sum(h2v * h2v, axis=0, keepdims=True)

    st_ref[0] = jnp.concatenate([sum2, ssq2], axis=0)


def _finalize_kernel(h2_ref, hs_ref, aff2_ref, affs_ref, out_ref):
    """Pass 3 (flat lane-dense row tiles): BN2+ReLU, shortcut BN, residual add."""
    y2 = jnp.maximum(h2_ref[...].astype(jnp.float32) * aff2_ref[pl.ds(0, 1), :]
                     + aff2_ref[pl.ds(1, 1), :], 0.0)
    ys = (hs_ref[...].astype(jnp.float32) * affs_ref[pl.ds(0, 1), :]
          + affs_ref[pl.ds(1, 1), :])
    out_ref[...] = (y2 + ys).astype(out_ref.dtype)


# ------------------------------- JAX-side glue -------------------------------
def _round_up(v, mul):
    return (v + mul - 1) // mul * mul


def _pad_last(a, target):
    pad = target - a.shape[-1]
    return a if pad == 0 else jnp.pad(a, [(0, 0)] * (a.ndim - 1) + [(0, pad)])


def _vec(v, cp, fill=0.0):
    return jnp.pad(v.astype(jnp.float32), (0, cp - v.shape[0]), constant_values=fill)


def _row(v, cp):
    return _vec(v, cp).reshape(1, cp)


def _w3x3_to_taps(w, cin_p, cout_p, dtype):
    # (Cout, Cin, 3, 3) -> (9, cin_p, cout_p), tap index t = dy*3 + dx.
    cout, cin, kh, kw = w.shape
    wt = jnp.transpose(w, (2, 3, 1, 0)).reshape(kh * kw, cin, cout).astype(jnp.float32)
    wt = jnp.pad(wt, ((0, 0), (0, cin_p - cin), (0, cout_p - cout)))
    return wt.astype(dtype)


def _phase_stack_flat(x_nhwc, s, cin_p, mm_dtype):
    """Zero-pad (spatial pad=1, channels->cin_p), fold the stride-s phases into the
    channel axis, flatten spatial to one sublane axis and append a few zero rows so
    every conv1 tap is a single contiguous slab at a static sublane offset:
        out[n, r*wph + c, (py*s+px)*cin_p + ch] = x_pad[n, r*s+py, c*s+px, ch]
    Stored in bf16 (MXU operand dtype) to halve the dominant HBM stream of pass 1."""
    n, h, w, _ = x_nhwc.shape
    xc = _pad_last(x_nhwc.astype(mm_dtype), cin_p)
    hp2, wp2 = _round_up(h + 2, s), _round_up(w + 2, s)
    xp = jnp.pad(xc, ((0, 0), (1, hp2 - h - 1), (1, wp2 - w - 1), (0, 0)))
    hph, wph = hp2 // s, wp2 // s
    xr = xp.reshape(n, hph, s, wph, s, cin_p)
    xph = jnp.transpose(xr, (0, 1, 3, 2, 4, 5)).reshape(n, hph * wph, s * s * cin_p)
    s_flat = _round_up(hph * wph + (2 // s), 8)      # slack so tap slices never OOB
    xph = jnp.pad(xph, ((0, 0), (0, s_flat - hph * wph), (0, 0)))
    return xph, hph, wph, s_flat


def _pack_conv1_groups(w1, wsc, s, cin_p, cout_p, mm_dtype):
    """Group conv1 taps that share a spatial offset along dx (their stride phases are
    contiguous in the folded channel axis -> one larger-K matmul per group) and fuse
    the 1x1 shortcut weight into columns [cout_p:2cout_p) of the group holding the
    centre tap (dy,dx)=(1,1), so that matmul fills N=2*cout_p."""
    cout, cin = w1.shape[0], w1.shape[1]

    def tap(dy, dx):
        t = jnp.transpose(w1[:, :, dy, dx], (1, 0)).astype(jnp.float32)   # (cin, cout)
        return jnp.pad(t, ((0, cin_p - cin), (0, cout_p - cout)))

    wsc_m = jnp.pad(jnp.transpose(wsc.reshape(cout, cin), (1, 0)).astype(jnp.float32),
                    ((0, cin_p - cin), (0, cout_p - cout)))

    groups, mats = [], []
    for dy in range(3):
        for dxs in range((2 // s) + 1):
            dx_list = [dx for dx in range(3) if dx // s == dxs]
            klen = len(dx_list) * cin_p
            left = jnp.concatenate([tap(dy, dx) for dx in dx_list], axis=0)
            has_sc = (dy == 1) and ((1 // s) == dxs)
            right = jnp.zeros((klen, cout_p), jnp.float32)
            if has_sc:
                t_sc = 1 - dxs * s           # position of dx==1 inside this group
                right = right.at[t_sc * cin_p:(t_sc + 1) * cin_p, :].set(wsc_m)
            mats.append(jnp.concatenate([left, right], axis=1))   # (klen, 2*cout_p)
            groups.append((dy, dxs, klen, has_sc))
    kmax = max(g[2] for g in groups)
    wg = jnp.stack([jnp.pad(mm, ((0, kmax - mm.shape[0]), (0, 0))) for mm in mats], 0)
    return wg.astype(mm_dtype), tuple(groups), kmax


def _bn_affine(sum_c, sumsq_c, count, gamma, beta):
    # Training-mode BN folded to per-channel scale/shift (f32, single-sweep statistics).
    mean = sum_c / count
    var = jnp.maximum(sumsq_c / count - mean * mean, 0.0)        # biased variance
    scale = gamma * jax.lax.rsqrt(var + EPS)
    return jnp.stack([scale, beta - mean * scale], axis=0)       # (2, cout_p)


def _vmem_limit(block_bytes):
    try:
        cap = int(pltpu.get_tpu_info().vmem_capacity_bytes)      # 128 MiB v5e/v6e, 64 MiB v7x
    except Exception:                                            # pragma: no cover
        cap = 64 << 20                                           # conservative fallback
    want = 2 * block_bytes + (16 << 20)                          # double-buffer + scratch margin
    return int(min(max(want, 32 << 20), (cap * 3) // 4))


def _cparams(blocks):
    blk = sum(math.prod(s) * jnp.dtype(d).itemsize for s, d in blocks)
    return pltpu.CompilerParams(dimension_semantics=("parallel",),
                                vmem_limit_bytes=_vmem_limit(blk))


def _pick_images_per_step(n, m_rows, per_image_bytes, budget=8 << 20,
                          target_rows=512, max_b=8):
    """Images per grid step: enough to fill the MXU M dim / amortize per-step overhead
    when the spatial extent is small, while keeping the block well under VMEM."""
    best = 1
    for d in range(1, n + 1):
        if n % d:
            continue
        if d > max_b or d * per_image_bytes > budget:
            break
        best = d
        if d * m_rows >= target_rows:
            break
    return best


def resblock_forward(x_nchw, params, stride):
    x = jnp.transpose(x_nchw, (0, 2, 3, 1)).astype(jnp.float32)     # NCHW -> NHWC
    n, h, w, cin = x.shape
    cout = params["w1"].shape[0]
    s = int(stride)
    cin_p, cout_p = _round_up(cin, LANE), _round_up(cout, LANE)
    ho, wo = (h - 1) // s + 1, (w - 1) // s + 1
    m = ho * wo
    cph = s * s * cin_p
    f32 = jnp.float32

    xflat3, hph, wph, s_flat = _phase_stack_flat(x, s, cin_p, MM_DTYPE)
    assert ho + (2 // s) <= hph and wo + (2 // s) <= wph            # tap rows/cols in-bounds
    xflat = xflat3.reshape(n * s_flat, cph)

    wg, groups, kmax = _pack_conv1_groups(params["w1"], params["wsc"],
                                          s, cin_p, cout_p, MM_DTYPE)
    n_groups = len(groups)
    w2m = _w3x3_to_taps(params["w2"], cout_p, cout_p, MM_DTYPE)
    b1r, b2r, bscr = (_row(params[k], cout_p) for k in ("b1", "b2", "bsc"))
    g1v, g2v, gsv = (_vec(params[k], cout_p, 1.0) for k in ("g1", "g2", "gsc"))
    be1v, be2v, besv = (_vec(params[k], cout_p, 0.0) for k in ("be1", "be2", "besc"))

    p2f = _round_up((ho + 2) * (wo + 2) + 2, 8)                      # conv2 scratch rows
    per_img = (s_flat * cph * 2 + 3 * m * cout_p * 2
               + 2 * (ho * wph) * cout_p * 4 + p2f * cout_p * 4)
    b_imgs = _pick_images_per_step(n, ho * wph, per_img)
    # TODO(synk): for large spatial extents (56x56+ with cout_p >= 256) split each image
    # into row bands with a 1-row halo (manual DMA) so the per-step block also fits
    # v7x's 64 MiB VMEM and both of its TensorCores get work.

    # ---- pass 1: conv1 (3x3, stride s) + fused 1x1 shortcut + BN partial sums -------
    k1 = functools.partial(_conv1_kernel, groups=groups, stride=s, b_imgs=b_imgs,
                           s_flat=s_flat, ho=ho, wo=wo, wph=wph,
                           cin_p=cin_p, cout_p=cout_p)
    h1, hs, st1 = pl.pallas_call(
        k1,
        grid=(n // b_imgs,),
        out_shape=(jax.ShapeDtypeStruct((n, m, cout_p), MM_DTYPE),
                   jax.ShapeDtypeStruct((n, m, cout_p), MM_DTYPE),
                   jax.ShapeDtypeStruct((n // b_imgs, 4, cout_p), f32)),
        in_specs=[pl.BlockSpec((b_imgs * s_flat, cph), lambda i: (i, 0)),
                  pl.BlockSpec((n_groups, kmax, 2 * cout_p), lambda i: (0, 0, 0)),
                  pl.BlockSpec((1, cout_p), lambda i: (0, 0)),
                  pl.BlockSpec((1, cout_p), lambda i: (0, 0))],
        out_specs=(pl.BlockSpec((b_imgs, m, cout_p), lambda i: (i, 0, 0)),
                   pl.BlockSpec((b_imgs, m, cout_p), lambda i: (i, 0, 0)),
                   pl.BlockSpec((1, 4, cout_p), lambda i: (i, 0, 0))),
        compiler_params=_cparams([((b_imgs * s_flat, cph), MM_DTYPE),
                                  ((n_groups, kmax, 2 * cout_p), MM_DTYPE),
                                  ((1, cout_p), f32), ((1, cout_p), f32),
                                  ((b_imgs, m, cout_p), MM_DTYPE),
                                  ((b_imgs, m, cout_p), MM_DTYPE),
                                  ((1, 4, cout_p), f32)]),
    )(xflat, wg, b1r, bscr)

    cnt = jnp.float32(n * m)
    aff1 = _bn_affine(jnp.sum(st1[:, 0, :], 0), jnp.sum(st1[:, 1, :], 0), cnt, g1v, be1v)
    affs = _bn_affine(jnp.sum(st1[:, 2, :], 0), jnp.sum(st1[:, 3, :], 0), cnt, gsv, besv)

    # ---- pass 2: BN1 + ReLU (in VMEM) -> conv2 (3x3, stride 1) + BN partial sums ----
    k2 = functools.partial(_conv2_kernel, b_imgs=b_imgs, ho=ho, wo=wo,
                           cout_p=cout_p, mm_dtype=MM_DTYPE)
    h2, st2 = pl.pallas_call(
        k2,
        grid=(n // b_imgs,),
        out_shape=(jax.ShapeDtypeStruct((n, m, cout_p), MM_DTYPE),
                   jax.ShapeDtypeStruct((n // b_imgs, 2, cout_p), f32)),
        in_specs=[pl.BlockSpec((b_imgs, m, cout_p), lambda i: (i, 0, 0)),
                  pl.BlockSpec((2, cout_p), lambda i: (0, 0)),
                  pl.BlockSpec((9, cout_p, cout_p), lambda i: (0, 0, 0)),
                  pl.BlockSpec((1, cout_p), lambda i: (0, 0))],
        out_specs=(pl.BlockSpec((b_imgs, m, cout_p), lambda i: (i, 0, 0)),
                   pl.BlockSpec((1, 2, cout_p), lambda i: (i, 0, 0))),
        scratch_shapes=[pltpu.VMEM((p2f, cout_p), f32)],
        compiler_params=_cparams([((b_imgs, m, cout_p), MM_DTYPE),
                                  ((2, cout_p), f32),
                                  ((9, cout_p, cout_p), MM_DTYPE),
                                  ((1, cout_p), f32),
                                  ((b_imgs, m, cout_p), MM_DTYPE),
                                  ((1, 2, cout_p), f32),
                                  ((p2f, cout_p), f32)]),
    )(h1, aff1, w2m, b2r)

    aff2 = _bn_affine(jnp.sum(st2[:, 0, :], 0), jnp.sum(st2[:, 1, :], 0), cnt, g2v, be2v)

    # ---- pass 3: BN2 + ReLU + shortcut BN + residual add (lane-dense row tiles) -----
    h2f, hsf = h2.reshape(n * m, cout_p), hs.reshape(n * m, cout_p)
    tm = next((t for t in (1024, 512, 256, 128, 64, 32, 16, 8) if (n * m) % t == 0),
              n * m)
    out_flat = pl.pallas_call(
        _finalize_kernel,
        grid=((n * m) // tm,),
        out_shape=jax.ShapeDtypeStruct((n * m, cout_p), f32),
        in_specs=[pl.BlockSpec((tm, cout_p), lambda i: (i, 0)),
                  pl.BlockSpec((tm, cout_p), lambda i: (i, 0)),
                  pl.BlockSpec((2, cout_p), lambda i: (0, 0)),
                  pl.BlockSpec((2, cout_p), lambda i: (0, 0))],
        out_specs=pl.BlockSpec((tm, cout_p), lambda i: (i, 0)),
        compiler_params=_cparams([((tm, cout_p), MM_DTYPE)] * 2
                                 + [((tm, cout_p), f32)]
                                 + [((2, cout_p), f32)] * 2),
    )(h2f, hsf, aff2, affs)

    # TODO(synk): if the downstream block consumes NHWC (or tolerates bf16), emit that
    # layout/dtype directly from pass 3 and skip this pad-strip + transpose round trip.
    out = out_flat.reshape(n, ho, wo, cout_p)[..., :cout]
    return jnp.transpose(out, (0, 3, 1, 2))                         # NHWC -> NCHW


# ---------------------------- pure-JAX f32 reference ----------------------------
def _ref_forward(x_nchw, params, stride):
    x = jnp.transpose(x_nchw, (0, 2, 3, 1)).astype(jnp.float32)

    def conv(x, w, b, s, pad):
        wh = jnp.transpose(w, (2, 3, 1, 0))
        y = jax.lax.conv_general_dilated(x, wh, (s, s), [(pad, pad), (pad, pad)],
                                         dimension_numbers=("NHWC", "HWIO", "NHWC"))
        return y + b.reshape(1, 1, 1, -1)

    def bn(y, g, be):
        mu = jnp.mean(y, axis=(0, 1, 2), keepdims=True)
        v = jnp.mean((y - mu) ** 2, axis=(0, 1, 2), keepdims=True)
        return (y - mu) * jax.lax.rsqrt(v + EPS) * g.reshape(1, 1, 1, -1) \
            + be.reshape(1, 1, 1, -1)

    h = jnp.maximum(bn(conv(x, params["w1"], params["b1"], stride, 1),
                       params["g1"], params["be1"]), 0.0)
    h = jnp.maximum(bn(conv(h, params["w2"], params["b2"], 1, 1),
                       params["g2"], params["be2"]), 0.0)
    sc = bn(conv(x, params["wsc"], params["bsc"], stride, 0),
            params["gsc"], params["besc"])
    return jnp.transpose(h + sc, (0, 3, 1, 2))


# ------------------------------------- main -------------------------------------
if __name__ == "__main__":
    N, Cin, Cout, H, W, stride = 2, 4, 8, 16, 16, 2
    key = jax.random.PRNGKey(0)
    ks = jax.random.split(key, 13)

    params = {
        "w1":  0.1 * jax.random.normal(ks[0], (Cout, Cin, 3, 3), jnp.float32),
        "b1":  0.1 * jax.random.normal(ks[1], (Cout,), jnp.float32),
        "g1":  1.0 + 0.1 * jax.random.normal(ks[2], (Cout,), jnp.float32),
        "be1": 0.1 * jax.random.normal(ks[3], (Cout,), jnp.float32),
        "w2":  0.1 * jax.random.normal(ks[4], (Cout, Cout, 3, 3), jnp.float32),
        "b2":  0.1 * jax.random.normal(ks[5], (Cout,), jnp.float32),
        "g2":  1.0 + 0.1 * jax.random.normal(ks[6], (Cout,), jnp.float32),
        "be2": 0.1 * jax.random.normal(ks[7], (Cout,), jnp.float32),
        "wsc": 0.1 * jax.random.normal(ks[8], (Cout, Cin, 1, 1), jnp.float32),
        "bsc": 0.1 * jax.random.normal(ks[9], (Cout,), jnp.float32),
        "gsc": 1.0 + 0.1 * jax.random.normal(ks[10], (Cout,), jnp.float32),
        "besc": 0.1 * jax.random.normal(ks[11], (Cout,), jnp.float32),
    }
    # TODO(synk): BatchNorm running_mean/running_var buffer updates (a training-time
    # side effect) are not reproduced; they do not affect the train-mode forward output.

    x = jax.random.normal(ks[12], (N, Cin, H, W), jnp.float32)

    fwd = jax.jit(functools.partial(resblock_forward, stride=stride))
    out = jax.block_until_ready(fwd(x, params))
    ref = jax.block_until_ready(_ref_forward(x, params, stride))

    assert out.shape == (N, Cout, H // stride, W // stride), out.shape
    # bf16 MXU operands + bf16 h1/hs/h2 HBM streams (f32 accumulation/stats) vs. the
    # pure-f32 reference: errors on the O(1) BN-normalized outputs stay well below 5e-2;
    # set MM_DTYPE=jnp.float32 to recover <2e-3.
    tol = 5e-2 if MM_DTYPE == jnp.bfloat16 else 2e-3
    assert jnp.allclose(out, ref, rtol=tol, atol=tol), float(jnp.max(jnp.abs(out - ref)))
    print("KERNEL_OK")
</pallas_src>

<mosaic_0001>
module attributes {stable_mosaic.version = 11 : i64} {
  func.func @_conv1_kernel(%arg0: i32, %arg1: memref<176x512xbf16, #tpu.memory_space<vmem>>, %arg2: memref<6x256x256xbf16, #tpu.memory_space<vmem>>, %arg3: memref<1x128xf32, #tpu.memory_space<vmem>>, %arg4: memref<1x128xf32, #tpu.memory_space<vmem>>, %arg5: memref<2x64x128xbf16, #tpu.memory_space<vmem>>, %arg6: memref<2x64x128xbf16, #tpu.memory_space<vmem>>, %arg7: memref<1x4x128xf32, #tpu.memory_space<vmem>>) attributes {dimension_semantics = [#tpu.dimension_semantics<parallel>], iteration_bounds = array<i64: 1>, scalar_prefetch = 0 : i64, scratch_operands = 0 : i64, tpu.core_type = #tpu.core_type<tc>, window_params = [{transform_indices = @transform_0, window_bounds = array<i64: 176, 512>}, {pipeline_mode = #tpu.pipeline_mode<synchronous>, transform_indices = @transform_1, window_bounds = array<i64: 6, 256, 256>}, {pipeline_mode = #tpu.pipeline_mode<synchronous>, transform_indices = @transform_2, window_bounds = array<i64: 1, 128>}, {pipeline_mode = #tpu.pipeline_mode<synchronous>, transform_indices = @transform_3, window_bounds = array<i64: 1, 128>}, {transform_indices = @transform_4, window_bounds = array<i64: 2, 64, 128>}, {transform_indices = @transform_5, window_bounds = array<i64: 2, 64, 128>}, {transform_indices = @transform_6, window_bounds = array<i64: 1, 4, 128>}]} {
    %cst = arith.constant 0.000000e+00 : f32
    %0 = vector.broadcast %cst : f32 to vector<1x128xf32>
    %cst_0 = arith.constant 0.000000e+00 : f32
    %1 = vector.broadcast %cst_0 : f32 to vector<1x128xf32>
    %cst_1 = arith.constant 0.000000e+00 : f32
    %2 = vector.broadcast %cst_1 : f32 to vector<1x128xf32>
    %cst_2 = arith.constant 0.000000e+00 : f32
    %3 = vector.broadcast %cst_2 : f32 to vector<1x128xf32>
    %cst_3 = arith.constant 0.000000e+00 : f32
    %4 = vector.broadcast %cst_3 : f32 to vector<72x128xf32>
    %c0 = arith.constant 0 : index
    %c0_4 = arith.constant 0 : index
    %5 = vector.load %arg1[%c0, %c0_4] : memref<176x512xbf16, #tpu.memory_space<vmem>>, vector<72x256xbf16>
    %c0_5 = arith.constant 0 : index
    %c0_6 = arith.constant 0 : index
    %c0_7 = arith.constant 0 : index
    %6 = vector.load %arg2[%c0_5, %c0_6, %c0_7] : memref<6x256x256xbf16, #tpu.memory_space<vmem>>, vector<1x256x128xbf16>
    %7 = vector.shape_cast %6 : vector<1x256x128xbf16> to vector<256x128xbf16>
    %cst_8 = arith.constant dense<0.000000e+00> : vector<72x128xf32>
    %8 = tpu.matmul %5, %7, %cst_8 {dimension_numbers = #tpu.dot_dimension_numbers<[1], [0], [0], [1], [0, 0, 1, 1], [], []>} : vector<72x256xbf16>, vector<256x128xbf16>, vector<72x128xf32> -> vector<72x128xf32>
    %9 = arith.addf %4, %8 : vector<72x128xf32>
    %c1 = arith.constant 1 : index
    %c0_9 = arith.constant 0 : index
    %10 = vector.load %arg1[%c1, %c0_9] : memref<176x512xbf16, #tpu.memory_space<vmem>>, vector<72x128xbf16>
    %c1_10 = arith.constant 1 : index
    %c0_11 = arith.constant 0 : index
    %c0_12 = arith.constant 0 : index
    %11 = vector.load %arg2[%c1_10, %c0_11, %c0_12] : memref<6x256x256xbf16, #tpu.memory_space<vmem>>, vector<1x128x128xbf16>
    %12 = vector.shape_cast %11 : vector<1x128x128xbf16> to vector<128x128xbf16>
    %cst_13 = arith.constant dense<0.000000e+00> : vector<72x128xf32>
    %13 = tpu.matmul %10, %12, %cst_13 {dimension_numbers = #tpu.dot_dimension_numbers<[1], [0], [0], [1], [0, 0, 1, 1], [], []>} : vector<72x128xbf16>, vector<128x128xbf16>, vector<72x128xf32> -> vector<72x128xf32>
    %14 = arith.addf %9, %13 : vector<72x128xf32>
    %c0_14 = arith.constant 0 : index
    %c256 = arith.constant 256 : index
    %15 = vector.load %arg1[%c0_14, %c256] : memref<176x512xbf16, #tpu.memory_space<vmem>>, vector<72x256xbf16>
    %c2 = arith.constant 2 : index
    %c0_15 = arith.constant 0 : index
    %c0_16 = arith.constant 0 : index
    %16 = vector.load %arg2[%c2, %c0_15, %c0_16] : memref<6x256x256xbf16, #tpu.memory_space<vmem>>, vector<1x256x256xbf16>
    %17 = vector.shape_cast %16 : vector<1x256x256xbf16> to vector<256x256xbf16>
    %cst_17 = arith.constant dense<0.000000e+00> : vector<72x256xf32>
    %18 = tpu.matmul %15, %17, %cst_17 {dimension_numbers = #tpu.dot_dimension_numbers<[1], [0], [0], [1], [0, 0, 1, 1], [], []>} : vector<72x256xbf16>, vector<256x256xbf16>, vector<72x256xf32> -> vector<72x256xf32>
    %19 = vector.extract_strided_slice %18 {offsets = [0, 0], sizes = [72, 128], strides = [1, 1]} : vector<72x256xf32> to vector<72x128xf32>
    %20 = arith.addf %14, %19 : vector<72x128xf32>
    %21 = vector.extract_strided_slice %18 {offsets = [0, 128], sizes = [72, 128], strides = [1, 1]} : vector<72x256xf32> to vector<72x128xf32>
    %c1_18 = arith.constant 1 : index
    %c256_19 = arith.constant 256 : index
    %22 = vector.load %arg1[%c1_18, %c256_19] : memref<176x512xbf16, #tpu.memory_space<vmem>>, vector<72x128xbf16>
    %c3 = arith.constant 3 : index
    %c0_20 = arith.constant 0 : index
    %c0_21 = arith.constant 0 : index
    %23 = vector.load %arg2[%c3, %c0_20, %c0_21] : memref<6x256x256xbf16, #tpu.memory_space<vmem>>, vector<1x128x128xbf16>
    %24 = vector.shape_cast %23 : vector<1x128x128xbf16> to vector<128x128xbf16>
    %cst_22 = arith.constant dense<0.000000e+00> : vector<72x128xf32>
    %25 = tpu.matmul %22, %24, %cst_22 {dimension_numbers = #tpu.dot_dimension_numbers<[1], [0], [0], [1], [0, 0, 1, 1], [], []>} : vector<72x128xbf16>, vector<128x128xbf16>, vector<72x128xf32> -> vector<72x128xf32>
    %26 = arith.addf %20, %25 : vector<72x128xf32>
    %c9 = arith.constant 9 : index
    %c0_23 = arith.constant 0 : index
    %27 = vector.load %arg1[%c9, %c0_23] : memref<176x512xbf16, #tpu.memory_space<vmem>>, vector<72x256xbf16>
    %c4 = arith.constant 4 : index
    %c0_24 = arith.constant 0 : index
    %c0_25 = arith.constant 0 : index
    %28 = vector.load %arg2[%c4, %c0_24, %c0_25] : memref<6x256x256xbf16, #tpu.memory_space<vmem>>, vector<1x256x128xbf16>
    %29 = vector.shape_cast %28 : vector<1x256x128xbf16> to vector<256x128xbf16>
    %cst_26 = arith.constant dense<0.000000e+00> : vector<72x128xf32>
    %30 = tpu.matmul %27, %29, %cst_26 {dimension_numbers = #tpu.dot_dimension_numbers<[1], [0], [0], [1], [0, 0, 1, 1], [], []>} : vector<72x256xbf16>, vector<256x128xbf16>, vector<72x128xf32> -> vector<72x128xf32>
    %31 = arith.addf %26, %30 : vector<72x128xf32>
    %c10 = arith.constant 10 : index
    %c0_27 = arith.constant 0 : index
    %32 = vector.load %arg1[%c10, %c0_27] : memref<176x512xbf16, #tpu.memory_space<vmem>>, vector<72x128xbf16>
    %c5 = arith.constant 5 : index
    %c0_28 = arith.constant 0 : index
    %c0_29 = arith.constant 0 : index
    %33 = vector.load %arg2[%c5, %c0_28, %c0_29] : memref<6x256x256xbf16, #tpu.memory_space<vmem>>, vector<1x128x128xbf16>
    %34 = vector.shape_cast %33 : vector<1x128x128xbf16> to vector<128x128xbf16>
    %cst_30 = arith.constant dense<0.000000e+00> : vector<72x128xf32>
    %35 = tpu.matmul %32, %34, %cst_30 {dimension_numbers = #tpu.dot_dimension_numbers<[1], [0], [0], [1], [0, 0, 1, 1], [], []>} : vector<72x128xbf16>, vector<128x128xbf16>, vector<72x128xf32> -> vector<72x128xf32>
    %36 = arith.addf %31, %35 : vector<72x128xf32>
    %37 = vector.shape_cast %36 : vector<72x128xf32> to vector<8x9x128xf32>
    %38 = vector.extract_strided_slice %37 {offsets = [0, 0, 0], sizes = [8, 8, 128], strides = [1, 1, 1]} : vector<8x9x128xf32> to vector<8x8x128xf32>
    %39 = vector.shape_cast %38 : vector<8x8x128xf32> to vector<64x128xf32>
    %c0_31 = arith.constant 0 : index
    %c0_32 = arith.constant 0 : index
    %40 = vector.load %arg3[%c0_31, %c0_32] : memref<1x128xf32, #tpu.memory_space<vmem>>, vector<1x128xf32>
    %41 = vector.broadcast %40 : vector<1x128xf32> to vector<64x128xf32>
    %42 = arith.addf %39, %41 : vector<64x128xf32>
    %43 = vector.shape_cast %21 : vector<72x128xf32> to vector<8x9x128xf32>
    %44 = vector.extract_strided_slice %43 {offsets = [0, 0, 0], sizes = [8, 8, 128], strides = [1, 1, 1]} : vector<8x9x128xf32> to vector<8x8x128xf32>
    %45 = vector.shape_cast %44 : vector<8x8x128xf32> to vector<64x128xf32>
    %c0_33 = arith.constant 0 : index
    %c0_34 = arith.constant 0 : index
    %46 = vector.load %arg4[%c0_33, %c0_34] : memref<1x128xf32, #tpu.memory_space<vmem>>, vector<1x128xf32>
    %47 = vector.broadcast %46 : vector<1x128xf32> to vector<64x128xf32>
    %48 = arith.addf %45, %47 : vector<64x128xf32>
    %49 = arith.truncf %42 : vector<64x128xf32> to vector<64x128xbf16>
    %c0_35 = arith.constant 0 : index
    %c0_36 = arith.constant 0 : index
    %c0_37 = arith.constant 0 : index
    %50 = vector.load %arg5[%c0_35, %c0_36, %c0_37] : memref<2x64x128xbf16, #tpu.memory_space<vmem>>, vector<1x64x128xbf16>
    %51 = vector.shape_cast %50 : vector<1x64x128xbf16> to vector<64x128xbf16>
    %52 = vector.shape_cast %49 : vector<64x128xbf16> to vector<1x64x128xbf16>
    tpu.vector_store %arg5[%c0_35, %c0_36, %c0_37], %52 {strides = array<i32>} : memref<2x64x128xbf16, #tpu.memory_space<vmem>>, vector<1x64x128xbf16>,
    %53 = arith.truncf %48 : vector<64x128xf32> to vector<64x128xbf16>
    %c0_38 = arith.constant 0 : index
    %c0_39 = arith.constant 0 : index
    %c0_40 = arith.constant 0 : index
    %54 = vector.load %arg6[%c0_38, %c0_39, %c0_40] : memref<2x64x128xbf16, #tpu.memory_space<vmem>>, vector<1x64x128xbf16>
    %55 = vector.shape_cast %54 : vector<1x64x128xbf16> to vector<64x128xbf16>
    %56 = vector.shape_cast %53 : vector<64x128xbf16> to vector<1x64x128xbf16>
    tpu.vector_store %arg6[%c0_38, %c0_39, %c0_40], %56 {strides = array<i32>} : memref<2x64x128xbf16, #tpu.memory_space<vmem>>, vector<1x64x128xbf16>,
    %cst_41 = arith.constant dense<0.000000e+00> : vector<128xf32>
    %57 = vector.multi_reduction <add>, %42, %cst_41 [0] : vector<64x128xf32> to vector<128xf32>
    %58 = vector.shape_cast %57 : vector<128xf32> to vector<1x128xf32>
    %59 = arith.addf %0, %58 : vector<1x128xf32>
    %60 = arith.mulf %42, %42 : vector<64x128xf32>
    %cst_42 = arith.constant dense<0.000000e+00> : vector<128xf32>
    %61 = vector.multi_reduction <add>, %60, %cst_42 [0] : vector<64x128xf32> to vector<128xf32>
    %62 = vector.shape_cast %61 : vector<128xf32> to vector<1x128xf32>
    %63 = arith.addf %1, %62 : vector<1x128xf32>
    %cst_43 = arith.constant dense<0.000000e+00> : vector<128xf32>
    %64 = vector.multi_reduction <add>, %48, %cst_43 [0] : vector<64x128xf32> to vector<128xf32>
    %65 = vector.shape_cast %64 : vector<128xf32> to vector<1x128xf32>
    %66 = arith.addf %2, %65 : vector<1x128xf32>
    %67 = arith.mulf %48, %48 : vector<64x128xf32>
    %cst_44 = arith.constant dense<0.000000e+00> : vector<128xf32>
    %68 = vector.multi_reduction <add>, %67, %cst_44 [0] : vector<64x128xf32> to vector<128xf32>
    %69 = vector.shape_cast %68 : vector<128xf32> to vector<1x128xf32>
    %70 = arith.addf %3, %69 : vector<1x128xf32>
    %cst_45 = arith.constant 0.000000e+00 : f32
    %71 = vector.broadcast %cst_45 : f32 to vector<72x128xf32>
    %c88 = arith.constant 88 : index
    %c0_46 = arith.constant 0 : index
    %72 = vector.load %arg1[%c88, %c0_46] : memref<176x512xbf16, #tpu.memory_space<vmem>>, vector<72x256xbf16>
    %c0_47 = arith.constant 0 : index
    %c0_48 = arith.constant 0 : index
    %c0_49 = arith.constant 0 : index
    %73 = vector.load %arg2[%c0_47, %c0_48, %c0_49] : memref<6x256x256xbf16, #tpu.memory_space<vmem>>, vector<1x256x128xbf16>
    %74 = vector.shape_cast %73 : vector<1x256x128xbf16> to vector<256x128xbf16>
    %cst_50 = arith.constant dense<0.000000e+00> : vector<72x128xf32>
    %75 = tpu.matmul %72, %74, %cst_50 {dimension_numbers = #tpu.dot_dimension_numbers<[1], [0], [0], [1], [0, 0, 1, 1], [], []>} : vector<72x256xbf16>, vector<256x128xbf16>, vector<72x128xf32> -> vector<72x128xf32>
    %76 = arith.addf %71, %75 : vector<72x128xf32>
    %c89 = arith.constant 89 : index
    %c0_51 = arith.constant 0 : index
    %77 = vector.load %arg1[%c89, %c0_51] : memref<176x512xbf16, #tpu.memory_space<vmem>>, vector<72x128xbf16>
    %c1_52 = arith.constant 1 : index
    %c0_53 = arith.constant 0 : index
    %c0_54 = arith.constant 0 : index
    %78 = vector.load %arg2[%c1_52, %c0_53, %c0_54] : memref<6x256x256xbf16, #tpu.memory_space<vmem>>, vector<1x128x128xbf16>
    %79 = vector.shape_cast %78 : vector<1x128x128xbf16> to vector<128x128xbf16>
    %cst_55 = arith.constant dense<0.000000e+00> : vector<72x128xf32>
    %80 = tpu.matmul %77, %79, %cst_55 {dimension_numbers = #tpu.dot_dimension_numbers<[1], [0], [0], [1], [0, 0, 1, 1], [], []>} : vector<72x128xbf16>, vector<128x128xbf16>, vector<72x128xf32> -> vector<72x128xf32>
    %81 = arith.addf %76, %80 : vector<72x128xf32>
    %c88_56 = arith.constant 88 : index
    %c256_57 = arith.constant 256 : index
    %82 = vector.load %arg1[%c88_56, %c256_57] : memref<176x512xbf16, #tpu.memory_space<vmem>>, vector<72x256xbf16>
    %c2_58 = arith.constant 2 : index
    %c0_59 = arith.constant 0 : index
    %c0_60 = arith.constant 0 : index
    %83 = vector.load %arg2[%c2_58, %c0_59, %c0_60] : memref<6x256x256xbf16, #tpu.memory_space<vmem>>, vector<1x256x256xbf16>
    %84 = vector.shape_cast %83 : vector<1x256x256xbf16> to vector<256x256xbf16>
    %cst_61 = arith.constant dense<0.000000e+00> : vector<72x256xf32>
    %85 = tpu.matmul %82, %84, %cst_61 {dimension_numbers = #tpu.dot_dimension_numbers<[1], [0], [0], [1], [0, 0, 1, 1], [], []>} : vector<72x256xbf16>, vector<256x256xbf16>, vector<72x256xf32> -> vector<72x256xf32>
    %86 = vector.extract_strided_slice %85 {offsets = [0, 0], sizes = [72, 128], strides = [1, 1]} : vector<72x256xf32> to vector<72x128xf32>
    %87 = arith.addf %81, %86 : vector<72x128xf32>
    %88 = vector.extract_strided_slice %85 {offsets = [0, 128], sizes = [72, 128], strides = [1, 1]} : vector<72x256xf32> to vector<72x128xf32>
    %c89_62 = arith.constant 89 : index
    %c256_63 = arith.constant 256 : index
    %89 = vector.load %arg1[%c89_62, %c256_63] : memref<176x512xbf16, #tpu.memory_space<vmem>>, vector<72x128xbf16>
    %c3_64 = arith.constant 3 : index
    %c0_65 = arith.constant 0 : index
    %c0_66 = arith.constant 0 : index
    %90 = vector.load %arg2[%c3_64, %c0_65, %c0_66] : memref<6x256x256xbf16, #tpu.memory_space<vmem>>, vector<1x128x128xbf16>
    %91 = vector.shape_cast %90 : vector<1x128x128xbf16> to vector<128x128xbf16>
    %cst_67 = arith.constant dense<0.000000e+00> : vector<72x128xf32>
    %92 = tpu.matmul %89, %91, %cst_67 {dimension_numbers = #tpu.dot_dimension_numbers<[1], [0], [0], [1], [0, 0, 1, 1], [], []>} : vector<72x128xbf16>, vector<128x128xbf16>, vector<72x128xf32> -> vector<72x128xf32>
    %93 = arith.addf %87, %92 : vector<72x128xf32>
    %c97 = arith.constant 97 : index
    %c0_68 = arith.constant 0 : index
    %94 = vector.load %arg1[%c97, %c0_68] : memref<176x512xbf16, #tpu.memory_space<vmem>>, vector<72x256xbf16>
    %c4_69 = arith.constant 4 : index
    %c0_70 = arith.constant 0 : index
    %c0_71 = arith.constant 0 : index
    %95 = vector.load %arg2[%c4_69, %c0_70, %c0_71] : memref<6x256x256xbf16, #tpu.memory_space<vmem>>, vector<1x256x128xbf16>
    %96 = vector.shape_cast %95 : vector<1x256x128xbf16> to vector<256x128xbf16>
    %cst_72 = arith.constant dense<0.000000e+00> : vector<72x128xf32>
    %97 = tpu.matmul %94, %96, %cst_72 {dimension_numbers = #tpu.dot_dimension_numbers<[1], [0], [0], [1], [0, 0, 1, 1], [], []>} : vector<72x256xbf16>, vector<256x128xbf16>, vector<72x128xf32> -> vector<72x128xf32>
    %98 = arith.addf %93, %97 : vector<72x128xf32>
    %c98 = arith.constant 98 : index
    %c0_73 = arith.constant 0 : index
    %99 = vector.load %arg1[%c98, %c0_73] : memref<176x512xbf16, #tpu.memory_space<vmem>>, vector<72x128xbf16>
    %c5_74 = arith.constant 5 : index
    %c0_75 = arith.constant 0 : index
    %c0_76 = arith.constant 0 : index
    %100 = vector.load %arg2[%c5_74, %c0_75, %c0_76] : memref<6x256x256xbf16, #tpu.memory_space<vmem>>, vector<1x128x128xbf16>
    %101 = vector.shape_cast %100 : vector<1x128x128xbf16> to vector<128x128xbf16>
    %cst_77 = arith.constant dense<0.000000e+00> : vector<72x128xf32>
    %102 = tpu.matmul %99, %101, %cst_77 {dimension_numbers = #tpu.dot_dimension_numbers<[1], [0], [0], [1], [0, 0, 1, 1], [], []>} : vector<72x128xbf16>, vector<128x128xbf16>, vector<72x128xf32> -> vector<72x128xf32>
    %103 = arith.addf %98, %102 : vector<72x128xf32>
    %104 = vector.shape_cast %103 : vector<72x128xf32> to vector<8x9x128xf32>
    %105 = vector.extract_strided_slice %104 {offsets = [0, 0, 0], sizes = [8, 8, 128], strides = [1, 1, 1]} : vector<8x9x128xf32> to vector<8x8x128xf32>
    %106 = vector.shape_cast %105 : vector<8x8x128xf32> to vector<64x128xf32>
    %c0_78 = arith.constant 0 : index
    %c0_79 = arith.constant 0 : index
    %107 = vector.load %arg3[%c0_78, %c0_79] : memref<1x128xf32, #tpu.memory_space<vmem>>, vector<1x128xf32>
    %108 = vector.broadcast %107 : vector<1x128xf32> to vector<64x128xf32>
    %109 = arith.addf %106, %108 : vector<64x128xf32>
    %110 = vector.shape_cast %88 : vector<72x128xf32> to vector<8x9x128xf32>
    %111 = vector.extract_strided_slice %110 {offsets = [0, 0, 0], sizes = [8, 8, 128], strides = [1, 1, 1]} : vector<8x9x128xf32> to vector<8x8x128xf32>
    %112 = vector.shape_cast %111 : vector<8x8x128xf32> to vector<64x128xf32>
    %c0_80 = arith.constant 0 : index
    %c0_81 = arith.constant 0 : index
    %113 = vector.load %arg4[%c0_80, %c0_81] : memref<1x128xf32, #tpu.memory_space<vmem>>, vector<1x128xf32>
    %114 = vector.broadcast %113 : vector<1x128xf32> to vector<64x128xf32>
    %115 = arith.addf %112, %114 : vector<64x128xf32>
    %116 = arith.truncf %109 : vector<64x128xf32> to vector<64x128xbf16>
    %c1_82 = arith.constant 1 : index
    %c0_83 = arith.constant 0 : index
    %c0_84 = arith.constant 0 : index
    %117 = vector.load %arg5[%c1_82, %c0_83, %c0_84] : memref<2x64x128xbf16, #tpu.memory_space<vmem>>, vector<1x64x128xbf16>
    %118 = vector.shape_cast %117 : vector<1x64x128xbf16> to vector<64x128xbf16>
    %119 = vector.shape_cast %116 : vector<64x128xbf16> to vector<1x64x128xbf16>
    tpu.vector_store %arg5[%c1_82, %c0_83, %c0_84], %119 {strides = array<i32>} : memref<2x64x128xbf16, #tpu.memory_space<vmem>>, vector<1x64x128xbf16>,
    %120 = arith.truncf %115 : vector<64x128xf32> to vector<64x128xbf16>
    %c1_85 = arith.constant 1 : index
    %c0_86 = arith.constant 0 : index
    %c0_87 = arith.constant 0 : index
    %121 = vector.load %arg6[%c1_85, %c0_86, %c0_87] : memref<2x64x128xbf16, #tpu.memory_space<vmem>>, vector<1x64x128xbf16>
    %122 = vector.shape_cast %121 : vector<1x64x128xbf16> to vector<64x128xbf16>
    %123 = vector.shape_cast %120 : vector<64x128xbf16> to vector<1x64x128xbf16>
    tpu.vector_store %arg6[%c1_85, %c0_86, %c0_87], %123 {strides = array<i32>} : memref<2x64x128xbf16, #tpu.memory_space<vmem>>, vector<1x64x128xbf16>,
    %cst_88 = arith.constant dense<0.000000e+00> : vector<128xf32>
    %124 = vector.multi_reduction <add>, %109, %cst_88 [0] : vector<64x128xf32> to vector<128xf32>
    %125 = vector.shape_cast %124 : vector<128xf32> to vector<1x128xf32>
    %126 = arith.addf %59, %125 : vector<1x128xf32>
    %127 = arith.mulf %109, %109 : vector<64x128xf32>
    %cst_89 = arith.constant dense<0.000000e+00> : vector<128xf32>
    %128 = vector.multi_reduction <add>, %127, %cst_89 [0] : vector<64x128xf32> to vector<128xf32>
    %129 = vector.shape_cast %128 : vector<128xf32> to vector<1x128xf32>
    %130 = arith.addf %63, %129 : vector<1x128xf32>
    %cst_90 = arith.constant dense<0.000000e+00> : vector<128xf32>
    %131 = vector.multi_reduction <add>, %115, %cst_90 [0] : vector<64x128xf32> to vector<128xf32>
    %132 = vector.shape_cast %131 : vector<128xf32> to vector<1x128xf32>
    %133 = arith.addf %66, %132 : vector<1x128xf32>
    %134 = arith.mulf %115, %115 : vector<64x128xf32>
    %cst_91 = arith.constant dense<0.000000e+00> : vector<128xf32>
    %135 = vector.multi_reduction <add>, %134, %cst_91 [0] : vector<64x128xf32> to vector<128xf32>
    %136 = vector.shape_cast %135 : vector<128xf32> to vector<1x128xf32>
    %137 = arith.addf %70, %136 : vector<1x128xf32>
    %138 = tpu.concatenate %126, %130, %133, %137 in 0 : vector<1x128xf32>, vector<1x128xf32>, vector<1x128xf32>, vector<1x128xf32> -> vector<4x128xf32>
    %c0_92 = arith.constant 0 : index
    %c0_93 = arith.constant 0 : index
    %c0_94 = arith.constant 0 : index
    %139 = vector.load %arg7[%c0_92, %c0_93, %c0_94] : memref<1x4x128xf32, #tpu.memory_space<vmem>>, vector<1x4x128xf32>
    %140 = vector.shape_cast %139 : vector<1x4x128xf32> to vector<4x128xf32>
    %141 = vector.shape_cast %138 : vector<4x128xf32> to vector<1x4x128xf32>
    tpu.vector_store %arg7[%c0_92, %c0_93, %c0_94], %141 {strides = array<i32>} : memref<1x4x128xf32, #tpu.memory_space<vmem>>, vector<1x4x128xf32>,
    return
  }
  func.func @transform_0(%arg0: i32) -> (i32, i32) {
    %c0_i32 = arith.constant 0 : i32
    %c0_i32_0 = arith.constant 0 : i32
    return %arg0, %c0_i32 : i32, i32
  }
  func.func @transform_1(%arg0: i32) -> (i32, i32, i32) {
    %c0_i32 = arith.constant 0 : i32
    %c0_i32_0 = arith.constant 0 : i32
    %c0_i32_1 = arith.constant 0 : i32
    %c0_i32_2 = arith.constant 0 : i32
    return %c0_i32, %c0_i32_0, %c0_i32_1 : i32, i32, i32
  }
  func.func @transform_2(%arg0: i32) -> (i32, i32) {
    %c0_i32 = arith.constant 0 : i32
    %c0_i32_0 = arith.constant 0 : i32
    %c0_i32_1 = arith.constant 0 : i32
    return %c0_i32, %c0_i32_0 : i32, i32
  }
  func.func @transform_3(%arg0: i32) -> (i32, i32) {
    %c0_i32 = arith.constant 0 : i32
    %c0_i32_0 = arith.constant 0 : i32
    %c0_i32_1 = arith.constant 0 : i32
    return %c0_i32, %c0_i32_0 : i32, i32
  }
  func.func @transform_4(%arg0: i32) -> (i32, i32, i32) {
    %c0_i32 = arith.constant 0 : i32
    %c0_i32_0 = arith.constant 0 : i32
    %c0_i32_1 = arith.constant 0 : i32
    return %arg0, %c0_i32, %c0_i32_0 : i32, i32, i32
  }
  func.func @transform_5(%arg0: i32) -> (i32, i32, i32) {
    %c0_i32 = arith.constant 0 : i32
    %c0_i32_0 = arith.constant 0 : i32
    %c0_i32_1 = arith.constant 0 : i32
    return %arg0, %c0_i32, %c0_i32_0 : i32, i32, i32
  }
  func.func @transform_6(%arg0: i32) -> (i32, i32, i32) {
    %c0_i32 = arith.constant 0 : i32
    %c0_i32_0 = arith.constant 0 : i32
    %c0_i32_1 = arith.constant 0 : i32
    return %arg0, %c0_i32, %c0_i32_0 : i32, i32, i32
  }
}

module attributes {stable_mosaic.version = 11 : i64} {
  func.func @_finalize_kernel(%arg0: i32, %arg1: memref<128x128xbf16, #tpu.memory_space<vmem>>, %arg2: memref<128x128xbf16, #tpu.memory_space<vmem>>, %arg3: memref<2x128xf32, #tpu.memory_space<vmem>>, %arg4: memref<2x128xf32, #tpu.memory_space<vmem>>, %arg5: memref<128x128xf32, #tpu.memory_space<vmem>>) attributes {dimension_semantics = [#tpu.dimension_semantics<parallel>], iteration_bounds = array<i64: 1>, scalar_prefetch = 0 : i64, scratch_operands = 0 : i64, tpu.core_type = #tpu.core_type<tc>, window_params = [{transform_indices = @transform_0, window_bounds = array<i64: 128, 128>}, {transform_indices = @transform_1, window_bounds = array<i64: 128, 128>}, {pipeline_mode = #tpu.pipeline_mode<synchronous>, transform_indices = @transform_2, window_bounds = array<i64: 2, 128>}, {pipeline_mode = #tpu.pipeline_mode<synchronous>, transform_indices = @transform_3, window_bounds = array<i64: 2, 128>}, {transform_indices = @transform_4, window_bounds = array<i64: 128, 128>}]} {
    %c0 = arith.constant 0 : index
    %c0_0 = arith.constant 0 : index
    %0 = vector.load %arg1[%c0, %c0_0] : memref<128x128xbf16, #tpu.memory_space<vmem>>, vector<128x128xbf16>
    %1 = arith.extf %0 : vector<128x128xbf16> to vector<128x128xf32>
    %c0_1 = arith.constant 0 : index
    %c0_2 = arith.constant 0 : index
    %2 = vector.load %arg3[%c0_1, %c0_2] : memref<2x128xf32, #tpu.memory_space<vmem>>, vector<1x128xf32>
    %3 = vector.broadcast %2 : vector<1x128xf32> to vector<128x128xf32>
    %4 = arith.mulf %1, %3 : vector<128x128xf32>
    %c1 = arith.constant 1 : index
    %c0_3 = arith.constant 0 : index
    %5 = vector.load %arg3[%c1, %c0_3] : memref<2x128xf32, #tpu.memory_space<vmem>>, vector<1x128xf32>
    %6 = vector.broadcast %5 : vector<1x128xf32> to vector<128x128xf32>
    %7 = arith.addf %4, %6 : vector<128x128xf32>
    %cst = arith.constant 0.000000e+00 : f32
    %8 = vector.broadcast %cst : f32 to vector<128x128xf32>
    %9 = arith.maximumf %7, %8 : vector<128x128xf32>
    %c0_4 = arith.constant 0 : index
    %c0_5 = arith.constant 0 : index
    %10 = vector.load %arg2[%c0_4, %c0_5] : memref<128x128xbf16, #tpu.memory_space<vmem>>, vector<128x128xbf16>
    %11 = arith.extf %10 : vector<128x128xbf16> to vector<128x128xf32>
    %c0_6 = arith.constant 0 : index
    %c0_7 = arith.constant 0 : index
    %12 = vector.load %arg4[%c0_6, %c0_7] : memref<2x128xf32, #tpu.memory_space<vmem>>, vector<1x128xf32>
    %13 = vector.broadcast %12 : vector<1x128xf32> to vector<128x128xf32>
    %14 = arith.mulf %11, %13 : vector<128x128xf32>
    %c1_8 = arith.constant 1 : index
    %c0_9 = arith.constant 0 : index
    %15 = vector.load %arg4[%c1_8, %c0_9] : memref<2x128xf32, #tpu.memory_space<vmem>>, vector<1x128xf32>
    %16 = vector.broadcast %15 : vector<1x128xf32> to vector<128x128xf32>
    %17 = arith.addf %14, %16 : vector<128x128xf32>
    %18 = arith.addf %9, %17 : vector<128x128xf32>
    %c0_10 = arith.constant 0 : index
    %c0_11 = arith.constant 0 : index
    %19 = vector.load %arg5[%c0_10, %c0_11] : memref<128x128xf32, #tpu.memory_space<vmem>>, vector<128x128xf32>
    tpu.vector_store %arg5[%c0_10, %c0_11], %18 {strides = array<i32>} : memref<128x128xf32, #tpu.memory_space<vmem>>, vector<128x128xf32>,
    return
  }
  func.func @transform_0(%arg0: i32) -> (i32, i32) {
    %c0_i32 = arith.constant 0 : i32
    %c0_i32_0 = arith.constant 0 : i32
    return %arg0, %c0_i32 : i32, i32
  }
  func.func @transform_1(%arg0: i32) -> (i32, i32) {
    %c0_i32 = arith.constant 0 : i32
    %c0_i32_0 = arith.constant 0 : i32
    return %arg0, %c0_i32 : i32, i32
  }
  func.func @transform_2(%arg0: i32) -> (i32, i32) {
    %c0_i32 = arith.constant 0 : i32
    %c0_i32_0 = arith.constant 0 : i32
    %c0_i32_1 = arith.constant 0 : i32
    return %c0_i32, %c0_i32_0 : i32, i32
  }
  func.func @transform_3(%arg0: i32) -> (i32, i32) {
    %c0_i32 = arith.constant 0 : i32
    %c0_i32_0 = arith.constant 0 : i32
    %c0_i32_1 = arith.constant 0 : i32
    return %c0_i32, %c0_i32_0 : i32, i32
  }
  func.func @transform_4(%arg0: i32) -> (i32, i32) {
    %c0_i32 = arith.constant 0 : i32
    %c0_i32_0 = arith.constant 0 : i32
    return %arg0, %c0_i32 : i32, i32
  }
}

module attributes {stable_mosaic.version = 11 : i64} {
  func.func @_conv2_kernel(%arg0: i32, %arg1: memref<2x64x128xbf16, #tpu.memory_space<vmem>>, %arg2: memref<2x128xf32, #tpu.memory_space<vmem>>, %arg3: memref<9x128x128xbf16, #tpu.memory_space<vmem>>, %arg4: memref<1x128xf32, #tpu.memory_space<vmem>>, %arg5: memref<2x64x128xbf16, #tpu.memory_space<vmem>>, %arg6: memref<1x2x128xf32, #tpu.memory_space<vmem>>, %arg7: memref<104x128xf32, #tpu.memory_space<vmem>>) attributes {dimension_semantics = [#tpu.dimension_semantics<parallel>], iteration_bounds = array<i64: 1>, scalar_prefetch = 0 : i64, scratch_operands = 1 : i64, tpu.core_type = #tpu.core_type<tc>, window_params = [{transform_indices = @transform_0, window_bounds = array<i64: 2, 64, 128>}, {pipeline_mode = #tpu.pipeline_mode<synchronous>, transform_indices = @transform_1, window_bounds = array<i64: 2, 128>}, {pipeline_mode = #tpu.pipeline_mode<synchronous>, transform_indices = @transform_2, window_bounds = array<i64: 9, 128, 128>}, {pipeline_mode = #tpu.pipeline_mode<synchronous>, transform_indices = @transform_3, window_bounds = array<i64: 1, 128>}, {transform_indices = @transform_4, window_bounds = array<i64: 2, 64, 128>}, {transform_indices = @transform_5, window_bounds = array<i64: 1, 2, 128>}]} {
    %cst = arith.constant 0.000000e+00 : f32
    %0 = vector.broadcast %cst : f32 to vector<11x128xf32>
    %c0 = arith.constant 0 : index
    %c0_0 = arith.constant 0 : index
    %1 = vector.load %arg7[%c0, %c0_0] : memref<104x128xf32, #tpu.memory_space<vmem>>, vector<11x128xf32>
    tpu.vector_store %arg7[%c0, %c0_0], %0 {strides = array<i32>} : memref<104x128xf32, #tpu.memory_space<vmem>>, vector<11x128xf32>,
    %cst_1 = arith.constant 0.000000e+00 : f32
    %2 = vector.broadcast %cst_1 : f32 to vector<13x128xf32>
    %c91 = arith.constant 91 : index
    %c0_2 = arith.constant 0 : index
    %3 = vector.load %arg7[%c91, %c0_2] : memref<104x128xf32, #tpu.memory_space<vmem>>, vector<13x128xf32>
    tpu.vector_store %arg7[%c91, %c0_2], %2 {strides = array<i32>} : memref<104x128xf32, #tpu.memory_space<vmem>>, vector<13x128xf32>,
    %c0_3 = arith.constant 0 : index
    %c0_4 = arith.constant 0 : index
    %4 = vector.load %arg2[%c0_3, %c0_4] : memref<2x128xf32, #tpu.memory_space<vmem>>, vector<1x128xf32>
    %c1 = arith.constant 1 : index
    %c0_5 = arith.constant 0 : index
    %5 = vector.load %arg2[%c1, %c0_5] : memref<2x128xf32, #tpu.memory_space<vmem>>, vector<1x128xf32>
    %cst_6 = arith.constant 0.000000e+00 : f32
    %6 = vector.broadcast %cst_6 : f32 to vector<1x128xf32>
    %cst_7 = arith.constant 0.000000e+00 : f32
    %7 = vector.broadcast %cst_7 : f32 to vector<1x128xf32>
    %c0_8 = arith.constant 0 : index
    %c0_9 = arith.constant 0 : index
    %c0_10 = arith.constant 0 : index
    %8 = vector.load %arg1[%c0_8, %c0_9, %c0_10] : memref<2x64x128xbf16, #tpu.memory_space<vmem>>, vector<1x64x128xbf16>
    %9 = vector.shape_cast %8 : vector<1x64x128xbf16> to vector<64x128xbf16>
    %10 = arith.extf %9 : vector<64x128xbf16> to vector<64x128xf32>
    %11 = vector.broadcast %4 : vector<1x128xf32> to vector<64x128xf32>
    %12 = arith.mulf %10, %11 : vector<64x128xf32>
    %13 = vector.broadcast %5 : vector<1x128xf32> to vector<64x128xf32>
    %14 = arith.addf %12, %13 : vector<64x128xf32>
    %cst_11 = arith.constant 0.000000e+00 : f32
    %15 = vector.broadcast %cst_11 : f32 to vector<64x128xf32>
    %16 = arith.maximumf %14, %15 : vector<64x128xf32>
    %17 = vector.shape_cast %16 : vector<64x128xf32> to vector<8x8x128xf32>
    %c0_i32 = arith.constant 0 : i32
    %18 = arith.sitofp %c0_i32 : i32 to f32
    %19 = vector.broadcast %18 : f32 to vector<8x2x128xf32>
    %20 = tpu.concatenate %17, %19 in 1 : vector<8x8x128xf32>, vector<8x2x128xf32> -> vector<8x10x128xf32>
    %21 = vector.shape_cast %20 : vector<8x10x128xf32> to vector<80x128xf32>
    %c11 = arith.constant 11 : index
    %c0_12 = arith.constant 0 : index
    %22 = vector.load %arg7[%c11, %c0_12] : memref<104x128xf32, #tpu.memory_space<vmem>>, vector<80x128xf32>
    tpu.vector_store %arg7[%c11, %c0_12], %21 {strides = array<i32>} : memref<104x128xf32, #tpu.memory_space<vmem>>, vector<80x128xf32>,
    %cst_13 = arith.constant 0.000000e+00 : f32
    %23 = vector.broadcast %cst_13 : f32 to vector<80x128xf32>
    %c0_14 = arith.constant 0 : index
    %c0_15 = arith.constant 0 : index
    %24 = vector.load %arg7[%c0_14, %c0_15] : memref<104x128xf32, #tpu.memory_space<vmem>>, vector<80x128xf32>
    %25 = arith.truncf %24 : vector<80x128xf32> to vector<80x128xbf16>
    %c0_16 = arith.constant 0 : index
    %c0_17 = arith.constant 0 : index
    %c0_18 = arith.constant 0 : index
    %26 = vector.load %arg3[%c0_16, %c0_17, %c0_18] : memref<9x128x128xbf16, #tpu.memory_space<vmem>>, vector<1x128x128xbf16>
    %27 = vector.shape_cast %26 : vector<1x128x128xbf16> to vector<128x128xbf16>
    %cst_19 = arith.constant dense<0.000000e+00> : vector<80x128xf32>
    %28 = tpu.matmul %25, %27, %cst_19 {dimension_numbers = #tpu.dot_dimension_numbers<[1], [0], [0], [1], [0, 0, 1, 1], [], []>} : vector<80x128xbf16>, vector<128x128xbf16>, vector<80x128xf32> -> vector<80x128xf32>
    %29 = arith.addf %23, %28 : vector<80x128xf32>
    %c1_20 = arith.constant 1 : index
    %c0_21 = arith.constant 0 : index
    %30 = vector.load %arg7[%c1_20, %c0_21] : memref<104x128xf32, #tpu.memory_space<vmem>>, vector<80x128xf32>
    %31 = arith.truncf %30 : vector<80x128xf32> to vector<80x128xbf16>
    %c1_22 = arith.constant 1 : index
    %c0_23 = arith.constant 0 : index
    %c0_24 = arith.constant 0 : index
    %32 = vector.load %arg3[%c1_22, %c0_23, %c0_24] : memref<9x128x128xbf16, #tpu.memory_space<vmem>>, vector<1x128x128xbf16>
    %33 = vector.shape_cast %32 : vector<1x128x128xbf16> to vector<128x128xbf16>
    %cst_25 = arith.constant dense<0.000000e+00> : vector<80x128xf32>
    %34 = tpu.matmul %31, %33, %cst_25 {dimension_numbers = #tpu.dot_dimension_numbers<[1], [0], [0], [1], [0, 0, 1, 1], [], []>} : vector<80x128xbf16>, vector<128x128xbf16>, vector<80x128xf32> -> vector<80x128xf32>
    %35 = arith.addf %29, %34 : vector<80x128xf32>
    %c2 = arith.constant 2 : index
    %c0_26 = arith.constant 0 : index
    %36 = vector.load %arg7[%c2, %c0_26] : memref<104x128xf32, #tpu.memory_space<vmem>>, vector<80x128xf32>
    %37 = arith.truncf %36 : vector<80x128xf32> to vector<80x128xbf16>
    %c2_27 = arith.constant 2 : index
    %c0_28 = arith.constant 0 : index
    %c0_29 = arith.constant 0 : index
    %38 = vector.load %arg3[%c2_27, %c0_28, %c0_29] : memref<9x128x128xbf16, #tpu.memory_space<vmem>>, vector<1x128x128xbf16>
    %39 = vector.shape_cast %38 : vector<1x128x128xbf16> to vector<128x128xbf16>
    %cst_30 = arith.constant dense<0.000000e+00> : vector<80x128xf32>
    %40 = tpu.matmul %37, %39, %cst_30 {dimension_numbers = #tpu.dot_dimension_numbers<[1], [0], [0], [1], [0, 0, 1, 1], [], []>} : vector<80x128xbf16>, vector<128x128xbf16>, vector<80x128xf32> -> vector<80x128xf32>
    %41 = arith.addf %35, %40 : vector<80x128xf32>
    %c10 = arith.constant 10 : index
    %c0_31 = arith.constant 0 : index
    %42 = vector.load %arg7[%c10, %c0_31] : memref<104x128xf32, #tpu.memory_space<vmem>>, vector<80x128xf32>
    %43 = arith.truncf %42 : vector<80x128xf32> to vector<80x128xbf16>
    %c3 = arith.constant 3 : index
    %c0_32 = arith.constant 0 : index
    %c0_33 = arith.constant 0 : index
    %44 = vector.load %arg3[%c3, %c0_32, %c0_33] : memref<9x128x128xbf16, #tpu.memory_space<vmem>>, vector<1x128x128xbf16>
    %45 = vector.shape_cast %44 : vector<1x128x128xbf16> to vector<128x128xbf16>
    %cst_34 = arith.constant dense<0.000000e+00> : vector<80x128xf32>
    %46 = tpu.matmul %43, %45, %cst_34 {dimension_numbers = #tpu.dot_dimension_numbers<[1], [0], [0], [1], [0, 0, 1, 1], [], []>} : vector<80x128xbf16>, vector<128x128xbf16>, vector<80x128xf32> -> vector<80x128xf32>
    %47 = arith.addf %41, %46 : vector<80x128xf32>
    %c11_35 = arith.constant 11 : index
    %c0_36 = arith.constant 0 : index
    %48 = vector.load %arg7[%c11_35, %c0_36] : memref<104x128xf32, #tpu.memory_space<vmem>>, vector<80x128xf32>
    %49 = arith.truncf %48 : vector<80x128xf32> to vector<80x128xbf16>
    %c4 = arith.constant 4 : index
    %c0_37 = arith.constant 0 : index
    %c0_38 = arith.constant 0 : index
    %50 = vector.load %arg3[%c4, %c0_37, %c0_38] : memref<9x128x128xbf16, #tpu.memory_space<vmem>>, vector<1x128x128xbf16>
    %51 = vector.shape_cast %50 : vector<1x128x128xbf16> to vector<128x128xbf16>
    %cst_39 = arith.constant dense<0.000000e+00> : vector<80x128xf32>
    %52 = tpu.matmul %49, %51, %cst_39 {dimension_numbers = #tpu.dot_dimension_numbers<[1], [0], [0], [1], [0, 0, 1, 1], [], []>} : vector<80x128xbf16>, vector<128x128xbf16>, vector<80x128xf32> -> vector<80x128xf32>
    %53 = arith.addf %47, %52 : vector<80x128xf32>
    %c12 = arith.constant 12 : index
    %c0_40 = arith.constant 0 : index
    %54 = vector.load %arg7[%c12, %c0_40] : memref<104x128xf32, #tpu.memory_space<vmem>>, vector<80x128xf32>
    %55 = arith.truncf %54 : vector<80x128xf32> to vector<80x128xbf16>
    %c5 = arith.constant 5 : index
    %c0_41 = arith.constant 0 : index
    %c0_42 = arith.constant 0 : index
    %56 = vector.load %arg3[%c5, %c0_41, %c0_42] : memref<9x128x128xbf16, #tpu.memory_space<vmem>>, vector<1x128x128xbf16>
    %57 = vector.shape_cast %56 : vector<1x128x128xbf16> to vector<128x128xbf16>
    %cst_43 = arith.constant dense<0.000000e+00> : vector<80x128xf32>
    %58 = tpu.matmul %55, %57, %cst_43 {dimension_numbers = #tpu.dot_dimension_numbers<[1], [0], [0], [1], [0, 0, 1, 1], [], []>} : vector<80x128xbf16>, vector<128x128xbf16>, vector<80x128xf32> -> vector<80x128xf32>
    %59 = arith.addf %53, %58 : vector<80x128xf32>
    %c20 = arith.constant 20 : index
    %c0_44 = arith.constant 0 : index
    %60 = vector.load %arg7[%c20, %c0_44] : memref<104x128xf32, #tpu.memory_space<vmem>>, vector<80x128xf32>
    %61 = arith.truncf %60 : vector<80x128xf32> to vector<80x128xbf16>
    %c6 = arith.constant 6 : index
    %c0_45 = arith.constant 0 : index
    %c0_46 = arith.constant 0 : index
    %62 = vector.load %arg3[%c6, %c0_45, %c0_46] : memref<9x128x128xbf16, #tpu.memory_space<vmem>>, vector<1x128x128xbf16>
    %63 = vector.shape_cast %62 : vector<1x128x128xbf16> to vector<128x128xbf16>
    %cst_47 = arith.constant dense<0.000000e+00> : vector<80x128xf32>
    %64 = tpu.matmul %61, %63, %cst_47 {dimension_numbers = #tpu.dot_dimension_numbers<[1], [0], [0], [1], [0, 0, 1, 1], [], []>} : vector<80x128xbf16>, vector<128x128xbf16>, vector<80x128xf32> -> vector<80x128xf32>
    %65 = arith.addf %59, %64 : vector<80x128xf32>
    %c21 = arith.constant 21 : index
    %c0_48 = arith.constant 0 : index
    %66 = vector.load %arg7[%c21, %c0_48] : memref<104x128xf32, #tpu.memory_space<vmem>>, vector<80x128xf32>
    %67 = arith.truncf %66 : vector<80x128xf32> to vector<80x128xbf16>
    %c7 = arith.constant 7 : index
    %c0_49 = arith.constant 0 : index
    %c0_50 = arith.constant 0 : index
    %68 = vector.load %arg3[%c7, %c0_49, %c0_50] : memref<9x128x128xbf16, #tpu.memory_space<vmem>>, vector<1x128x128xbf16>
    %69 = vector.shape_cast %68 : vector<1x128x128xbf16> to vector<128x128xbf16>
    %cst_51 = arith.constant dense<0.000000e+00> : vector<80x128xf32>
    %70 = tpu.matmul %67, %69, %cst_51 {dimension_numbers = #tpu.dot_dimension_numbers<[1], [0], [0], [1], [0, 0, 1, 1], [], []>} : vector<80x128xbf16>, vector<128x128xbf16>, vector<80x128xf32> -> vector<80x128xf32>
    %71 = arith.addf %65, %70 : vector<80x128xf32>
    %c22 = arith.constant 22 : index
    %c0_52 = arith.constant 0 : index
    %72 = vector.load %arg7[%c22, %c0_52] : memref<104x128xf32, #tpu.memory_space<vmem>>, vector<80x128xf32>
    %73 = arith.truncf %72 : vector<80x128xf32> to vector<80x128xbf16>
    %c8 = arith.constant 8 : index
    %c0_53 = arith.constant 0 : index
    %c0_54 = arith.constant 0 : index
    %74 = vector.load %arg3[%c8, %c0_53, %c0_54] : memref<9x128x128xbf16, #tpu.memory_space<vmem>>, vector<1x128x128xbf16>
    %75 = vector.shape_cast %74 : vector<1x128x128xbf16> to vector<128x128xbf16>
    %cst_55 = arith.constant dense<0.000000e+00> : vector<80x128xf32>
    %76 = tpu.matmul %73, %75, %cst_55 {dimension_numbers = #tpu.dot_dimension_numbers<[1], [0], [0], [1], [0, 0, 1, 1], [], []>} : vector<80x128xbf16>, vector<128x128xbf16>, vector<80x128xf32> -> vector<80x128xf32>
    %77 = arith.addf %71, %76 : vector<80x128xf32>
    %78 = vector.shape_cast %77 : vector<80x128xf32> to vector<8x10x128xf32>
    %79 = vector.extract_strided_slice %78 {offsets = [0, 0, 0], sizes = [8, 8, 128], strides = [1, 1, 1]} : vector<8x10x128xf32> to vector<8x8x128xf32>
    %80 = vector.shape_cast %79 : vector<8x8x128xf32> to vector<64x128xf32>
    %c0_56 = arith.constant 0 : index
    %c0_57 = arith.constant 0 : index
    %81 = vector.load %arg4[%c0_56, %c0_57] : memref<1x128xf32, #tpu.memory_space<vmem>>, vector<1x128xf32>
    %82 = vector.broadcast %81 : vector<1x128xf32> to vector<64x128xf32>
    %83 = arith.addf %80, %82 : vector<64x128xf32>
    %84 = arith.truncf %83 : vector<64x128xf32> to vector<64x128xbf16>
    %c0_58 = arith.constant 0 : index
    %c0_59 = arith.constant 0 : index
    %c0_60 = arith.constant 0 : index
    %85 = vector.load %arg5[%c0_58, %c0_59, %c0_60] : memref<2x64x128xbf16, #tpu.memory_space<vmem>>, vector<1x64x128xbf16>
    %86 = vector.shape_cast %85 : vector<1x64x128xbf16> to vector<64x128xbf16>
    %87 = vector.shape_cast %84 : vector<64x128xbf16> to vector<1x64x128xbf16>
    tpu.vector_store %arg5[%c0_58, %c0_59, %c0_60], %87 {strides = array<i32>} : memref<2x64x128xbf16, #tpu.memory_space<vmem>>, vector<1x64x128xbf16>,
    %cst_61 = arith.constant dense<0.000000e+00> : vector<128xf32>
    %88 = vector.multi_reduction <add>, %83, %cst_61 [0] : vector<64x128xf32> to vector<128xf32>
    %89 = vector.shape_cast %88 : vector<128xf32> to vector<1x128xf32>
    %90 = arith.addf %6, %89 : vector<1x128xf32>
    %91 = arith.mulf %83, %83 : vector<64x128xf32>
    %cst_62 = arith.constant dense<0.000000e+00> : vector<128xf32>
    %92 = vector.multi_reduction <add>, %91, %cst_62 [0] : vector<64x128xf32> to vector<128xf32>
    %93 = vector.shape_cast %92 : vector<128xf32> to vector<1x128xf32>
    %94 = arith.addf %7, %93 : vector<1x128xf32>
    %c1_63 = arith.constant 1 : index
    %c0_64 = arith.constant 0 : index
    %c0_65 = arith.constant 0 : index
    %95 = vector.load %arg1[%c1_63, %c0_64, %c0_65] : memref<2x64x128xbf16, #tpu.memory_space<vmem>>, vector<1x64x128xbf16>
    %96 = vector.shape_cast %95 : vector<1x64x128xbf16> to vector<64x128xbf16>
    %97 = arith.extf %96 : vector<64x128xbf16> to vector<64x128xf32>
    %98 = vector.broadcast %4 : vector<1x128xf32> to vector<64x128xf32>
    %99 = arith.mulf %97, %98 : vector<64x128xf32>
    %100 = vector.broadcast %5 : vector<1x128xf32> to vector<64x128xf32>
    %101 = arith.addf %99, %100 : vector<64x128xf32>
    %cst_66 = arith.constant 0.000000e+00 : f32
    %102 = vector.broadcast %cst_66 : f32 to vector<64x128xf32>
    %103 = arith.maximumf %101, %102 : vector<64x128xf32>
    %104 = vector.shape_cast %103 : vector<64x128xf32> to vector<8x8x128xf32>
    %c0_i32_67 = arith.constant 0 : i32
    %105 = arith.sitofp %c0_i32_67 : i32 to f32
    %106 = vector.broadcast %105 : f32 to vector<8x2x128xf32>
    %107 = tpu.concatenate %104, %106 in 1 : vector<8x8x128xf32>, vector<8x2x128xf32> -> vector<8x10x128xf32>
    %108 = vector.shape_cast %107 : vector<8x10x128xf32> to vector<80x128xf32>
    %c11_68 = arith.constant 11 : index
    %c0_69 = arith.constant 0 : index
    %109 = vector.load %arg7[%c11_68, %c0_69] : memref<104x128xf32, #tpu.memory_space<vmem>>, vector<80x128xf32>
    tpu.vector_store %arg7[%c11_68, %c0_69], %108 {strides = array<i32>} : memref<104x128xf32, #tpu.memory_space<vmem>>, vector<80x128xf32>,
    %cst_70 = arith.constant 0.000000e+00 : f32
    %110 = vector.broadcast %cst_70 : f32 to vector<80x128xf32>
    %c0_71 = arith.constant 0 : index
    %c0_72 = arith.constant 0 : index
    %111 = vector.load %arg7[%c0_71, %c0_72] : memref<104x128xf32, #tpu.memory_space<vmem>>, vector<80x128xf32>
    %112 = arith.truncf %111 : vector<80x128xf32> to vector<80x128xbf16>
    %c0_73 = arith.constant 0 : index
    %c0_74 = arith.constant 0 : index
    %c0_75 = arith.constant 0 : index
    %113 = vector.load %arg3[%c0_73, %c0_74, %c0_75] : memref<9x128x128xbf16, #tpu.memory_space<vmem>>, vector<1x128x128xbf16>
    %114 = vector.shape_cast %113 : vector<1x128x128xbf16> to vector<128x128xbf16>
    %cst_76 = arith.constant dense<0.000000e+00> : vector<80x128xf32>
    %115 = tpu.matmul %112, %114, %cst_76 {dimension_numbers = #tpu.dot_dimension_numbers<[1], [0], [0], [1], [0, 0, 1, 1], [], []>} : vector<80x128xbf16>, vector<128x128xbf16>, vector<80x128xf32> -> vector<80x128xf32>
    %116 = arith.addf %110, %115 : vector<80x128xf32>
    %c1_77 = arith.constant 1 : index
    %c0_78 = arith.constant 0 : index
    %117 = vector.load %arg7[%c1_77, %c0_78] : memref<104x128xf32, #tpu.memory_space<vmem>>, vector<80x128xf32>
    %118 = arith.truncf %117 : vector<80x128xf32> to vector<80x128xbf16>
    %c1_79 = arith.constant 1 : index
    %c0_80 = arith.constant 0 : index
    %c0_81 = arith.constant 0 : index
    %119 = vector.load %arg3[%c1_79, %c0_80, %c0_81] : memref<9x128x128xbf16, #tpu.memory_space<vmem>>, vector<1x128x128xbf16>
    %120 = vector.shape_cast %119 : vector<1x128x128xbf16> to vector<128x128xbf16>
    %cst_82 = arith.constant dense<0.000000e+00> : vector<80x128xf32>
    %121 = tpu.matmul %118, %120, %cst_82 {dimension_numbers = #tpu.dot_dimension_numbers<[1], [0], [0], [1], [0, 0, 1, 1], [], []>} : vector<80x128xbf16>, vector<128x128xbf16>, vector<80x128xf32> -> vector<80x128xf32>
    %122 = arith.addf %116, %121 : vector<80x128xf32>
    %c2_83 = arith.constant 2 : index
    %c0_84 = arith.constant 0 : index
    %123 = vector.load %arg7[%c2_83, %c0_84] : memref<104x128xf32, #tpu.memory_space<vmem>>, vector<80x128xf32>
    %124 = arith.truncf %123 : vector<80x128xf32> to vector<80x128xbf16>
    %c2_85 = arith.constant 2 : index
    %c0_86 = arith.constant 0 : index
    %c0_87 = arith.constant 0 : index
    %125 = vector.load %arg3[%c2_85, %c0_86, %c0_87] : memref<9x128x128xbf16, #tpu.memory_space<vmem>>, vector<1x128x128xbf16>
    %126 = vector.shape_cast %125 : vector<1x128x128xbf16> to vector<128x128xbf16>
    %cst_88 = arith.constant dense<0.000000e+00> : vector<80x128xf32>
    %127 = tpu.matmul %124, %126, %cst_88 {dimension_numbers = #tpu.dot_dimension_numbers<[1], [0], [0], [1], [0, 0, 1, 1], [], []>} : vector<80x128xbf16>, vector<128x128xbf16>, vector<80x128xf32> -> vector<80x128xf32>
    %128 = arith.addf %122, %127 : vector<80x128xf32>
    %c10_89 = arith.constant 10 : index
    %c0_90 = arith.constant 0 : index
    %129 = vector.load %arg7[%c10_89, %c0_90] : memref<104x128xf32, #tpu.memory_space<vmem>>, vector<80x128xf32>
    %130 = arith.truncf %129 : vector<80x128xf32> to vector<80x128xbf16>
    %c3_91 = arith.constant 3 : index
    %c0_92 = arith.constant 0 : index
    %c0_93 = arith.constant 0 : index
    %131 = vector.load %arg3[%c3_91, %c0_92, %c0_93] : memref<9x128x128xbf16, #tpu.memory_space<vmem>>, vector<1x128x128xbf16>
    %132 = vector.shape_cast %131 : vector<1x128x128xbf16> to vector<128x128xbf16>
    %cst_94 = arith.constant dense<0.000000e+00> : vector<80x128xf32>
    %133 = tpu.matmul %130, %132, %cst_94 {dimension_numbers = #tpu.dot_dimension_numbers<[1], [0], [0], [1], [0, 0, 1, 1], [], []>} : vector<80x128xbf16>, vector<128x128xbf16>, vector<80x128xf32> -> vector<80x128xf32>
    %134 = arith.addf %128, %133 : vector<80x128xf32>
    %c11_95 = arith.constant 11 : index
    %c0_96 = arith.constant 0 : index
    %135 = vector.load %arg7[%c11_95, %c0_96] : memref<104x128xf32, #tpu.memory_space<vmem>>, vector<80x128xf32>
    %136 = arith.truncf %135 : vector<80x128xf32> to vector<80x128xbf16>
    %c4_97 = arith.constant 4 : index
    %c0_98 = arith.constant 0 : index
    %c0_99 = arith.constant 0 : index
    %137 = vector.load %arg3[%c4_97, %c0_98, %c0_99] : memref<9x128x128xbf16, #tpu.memory_space<vmem>>, vector<1x128x128xbf16>
    %138 = vector.shape_cast %137 : vector<1x128x128xbf16> to vector<128x128xbf16>
    %cst_100 = arith.constant dense<0.000000e+00> : vector<80x128xf32>
    %139 = tpu.matmul %136, %138, %cst_100 {dimension_numbers = #tpu.dot_dimension_numbers<[1], [0], [0], [1], [0, 0, 1, 1], [], []>} : vector<80x128xbf16>, vector<128x128xbf16>, vector<80x128xf32> -> vector<80x128xf32>
    %140 = arith.addf %134, %139 : vector<80x128xf32>
    %c12_101 = arith.constant 12 : index
    %c0_102 = arith.constant 0 : index
    %141 = vector.load %arg7[%c12_101, %c0_102] : memref<104x128xf32, #tpu.memory_space<vmem>>, vector<80x128xf32>
    %142 = arith.truncf %141 : vector<80x128xf32> to vector<80x128xbf16>
    %c5_103 = arith.constant 5 : index
    %c0_104 = arith.constant 0 : index
    %c0_105 = arith.constant 0 : index
    %143 = vector.load %arg3[%c5_103, %c0_104, %c0_105] : memref<9x128x128xbf16, #tpu.memory_space<vmem>>, vector<1x128x128xbf16>
    %144 = vector.shape_cast %143 : vector<1x128x128xbf16> to vector<128x128xbf16>
    %cst_106 = arith.constant dense<0.000000e+00> : vector<80x128xf32>
    %145 = tpu.matmul %142, %144, %cst_106 {dimension_numbers = #tpu.dot_dimension_numbers<[1], [0], [0], [1], [0, 0, 1, 1], [], []>} : vector<80x128xbf16>, vector<128x128xbf16>, vector<80x128xf32> -> vector<80x128xf32>
    %146 = arith.addf %140, %145 : vector<80x128xf32>
    %c20_107 = arith.constant 20 : index
    %c0_108 = arith.constant 0 : index
    %147 = vector.load %arg7[%c20_107, %c0_108] : memref<104x128xf32, #tpu.memory_space<vmem>>, vector<80x128xf32>
    %148 = arith.truncf %147 : vector<80x128xf32> to vector<80x128xbf16>
    %c6_109 = arith.constant 6 : index
    %c0_110 = arith.constant 0 : index
    %c0_111 = arith.constant 0 : index
    %149 = vector.load %arg3[%c6_109, %c0_110, %c0_111] : memref<9x128x128xbf16, #tpu.memory_space<vmem>>, vector<1x128x128xbf16>
    %150 = vector.shape_cast %149 : vector<1x128x128xbf16> to vector<128x128xbf16>
    %cst_112 = arith.constant dense<0.000000e+00> : vector<80x128xf32>
    %151 = tpu.matmul %148, %150, %cst_112 {dimension_numbers = #tpu.dot_dimension_numbers<[1], [0], [0], [1], [0, 0, 1, 1], [], []>} : vector<80x128xbf16>, vector<128x128xbf16>, vector<80x128xf32> -> vector<80x128xf32>
    %152 = arith.addf %146, %151 : vector<80x128xf32>
    %c21_113 = arith.constant 21 : index
    %c0_114 = arith.constant 0 : index
    %153 = vector.load %arg7[%c21_113, %c0_114] : memref<104x128xf32, #tpu.memory_space<vmem>>, vector<80x128xf32>
    %154 = arith.truncf %153 : vector<80x128xf32> to vector<80x128xbf16>
    %c7_115 = arith.constant 7 : index
    %c0_116 = arith.constant 0 : index
    %c0_117 = arith.constant 0 : index
    %155 = vector.load %arg3[%c7_115, %c0_116, %c0_117] : memref<9x128x128xbf16, #tpu.memory_space<vmem>>, vector<1x128x128xbf16>
    %156 = vector.shape_cast %155 : vector<1x128x128xbf16> to vector<128x128xbf16>
    %cst_118 = arith.constant dense<0.000000e+00> : vector<80x128xf32>
    %157 = tpu.matmul %154, %156, %cst_118 {dimension_numbers = #tpu.dot_dimension_numbers<[1], [0], [0], [1], [0, 0, 1, 1], [], []>} : vector<80x128xbf16>, vector<128x128xbf16>, vector<80x128xf32> -> vector<80x128xf32>
    %158 = arith.addf %152, %157 : vector<80x128xf32>
    %c22_119 = arith.constant 22 : index
    %c0_120 = arith.constant 0 : index
    %159 = vector.load %arg7[%c22_119, %c0_120] : memref<104x128xf32, #tpu.memory_space<vmem>>, vector<80x128xf32>
    %160 = arith.truncf %159 : vector<80x128xf32> to vector<80x128xbf16>
    %c8_121 = arith.constant 8 : index
    %c0_122 = arith.constant 0 : index
    %c0_123 = arith.constant 0 : index
    %161 = vector.load %arg3[%c8_121, %c0_122, %c0_123] : memref<9x128x128xbf16, #tpu.memory_space<vmem>>, vector<1x128x128xbf16>
    %162 = vector.shape_cast %161 : vector<1x128x128xbf16> to vector<128x128xbf16>
    %cst_124 = arith.constant dense<0.000000e+00> : vector<80x128xf32>
    %163 = tpu.matmul %160, %162, %cst_124 {dimension_numbers = #tpu.dot_dimension_numbers<[1], [0], [0], [1], [0, 0, 1, 1], [], []>} : vector<80x128xbf16>, vector<128x128xbf16>, vector<80x128xf32> -> vector<80x128xf32>
    %164 = arith.addf %158, %163 : vector<80x128xf32>
    %165 = vector.shape_cast %164 : vector<80x128xf32> to vector<8x10x128xf32>
    %166 = vector.extract_strided_slice %165 {offsets = [0, 0, 0], sizes = [8, 8, 128], strides = [1, 1, 1]} : vector<8x10x128xf32> to vector<8x8x128xf32>
    %167 = vector.shape_cast %166 : vector<8x8x128xf32> to vector<64x128xf32>
    %c0_125 = arith.constant 0 : index
    %c0_126 = arith.constant 0 : index
    %168 = vector.load %arg4[%c0_125, %c0_126] : memref<1x128xf32, #tpu.memory_space<vmem>>, vector<1x128xf32>
    %169 = vector.broadcast %168 : vector<1x128xf32> to vector<64x128xf32>
    %170 = arith.addf %167, %169 : vector<64x128xf32>
    %171 = arith.truncf %170 : vector<64x128xf32> to vector<64x128xbf16>
    %c1_127 = arith.constant 1 : index
    %c0_128 = arith.constant 0 : index
    %c0_129 = arith.constant 0 : index
    %172 = vector.load %arg5[%c1_127, %c0_128, %c0_129] : memref<2x64x128xbf16, #tpu.memory_space<vmem>>, vector<1x64x128xbf16>
    %173 = vector.shape_cast %172 : vector<1x64x128xbf16> to vector<64x128xbf16>
    %174 = vector.shape_cast %171 : vector<64x128xbf16> to vector<1x64x128xbf16>
    tpu.vector_store %arg5[%c1_127, %c0_128, %c0_129], %174 {strides = array<i32>} : memref<2x64x128xbf16, #tpu.memory_space<vmem>>, vector<1x64x128xbf16>,
    %cst_130 = arith.constant dense<0.000000e+00> : vector<128xf32>
    %175 = vector.multi_reduction <add>, %170, %cst_130 [0] : vector<64x128xf32> to vector<128xf32>
    %176 = vector.shape_cast %175 : vector<128xf32> to vector<1x128xf32>
    %177 = arith.addf %90, %176 : vector<1x128xf32>
    %178 = arith.mulf %170, %170 : vector<64x128xf32>
    %cst_131 = arith.constant dense<0.000000e+00> : vector<128xf32>
    %179 = vector.multi_reduction <add>, %178, %cst_131 [0] : vector<64x128xf32> to vector<128xf32>
    %180 = vector.shape_cast %179 : vector<128xf32> to vector<1x128xf32>
    %181 = arith.addf %94, %180 : vector<1x128xf32>
    %182 = tpu.concatenate %177, %181 in 0 : vector<1x128xf32>, vector<1x128xf32> -> vector<2x128xf32>
    %c0_132 = arith.constant 0 : index
    %c0_133 = arith.constant 0 : index
    %c0_134 = arith.constant 0 : index
    %183 = vector.load %arg6[%c0_132, %c0_133, %c0_134] : memref<1x2x128xf32, #tpu.memory_space<vmem>>, vector<1x2x128xf32>
    %184 = vector.shape_cast %183 : vector<1x2x128xf32> to vector<2x128xf32>
    %185 = vector.shape_cast %182 : vector<2x128xf32> to vector<1x2x128xf32>
    tpu.vector_store %arg6[%c0_132, %c0_133, %c0_134], %185 {strides = array<i32>} : memref<1x2x128xf32, #tpu.memory_space<vmem>>, vector<1x2x128xf32>,
    return
  }
  func.func @transform_0(%arg0: i32) -> (i32, i32, i32) {
    %c0_i32 = arith.constant 0 : i32
    %c0_i32_0 = arith.constant 0 : i32
    %c0_i32_1 = arith.constant 0 : i32
    return %arg0, %c0_i32, %c0_i32_0 : i32, i32, i32
  }
  func.func @transform_1(%arg0: i32) -> (i32, i32) {
    %c0_i32 = arith.constant 0 : i32
    %c0_i32_0 = arith.constant 0 : i32
    %c0_i32_1 = arith.constant 0 : i32
    return %c0_i32, %c0_i32_0 : i32, i32
  }
  func.func @transform_2(%arg0: i32) -> (i32, i32, i32) {
    %c0_i32 = arith.constant 0 : i32
    %c0_i32_0 = arith.constant 0 : i32
    %c0_i32_1 = arith.constant 0 : i32
    %c0_i32_2 = arith.constant 0 : i32
    return %c0_i32, %c0_i32_0, %c0_i32_1 : i32, i32, i32
  }
  func.func @transform_3(%arg0: i32) -> (i32, i32) {
    %c0_i32 = arith.constant 0 : i32
    %c0_i32_0 = arith.constant 0 : i32
    %c0_i32_1 = arith.constant 0 : i32
    return %c0_i32, %c0_i32_0 : i32, i32
  }
  func.func @transform_4(%arg0: i32) -> (i32, i32, i32) {
    %c0_i32 = arith.constant 0 : i32
    %c0_i32_0 = arith.constant 0 : i32
    %c0_i32_1 = arith.constant 0 : i32
    return %arg0, %c0_i32, %c0_i32_0 : i32, i32, i32
  }
  func.func @transform_5(%arg0: i32) -> (i32, i32, i32) {
    %c0_i32 = arith.constant 0 : i32
    %c0_i32_0 = arith.constant 0 : i32
    %c0_i32_1 = arith.constant 0 : i32
    return %arg0, %c0_i32, %c0_i32_0 : i32, i32, i32
  }
}

</mosaic_0001>

<bundles_post_ra>
// kernel: resblock_forward.5
= control target key start
LH: loop header
LB: loop body
LE: loop exit
PB: predicated region body
PF: predicated region fallthrough
CT: control target
= control target key end

     0   :  { %s504_s0 = inlined_call_operand.vmem [shape: bf16[128,128], index: 0, kind: input, shape index: {}]   ;;  %s505_s1 = inlined_call_operand.vmem [shape: bf16[128,128], index: 1, kind: input, shape index: {}]   ;;  %s506_s2 = inlined_call_operand.vmem [shape: f32[2,128], index: 2, kind: input, shape index: {}]   ;;  %s507_s3 = inlined_call_operand.vmem [shape: f32[2,128], index: 3, kind: input, shape index: {}]   ;;  %s508_s4 = inlined_call_operand.vmem [shape: f32[128,128], index: 4, kind: output, shape index: {}]  }
   0x1   :  { %v222_v0 = vld [vmem:[%s504_s0] sm:$0xff]   ;;  %v285_v9 = vld [vmem:[%s504_s0 + $0x8] sm:$0xff]   ;;  %v286_v24 = vld [vmem:[%s504_s0 + $0x10] sm:$0xff]  }
   0x2   :  { %v330_v1 = vld [vmem:[%s506_s2] ss:$0 sm:$0xff]  ;;  %v223_v2 = vunpack.c.l.bf16 %v222_v0  ;;  %v224_v5 = vunpack.c.h.bf16 %v222_v0  ;;  %v343_v6 = vld [vmem:[%s506_s2 + $0x1] ss:$0 sm:$0xff]  ;;  %v292_v10 = vld [vmem:[%s505_s1 + $0x8] sm:$0xff]   ;;  %v227_v14 = vunpack.c.l.bf16 %v285_v9  ;;  %v228_v18 = vunpack.c.h.bf16 %v285_v9 }
   0x3   :  { %v254_v3 = vld [vmem:[%s505_s1] sm:$0xff]   ;;  %v259_v15 = vunpack.c.l.bf16 %v292_v10  ;;  %v260_v19 = vunpack.c.h.bf16 %v292_v10  ;;  %v293_v25 = vld [vmem:[%s505_s1 + $0x10] sm:$0xff]   ;;  %v231_v36 = vunpack.c.l.bf16 %v286_v24  ;;  %v287_v38 = vld [vmem:[%s504_s0 + $0x18] sm:$0xff]   ;;  %v232_v43 = vunpack.c.h.bf16 %v286_v24 }
   0x4   :  { %v338_v4 = vld [vmem:[%s507_s3] ss:$0 sm:$0xff]  ;;  %v255_v7 = vunpack.c.l.bf16 %v254_v3  ;;  %v256_v8 = vunpack.c.h.bf16 %v254_v3  ;;  %v54_v11 = vmul.f32 %v223_v2, %v330_v1  ;;  %v355_v12 = vld [vmem:[%s507_s3 + $0x1] ss:$0 sm:$0xff]  ;;  %v55_v13 = vmul.f32 %v224_v5, %v330_v1  ;;  %v294_v39 = vld [vmem:[%s505_s1 + $0x18] sm:$0xff]  }
   0x5   :  { %v56_v22 = vmul.f32 %v227_v14, %v330_v1  ;;  %v146_v23 = vmul.f32 %v259_v15, %v338_v4  ;;  %v57_v28 = vmul.f32 %v228_v18, %v330_v1  ;;  %v147_v29 = vmul.f32 %v260_v19, %v338_v4  ;;  %v288_v52 = vld [vmem:[%s504_s0 + $0x20] sm:$0xff]   ;;  %v289_v14 = vld [vmem:[%s504_s0 + $0x28] sm:$0xff]  }
   0x6   :  { %v144_v16 = vmul.f32 %v255_v7, %v338_v4  ;;  %v145_v17 = vmul.f32 %v256_v8, %v338_v4  ;;  %v75_v20 = vadd.f32 %v343_v6, %v54_v11  ;;  %v76_v21 = vadd.f32 %v343_v6, %v55_v13  ;;  %v295_v61 = vld [vmem:[%s505_s1 + $0x20] sm:$0xff]   ;;  %v296_v19 = vld [vmem:[%s505_s1 + $0x28] sm:$0xff]  }
   0x7   :  { %v77_v32 = vadd.f32 %v343_v6, %v56_v22  ;;  %v167_v33 = vadd.f32 %v355_v12, %v146_v23  ;;  %v78_v34 = vadd.f32 %v343_v6, %v57_v28  ;;  %v168_v35 = vadd.f32 %v355_v12, %v147_v29 }
   0x8   :  { %v165_v26 = vadd.f32 %v355_v12, %v144_v16  ;;  %v166_v27 = vadd.f32 %v355_v12, %v145_v17  ;;  %v91_v30 = vmax.f32 %v75_v20, 0.0  ;;  %v92_v31 = vmax.f32 %v76_v21, 0.0 }
   0x9   :  { %v263_v37 = vunpack.c.l.bf16 %v293_v25  ;;  %v93_v42 = vmax.f32 %v77_v32, 0.0  ;;  %v94_v44 = vmax.f32 %v78_v34, 0.0  ;;  %v58_v45 = vmul.f32 %v231_v36, %v330_v1  ;;  %v290_v32 = vld [vmem:[%s504_s0 + $0x30] sm:$0xff]  }
   0xa   :  { %v181_v40 = vadd.f32 %v165_v26, %v91_v30  ;;  %v182_v41 = vadd.f32 %v166_v27, %v92_v31  ;;  %v264_v47 = vunpack.c.h.bf16 %v293_v25  ;;  %v59_v49 = vmul.f32 %v232_v43, %v330_v1 }
   0xb   :  { %v148_v46 = vmul.f32 %v263_v37, %v338_v4  ;;  %v183_v48 = vadd.f32 %v167_v33, %v93_v42  ;;  %v235_v50 = vunpack.c.l.bf16 %v287_v38  ;;  %v267_v51 = vunpack.c.l.bf16 %v294_v39  ;;  %v297_v37 = vld [vmem:[%s505_s1 + $0x30] sm:$0xff]  }
   0xc   :  { %197 = vst [vmem:[%s508_s4] sm:$0xff] %v181_v40  ;;  %198 = vst [vmem:[%s508_s4 + $0x8] sm:$0xff] %v182_v41  ;;  %v184_v53 = vadd.f32 %v168_v35, %v94_v44  ;;  %v79_v54 = vadd.f32 %v343_v6, %v58_v45  ;;  %v149_v56 = vmul.f32 %v264_v47, %v338_v4  ;;  %v236_v60 = vunpack.c.h.bf16 %v287_v38 }
   0xd   :  { %v169_v55 = vadd.f32 %v355_v12, %v148_v46  ;;  %199 = vst [vmem:[%s508_s4 + $0x10] sm:$0xff] %v183_v48  ;;  %v80_v57 = vadd.f32 %v343_v6, %v59_v49  ;;  %v60_v58 = vmul.f32 %v235_v50, %v330_v1  ;;  %v150_v59 = vmul.f32 %v267_v51, %v338_v4  ;;  %v291_v50 = vld [vmem:[%s504_s0 + $0x38] sm:$0xff]  }
   0xe   :  { %200 = vst [vmem:[%s508_s4 + $0x18] sm:$0xff] %v184_v53  ;;  %v95_v62 = vmax.f32 %v79_v54, 0.0  ;;  %v170_v63 = vadd.f32 %v355_v12, %v149_v56  ;;  %v268_v0 = vunpack.c.h.bf16 %v294_v39  ;;  %v239_v2 = vunpack.c.l.bf16 %v288_v52 }
   0xf   :  { %v96_v3 = vmax.f32 %v80_v57, 0.0  ;;  %v81_v5 = vadd.f32 %v343_v6, %v60_v58  ;;  %v171_v7 = vadd.f32 %v355_v12, %v150_v59  ;;  %v61_v8 = vmul.f32 %v236_v60, %v330_v1 }
  0x10   :  { %v185_v9 = vadd.f32 %v169_v55, %v95_v62  ;;  %v151_v10 = vmul.f32 %v268_v0, %v338_v4  ;;  %v62_v11 = vmul.f32 %v239_v2, %v330_v1  ;;  %v271_v13 = vunpack.c.l.bf16 %v295_v61  ;;  %v298_v55 = vld [vmem:[%s505_s1 + $0x38] sm:$0xff]  }
  0x11   :  { %v186_v15 = vadd.f32 %v170_v63, %v96_v3  ;;  %v97_v16 = vmax.f32 %v81_v5, 0.0  ;;  %v82_v17 = vadd.f32 %v343_v6, %v61_v8  ;;  %v240_v18 = vunpack.c.h.bf16 %v288_v52 }
  0x12   :  { %201 = vst [vmem:[%s508_s4 + $0x20] sm:$0xff] %v185_v9  ;;  %v172_v20 = vadd.f32 %v355_v12, %v151_v10  ;;  %v83_v21 = vadd.f32 %v343_v6, %v62_v11  ;;  %v152_v22 = vmul.f32 %v271_v13, %v338_v4  ;;  %v272_v23 = vunpack.c.h.bf16 %v295_v61 }
  0x13   :  { %202 = vst [vmem:[%s508_s4 + $0x28] sm:$0xff] %v186_v15  ;;  %v187_v24 = vadd.f32 %v171_v7, %v97_v16  ;;  %v98_v25 = vmax.f32 %v82_v17, 0.0  ;;  %v63_v26 = vmul.f32 %v240_v18, %v330_v1  ;;  %v243_v27 = vunpack.c.l.bf16 %v289_v14 }
  0x14   :  { %v99_v28 = vmax.f32 %v83_v21, 0.0  ;;  %v173_v29 = vadd.f32 %v355_v12, %v152_v22  ;;  %v153_v30 = vmul.f32 %v272_v23, %v338_v4  ;;  %v275_v31 = vunpack.c.l.bf16 %v296_v19 }
  0x15   :  { %203 = vst [vmem:[%s508_s4 + $0x30] sm:$0xff] %v187_v24  ;;  %v188_v33 = vadd.f32 %v172_v20, %v98_v25  ;;  %v84_v34 = vadd.f32 %v343_v6, %v63_v26  ;;  %v64_v35 = vmul.f32 %v243_v27, %v330_v1  ;;  %v244_v36 = vunpack.c.h.bf16 %v289_v14 }
  0x16   :  { %v189_v38 = vadd.f32 %v173_v29, %v99_v28  ;;  %v174_v39 = vadd.f32 %v355_v12, %v153_v30  ;;  %v154_v40 = vmul.f32 %v275_v31, %v338_v4  ;;  %v276_v41 = vunpack.c.h.bf16 %v296_v19 }
  0x17   :  { %204 = vst [vmem:[%s508_s4 + $0x38] sm:$0xff] %v188_v33  ;;  %v100_v42 = vmax.f32 %v84_v34, 0.0  ;;  %v85_v43 = vadd.f32 %v343_v6, %v64_v35  ;;  %v65_v44 = vmul.f32 %v244_v36, %v330_v1  ;;  %v247_v45 = vunpack.c.l.bf16 %v290_v32 }
  0x18   :  { %205 = vst [vmem:[%s508_s4 + $0x40] sm:$0xff] %v189_v38  ;;  %v175_v46 = vadd.f32 %v355_v12, %v154_v40  ;;  %v155_v47 = vmul.f32 %v276_v41, %v338_v4  ;;  %v279_v48 = vunpack.c.l.bf16 %v297_v37  ;;  %v248_v49 = vunpack.c.h.bf16 %v290_v32 }
  0x19   :  { %v190_v51 = vadd.f32 %v174_v39, %v100_v42  ;;  %v101_v52 = vmax.f32 %v85_v43, 0.0  ;;  %v86_v53 = vadd.f32 %v343_v6, %v65_v44  ;;  %v66_v54 = vmul.f32 %v247_v45, %v330_v1 }
  0x1a   :  { %v176_v56 = vadd.f32 %v355_v12, %v155_v47  ;;  %v156_v57 = vmul.f32 %v279_v48, %v338_v4  ;;  %v67_v58 = vmul.f32 %v248_v49, %v330_v1  ;;  %v280_v59 = vunpack.c.h.bf16 %v297_v37 }
  0x1b   :  { %206 = vst [vmem:[%s508_s4 + $0x48] sm:$0xff] %v190_v51  ;;  %v191_v60 = vadd.f32 %v175_v46, %v101_v52  ;;  %v102_v61 = vmax.f32 %v86_v53, 0.0  ;;  %v87_v62 = vadd.f32 %v343_v6, %v66_v54  ;;  %v251_v63 = vunpack.c.l.bf16 %v291_v50 }
  0x1c   :  { %v177_v0 = vadd.f32 %v355_v12, %v156_v57  ;;  %v88_v2 = vadd.f32 %v343_v6, %v67_v58  ;;  %v157_v3 = vmul.f32 %v280_v59, %v338_v4  ;;  %v283_v5 = vunpack.c.l.bf16 %v298_v55 }
  0x1d   :  { %207 = vst [vmem:[%s508_s4 + $0x50] sm:$0xff] %v191_v60  ;;  %v192_v7 = vadd.f32 %v176_v56, %v102_v61  ;;  %v103_v8 = vmax.f32 %v87_v62, 0.0  ;;  %v68_v9 = vmul.f32 %v251_v63, %v330_v1  ;;  %v252_v10 = vunpack.c.h.bf16 %v291_v50 }
  0x1e   :  { %v104_v11 = vmax.f32 %v88_v2, 0.0  ;;  %v178_v13 = vadd.f32 %v355_v12, %v157_v3  ;;  %v158_v14 = vmul.f32 %v283_v5, %v338_v4  ;;  %v284_v15 = vunpack.c.h.bf16 %v298_v55 }
  0x1f   :  { %208 = vst [vmem:[%s508_s4 + $0x58] sm:$0xff] %v192_v7  ;;  %v193_v16 = vadd.f32 %v177_v0, %v103_v8  ;;  %v89_v17 = vadd.f32 %v343_v6, %v68_v9  ;;  %v69_v18 = vmul.f32 %v252_v10, %v330_v1 }
  0x20   :  { %v194_v19 = vadd.f32 %v178_v13, %v104_v11  ;;  %v179_v20 = vadd.f32 %v355_v12, %v158_v14  ;;  %v159_v21 = vmul.f32 %v284_v15, %v338_v4 }
  0x21   :  { %209 = vst [vmem:[%s508_s4 + $0x60] sm:$0xff] %v193_v16  ;;  %v105_v22 = vmax.f32 %v89_v17, 0.0  ;;  %v90_v23 = vadd.f32 %v343_v6, %v69_v18 }
  0x22   :  { %210 = vst [vmem:[%s508_s4 + $0x68] sm:$0xff] %v194_v19  ;;  %v180_v24 = vadd.f32 %v355_v12, %v159_v21 }
  0x23   :  { %v195_v25 = vadd.f32 %v179_v20, %v105_v22  ;;  %v106_v1 = vmax.f32 %v90_v23, 0.0 }
  0x25   :  { %211 = vst [vmem:[%s508_s4 + $0x70] sm:$0xff] %v195_v25  ;;  %v196_v4 = vadd.f32 %v180_v24, %v106_v1 }
  0x27   :  { %212 = vst [vmem:[%s508_s4 + $0x78] sm:$0xff] %v196_v4 }

// kernel: resblock_forward.4
= control target key start
LH: loop header
LB: loop body
LE: loop exit
PB: predicated region body
PF: predicated region fallthrough
CT: control target
= control target key end

     0   :  { %v7014_v0 = vmov 0.0   ;;  %vm7015_vm0 = vmmov 0   ;;  %v7016_v9 = vmov 1983009808   ;;  %v87_v11 = vlaneseq  ;;  %s8843_s2 = inlined_call_operand.vmem [shape: bf16[9,128,128], index: 2, kind: input, shape index: {}]   ;;  %s8844_s0 = inlined_call_operand.vmem [shape: bf16[2,64,128], index: 0, kind: input, shape index: {}]   ;;  %s8845_s1 = inlined_call_operand.vmem [shape: f32[2,128], index: 1, kind: input, shape index: {}]   ;;  %s8846_s3 = inlined_call_operand.vmem [shape: f32[1,128], index: 3, kind: input, shape index: {}]   ;;  %s8847_s4 = inlined_call_operand.vmem [shape: bf16[2,64,128], index: 4, kind: output, shape index: {0}]   ;;  %s8848_s5 = inlined_call_operand.vmem [shape: f32[1,2,128], index: 5, kind: output, shape index: {1}]  }
   0x1   :  { %5897 = vmatprep.subr.bf16.mxu0 %v7014_v0  ;;  %20 = vst [vmem:[#allocation2] sm:$0xff] %v7014_v0  ;;  %21 = vst [vmem:[#allocation2 + $0x8] sm:$0x7] %v7014_v0  ;;  %v6868_v1 = vld [vmem:[%s8843_s2 + $0x40] sm:$0xff]   ;;  %6221 = vmatprep.subr.bf16.mxu1 %v7014_v0  ;;  %v6869_v2 = vld [vmem:[%s8843_s2 + $0x48] sm:$0xff]   ;;  %v85_v10 = vunpack.c.l.s4 %v7016_v9  ;;  %vm5114_vm1 = vcmask 1040384  }
   0x2   :  { %22 = vst [vmem:[#allocation2 + $0x5b] sm:$0xff] %v7014_v0  ;;  %23 = vst [vmem:[#allocation2 + $0x63] sm:$0x1f] %v7014_v0  ;;  %5913 = vmatprep.mubr.msk.bf16.mxu0 %vm7015_vm0, %v7014_v0  ;;  %6237 = vmatprep.mubr.msk.bf16.mxu1 %vm7015_vm0, %v7014_v0  ;;  %v6870_v3 = vld [vmem:[%s8843_s2 + $0x40] sm:$0xff]   ;;  %v6872_v4 = vld [vmem:[%s8843_s2 + $0x48] sm:$0xff]   ;;  %v88_v20 = vshrl.u32 %v87_v11, 7 }
   0x3   :  { %5898 = vmatpush3.bf16.msra.mxu0 %v6868_v1  ;;  %6222 = vmatpush3.bf16.msra.mxu1 %v6870_v3  ;;  %v6871_v5 = vld [vmem:[%s8843_s2 + $0x50] sm:$0xff]   ;;  %v6873_v7 = vld [vmem:[%s8843_s2 + $0x58] sm:$0xff]   ;;  %v6875_v12 = vld [vmem:[%s8843_s2 + $0x60] sm:$0xff]   ;;  %v86_v19 = vunpack.c.0.s8 %v85_v10 }
   0x4   :  { %5899 = vmatprep.subr.bf16.mxu0 %v7014_v0  ;;  %6223 = vmatprep.subr.bf16.mxu1 %v7014_v0  ;;  %v6874_v6 = vld [vmem:[%s8843_s2 + $0x50] sm:$0xff]   ;;  %v6876_v8 = vld [vmem:[%s8843_s2 + $0x58] sm:$0xff]   ;;  %v7094_v13 = vld [vmem:[%s8845_s1] ss:$0 sm:$0xff] }
   0x5   :  { %v5578_v14 = vld [vmem:[%s8844_s0] sm:$0xff]   ;;  %v7105_v18 = vld [vmem:[%s8844_s0 + $0x10] sm:$0xff]   ;;  %v6877_v24 = vld [vmem:[%s8843_s2 + $0x68] sm:$0xff]   ;;  %v7132_v32 = vsub.s32 %v86_v19, %v88_v20 }
   0x6   :  { %v6878_v15 = vld [vmem:[%s8843_s2 + $0x60] sm:$0xff]   ;;  %v5579_v16 = vunpack.c.l.bf16 %v5578_v14  ;;  %v5580_v17 = vunpack.c.h.bf16 %v5578_v14  ;;  %v5587_v23 = vunpack.c.l.bf16 %v7105_v18  ;;  %v6880_v27 = vld [vmem:[%s8843_s2 + $0x68] sm:$0xff]   ;;  %v7137_v33 = vld [vmem:[%s8844_s0 + $0x38] sm:$0xff]  }
   0x7   :  { %5900 = vmatpush3.bf16.msra.mxu0 %v6869_v2  ;;  %6224 = vmatpush3.bf16.msra.mxu1 %v6872_v4  ;;  %v7110_v21 = vld [vmem:[%s8844_s0 + $0x20] sm:$0xff]   ;;  %8851 = vst [vmem:[#allocation3_spill] sm:$0xff] %v7132_v32  ;;  %v5628_v35 = vunpack.c.h.bf16 %v7137_v33  ;;  %v6879_v36 = vld [vmem:[%s8843_s2 + $0x70] sm:$0xff]   ;;  %v7151_v41 = vrot.slane %v7014_v0, %v7132_v32  ;;  %v5656_v50 = vld [vmem:[%s8844_s0 + $0x28] sm:$0xff]  }
   0x8   :  { %5901 = vmatprep.subr.bf16.mxu0 %v7014_v0  ;;  %6225 = vmatprep.subr.bf16.mxu1 %v7014_v0  ;;  %v7116_v22 = vld [vmem:[%s8845_s1 + $0x1] ss:$0 sm:$0xff]  ;;  %v46_v25 = vmul.f32 %v5579_v16, %v7094_v13  ;;  %v47_v26 = vmul.f32 %v5580_v17, %v7094_v13  ;;  %v50_v28 = vmul.f32 %v5587_v23, %v7094_v13  ;;  %v5615_v29 = vunpack.c.l.bf16 %v7110_v21  ;;  %v6882_v39 = vld [vmem:[%s8843_s2 + $0x70] sm:$0xff]   ;;  %v6881_v52 = vld [vmem:[%s8843_s2 + $0x78] sm:$0xff]  }
   0x9   :  { %v5616_v49 = vunpack.c.h.bf16 %v7110_v21  ;;  %v2605_v51 = vmul.f32 %v5628_v35, %v7094_v13  ;;  %v5657_v60 = vld [vmem:[%s8844_s0 + $0x30] sm:$0xff]   ;;  %v5619_v2 = vunpack.c.l.bf16 %v5656_v50  ;;  %v6883_v3 = vld [vmem:[%s8843_s2 + $0x78] sm:$0xff]  }
   0xa   :  { %v58_v30 = vadd.f32 %v7116_v22, %v46_v25  ;;  %v59_v31 = vadd.f32 %v7116_v22, %v47_v26  ;;  %v62_v34 = vadd.f32 %v7116_v22, %v50_v28  ;;  %v2598_v42 = vmul.f32 %v5615_v29, %v7094_v13 }
   0xb   :  { %5902 = vmatpush3.bf16.msra.mxu0 %v6871_v5  ;;  %6226 = vmatpush3.bf16.msra.mxu1 %v6874_v6  ;;  %v5623_v11 = vunpack.c.l.bf16 %v5657_v60  ;;  %v2599_v20 = vmul.f32 %v5616_v49, %v7094_v13  ;;  %v5624_v23 = vunpack.c.h.bf16 %v5657_v60  ;;  %v5627_v26 = vunpack.c.l.bf16 %v7137_v33 }
   0xc   :  { %5903 = vmatprep.subr.bf16.mxu0 %v7014_v0  ;;  %6227 = vmatprep.subr.bf16.mxu1 %v7014_v0  ;;  %v66_v37 = vmax.f32 %v58_v30, 0.0  ;;  %v67_v38 = vmax.f32 %v59_v31, 0.0  ;;  %v70_v40 = vmax.f32 %v62_v34, 0.0  ;;  %v2606_v61 = vadd.f32 %v7116_v22, %v2598_v42  ;;  %v7213_v42 = vld [vmem:[#allocation2 + $0x1] sm:$0xff] }
   0xd   :  { %v2602_v30 = vmul.f32 %v5623_v11, %v7094_v13  ;;  %v2607_v34 = vadd.f32 %v7116_v22, %v2599_v20  ;;  %v2603_v35 = vmul.f32 %v5624_v23, %v7094_v13 }
   0xe   :  { %v83_v43 = vcombine.high %v66_v37, %v66_v37  ;;  %v90_v44 = vrot.slane %v66_v37, %v7132_v32  ;;  %v107_v45 = vcombine.high %v67_v38, %v67_v38  ;;  %v114_v46 = vrot.slane %v67_v38, %v7132_v32 }
   0xf   :  { %5904 = vmatpush3.bf16.msra.mxu0 %v6873_v7  ;;  %6228 = vmatpush3.bf16.msra.mxu1 %v6876_v8  ;;  %v158_v47 = vcombine.high %v70_v40, %v70_v40  ;;  %v165_v48 = vrot.slane %v70_v40, %v7132_v32  ;;  %v5620_v7 = vunpack.c.h.bf16 %v5656_v50  ;;  %v2614_v16 = vmax.f32 %v2606_v61, 0.0 }
  0x10   :  { %5905 = vmatprep.subr.bf16.mxu0 %v7014_v0  ;;  %6229 = vmatprep.subr.bf16.mxu1 %v7014_v0  ;;  %v97_v53 = vrot.slane %v83_v43, %v7132_v32  ;;  %v98_v54 = vcombine.high %v90_v44, %v90_v44  ;;  %v7168_v55 = vrot.slane %v107_v45, %v7132_v32  ;;  %v2615_v43 = vmax.f32 %v2607_v34, 0.0 }
  0x11   :  { %v122_v56 = vcombine.high %v114_v46, %v114_v46  ;;  %v172_v57 = vrot.slane %v158_v47, %v7132_v32  ;;  %v173_v58 = vcombine.high %v165_v48, %v165_v48  ;;  %v243_v59 = vcombine.low %v7151_v41, %v114_v46 }
  0x12   :  { %v99_v62 = vcombine.high %v97_v53, %v97_v53  ;;  %v226_v63 = vcombine.low %v90_v44, %v98_v54  ;;  %v2630_v28 = vcombine.high %v2614_v16, %v2614_v16  ;;  %v2637_v31 = vrot.slane %v2614_v16, %v7132_v32  ;;  %v6884_v54 = vld [vmem:[%s8843_s2] sm:$0xff]  }
  0x13   :  { %5906 = vmatpush3.bf16.msra.mxu0 %v6875_v12  ;;  %6230 = vmatpush3.bf16.msra.mxu1 %v6878_v15  ;;  %v244_v1 = vcombine.low %v122_v56, %v7168_v55  ;;  %v174_v4 = vcombine.high %v172_v57, %v172_v57  ;;  %v251_v5 = vrot.slane %v243_v59, %v7132_v32 }
  0x14   :  { %5907 = vmatprep.subr.bf16.mxu0 %v7014_v0  ;;  %6231 = vmatprep.subr.bf16.mxu1 %v7014_v0  ;;  %v311_v6 = vcombine.low %v165_v48, %v173_v58  ;;  %v227_v8 = vcombine.low %v97_v53, %v99_v62  ;;  %v234_v9 = vrot.slane %v226_v63, %v7132_v32  ;;  %v6886_v63 = vld [vmem:[%s8843_s2 + $0x8] sm:$0xff]  }
  0x15   :  { %v258_v10 = vrot.slane %v244_v1, %v7132_v32  ;;  %v312_v12 = vcombine.low %v172_v57, %v174_v4  ;;  %v2613_v15 = vadd.f32 %v7116_v22, %v2605_v51  ;;  %v2644_v33 = vrot.slane %v2630_v28, %v7132_v32 }
  0x16   :  { %v319_v14 = vrot.slane %v311_v6, %v7132_v32  ;;  %v241_v17 = vrot.slane %v227_v8, %v7132_v32  ;;  %v2604_v37 = vmul.f32 %v5627_v26, %v7094_v13  ;;  %v2645_v40 = vcombine.high %v2637_v31, %v2637_v31 }
  0x17   :  { %5908 = vmatpush3.bf16.msra.mxu0 %v6877_v24  ;;  %6232 = vmatpush3.bf16.msra.mxu1 %v6880_v27  ;;  %v7189_v19 = vcombine.low %v251_v5, %v258_v10  ;;  %v326_v21 = vrot.slane %v312_v12, %v7132_v32  ;;  %v2601_v24 = vmul.f32 %v5620_v7, %v7094_v13  ;;  %v2621_v46 = vmax.f32 %v2613_v15, 0.0 }
  0x18   :  { %5909 = vmatprep.subr.bf16.mxu0 %v7014_v0  ;;  %6233 = vmatprep.subr.bf16.mxu1 %v7014_v0  ;;  %v7195_v25 = vcombine.low %v234_v9, %v241_v17  ;;  %v2600_v27 = vmul.f32 %v5619_v2, %v7094_v13  ;;  %v2611_v44 = vadd.f32 %v7116_v22, %v2603_v35  ;;  %v6888_v35 = vld [vmem:[%s8843_s2 + $0x10] sm:$0xff]  }
  0x19   :  { %407 = vst [vmem:[#allocation2 + $0x13] sm:$0xff] %v7189_v19  ;;  %v7200_v29 = vcombine.low %v319_v14, %v326_v21  ;;  %v2646_v47 = vcombine.high %v2644_v33, %v2644_v33  ;;  %v2612_v48 = vadd.f32 %v7116_v22, %v2604_v37  ;;  %v2766_v53 = vcombine.low %v2637_v31, %v2645_v40 }
  0x1a   :  { %406 = vst [vmem:[#allocation2 + $0xb] sm:$0xff] %v7195_v25  ;;  %v2608_v38 = vadd.f32 %v7116_v22, %v2600_v27  ;;  %v2647_v57 = vcombine.high %v2615_v43, %v2615_v43  ;;  %v2619_v59 = vmax.f32 %v2611_v44, 0.0  ;;  %v2654_v7 = vrot.slane %v2615_v43, %v7132_v32  ;;  %v5649_v44 = vld [vmem:[%s8844_s0 + $0x8] sm:$0xff]  }
  0x1b   :  { %5910 = vmatpush3.bf16.msra.mxu0 %v6879_v36  ;;  %6234 = vmatpush3.bf16.msra.mxu1 %v6882_v39  ;;  %411 = vst [vmem:[#allocation2 + $0x33] sm:$0xff] %v7200_v29  ;;  %v2609_v36 = vadd.f32 %v7116_v22, %v2601_v24  ;;  %v2610_v39 = vadd.f32 %v7116_v22, %v2602_v30  ;;  %v2620_v5 = vmax.f32 %v2612_v48, 0.0  ;;  %v5588_v27 = vunpack.c.h.bf16 %v7105_v18 }
  0x1c   :  { %5911 = vmatprep.subr.bf16.mxu0 %v7014_v0  ;;  %6235 = vmatprep.subr.bf16.mxu1 %v7014_v0  ;;  %v2616_v49 = vmax.f32 %v2608_v38, 0.0  ;;  %v2767_v61 = vcombine.low %v2644_v33, %v2646_v47  ;;  %v2774_v62 = vrot.slane %v2766_v53, %v7132_v32  ;;  %v2661_v12 = vrot.slane %v2647_v57, %v7132_v32 }
  0x1d   :  { %v2617_v45 = vmax.f32 %v2609_v36, 0.0  ;;  %v2618_v51 = vmax.f32 %v2610_v39, 0.0  ;;  %v7257_v21 = vrot.slane %v2621_v46, %v7132_v32  ;;  %v2715_v24 = vcombine.high %v2619_v59, %v2619_v59 }
  0x1e   :  { %v2664_v58 = vcombine.high %v2616_v49, %v2616_v49  ;;  %v2781_v10 = vrot.slane %v2767_v61, %v7132_v32  ;;  %v2671_v14 = vrot.slane %v2616_v49, %v7132_v32  ;;  %v7261_v26 = vrot.slane %v2619_v59, %v7132_v32  ;;  %v6890_v49 = vld [vmem:[%s8843_s2 + $0x18] sm:$0xff]  }
  0x1f   :  { %5912 = vmatpush3.bf16.msra.mxu0 %v6881_v52  ;;  %6236 = vmatpush3.bf16.msra.mxu1 %v6883_v3  ;;  %v2749_v52 = vcombine.high %v2621_v46, %v2621_v46  ;;  %v2681_v60 = vcombine.high %v2617_v45, %v2617_v45  ;;  %v2698_v8 = vcombine.high %v2618_v51, %v2618_v51  ;;  %v5583_v59 = vunpack.c.l.bf16 %v5649_v44 }
  0x20   :  { %5933 = vmatprep.subr.bf16.mxu0 %v7014_v0  ;;  %6257 = vmatprep.subr.bf16.mxu1 %v7014_v0  ;;  %v7243_v15 = vrot.slane %v2664_v58, %v7132_v32  ;;  %v7246_v16 = vrot.slane %v2617_v45, %v7132_v32  ;;  %v7254_v20 = vrot.slane %v2618_v51, %v7132_v32 }
  0x21   :  { %v448_v50 = vld [vmem:[#allocation2 + $0x9] sm:$0xff]  ;;  %v7229_v3 = vld [vmem:[#allocation2 + $0x11] sm:$0xff]  ;;  %v2763_v9 = vrot.slane %v2749_v52, %v7132_v32  ;;  %v7251_v17 = vrot.slane %v2681_v60, %v7132_v32  ;;  %v2782_v23 = vcombine.low %v2774_v62, %v2781_v10  ;;  %v7265_v28 = vrot.slane %v2698_v8, %v7132_v32  ;;  %v6885_v8 = vld [vmem:[%s8843_s2] sm:$0xff]  }
  0x22   :  { %v457_v56 = vpack.c.bf16 %v448_v50, %v7213_v42  ;;  %v7225_v1 = vld [vmem:[#allocation2 + $0x8] sm:$0xff]  ;;  %v7227_v2 = vld [vmem:[#allocation2 + $0x10] sm:$0xff]  ;;  %v2732_v30 = vcombine.high %v2620_v5, %v2620_v5  ;;  %v2764_v31 = vcombine.high %v7257_v21, %v7257_v21  ;;  %v2662_v36 = vcombine.high %v2654_v7, %v2654_v7 }
  0x23   :  { %v7231_v4 = vld [vmem:[#allocation2 + $0xa] sm:$0xff]  ;;  %v7233_v6 = vld [vmem:[#allocation2 + $0x12] sm:$0xff]  ;;  %v2765_v34 = vcombine.high %v2763_v9, %v2763_v9  ;;  %v2663_v33 = vcombine.high %v2661_v12, %v2661_v12  ;;  %v2679_v37 = vcombine.high %v2671_v14, %v2671_v14  ;;  %v2696_v18 = vcombine.high %v7246_v16, %v7246_v16 }
  0x24   :  { %5914 = vmatmul.mubr.bf16.vlgmr.msra.gmra.mrb[0].mxu0 %v457_v56  ;;  %v7238_v11 = vld [vmem:[#allocation2 + $0xc] sm:$0xff]  ;;  %v2680_v38 = vcombine.high %v7243_v15, %v7243_v15  ;;  %v2697_v39 = vcombine.high %v7251_v17, %v7251_v17  ;;  %v2713_v40 = vcombine.high %v7254_v20, %v7254_v20  ;;  %v7282_v43 = vrot.slane %v2620_v5, %v7132_v32 }
  0x25   :  { %5934 = vmatpush3.bf16.msra.mxu0 %v6884_v54  ;;  %5917 = vmatprep.mubr.msk.bf16.mxu0 %vm7015_vm0, %v7014_v0  ;;  %2946 = vst [vmem:[#allocation2 + $0xb] sm:$0xff] %v2782_v23  ;;  %v7288_v45 = vrot.slane %v2715_v24, %v7132_v32  ;;  %v2730_v46 = vcombine.high %v7261_v26, %v7261_v26  ;;  %v5651_v54 = vld [vmem:[%s8844_s0 + $0x18] sm:$0xff]   ;;  %v5584_v62 = vunpack.c.h.bf16 %v5649_v44  ;;  %v6887_v44 = vld [vmem:[%s8843_s2 + $0x8] sm:$0xff]  }
  0x26   :  { %5935 = vmatprep.subr.bf16.mxu0 %v7014_v0  ;;  %v2783_v47 = vcombine.low %v7151_v41, %v2654_v7  ;;  %v2903_v48 = vcombine.low %v7151_v41, %v7257_v21  ;;  %v2714_v50 = vcombine.high %v7265_v28, %v7265_v28  ;;  %v7301_v51 = vrot.slane %v2732_v30, %v7132_v32  ;;  %v6892_v30 = vld [vmem:[%s8843_s2 + $0x20] sm:$0xff]  }
  0x27   :  { %v2919_v52 = vcombine.low %v2764_v31, %v2763_v9  ;;  %v2920_v53 = vcombine.low %v2765_v34, %v7151_v41  ;;  %v7307_v56 = vcombine.low %v2662_v36, %v2661_v12  ;;  %v7310_v57 = vcombine.low %v2663_v33, %v7151_v41 }
  0x28   :  { %v7312_v58 = vcombine.low %v2671_v14, %v2679_v37  ;;  %v7320_v5 = vrot.slane %v2783_v47, %v7132_v32  ;;  %v48_v9 = vmul.f32 %v5583_v59, %v7094_v13  ;;  %v5591_v10 = vunpack.c.l.bf16 %v5651_v54 }
  0x29   :  { %5936 = vmatpush3.bf16.msra.mxu0 %v6886_v63  ;;  %v2927_v60 = vrot.slane %v2919_v52, %v7132_v32  ;;  %v2934_v61 = vrot.slane %v2920_v53, %v7132_v32  ;;  %v123_v63 = vcombine.high %v7168_v55, %v7168_v55  ;;  %v51_v12 = vmul.f32 %v5588_v27, %v7094_v13 }
  0x2a   :  { %5937 = vmatprep.subr.bf16.mxu0 %v7014_v0  ;;  %v49_v24 = vmul.f32 %v5584_v62, %v7094_v13  ;;  %v60_v31 = vadd.f32 %v7116_v22, %v48_v9  ;;  %v52_v34 = vmul.f32 %v5591_v10, %v7094_v13  ;;  %v7344_v36 = vcombine.low %v7243_v15, %v2680_v38 }
  0x2b   :  { %v7327_v14 = vcombine.low %v2927_v60, %v2934_v61  ;;  %v7332_v55 = vcombine.low %v123_v63, %v7151_v41  ;;  %v63_v27 = vadd.f32 %v7116_v22, %v51_v12  ;;  %v2818_v33 = vcombine.low %v7151_v41, %v7246_v16 }
  0x2c   :  { %v2988_v7 = vld [vmem:[#allocation2 + $0x9] sm:$0xff]  ;;  %v61_v37 = vadd.f32 %v7116_v22, %v49_v24  ;;  %v68_v47 = vmax.f32 %v60_v31, 0.0  ;;  %v2808_v38 = vrot.slane %v7310_v57, %v7132_v32  ;;  %v2815_v53 = vrot.slane %v7312_v58, %v7132_v32 }
  0x2d   :  { %5938 = vmatpush3.bf16.msra.mxu0 %v6888_v35  ;;  %v2997_v23 = vpack.c.bf16 %v2988_v7, %v7213_v42  ;;  %v5592_v35 = vunpack.c.h.bf16 %v5651_v54  ;;  %v2798_v42 = vrot.slane %v7307_v56, %v7132_v32  ;;  %v71_v52 = vmax.f32 %v63_v27, 0.0  ;;  %v6889_v24 = vld [vmem:[%s8843_s2 + $0x10] sm:$0xff]  }
  0x2e   :  { %5939 = vmatprep.subr.bf16.mxu0 %v7014_v0  ;;  %v69_v54 = vmax.f32 %v61_v37, 0.0  ;;  %v268_v59 = vrot.slane %v7332_v55, %v7132_v32  ;;  %v124_v60 = vcombine.high %v68_v47, %v68_v47  ;;  %v131_v61 = vrot.slane %v68_v47, %v7132_v32  ;;  %v6897_v57 = vld [vmem:[%s8843_s2 + $0x30] sm:$0xff]  }
  0x2f   :  { %6238 = vmatmul.mubr.bf16.vlgmr.msra.gmra.mrb[0].mxu1 %v2997_v23  ;;  %v53_v15 = vmul.f32 %v5592_v35, %v7094_v13  ;;  %v175_v63 = vcombine.high %v71_v52, %v71_v52  ;;  %v6894_v13 = vld [vmem:[%s8843_s2 + $0x28] sm:$0xff]   ;;  %v182_v9 = vrot.slane %v71_v52, %v7132_v32 }
  0x30   :  { %6258 = vmatpush3.bf16.msra.mxu1 %v6885_v8  ;;  %6241 = vmatprep.mubr.msk.bf16.mxu1 %vm7015_vm0, %v7014_v0  ;;  %v148_v7 = vrot.slane %v69_v54, %v7132_v32  ;;  %v141_v8 = vcombine.high %v69_v54, %v69_v54  ;;  %v138_v12 = vrot.slane %v124_v60, %v7132_v32 }
  0x31   :  { %5940 = vmatpush3.bf16.msra.mxu0 %v6890_v49  ;;  %v64_v49 = vadd.f32 %v7116_v22, %v52_v34  ;;  %6259 = vmatprep.subr.bf16.mxu1 %v7014_v0  ;;  %v65_v10 = vadd.f32 %v7116_v22, %v53_v15  ;;  %v139_v23 = vcombine.high %v131_v61, %v131_v61 }
  0x32   :  { %5941 = vmatprep.subr.bf16.mxu0 %v7014_v0  ;;  %v189_v55 = vrot.slane %v175_v63, %v7132_v32  ;;  %v278_v31 = vcombine.low %v7151_v41, %v148_v7  ;;  %v155_v34 = vrot.slane %v141_v8, %v7132_v32  ;;  %v156_v22 = vcombine.high %v148_v7, %v148_v7 }
  0x33   :  { %v7364_v62 = vmax.f32 %v64_v49, 0.0  ;;  %v190_v27 = vcombine.high %v182_v9, %v182_v9  ;;  %v140_v35 = vcombine.high %v138_v12, %v138_v12  ;;  %v261_v37 = vcombine.low %v131_v61, %v139_v23  ;;  %v6896_v49 = vld [vmem:[%s8843_s2 + $0x30] sm:$0xff]   ;;  %v6891_v61 = vld [vmem:[%s8843_s2 + $0x18] sm:$0xff]  }
  0x34   :  { %6260 = vmatpush3.bf16.msra.mxu1 %v6887_v44  ;;  %v191_v44 = vcombine.high %v189_v55, %v189_v55  ;;  %v292_v52 = vrot.slane %v278_v31, %v7132_v32  ;;  %v157_v15 = vcombine.high %v155_v34, %v155_v34  ;;  %v294_v54 = vcombine.low %v156_v22, %v155_v34 }
  0x35   :  { %5942 = vmatpush3.bf16.msra.mxu0 %v6892_v30  ;;  %v199_v30 = vrot.slane %v7364_v62, %v7132_v32  ;;  %6261 = vmatprep.subr.bf16.mxu1 %v7014_v0  ;;  %v328_v60 = vcombine.low %v7151_v41, %v182_v9  ;;  %v275_v63 = vrot.slane %v261_v37, %v7132_v32 }
  0x36   :  { %5943 = vmatprep.subr.bf16.mxu0 %v7014_v0  ;;  %v277_v7 = vcombine.low %v138_v12, %v140_v35  ;;  %v345_v8 = vcombine.low %v191_v44, %v7151_v41  ;;  %v295_v23 = vcombine.low %v157_v15, %v7151_v41  ;;  %v302_v31 = vrot.slane %v294_v54, %v7132_v32 }
  0x37   :  { %v207_v47 = vcombine.high %v199_v30, %v199_v30  ;;  %v336_v9 = vrot.slane %v328_v60, %v7132_v32  ;;  %v7398_v22 = vcombine.low %v268_v59, %v275_v63  ;;  %v6893_v59 = vld [vmem:[%s8843_s2 + $0x20] sm:$0xff]   ;;  %v192_v44 = vcombine.high %v7364_v62, %v7364_v62 }
  0x38   :  { %6262 = vmatpush3.bf16.msra.mxu1 %v6889_v24  ;;  %v285_v12 = vrot.slane %v277_v7, %v7132_v32  ;;  %v353_v35 = vrot.slane %v345_v8, %v7132_v32  ;;  %v2747_v63 = vcombine.high %v7282_v43, %v7282_v43  ;;  %v2835_v7 = vcombine.low %v2697_v39, %v7151_v41 }
  0x39   :  { %5944 = vmatpush3.bf16.msra.mxu0 %v6894_v13  ;;  %v329_v13 = vcombine.low %v190_v27, %v189_v55  ;;  %6263 = vmatprep.subr.bf16.mxu1 %v7014_v0  ;;  %v346_v34 = vcombine.low %v199_v30, %v207_v47  ;;  %v6898_v55 = vld [vmem:[%s8843_s2 + $0x38] sm:$0xff]   ;;  %v309_v27 = vrot.slane %v295_v23, %v7132_v32  ;;  %v73_v30 = vmax.f32 %v65_v10, 0.0 }
  0x3a   :  { %5945 = vmatprep.subr.bf16.mxu0 %v7014_v0  ;;  %v7418_v47 = vcombine.low %v2696_v18, %v7251_v17  ;;  %408 = vst [vmem:[#allocation2 + $0x1b] sm:$0xff] %v7398_v22  ;;  %v206_v60 = vrot.slane %v192_v44, %v7132_v32  ;;  %v2748_v8 = vcombine.high %v7301_v51, %v7301_v51 }
  0x3b   :  { %v343_v24 = vrot.slane %v329_v13, %v7132_v32  ;;  %v360_v37 = vrot.slane %v346_v34, %v7132_v32  ;;  %v7427_v54 = vcombine.low %v302_v31, %v309_v27  ;;  %v209_v18 = vcombine.high %v73_v30, %v73_v30 }
  0x3c   :  { %6264 = vmatpush3.bf16.msra.mxu1 %v6891_v61  ;;  %v6895_v61 = vld [vmem:[%s8843_s2 + $0x28] sm:$0xff]   ;;  %v216_v13 = vrot.slane %v73_v30, %v7132_v32  ;;  %v2825_v23 = vrot.slane %v7344_v36, %v7132_v32  ;;  %v208_v17 = vcombine.high %v206_v60, %v206_v60  ;;  %v2799_v31 = vcombine.low %v7320_v5, %v2798_v42 }
  0x3d   :  { %5946 = vmatpush3.bf16.msra.mxu0 %v6896_v49  ;;  %v7420_v49 = vcombine.low %v285_v12, %v292_v52  ;;  %v7423_v15 = vcombine.low %v336_v9, %v343_v24  ;;  %v7429_v62 = vcombine.low %v353_v35, %v360_v37  ;;  %6265 = vmatprep.subr.bf16.mxu1 %v7014_v0 }
  0x3e   :  { %5947 = vmatprep.subr.bf16.mxu0 %v7014_v0  ;;  %v2731_v52 = vcombine.high %v7288_v45, %v7288_v45  ;;  %410 = vst [vmem:[#allocation2 + $0x2b] sm:$0xff] %v7427_v54  ;;  %v223_v39 = vrot.slane %v209_v18, %v7132_v32  ;;  %v2832_v9 = vrot.slane %v2818_v33, %v7132_v32 }
  0x3f   :  { %409 = vst [vmem:[#allocation2 + $0x23] sm:$0xff] %v7420_v49  ;;  %412 = vst [vmem:[#allocation2 + $0x3b] sm:$0xff] %v7423_v15  ;;  %v224_v36 = vcombine.high %v216_v13, %v216_v13  ;;  %v363_v34 = vcombine.low %v7151_v41, %v216_v13  ;;  %v2816_v12 = vcombine.low %v2808_v38, %v2815_v53 }
  0x40   :  { %413 = vst [vmem:[#allocation2 + $0x43] sm:$0xff] %v7429_v62  ;;  %6266 = vmatpush3.bf16.msra.mxu1 %v6893_v59  ;;  %v2842_v56 = vrot.slane %v7418_v47, %v7132_v32  ;;  %v225_v5 = vcombine.high %v223_v39, %v223_v39  ;;  %v362_v42 = vcombine.low %v206_v60, %v208_v17 }
  0x41   :  { %5948 = vmatpush3.bf16.msra.mxu0 %v6898_v55  ;;  %6267 = vmatprep.subr.bf16.mxu1 %v7014_v0  ;;  %v2849_v16 = vrot.slane %v2835_v7, %v7132_v32  ;;  %v7478_v33 = vcombine.low %v7254_v20, %v2713_v40  ;;  %v377_v58 = vrot.slane %v363_v34, %v7132_v32  ;;  %v7492_v53 = vld [vmem:[#allocation2 + $0x18] sm:$0xff] }
  0x42   :  { %5969 = vmatprep.subr.bf16.mxu0 %v7014_v0  ;;  %v379_v24 = vcombine.low %v224_v36, %v223_v39  ;;  %v7488_v0 = vcombine.low %v7265_v28, %v2714_v50  ;;  %v2868_v38 = vcombine.low %v7151_v41, %v7261_v26  ;;  %v450_v20 = vld [vmem:[#allocation2 + $0x19] sm:$0xff]  ;;  %v370_v35 = vrot.slane %v362_v42, %v7132_v32 }
  0x43   :  { %v7494_v40 = vld [vmem:[#allocation2 + $0x1a] sm:$0xff]  ;;  %v380_v55 = vcombine.low %v225_v5, %v7151_v41  ;;  %v2869_v27 = vcombine.low %v2730_v46, %v7288_v45  ;;  %v458_v28 = vpack.c.bf16 %v450_v20, %v7229_v3  ;;  %v2833_v18 = vcombine.low %v2825_v23, %v2832_v9 }
  0x44   :  { %v7503_v50 = vld [vmem:[#allocation2 + $0x14] sm:$0xff]  ;;  %6268 = vmatpush3.bf16.msra.mxu1 %v6895_v61  ;;  %v387_v30 = vrot.slane %v379_v24, %v7132_v32  ;;  %v7518_v3 = vcombine.low %v370_v35, %v377_v58  ;;  %v7521_v46 = vld [vmem:[#allocation2] sm:$0xff]  ;;  %v2859_v7 = vrot.slane %v7478_v33, %v7132_v32  ;;  %v2850_v36 = vcombine.low %v2842_v56, %v2849_v16 }
  0x45   :  { %v7505_v37 = vld [vmem:[#allocation2 + $0x15] sm:$0xff]  ;;  %v394_v45 = vrot.slane %v380_v55, %v7132_v32  ;;  %6269 = vmatprep.subr.bf16.mxu1 %v7521_v46  ;;  %5918 = vmatmul.mubr.bf16.gmra.mrb[4].mxu0 %v458_v28  ;;  %v2885_v23 = vcombine.low %v2731_v52, %v7151_v41  ;;  %v2886_v9 = vcombine.low %v7282_v43, %v2747_v63  ;;  %v7564_v20 = vld [vmem:[#allocation2 + $0x2c] sm:$0xff] }
  0x46   :  { %v7507_v59 = vld [vmem:[#allocation2 + $0x16] sm:$0xff]  ;;  %v7512_v47 = vld [vmem:[#allocation2 + $0x20] sm:$0xff]  ;;  %5921 = vmatprep.mubr.msk.bf16.mxu0 %vm7015_vm0, %v7521_v46  ;;  %v7541_v34 = vld [vmem:[#allocation2 + $0x28] sm:$0xff]  ;;  %414 = vst [vmem:[#allocation2 + $0x4b] sm:$0xff] %v7518_v3  ;;  %v2866_v56 = vrot.slane %v7488_v0, %v7132_v32  ;;  %v2876_v52 = vrot.slane %v2868_v38, %v7132_v32  ;;  %v2883_v43 = vrot.slane %v2869_v27, %v7132_v32 }
  0x47   :  { %v7514_v60 = vld [vmem:[#allocation2 + $0x21] sm:$0xff]  ;;  %2947 = vst [vmem:[#allocation2 + $0x13] sm:$0xff] %v2799_v31  ;;  %v6899_v39 = vld [vmem:[%s8843_s2 + $0x38] sm:$0xff]   ;;  %v7543_v5 = vld [vmem:[#allocation2 + $0x30] sm:$0xff]  ;;  %v7545_v33 = vcombine.low %v387_v30, %v394_v45  ;;  %v2902_v63 = vcombine.low %v7301_v51, %v2748_v8  ;;  %v2893_v27 = vrot.slane %v2885_v23, %v7132_v32  ;;  %v2900_v28 = vrot.slane %v2886_v9, %v7132_v32 }
  0x48   :  { %v7516_v26 = vld [vmem:[#allocation2 + $0x22] sm:$0xff]  ;;  %v7558_v16 = vld [vmem:[#allocation2 + $0x2a] sm:$0xff]  ;;  %v7560_v58 = vld [vmem:[#allocation2 + $0x32] sm:$0xff]  ;;  %6270 = vmatpush3.bf16.msra.mxu1 %v6897_v57  ;;  %v7587_v8 = vcombine.low %v2859_v7, %v2866_v56  ;;  %v2917_v10 = vrot.slane %v2903_v48, %v7132_v32 }
  0x49   :  { %v7526_v61 = vld [vmem:[#allocation2 + $0x1c] sm:$0xff]  ;;  %v452_v42 = vld [vmem:[#allocation2 + $0x29] sm:$0xff]  ;;  %415 = vst [vmem:[#allocation2 + $0x53] sm:$0xff] %v7545_v33  ;;  %6271 = vmatprep.subr.bf16.mxu1 %v7521_v46 }
  0x4a   :  { %v7528_v13 = vld [vmem:[#allocation2 + $0x1d] sm:$0xff]  ;;  %v7566_v0 = vld [vmem:[#allocation2 + $0x25] sm:$0xff]  ;;  %v459_v38 = vpack.c.bf16 %v452_v42, %v7514_v60  ;;  %v7575_v35 = vld [vmem:[#allocation2 + $0x2d] sm:$0xff]  ;;  %v2884_v60 = vcombine.low %v2876_v52, %v2883_v43  ;;  %v2910_v42 = vrot.slane %v2902_v63, %v7132_v32  ;;  %v7617_v63 = vcombine.low %v2893_v27, %v2900_v28 }
  0x4b   :  { %v7530_v17 = vld [vmem:[#allocation2 + $0x1e] sm:$0xff]  ;;  %v7577_v57 = vld [vmem:[#allocation2 + $0x26] sm:$0xff]  ;;  %v7579_v55 = vld [vmem:[#allocation2 + $0x2e] sm:$0xff] }
  0x4c   :  { %2948 = vst [vmem:[#allocation2 + $0x1b] sm:$0xff] %v2816_v12  ;;  %v7556_v12 = vld [vmem:[#allocation2 + $0x31] sm:$0xff]  ;;  %v7562_v24 = vld [vmem:[#allocation2 + $0x24] sm:$0xff]  ;;  %8852 = vst [vmem:[#allocation4_spill] sm:$0xff] %v7577_v57  ;;  %6272 = vmatpush3.bf16.msra.mxu1 %v6899_v39  ;;  %v7619_v32 = vcombine.low %v2910_v42, %v2917_v10 }
  0x4d   :  { %8853 = vst [vmem:[#allocation5_spill] sm:$0xff] %v7579_v55  ;;  %2949 = vst [vmem:[#allocation2 + $0x23] sm:$0xff] %v2833_v18  ;;  %v7583_v30 = vld [vmem:[#allocation2 + $0x38] sm:$0xff]  ;;  %v7585_v45 = vld [vmem:[#allocation2 + $0x40] sm:$0xff]  ;;  %6293 = vmatprep.subr.bf16.mxu1 %v7521_v46  ;;  %5922 = vmatmul.mubr.bf16.gmra.mrb[8].mxu0 %v459_v38 }
  0x4e   :  { %2950 = vst [vmem:[#allocation2 + $0x2b] sm:$0xff] %v2850_v36  ;;  %v454_v31 = vld [vmem:[#allocation2 + $0x39] sm:$0xff]  ;;  %v2989_v23 = vld [vmem:[#allocation2 + $0x11] sm:$0xff]  ;;  %v455_v51 = vld [vmem:[#allocation2 + $0x41] sm:$0xff]  ;;  %5925 = vmatprep.mubr.msk.bf16.mxu0 %vm7015_vm0, %v7521_v46 }
  0x4f   :  { %v7594_v9 = vld [vmem:[#allocation2 + $0x3a] sm:$0xff]  ;;  %v7596_v18 = vld [vmem:[#allocation2 + $0x42] sm:$0xff]  ;;  %v7622_v7 = vld [vmem:[#allocation2 + $0x4a] sm:$0xff]  ;;  %v460_v42 = vpack.c.bf16 %v454_v31, %v7556_v12 }
  0x50   :  { %v7598_v36 = vld [vmem:[#allocation2 + $0x34] sm:$0xff]  ;;  %v7600_v44 = vld [vmem:[#allocation2 + $0x3c] sm:$0xff]  ;;  %v7615_v43 = vld [vmem:[#allocation2 + $0x48] sm:$0xff] }
  0x51   :  { %v7605_v41 = vld [vmem:[#allocation2 + $0x35] sm:$0xff]  ;;  %v7607_v21 = vld [vmem:[#allocation2 + $0x3d] sm:$0xff]  ;;  %v456_v38 = vld [vmem:[#allocation2 + $0x49] sm:$0xff] }
  0x52   :  { %v7611_v39 = vld [vmem:[#allocation2 + $0x36] sm:$0xff]  ;;  %v7613_v52 = vld [vmem:[#allocation2 + $0x3e] sm:$0xff]  ;;  %v7641_v55 = vld [vmem:[#allocation2 + $0x46] sm:$0xff] }
  0x53   :  { %v2990_v56 = vld [vmem:[#allocation2 + $0x19] sm:$0xff]  ;;  %8854 = vst [vmem:[#allocation6_spill] sm:$0xff] %v7611_v39  ;;  %8855 = vst [vmem:[#allocation7_spill] sm:$0xff] %v7613_v52  ;;  %v7628_v39 = vld [vmem:[#allocation2 + $0x4c] sm:$0xff] }
  0x54   :  { %v2998_v48 = vpack.c.bf16 %v2990_v56, %v2989_v23  ;;  %2952 = vst [vmem:[#allocation2 + $0x3b] sm:$0xff] %v2884_v60  ;;  %2951 = vst [vmem:[#allocation2 + $0x33] sm:$0xff] %v7587_v8  ;;  %v7624_v23 = vld [vmem:[#allocation2 + $0x52] sm:$0xff]  ;;  %v7626_v56 = vld [vmem:[#allocation2 + $0x44] sm:$0xff] }
  0x55   :  { %v7630_v52 = vld [vmem:[#allocation2 + $0x45] sm:$0xff]  ;;  %8856 = vst [vmem:[#allocation8_spill] sm:$0xff] %v7641_v55  ;;  %v7643_v57 = vld [vmem:[#allocation2 + $0x4e] sm:$0xff]  ;;  %5926 = vmatmul.mubr.bf16.gmra.mrb[12].mxu0 %v460_v42  ;;  %v461_v55 = vpack.c.bf16 %v456_v38, %v455_v51  ;;  %v426_v51 = vpack.c.bf16 %v7225_v1, %v7521_v46 }
  0x56   :  { %6242 = vmatmul.mubr.bf16.gmra.mrb[4].mxu1 %v2998_v48  ;;  %v2991_v28 = vld [vmem:[#allocation2 + $0x21] sm:$0xff]  ;;  %v2992_v60 = vld [vmem:[#allocation2 + $0x29] sm:$0xff]  ;;  %8857 = vst [vmem:[#allocation9_spill] sm:$0xff] %v7643_v57  ;;  %2953 = vst [vmem:[#allocation2 + $0x43] sm:$0xff] %v7617_v63  ;;  %5929 = vmatprep.mubr.msk.bf16.mxu0 %vm7015_vm0, %v7521_v46 }
  0x57   :  { %6245 = vmatprep.mubr.msk.bf16.mxu1 %vm7015_vm0, %v7521_v46  ;;  %v7639_v48 = vld [vmem:[#allocation2 + $0x4d] sm:$0xff]  ;;  %v2999_v27 = vpack.c.bf16 %v2992_v60, %v2991_v28  ;;  %v7657_v42 = vld [vmem:[#allocation2 + $0x55] sm:$0xff] }
  0x58   :  { %2954 = vst [vmem:[#allocation2 + $0x4b] sm:$0xff] %v7619_v32  ;;  %v7655_v60 = vld [vmem:[#allocation2 + $0x54] sm:$0xff]  ;;  %v2957_v1 = vld [vmem:[#allocation2 + $0x8] sm:$0xff] }
  0x5b   :  { %v2993_v31 = vld [vmem:[#allocation2 + $0x31] sm:$0xff]  ;;  %v2994_v12 = vld [vmem:[#allocation2 + $0x39] sm:$0xff] }
  0x5c   :  { %v3000_v57 = vpack.c.bf16 %v2994_v12, %v2993_v31  ;;  %v1058_v31 = vpack.c.bf16 %v7420_v49, %v7398_v22  ;;  %v6904_v12 = vld [vmem:[%s8843_s2 + $0x90] sm:$0xff]   ;;  %v3586_v22 = vld [vmem:[#allocation2 + $0x1b] sm:$0xff]  ;;  %v3587_v49 = vld [vmem:[#allocation2 + $0x23] sm:$0xff] }
  0x5d   :  { %5930 = vmatmul.mubr.bf16.gmra.mrb[16].mxu0 %v461_v55  ;;  %v2995_v28 = vld [vmem:[#allocation2 + $0x41] sm:$0xff] }
  0x5e   :  { %6246 = vmatmul.mubr.bf16.gmra.mrb[8].mxu1 %v2999_v27  ;;  %5949 = vmatprep.mubr.msk.bf16.mxu0 %vm7015_vm0, %v7521_v46  ;;  %v7659_v27 = vld [vmem:[#allocation2 + $0x56] sm:$0xff]  ;;  %v6900_v55 = vld [vmem:[%s8843_s2 + $0x80] sm:$0xff]  }
  0x5f   :  { %6249 = vmatprep.mubr.msk.bf16.mxu1 %vm7015_vm0, %v7521_v46  ;;  %v2996_v10 = vld [vmem:[#allocation2 + $0x49] sm:$0xff]  ;;  %2955 = vst [vmem:[#allocation2 + $0x53] sm:$0xff] %v7327_v14 }
  0x60   :  { %v3001_v38 = vpack.c.bf16 %v2996_v10, %v2995_v28  ;;  %v427_v10 = vpack.c.bf16 %v7492_v53, %v7227_v2  ;;  %v2966_v28 = vpack.c.bf16 %v2957_v1, %v7521_v46  ;;  %v6903_v2 = vld [vmem:[%s8843_s2 + $0x88] sm:$0xff]   ;;  %v2958_v53 = vld [vmem:[#allocation2 + $0x10] sm:$0xff]  ;;  %v6908_v1 = vld [vmem:[%s8843_s2 + $0xa0] sm:$0xff]  }
  0x65   :  { %5950 = vmatmul.mubr.bf16.vlgmr.msra.gmra.mrb[0].mxu0 %v426_v51  ;;  %v6901_v51 = vld [vmem:[%s8843_s2 + $0x80] sm:$0xff]  }
  0x66   :  { %6250 = vmatmul.mubr.bf16.gmra.mrb[12].mxu1 %v3000_v57  ;;  %v6902_v57 = vld [vmem:[%s8843_s2 + $0x88] sm:$0xff]   ;;  %5970 = vmatpush3.bf16.msra.mxu0 %v6900_v55  ;;  %v6906_v55 = vld [vmem:[%s8843_s2 + $0x98] sm:$0xff]  }
  0x67   :  { %6253 = vmatprep.mubr.msk.bf16.mxu1 %vm7015_vm0, %v7521_v46  ;;  %5953 = vmatprep.mubr.msk.bf16.mxu0 %vm7015_vm0, %v7521_v46 }
  0x68   :  { %5971 = vmatprep.subr.bf16.mxu0 %v7521_v46 }
  0x6a   :  { %5972 = vmatpush3.bf16.msra.mxu0 %v6902_v57  ;;  %v428_v57 = vpack.c.bf16 %v7541_v34, %v7512_v47  ;;  %v6910_v47 = vld [vmem:[%s8843_s2 + $0xa8] sm:$0xff]   ;;  %v6907_v34 = vld [vmem:[%s8843_s2 + $0x98] sm:$0xff]  }
  0x6b   :  { %5973 = vmatprep.subr.bf16.mxu0 %v7521_v46 }
  0x6d   :  { %5954 = vmatmul.mubr.bf16.gmra.mrb[4].mxu0 %v427_v10  ;;  %v6905_v10 = vld [vmem:[%s8843_s2 + $0x90] sm:$0xff]  }
  0x6e   :  { %6254 = vmatmul.mubr.bf16.gmra.mrb[16].mxu1 %v3001_v38  ;;  %5957 = vmatprep.mubr.msk.bf16.mxu0 %vm7015_vm0, %v7521_v46  ;;  %v2959_v38 = vld [vmem:[#allocation2 + $0x18] sm:$0xff] }
  0x6f   :  { %6273 = vmatprep.mubr.msk.bf16.mxu1 %vm7015_vm0, %v7521_v46  ;;  %5974 = vmatpush3.bf16.msra.mxu0 %v6904_v12  ;;  %v2967_v12 = vpack.c.bf16 %v2959_v38, %v2958_v53  ;;  %v6912_v53 = vld [vmem:[%s8843_s2 + $0xb0] sm:$0xff]   ;;  %v6909_v38 = vld [vmem:[%s8843_s2 + $0xa0] sm:$0xff]  }
  0x70   :  { %5975 = vmatprep.subr.bf16.mxu0 %v7521_v46 }
  0x73   :  { %5976 = vmatpush3.bf16.msra.mxu0 %v6906_v55  ;;  %v2961_v55 = vld [vmem:[#allocation2 + $0x28] sm:$0xff] }
  0x74   :  { %5977 = vmatprep.subr.bf16.mxu0 %v7521_v46 }
  0x75   :  { %5958 = vmatmul.mubr.bf16.gmra.mrb[8].mxu0 %v428_v57 }
  0x76   :  { %6274 = vmatmul.mubr.bf16.vlgmr.msra.gmra.mrb[0].mxu1 %v2966_v28  ;;  %5961 = vmatprep.mubr.msk.bf16.mxu0 %vm7015_vm0, %v7521_v46  ;;  %v1060_v28 = vpack.c.bf16 %v7429_v62, %v7423_v15  ;;  %v3590_v15 = vld [vmem:[#allocation2 + $0x3b] sm:$0xff]  ;;  %v6959_v62 = vld [vmem:[%s8843_s2 + $0x168] sm:$0xff]  }
  0x77   :  { %6294 = vmatpush3.bf16.msra.mxu1 %v6901_v51  ;;  %6277 = vmatprep.mubr.msk.bf16.mxu1 %vm7015_vm0, %v7521_v46  ;;  %v2960_v51 = vld [vmem:[#allocation2 + $0x20] sm:$0xff] }
  0x78   :  { %6295 = vmatprep.subr.bf16.mxu1 %v7521_v46  ;;  %5978 = vmatpush3.bf16.msra.mxu0 %v6908_v1  ;;  %v2968_v57 = vpack.c.bf16 %v2961_v55, %v2960_v51  ;;  %v6911_v1 = vld [vmem:[%s8843_s2 + $0xa8] sm:$0xff]   ;;  %v6913_v51 = vld [vmem:[%s8843_s2 + $0xb0] sm:$0xff]  }
  0x79   :  { %5979 = vmatprep.subr.bf16.mxu0 %v7521_v46 }
  0x7b   :  { %6296 = vmatpush3.bf16.msra.mxu1 %v6903_v2  ;;  %v429_v2 = vpack.c.bf16 %v7583_v30, %v7543_v5  ;;  %v6914_v5 = vld [vmem:[%s8843_s2 + $0xb8] sm:$0xff]   ;;  %v2962_v30 = vld [vmem:[#allocation2 + $0x30] sm:$0xff] }
  0x7c   :  { %6297 = vmatprep.subr.bf16.mxu1 %v7521_v46  ;;  %5980 = vmatpush3.bf16.msra.mxu0 %v6910_v47  ;;  %v430_v47 = vpack.c.bf16 %v7615_v43, %v7585_v45  ;;  %v6915_v45 = vld [vmem:[%s8843_s2 + $0xb8] sm:$0xff]   ;;  %v2964_v43 = vld [vmem:[#allocation2 + $0x40] sm:$0xff] }
  0x7d   :  { %5981 = vmatprep.subr.bf16.mxu0 %v7521_v46  ;;  %5962 = vmatmul.mubr.bf16.gmra.mrb[12].mxu0 %v429_v2  ;;  %v721_v2 = vld [vmem:[#allocation2 + $0x2] sm:$0xff] }
  0x7e   :  { %6278 = vmatmul.mubr.bf16.gmra.mrb[4].mxu1 %v2967_v12  ;;  %5965 = vmatprep.mubr.msk.bf16.mxu0 %vm7015_vm0, %v7521_v46  ;;  %v2963_v12 = vld [vmem:[#allocation2 + $0x38] sm:$0xff] }
  0x7f   :  { %6298 = vmatpush3.bf16.msra.mxu1 %v6905_v10  ;;  %6281 = vmatprep.mubr.msk.bf16.mxu1 %vm7015_vm0, %v7521_v46  ;;  %v1061_v10 = vpack.c.bf16 %v7545_v33, %v7518_v3  ;;  %v2969_v55 = vpack.c.bf16 %v2963_v12, %v2962_v30  ;;  %v6918_v30 = vld [vmem:[%s8843_s2 + $0xc8] sm:$0xff]   ;;  %v6920_v12 = vld [vmem:[%s8843_s2 + $0xd0] sm:$0xff]   ;;  %v6963_v3 = vld [vmem:[%s8843_s2 + $0x178] sm:$0xff]  }
  0x80   :  { %6299 = vmatprep.subr.bf16.mxu1 %v7521_v46  ;;  %5982 = vmatpush3.bf16.msra.mxu0 %v6912_v53  ;;  %v2965_v53 = vld [vmem:[#allocation2 + $0x48] sm:$0xff]  ;;  %v6964_v33 = vld [vmem:[%s8843_s2 + $0x180] sm:$0xff]  }
  0x81   :  { %5983 = vmatprep.subr.bf16.mxu0 %v7521_v46 }
  0x83   :  { %6300 = vmatpush3.bf16.msra.mxu1 %v6907_v34  ;;  %v6934_v34 = vld [vmem:[%s8843_s2 + $0x108] sm:$0xff]  }
  0x84   :  { %6301 = vmatprep.subr.bf16.mxu1 %v7521_v46  ;;  %5984 = vmatpush3.bf16.msra.mxu0 %v6914_v5  ;;  %v2970_v5 = vpack.c.bf16 %v2965_v53, %v2964_v43  ;;  %v7803_v43 = vld [vmem:[#allocation2 + $0x12] sm:$0xff]  ;;  %v7805_v53 = vld [vmem:[#allocation2 + $0x1a] sm:$0xff] }
  0x85   :  { %6005 = vmatprep.subr.bf16.mxu0 %v7521_v46  ;;  %5966 = vmatmul.mubr.bf16.gmra.mrb[16].mxu0 %v430_v47 }
  0x86   :  { %6282 = vmatmul.mubr.bf16.gmra.mrb[8].mxu1 %v2968_v57  ;;  %5985 = vmatprep.mubr.msk.bf16.mxu0 %vm7015_vm0, %v7521_v46  ;;  %v6916_v57 = vld [vmem:[%s8843_s2 + $0xc0] sm:$0xff]  }
  0x87   :  { %6302 = vmatpush3.bf16.msra.mxu1 %v6909_v38  ;;  %6285 = vmatprep.mubr.msk.bf16.mxu1 %vm7015_vm0, %v7521_v46  ;;  %v731_v38 = vpack.c.bf16 %v7231_v4, %v721_v2 }
  0x88   :  { %6303 = vmatprep.subr.bf16.mxu1 %v7521_v46 }
  0x8b   :  { %6304 = vmatpush3.bf16.msra.mxu1 %v6911_v1  ;;  %v7777_v1 = vld [vmem:[#allocation2 + $0xa] sm:$0xff] }
  0x8c   :  { %6305 = vmatprep.subr.bf16.mxu1 %v7521_v46  ;;  %v3270_v47 = vpack.c.bf16 %v7777_v1, %v721_v2  ;;  %v6919_v2 = vld [vmem:[%s8843_s2 + $0xc8] sm:$0xff]  }
  0x8d   :  { %5986 = vmatmul.mubr.bf16.vlgmr.msra.gmra.mrb[0].mxu0 %v731_v38  ;;  %v6924_v38 = vld [vmem:[%s8843_s2 + $0xe0] sm:$0xff]  }
  0x8e   :  { %6286 = vmatmul.mubr.bf16.gmra.mrb[12].mxu1 %v2969_v55  ;;  %6006 = vmatpush3.bf16.msra.mxu0 %v6916_v57  ;;  %v8858_v55 = vpack.c.bf16 %v7494_v40, %v7233_v6  ;;  %v3271_v57 = vpack.c.bf16 %v7805_v53, %v7803_v43 }
  0x8f   :  { %6306 = vmatpush3.bf16.msra.mxu1 %v6913_v51  ;;  %6289 = vmatprep.mubr.msk.bf16.mxu1 %vm7015_vm0, %v7521_v46  ;;  %v6917_v51 = vld [vmem:[%s8843_s2 + $0xc0] sm:$0xff]  }
  0x90   :  { %6307 = vmatprep.subr.bf16.mxu1 %v7521_v46  ;;  %5989 = vmatprep.mubr.msk.bf16.mxu0 %vm7015_vm0, %v7521_v46 }
  0x91   :  { %6007 = vmatprep.subr.bf16.mxu0 %v7521_v46 }
  0x92   :  { %6008 = vmatpush3.bf16.msra.mxu0 %v6918_v30  ;;  %v8859_v30 = vpack.c.bf16 %v7558_v16, %v7516_v26 }
  0x93   :  { %6308 = vmatpush3.bf16.msra.mxu1 %v6915_v45  ;;  %6009 = vmatprep.subr.bf16.mxu0 %v7521_v46  ;;  %v6922_v45 = vld [vmem:[%s8843_s2 + $0xd8] sm:$0xff]  }
  0x94   :  { %6329 = vmatprep.subr.bf16.mxu1 %v7521_v46 }
  0x95   :  { %5990 = vmatmul.mubr.bf16.gmra.mrb[4].mxu0 %v8858_v55  ;;  %v7834_v55 = vld [vmem:[#allocation2 + $0x2a] sm:$0xff] }
  0x96   :  { %6290 = vmatmul.mubr.bf16.gmra.mrb[16].mxu1 %v2970_v5  ;;  %5993 = vmatprep.mubr.msk.bf16.mxu0 %vm7015_vm0, %v7521_v46  ;;  %v6921_v5 = vld [vmem:[%s8843_s2 + $0xd0] sm:$0xff]  }
  0x97   :  { %6309 = vmatprep.mubr.msk.bf16.mxu1 %vm7015_vm0, %v7521_v46  ;;  %6010 = vmatpush3.bf16.msra.mxu0 %v6920_v12  ;;  %v6926_v12 = vld [vmem:[%s8843_s2 + $0xe8] sm:$0xff]  }
  0x98   :  { %6011 = vmatprep.subr.bf16.mxu0 %v7521_v46 }
  0x9b   :  { %6012 = vmatpush3.bf16.msra.mxu0 %v6922_v45  ;;  %v6928_v45 = vld [vmem:[%s8843_s2 + $0xf0] sm:$0xff]  }
  0x9c   :  { %6013 = vmatprep.subr.bf16.mxu0 %v7521_v46 }
  0x9d   :  { %5994 = vmatmul.mubr.bf16.gmra.mrb[8].mxu0 %v8859_v30  ;;  %v7858_v30 = vld [vmem:[#allocation2 + $0x32] sm:$0xff] }
  0x9e   :  { %6310 = vmatmul.mubr.bf16.vlgmr.msra.gmra.mrb[0].mxu1 %v3270_v47  ;;  %5997 = vmatprep.mubr.msk.bf16.mxu0 %vm7015_vm0, %v7521_v46  ;;  %v6923_v47 = vld [vmem:[%s8843_s2 + $0xd8] sm:$0xff]  }
  0x9f   :  { %6330 = vmatpush3.bf16.msra.mxu1 %v6917_v51  ;;  %6313 = vmatprep.mubr.msk.bf16.mxu1 %vm7015_vm0, %v7521_v46  ;;  %v7832_v51 = vld [vmem:[#allocation2 + $0x22] sm:$0xff] }
  0xa0   :  { %6331 = vmatprep.subr.bf16.mxu1 %v7521_v46  ;;  %6014 = vmatpush3.bf16.msra.mxu0 %v6924_v38  ;;  %v8860_v38 = vpack.c.bf16 %v7594_v9, %v7560_v58 }
  0xa1   :  { %6015 = vmatprep.subr.bf16.mxu0 %v7521_v46 }
  0xa3   :  { %6332 = vmatpush3.bf16.msra.mxu1 %v6919_v2  ;;  %v3272_v2 = vpack.c.bf16 %v7834_v55, %v7832_v51 }
  0xa4   :  { %6333 = vmatprep.subr.bf16.mxu1 %v7521_v46  ;;  %6016 = vmatpush3.bf16.msra.mxu0 %v6926_v12  ;;  %v7860_v12 = vld [vmem:[#allocation2 + $0x3a] sm:$0xff] }
  0xa5   :  { %6017 = vmatprep.subr.bf16.mxu0 %v7521_v46  ;;  %5998 = vmatmul.mubr.bf16.gmra.mrb[12].mxu0 %v8860_v38  ;;  %v6929_v38 = vld [vmem:[%s8843_s2 + $0xf0] sm:$0xff]  }
  0xa6   :  { %6314 = vmatmul.mubr.bf16.gmra.mrb[4].mxu1 %v3271_v57  ;;  %v6925_v57 = vld [vmem:[%s8843_s2 + $0xe0] sm:$0xff]   ;;  %6001 = vmatprep.mubr.msk.bf16.mxu0 %vm7015_vm0, %v7521_v46 }
  0xa7   :  { %6334 = vmatpush3.bf16.msra.mxu1 %v6921_v5  ;;  %6317 = vmatprep.mubr.msk.bf16.mxu1 %vm7015_vm0, %v7521_v46  ;;  %v6930_v5 = vld [vmem:[%s8843_s2 + $0xf8] sm:$0xff]  }
  0xa8   :  { %6335 = vmatprep.subr.bf16.mxu1 %v7521_v46  ;;  %6018 = vmatpush3.bf16.msra.mxu0 %v6928_v45  ;;  %v3273_v45 = vpack.c.bf16 %v7860_v12, %v7858_v30 }
  0xa9   :  { %6019 = vmatprep.subr.bf16.mxu0 %v7521_v46 }
  0xab   :  { %6336 = vmatpush3.bf16.msra.mxu1 %v6923_v47  ;;  %v6927_v47 = vld [vmem:[%s8843_s2 + $0xe8] sm:$0xff]  }
  0xac   :  { %6337 = vmatprep.subr.bf16.mxu1 %v7521_v46  ;;  %6020 = vmatpush3.bf16.msra.mxu0 %v6930_v5  ;;  %v7882_v5 = vld [vmem:[#allocation2 + $0x4a] sm:$0xff] }
  0xad   :  { %6041 = vmatprep.subr.bf16.mxu0 %v7521_v46 }
  0xae   :  { %6318 = vmatmul.mubr.bf16.gmra.mrb[8].mxu1 %v3272_v2  ;;  %v8861_v2 = vpack.c.bf16 %v7622_v7, %v7596_v18 }
  0xaf   :  { %6338 = vmatpush3.bf16.msra.mxu1 %v6925_v57  ;;  %6321 = vmatprep.mubr.msk.bf16.mxu1 %vm7015_vm0, %v7521_v46  ;;  %v7880_v57 = vld [vmem:[#allocation2 + $0x42] sm:$0xff] }
  0xb0   :  { %6339 = vmatprep.subr.bf16.mxu1 %v7521_v46  ;;  %6002 = vmatmul.mubr.bf16.gmra.mrb[16].mxu0 %v8861_v2  ;;  %v6932_v2 = vld [vmem:[%s8843_s2 + $0x100] sm:$0xff]  }
  0xb1   :  { %6021 = vmatprep.mubr.msk.bf16.mxu0 %vm7015_vm0, %v7521_v46 }
  0xb3   :  { %6340 = vmatpush3.bf16.msra.mxu1 %v6927_v47  ;;  %v6931_v47 = vld [vmem:[%s8843_s2 + $0xf8] sm:$0xff]  }
  0xb4   :  { %6341 = vmatprep.subr.bf16.mxu1 %v7521_v46 }
  0xb6   :  { %6322 = vmatmul.mubr.bf16.gmra.mrb[12].mxu1 %v3273_v45  ;;  %v3274_v45 = vpack.c.bf16 %v7882_v5, %v7880_v57 }
  0xb7   :  { %6342 = vmatpush3.bf16.msra.mxu1 %v6929_v38  ;;  %6325 = vmatprep.mubr.msk.bf16.mxu1 %vm7015_vm0, %v7521_v46  ;;  %v8862_v38 = vpack.c.bf16 %v7233_v6, %v7231_v4  ;;  %v6936_v4 = vld [vmem:[%s8843_s2 + $0x110] sm:$0xff]   ;;  %v3432_v6 = vpack.c.bf16 %v7803_v43, %v7777_v1  ;;  %v6935_v1 = vld [vmem:[%s8843_s2 + $0x108] sm:$0xff]  }
  0xb8   :  { %6343 = vmatprep.subr.bf16.mxu1 %v7521_v46  ;;  %v6937_v43 = vld [vmem:[%s8843_s2 + $0x110] sm:$0xff]  }
  0xb9   :  { %6022 = vmatmul.mubr.bf16.vlgmr.msra.gmra.mrb[0].mxu0 %v8862_v38  ;;  %v6942_v38 = vld [vmem:[%s8843_s2 + $0x128] sm:$0xff]  }
  0xba   :  { %6042 = vmatpush3.bf16.msra.mxu0 %v6932_v2  ;;  %6025 = vmatprep.mubr.msk.bf16.mxu0 %vm7015_vm0, %v7521_v46  ;;  %v8863_v2 = vpack.c.bf16 %v7516_v26, %v7494_v40  ;;  %v6940_v40 = vld [vmem:[%s8843_s2 + $0x120] sm:$0xff]   ;;  %v3433_v26 = vpack.c.bf16 %v7832_v51, %v7805_v53  ;;  %v3434_v53 = vpack.c.bf16 %v7858_v30, %v7834_v55  ;;  %v6946_v55 = vld [vmem:[%s8843_s2 + $0x138] sm:$0xff]  }
  0xbb   :  { %6344 = vmatpush3.bf16.msra.mxu1 %v6931_v47  ;;  %6043 = vmatprep.subr.bf16.mxu0 %v7521_v46  ;;  %v6933_v47 = vld [vmem:[%s8843_s2 + $0x100] sm:$0xff]   ;;  %v8865_v51 = vpack.c.bf16 %v7596_v18, %v7594_v9  ;;  %v6943_v9 = vld [vmem:[%s8843_s2 + $0x128] sm:$0xff]   ;;  %v3435_v18 = vpack.c.bf16 %v7880_v57, %v7860_v12  ;;  %v8866_v30 = vpack.c.bf16 %v7624_v23, %v7622_v7  ;;  %v3431_v12 = vld [vmem:[#allocation2 + $0x52] sm:$0xff] }
  0xbc   :  { %6365 = vmatprep.subr.bf16.mxu1 %v7521_v46  ;;  %v1057_v57 = vpack.c.bf16 %v7189_v19, %v7195_v25  ;;  %v6947_v7 = vld [vmem:[%s8843_s2 + $0x138] sm:$0xff]   ;;  %v6948_v23 = vld [vmem:[%s8843_s2 + $0x140] sm:$0xff]   ;;  %v6950_v19 = vld [vmem:[%s8843_s2 + $0x148] sm:$0xff]  }
  0xbd   :  { %v3584_v25 = vld [vmem:[#allocation2 + $0xb] sm:$0xff] }
  0xbe   :  { %6326 = vmatmul.mubr.bf16.gmra.mrb[16].mxu1 %v3274_v45  ;;  %6044 = vmatpush3.bf16.msra.mxu0 %v6934_v34  ;;  %v6938_v34 = vld [vmem:[%s8843_s2 + $0x118] sm:$0xff]   ;;  %v8864_v45 = vpack.c.bf16 %v7560_v58, %v7558_v16  ;;  %v6944_v58 = vld [vmem:[%s8843_s2 + $0x130] sm:$0xff]  }
  0xbf   :  { %6345 = vmatprep.mubr.msk.bf16.mxu1 %vm7015_vm0, %v7521_v46  ;;  %6045 = vmatprep.subr.bf16.mxu0 %v7521_v46  ;;  %v6939_v16 = vld [vmem:[%s8843_s2 + $0x118] sm:$0xff]  }
  0xc1   :  { %6026 = vmatmul.mubr.bf16.gmra.mrb[4].mxu0 %v8863_v2  ;;  %v6952_v2 = vld [vmem:[%s8843_s2 + $0x150] sm:$0xff]  }
  0xc2   :  { %6029 = vmatprep.mubr.msk.bf16.mxu0 %vm7015_vm0, %v7521_v46  ;;  %6046 = vmatpush3.bf16.msra.mxu0 %v6936_v4  ;;  %v6941_v4 = vld [vmem:[%s8843_s2 + $0x120] sm:$0xff]  }
  0xc3   :  { %6047 = vmatprep.subr.bf16.mxu0 %v7521_v46 }
  0xc6   :  { %6346 = vmatmul.mubr.bf16.vlgmr.msra.gmra.mrb[0].mxu1 %v3432_v6  ;;  %6048 = vmatpush3.bf16.msra.mxu0 %v6938_v34  ;;  %v6945_v6 = vld [vmem:[%s8843_s2 + $0x130] sm:$0xff]  }
  0xc7   :  { %6366 = vmatpush3.bf16.msra.mxu1 %v6933_v47  ;;  %6349 = vmatprep.mubr.msk.bf16.mxu1 %vm7015_vm0, %v7521_v46  ;;  %v3436_v47 = vpack.c.bf16 %v3431_v12, %v7882_v5  ;;  %v3585_v5 = vld [vmem:[#allocation2 + $0x13] sm:$0xff]  ;;  %v6967_v12 = vld [vmem:[%s8843_s2 + $0x188] sm:$0xff]  }
  0xc8   :  { %6367 = vmatprep.subr.bf16.mxu1 %v7521_v46  ;;  %6049 = vmatprep.subr.bf16.mxu0 %v7521_v46  ;;  %v3594_v34 = vpack.c.bf16 %v3585_v5, %v3584_v25  ;;  %v6969_v25 = vld [vmem:[%s8843_s2 + $0x190] sm:$0xff]   ;;  %v6974_v5 = vld [vmem:[%s8843_s2 + $0x1a8] sm:$0xff]  }
  0xc9   :  { %6030 = vmatmul.mubr.bf16.gmra.mrb[8].mxu0 %v8864_v45  ;;  %v3595_v45 = vpack.c.bf16 %v3587_v49, %v3586_v22  ;;  %v6973_v49 = vld [vmem:[%s8843_s2 + $0x1a0] sm:$0xff]  }
  0xca   :  { %6033 = vmatprep.mubr.msk.bf16.mxu0 %vm7015_vm0, %v7521_v46  ;;  %6050 = vmatpush3.bf16.msra.mxu0 %v6940_v40  ;;  %v8022_v40 = vld [vmem:[#allocation2] sm:$0xff] }
  0xcb   :  { %6368 = vmatpush3.bf16.msra.mxu1 %v6935_v1  ;;  %6051 = vmatprep.subr.bf16.mxu0 %v7521_v46  ;;  %v6949_v1 = vld [vmem:[%s8843_s2 + $0x140] sm:$0xff]  }
  0xcc   :  { %6369 = vmatprep.subr.bf16.mxu1 %v7521_v46 }
  0xce   :  { %6350 = vmatmul.mubr.bf16.gmra.mrb[4].mxu1 %v3433_v26  ;;  %6052 = vmatpush3.bf16.msra.mxu0 %v6942_v38  ;;  %v6954_v26 = vld [vmem:[%s8843_s2 + $0x158] sm:$0xff]   ;;  %v6953_v38 = vld [vmem:[%s8843_s2 + $0x150] sm:$0xff]  }
  0xcf   :  { %6370 = vmatpush3.bf16.msra.mxu1 %v6937_v43  ;;  %6353 = vmatprep.mubr.msk.bf16.mxu1 %vm7015_vm0, %v7521_v46  ;;  %v6956_v43 = vld [vmem:[%s8843_s2 + $0x160] sm:$0xff]  }
  0xd0   :  { %6371 = vmatprep.subr.bf16.mxu1 %v7521_v46  ;;  %6053 = vmatprep.subr.bf16.mxu0 %v7521_v46 }
  0xd1   :  { %6034 = vmatmul.mubr.bf16.gmra.mrb[12].mxu0 %v8865_v51  ;;  %v6957_v51 = vld [vmem:[%s8843_s2 + $0x160] sm:$0xff]  }
  0xd2   :  { %6037 = vmatprep.mubr.msk.bf16.mxu0 %vm7015_vm0, %v7521_v46  ;;  %6054 = vmatpush3.bf16.msra.mxu0 %v6944_v58  ;;  %v6960_v58 = vld [vmem:[%s8843_s2 + $0x170] sm:$0xff]  }
  0xd3   :  { %6372 = vmatpush3.bf16.msra.mxu1 %v6939_v16  ;;  %6055 = vmatprep.subr.bf16.mxu0 %v7521_v46  ;;  %v3588_v16 = vld [vmem:[#allocation2 + $0x2b] sm:$0xff] }
  0xd4   :  { %6373 = vmatprep.subr.bf16.mxu1 %v7521_v46 }
  0xd6   :  { %6354 = vmatmul.mubr.bf16.gmra.mrb[8].mxu1 %v3434_v53  ;;  %6056 = vmatpush3.bf16.msra.mxu0 %v6946_v55  ;;  %v3596_v53 = vpack.c.bf16 %v7587_v8, %v3588_v16  ;;  %v6962_v8 = vld [vmem:[%s8843_s2 + $0x178] sm:$0xff]   ;;  %v3746_v55 = vld [vmem:[#allocation2 + $0xc] sm:$0xff] }
  0xd7   :  { %6374 = vmatpush3.bf16.msra.mxu1 %v6941_v4  ;;  %6357 = vmatprep.mubr.msk.bf16.mxu1 %vm7015_vm0, %v7521_v46  ;;  %v6961_v4 = vld [vmem:[%s8843_s2 + $0x170] sm:$0xff]  }
  0xd8   :  { %6375 = vmatprep.subr.bf16.mxu1 %v7521_v46  ;;  %6077 = vmatprep.subr.bf16.mxu0 %v7521_v46  ;;  %v6977_v16 = vld [vmem:[%s8843_s2 + $0x1b0] sm:$0xff]  }
  0xd9   :  { %6038 = vmatmul.mubr.bf16.gmra.mrb[16].mxu0 %v8866_v30  ;;  %v6968_v30 = vld [vmem:[%s8843_s2 + $0x190] sm:$0xff]  }
  0xda   :  { %6057 = vmatprep.mubr.msk.bf16.mxu0 %vm7015_vm0, %v7521_v46 }
  0xdb   :  { %6376 = vmatpush3.bf16.msra.mxu1 %v6943_v9  ;;  %v8116_v9 = vld [vmem:[#allocation2 + $0x14] sm:$0xff] }
  0xdc   :  { %6377 = vmatprep.subr.bf16.mxu1 %v7521_v46 }
  0xde   :  { %6358 = vmatmul.mubr.bf16.gmra.mrb[12].mxu1 %v3435_v18  ;;  %v1221_v18 = vpack.c.bf16 %v7562_v24, %v7526_v61 }
  0xdf   :  { %6378 = vmatpush3.bf16.msra.mxu1 %v6945_v6  ;;  %6361 = vmatprep.mubr.msk.bf16.mxu1 %vm7015_vm0, %v7521_v46  ;;  %v3756_v6 = vpack.c.bf16 %v8116_v9, %v3746_v55  ;;  %v1386_v55 = vpack.c.bf16 %v7628_v39, %v7626_v56 }
  0xe0   :  { %6379 = vmatprep.subr.bf16.mxu1 %v7521_v46 }
  0xe1   :  { %6058 = vmatmul.mubr.bf16.vlgmr.msra.gmra.mrb[0].mxu0 %v1057_v57  ;;  %v8139_v57 = vld [vmem:[#allocation2 + $0x1c] sm:$0xff] }
  0xe2   :  { %6078 = vmatpush3.bf16.msra.mxu0 %v6948_v23  ;;  %6061 = vmatprep.mubr.msk.bf16.mxu0 %vm7015_vm0, %v7521_v46  ;;  %v1222_v23 = vpack.c.bf16 %v7598_v36, %v7564_v20 }
  0xe3   :  { %6380 = vmatpush3.bf16.msra.mxu1 %v6947_v7  ;;  %6079 = vmatprep.subr.bf16.mxu0 %v7521_v46  ;;  %v8141_v7 = vld [vmem:[#allocation2 + $0x24] sm:$0xff] }
  0xe4   :  { %6401 = vmatprep.subr.bf16.mxu1 %v7521_v46 }
  0xe6   :  { %6362 = vmatmul.mubr.bf16.gmra.mrb[16].mxu1 %v3436_v47  ;;  %6080 = vmatpush3.bf16.msra.mxu0 %v6950_v19  ;;  %v6972_v47 = vld [vmem:[%s8843_s2 + $0x1a0] sm:$0xff]   ;;  %v3757_v19 = vpack.c.bf16 %v8141_v7, %v8139_v57 }
  0xe7   :  { %6381 = vmatprep.mubr.msk.bf16.mxu1 %vm7015_vm0, %v7521_v46  ;;  %6081 = vmatprep.subr.bf16.mxu0 %v7521_v46  ;;  %v6951_v46 = vld [vmem:[%s8843_s2 + $0x148] sm:$0xff]  }
  0xe9   :  { %6062 = vmatmul.mubr.bf16.gmra.mrb[4].mxu0 %v1058_v31  ;;  %v1059_v31 = vpack.c.bf16 %v7200_v29, %v7427_v54  ;;  %v6958_v29 = vld [vmem:[%s8843_s2 + $0x168] sm:$0xff]   ;;  %v6955_v54 = vld [vmem:[%s8843_s2 + $0x158] sm:$0xff]  }
  0xea   :  { %6065 = vmatprep.mubr.msk.bf16.mxu0 %vm7015_vm0, %v8022_v40  ;;  %6082 = vmatpush3.bf16.msra.mxu0 %v6952_v2  ;;  %v6971_v2 = vld [vmem:[%s8843_s2 + $0x198] sm:$0xff]  }
  0xeb   :  { %6083 = vmatprep.subr.bf16.mxu0 %v8022_v40 }
  0xee   :  { %6382 = vmatmul.mubr.bf16.vlgmr.msra.gmra.mrb[0].mxu1 %v3594_v34  ;;  %6084 = vmatpush3.bf16.msra.mxu0 %v6954_v26  ;;  %v8167_v34 = vld [vmem:[#allocation2 + $0x2c] sm:$0xff]  ;;  %v1223_v26 = vpack.c.bf16 %v7626_v56, %v7600_v44  ;;  %v6994_v56 = vld [vmem:[%s8843_s2 + $0x1f8] sm:$0xff]  }
  0xef   :  { %6402 = vmatpush3.bf16.msra.mxu1 %v6949_v1  ;;  %6385 = vmatprep.mubr.msk.bf16.mxu1 %vm7015_vm0, %v8022_v40  ;;  %v8169_v1 = vld [vmem:[#allocation2 + $0x34] sm:$0xff] }
  0xf0   :  { %6403 = vmatprep.subr.bf16.mxu1 %v8022_v40  ;;  %6085 = vmatprep.subr.bf16.mxu0 %v8022_v40  ;;  %v3758_v22 = vpack.c.bf16 %v8169_v1, %v8167_v34 }
  0xf1   :  { %6066 = vmatmul.mubr.bf16.gmra.mrb[8].mxu0 %v1059_v31  ;;  %v6978_v31 = vld [vmem:[%s8843_s2 + $0x1b8] sm:$0xff]  }
  0xf2   :  { %6069 = vmatprep.mubr.msk.bf16.mxu0 %vm7015_vm0, %v8022_v40  ;;  %6086 = vmatpush3.bf16.msra.mxu0 %v6956_v43  ;;  %v8192_v43 = vld [vmem:[#allocation2 + $0x3c] sm:$0xff] }
  0xf3   :  { %6404 = vmatpush3.bf16.msra.mxu1 %v6951_v46  ;;  %6087 = vmatprep.subr.bf16.mxu0 %v8022_v40  ;;  %v6976_v46 = vld [vmem:[%s8843_s2 + $0x1b0] sm:$0xff]  }
  0xf4   :  { %6405 = vmatprep.subr.bf16.mxu1 %v8022_v40 }
  0xf6   :  { %6386 = vmatmul.mubr.bf16.gmra.mrb[4].mxu1 %v3595_v45  ;;  %6088 = vmatpush3.bf16.msra.mxu0 %v6958_v29  ;;  %v8194_v45 = vld [vmem:[#allocation2 + $0x44] sm:$0xff]  ;;  %v1224_v29 = vpack.c.bf16 %v7655_v60, %v7628_v39  ;;  %v1382_v39 = vld [vmem:[#allocation2 + $0x5c] sm:$0xff] }
  0xf7   :  { %6406 = vmatpush3.bf16.msra.mxu1 %v6953_v38  ;;  %6389 = vmatprep.mubr.msk.bf16.mxu1 %vm7015_vm0, %v8022_v40  ;;  %v6975_v38 = vld [vmem:[%s8843_s2 + $0x1a8] sm:$0xff]  }
  0xf8   :  { %6407 = vmatprep.subr.bf16.mxu1 %v8022_v40  ;;  %6089 = vmatprep.subr.bf16.mxu0 %v8022_v40 }
  0xf9   :  { %6070 = vmatmul.mubr.bf16.gmra.mrb[12].mxu0 %v1060_v28  ;;  %v3597_v28 = vpack.c.bf16 %v7617_v63, %v3590_v15  ;;  %v1220_v63 = vpack.c.bf16 %v7503_v50, %v7238_v11  ;;  %v8867_v11 = vpack.c.bf16 %v7327_v14, %v7619_v32  ;;  %v6965_v32 = vld [vmem:[%s8843_s2 + $0x180] sm:$0xff]   ;;  %v6970_v14 = vld [vmem:[%s8843_s2 + $0x198] sm:$0xff]  }
  0xfa   :  { %6073 = vmatprep.mubr.msk.bf16.mxu0 %vm7015_vm0, %v8022_v40  ;;  %6090 = vmatpush3.bf16.msra.mxu0 %v6960_v58  ;;  %v8213_v58 = vld [vmem:[#allocation2 + $0x4c] sm:$0xff]  ;;  %v6980_v15 = vld [vmem:[%s8843_s2 + $0x1c0] sm:$0xff]  }
  0xfb   :  { %6408 = vmatpush3.bf16.msra.mxu1 %v6955_v54  ;;  %6091 = vmatprep.subr.bf16.mxu0 %v8022_v40  ;;  %v3759_v54 = vpack.c.bf16 %v8194_v45, %v8192_v43 }
  0xfc   :  { %6409 = vmatprep.subr.bf16.mxu1 %v8022_v40 }
  0xfe   :  { %6390 = vmatmul.mubr.bf16.gmra.mrb[8].mxu1 %v3596_v53  ;;  %6092 = vmatpush3.bf16.msra.mxu0 %v6962_v8  ;;  %v8215_v53 = vld [vmem:[#allocation2 + $0x54] sm:$0xff] }
  0xff   :  { %6410 = vmatpush3.bf16.msra.mxu1 %v6957_v51  ;;  %6393 = vmatprep.mubr.msk.bf16.mxu1 %vm7015_vm0, %v8022_v40  ;;  %v1383_v51 = vpack.c.bf16 %v7526_v61, %v7503_v50  ;;  %v6979_v8 = vld [vmem:[%s8843_s2 + $0x1b8] sm:$0xff]   ;;  %v6982_v50 = vld [vmem:[%s8843_s2 + $0x1c8] sm:$0xff]   ;;  %v1384_v61 = vpack.c.bf16 %v7564_v20, %v7562_v24 }
 0x100   :  { %6411 = vmatprep.subr.bf16.mxu1 %v8022_v40  ;;  %6113 = vmatprep.subr.bf16.mxu0 %v8022_v40  ;;  %v6986_v24 = vld [vmem:[%s8843_s2 + $0x1d8] sm:$0xff]   ;;  %v6983_v20 = vld [vmem:[%s8843_s2 + $0x1c8] sm:$0xff]  }
 0x101   :  { %6074 = vmatmul.mubr.bf16.gmra.mrb[16].mxu0 %v1061_v10  ;;  %v6966_v10 = vld [vmem:[%s8843_s2 + $0x188] sm:$0xff]  }
 0x102   :  { %6093 = vmatprep.mubr.msk.bf16.mxu0 %vm7015_vm0, %v8022_v40 }
 0x103   :  { %6412 = vmatpush3.bf16.msra.mxu1 %v6959_v62  ;;  %v3760_v62 = vpack.c.bf16 %v8215_v53, %v8213_v58 }
 0x104   :  { %6413 = vmatprep.subr.bf16.mxu1 %v8022_v40 }
 0x106   :  { %6394 = vmatmul.mubr.bf16.gmra.mrb[12].mxu1 %v3597_v28  ;;  %v6984_v28 = vld [vmem:[%s8843_s2 + $0x1d0] sm:$0xff]  }
 0x107   :  { %6414 = vmatpush3.bf16.msra.mxu1 %v6961_v4  ;;  %6397 = vmatprep.mubr.msk.bf16.mxu1 %vm7015_vm0, %v8022_v40  ;;  %v3918_v4 = vpack.c.bf16 %v8139_v57, %v8116_v9  ;;  %v6992_v9 = vld [vmem:[%s8843_s2 + $0x1f0] sm:$0xff]   ;;  %v6995_v57 = vld [vmem:[%s8843_s2 + $0x1f8] sm:$0xff]  }
 0x108   :  { %6415 = vmatprep.subr.bf16.mxu1 %v8022_v40 }
 0x109   :  { %6094 = vmatmul.mubr.bf16.vlgmr.msra.gmra.mrb[0].mxu0 %v1220_v63  ;;  %v6981_v63 = vld [vmem:[%s8843_s2 + $0x1c0] sm:$0xff]  }
 0x10a   :  { %6114 = vmatpush3.bf16.msra.mxu0 %v6964_v33  ;;  %6097 = vmatprep.mubr.msk.bf16.mxu0 %vm7015_vm0, %v8022_v40  ;;  %v6988_v33 = vld [vmem:[%s8843_s2 + $0x1e0] sm:$0xff]  }
 0x10b   :  { %6416 = vmatpush3.bf16.msra.mxu1 %v6963_v3  ;;  %6115 = vmatprep.subr.bf16.mxu0 %v8022_v40  ;;  %v1385_v3 = vpack.c.bf16 %v7600_v44, %v7598_v36  ;;  %v6990_v44 = vld [vmem:[%s8843_s2 + $0x1e8] sm:$0xff]   ;;  %v6987_v36 = vld [vmem:[%s8843_s2 + $0x1d8] sm:$0xff]  }
 0x10c   :  { %6437 = vmatprep.subr.bf16.mxu1 %v8022_v40 }
 0x10e   :  { %6398 = vmatmul.mubr.bf16.gmra.mrb[16].mxu1 %v8867_v11  ;;  %6116 = vmatpush3.bf16.msra.mxu0 %v6966_v10  ;;  %v3919_v10 = vpack.c.bf16 %v8167_v34, %v8141_v7  ;;  %v6985_v11 = vld [vmem:[%s8843_s2 + $0x1d0] sm:$0xff]   ;;  %v6996_v7 = vld [vmem:[%s8843_s2 + $0x200] sm:$0xff]  }
 0x10f   :  { %6417 = vmatprep.mubr.msk.bf16.mxu1 %vm7015_vm0, %v8022_v40  ;;  %6117 = vmatprep.subr.bf16.mxu0 %v8022_v40  ;;  %v4072_v34 = vld [vmem:[#allocation2 + $0x25] sm:$0xff] }
 0x111   :  { %6098 = vmatmul.mubr.bf16.gmra.mrb[4].mxu0 %v1221_v18  ;;  %v3920_v18 = vpack.c.bf16 %v8192_v43, %v8169_v1  ;;  %v4073_v1 = vld [vmem:[#allocation2 + $0x2d] sm:$0xff]  ;;  %v4075_v43 = vld [vmem:[#allocation2 + $0x3d] sm:$0xff] }
 0x112   :  { %6101 = vmatprep.mubr.msk.bf16.mxu0 %vm7015_vm0, %v8022_v40  ;;  %6118 = vmatpush3.bf16.msra.mxu0 %v6968_v30  ;;  %v6989_v30 = vld [vmem:[%s8843_s2 + $0x1e0] sm:$0xff]  }
 0x113   :  { %6119 = vmatprep.subr.bf16.mxu0 %v8022_v40 }
 0x116   :  { %6418 = vmatmul.mubr.bf16.vlgmr.msra.gmra.mrb[0].mxu1 %v3756_v6  ;;  %6120 = vmatpush3.bf16.msra.mxu0 %v6970_v14  ;;  %v6991_v6 = vld [vmem:[%s8843_s2 + $0x1e8] sm:$0xff]   ;;  %v3921_v14 = vpack.c.bf16 %v8213_v58, %v8194_v45  ;;  %v1549_v45 = vpack.c.bf16 %v7639_v48, %v7630_v52  ;;  %v1545_v52 = vld [vmem:[#allocation2 + $0x5d] sm:$0xff] }
 0x117   :  { %6438 = vmatpush3.bf16.msra.mxu1 %v6965_v32  ;;  %6421 = vmatprep.mubr.msk.bf16.mxu1 %vm7015_vm0, %v8022_v40  ;;  %v1387_v32 = vpack.c.bf16 %v1382_v39, %v7655_v60  ;;  %v1546_v60 = vpack.c.bf16 %v7528_v13, %v7505_v37  ;;  %v6998_v37 = vld [vmem:[%s8843_s2 + $0x208] sm:$0xff]   ;;  %v4070_v13 = vld [vmem:[#allocation2 + $0x15] sm:$0xff] }
 0x118   :  { %6439 = vmatprep.subr.bf16.mxu1 %v8022_v40  ;;  %6121 = vmatprep.subr.bf16.mxu0 %v8022_v40  ;;  %v7010_v48 = vld [vmem:[%s8843_s2 + $0x238] sm:$0xff]   ;;  %v4077_v58 = vld [vmem:[#allocation2 + $0x4d] sm:$0xff] }
 0x119   :  { %6102 = vmatmul.mubr.bf16.gmra.mrb[8].mxu0 %v1222_v23  ;;  %v3922_v23 = vpack.c.bf16 %v1382_v39, %v8215_v53  ;;  %v7007_v53 = vld [vmem:[%s8843_s2 + $0x228] sm:$0xff]  }
 0x11a   :  { %6105 = vmatprep.mubr.msk.bf16.mxu0 %vm7015_vm0, %v8022_v40  ;;  %6122 = vmatpush3.bf16.msra.mxu0 %v6972_v47  ;;  %v4071_v47 = vld [vmem:[#allocation2 + $0x1d] sm:$0xff] }
 0x11b   :  { %6440 = vmatpush3.bf16.msra.mxu1 %v6967_v12  ;;  %6123 = vmatprep.subr.bf16.mxu0 %v8022_v40  ;;  %v6993_v12 = vld [vmem:[%s8843_s2 + $0x1f0] sm:$0xff]  }
 0x11c   :  { %6441 = vmatprep.subr.bf16.mxu1 %v8022_v40 }
 0x11e   :  { %6422 = vmatmul.mubr.bf16.gmra.mrb[4].mxu1 %v3757_v19  ;;  %6124 = vmatpush3.bf16.msra.mxu0 %v6974_v5  ;;  %v1547_v19 = vpack.c.bf16 %v7575_v35, %v7566_v0  ;;  %v4080_v5 = vpack.c.bf16 %v4071_v47, %v4070_v13  ;;  %v7002_v0 = vld [vmem:[%s8843_s2 + $0x218] sm:$0xff]   ;;  %v6999_v35 = vld [vmem:[%s8843_s2 + $0x208] sm:$0xff]  }
 0x11f   :  { %6442 = vmatpush3.bf16.msra.mxu1 %v6969_v25  ;;  %6425 = vmatprep.mubr.msk.bf16.mxu1 %vm7015_vm0, %v8022_v40  ;;  %v7000_v25 = vld [vmem:[%s8843_s2 + $0x210] sm:$0xff]  }
 0x120   :  { %6443 = vmatprep.subr.bf16.mxu1 %v8022_v40  ;;  %6125 = vmatprep.subr.bf16.mxu0 %v8022_v40 }
 0x121   :  { %6106 = vmatmul.mubr.bf16.gmra.mrb[12].mxu0 %v1223_v26  ;;  %v1548_v26 = vpack.c.bf16 %v7607_v21, %v7605_v41  ;;  %v7006_v41 = vld [vmem:[%s8843_s2 + $0x228] sm:$0xff]   ;;  %v7003_v21 = vld [vmem:[%s8843_s2 + $0x218] sm:$0xff]  }
 0x122   :  { %6109 = vmatprep.mubr.msk.bf16.mxu0 %vm7015_vm0, %v8022_v40  ;;  %6126 = vmatpush3.bf16.msra.mxu0 %v6976_v46  ;;  %v7004_v46 = vld [vmem:[%s8843_s2 + $0x220] sm:$0xff]  }
 0x123   :  { %6444 = vmatpush3.bf16.msra.mxu1 %v6971_v2  ;;  %6127 = vmatprep.subr.bf16.mxu0 %v8022_v40  ;;  %v6997_v2 = vld [vmem:[%s8843_s2 + $0x200] sm:$0xff]  }
 0x124   :  { %6445 = vmatprep.subr.bf16.mxu1 %v8022_v40 }
 0x126   :  { %6426 = vmatmul.mubr.bf16.gmra.mrb[8].mxu1 %v3758_v22  ;;  %6128 = vmatpush3.bf16.msra.mxu0 %v6978_v31  ;;  %v4081_v22 = vpack.c.bf16 %v4073_v1, %v4072_v34  ;;  %v4074_v31 = vld [vmem:[#allocation2 + $0x35] sm:$0xff] }
 0x127   :  { %6446 = vmatpush3.bf16.msra.mxu1 %v6973_v49  ;;  %6429 = vmatprep.mubr.msk.bf16.mxu1 %vm7015_vm0, %v8022_v40  ;;  %v7001_v49 = vld [vmem:[%s8843_s2 + $0x210] sm:$0xff]  }
 0x128   :  { %6447 = vmatprep.subr.bf16.mxu1 %v8022_v40  ;;  %6149 = vmatprep.subr.bf16.mxu0 %v8022_v40 }
 0x129   :  { %6110 = vmatmul.mubr.bf16.gmra.mrb[16].mxu0 %v1224_v29  ;;  %v4082_v29 = vpack.c.bf16 %v4075_v43, %v4074_v31 }
 0x12a   :  { %6129 = vmatprep.mubr.msk.bf16.mxu0 %vm7015_vm0, %v8022_v40 }
 0x12b   :  { %6448 = vmatpush3.bf16.msra.mxu1 %v6975_v38  ;;  %v7008_v38 = vld [vmem:[%s8843_s2 + $0x230] sm:$0xff]  }
 0x12c   :  { %6449 = vmatprep.subr.bf16.mxu1 %v8022_v40 }
 0x12e   :  { %6430 = vmatmul.mubr.bf16.gmra.mrb[12].mxu1 %v3759_v54  ;;  %v7005_v54 = vld [vmem:[%s8843_s2 + $0x220] sm:$0xff]  }
 0x12f   :  { %6450 = vmatpush3.bf16.msra.mxu1 %v6977_v16  ;;  %6433 = vmatprep.mubr.msk.bf16.mxu1 %vm7015_vm0, %v8022_v40  ;;  %v4076_v16 = vld [vmem:[#allocation2 + $0x45] sm:$0xff] }
 0x130   :  { %6451 = vmatprep.subr.bf16.mxu1 %v8022_v40 }
 0x131   :  { %6130 = vmatmul.mubr.bf16.vlgmr.msra.gmra.mrb[0].mxu0 %v1383_v51  ;;  %v1550_v51 = vpack.c.bf16 %v1545_v52, %v7657_v42  ;;  %v4078_v42 = vld [vmem:[#allocation2 + $0x55] sm:$0xff] }
 0x132   :  { %6150 = vmatpush3.bf16.msra.mxu0 %v6980_v15  ;;  %6133 = vmatprep.mubr.msk.bf16.mxu0 %vm7015_vm0, %v8022_v40  ;;  %v7009_v15 = vld [vmem:[%s8843_s2 + $0x230] sm:$0xff]  }
 0x133   :  { %6452 = vmatpush3.bf16.msra.mxu1 %v6979_v8  ;;  %6151 = vmatprep.subr.bf16.mxu0 %v8022_v40  ;;  %v4083_v8 = vpack.c.bf16 %v4077_v58, %v4076_v16 }
 0x134   :  { %6473 = vmatprep.subr.bf16.mxu1 %v8022_v40 }
 0x136   :  { %6434 = vmatmul.mubr.bf16.gmra.mrb[16].mxu1 %v3760_v62  ;;  %6152 = vmatpush3.bf16.msra.mxu0 %v6982_v50  ;;  %v1709_v62 = vpack.c.bf16 %v7530_v17, %v7507_v59  ;;  %v7011_v50 = vld [vmem:[%s8843_s2 + $0x238] sm:$0xff]  }
 0x137   :  { %6453 = vmatprep.mubr.msk.bf16.mxu1 %vm7015_vm0, %v8022_v40  ;;  %6153 = vmatprep.subr.bf16.mxu0 %v8022_v40  ;;  %v8869_v59 = vld [vmem:[#allocation5_spill] sm:$0xff] }
 0x139   :  { %6134 = vmatmul.mubr.bf16.gmra.mrb[4].mxu0 %v1384_v61  ;;  %v4084_v61 = vpack.c.bf16 %v1545_v52, %v4078_v42 }
 0x13a   :  { %6137 = vmatprep.mubr.msk.bf16.mxu0 %vm7015_vm0, %v8022_v40  ;;  %6154 = vmatpush3.bf16.msra.mxu0 %v6984_v28  ;;  %v4232_v28 = vld [vmem:[#allocation2 + $0x16] sm:$0xff] }
 0x13b   :  { %6155 = vmatprep.subr.bf16.mxu0 %v8022_v40 }
 0x13e   :  { %6454 = vmatmul.mubr.bf16.vlgmr.msra.gmra.mrb[0].mxu1 %v3918_v4  ;;  %6156 = vmatpush3.bf16.msra.mxu0 %v6986_v24  ;;  %v4233_v4 = vld [vmem:[#allocation2 + $0x1e] sm:$0xff] }
 0x13f   :  { %6474 = vmatpush3.bf16.msra.mxu1 %v6981_v63  ;;  %6457 = vmatprep.mubr.msk.bf16.mxu1 %vm7015_vm0, %v8022_v40  ;;  %v8868_v63 = vld [vmem:[#allocation4_spill] sm:$0xff]  ;;  %v4242_v24 = vpack.c.bf16 %v4233_v4, %v4232_v28 }
 0x140   :  { %6475 = vmatprep.subr.bf16.mxu1 %v8022_v40  ;;  %6157 = vmatprep.subr.bf16.mxu0 %v8022_v40  ;;  %v1710_v17 = vpack.c.bf16 %v8869_v59, %v8868_v63 }
 0x141   :  { %6138 = vmatmul.mubr.bf16.gmra.mrb[8].mxu0 %v1385_v3  ;;  %v4235_v3 = vld [vmem:[#allocation2 + $0x2e] sm:$0xff] }
 0x142   :  { %6141 = vmatprep.mubr.msk.bf16.mxu0 %vm7015_vm0, %v8022_v40  ;;  %6158 = vmatpush3.bf16.msra.mxu0 %v6988_v33  ;;  %v8870_v33 = vld [vmem:[#allocation6_spill] sm:$0xff] }
 0x143   :  { %6476 = vmatpush3.bf16.msra.mxu1 %v6983_v20  ;;  %6159 = vmatprep.subr.bf16.mxu0 %v8022_v40  ;;  %v4234_v20 = vld [vmem:[#allocation2 + $0x26] sm:$0xff] }
 0x144   :  { %6477 = vmatprep.subr.bf16.mxu1 %v8022_v40 }
 0x146   :  { %6458 = vmatmul.mubr.bf16.gmra.mrb[4].mxu1 %v3919_v10  ;;  %6160 = vmatpush3.bf16.msra.mxu0 %v6990_v44  ;;  %v8871_v10 = vld [vmem:[#allocation7_spill] sm:$0xff]  ;;  %v4243_v44 = vpack.c.bf16 %v4235_v3, %v4234_v20 }
 0x147   :  { %6478 = vmatpush3.bf16.msra.mxu1 %v6985_v11  ;;  %6461 = vmatprep.mubr.msk.bf16.mxu1 %vm7015_vm0, %v8022_v40  ;;  %v1711_v11 = vpack.c.bf16 %v8871_v10, %v8870_v33 }
 0x148   :  { %6479 = vmatprep.subr.bf16.mxu1 %v8022_v40  ;;  %6161 = vmatprep.subr.bf16.mxu0 %v8022_v40 }
 0x149   :  { %6142 = vmatmul.mubr.bf16.gmra.mrb[12].mxu0 %v1386_v55  ;;  %v4237_v55 = vld [vmem:[#allocation2 + $0x3e] sm:$0xff] }
 0x14a   :  { %6145 = vmatprep.mubr.msk.bf16.mxu0 %vm7015_vm0, %v8022_v40  ;;  %6162 = vmatpush3.bf16.msra.mxu0 %v6992_v9  ;;  %v8872_v9 = vld [vmem:[#allocation8_spill] sm:$0xff] }
 0x14b   :  { %6480 = vmatpush3.bf16.msra.mxu1 %v6987_v36  ;;  %6163 = vmatprep.subr.bf16.mxu0 %v8022_v40  ;;  %v4236_v36 = vld [vmem:[#allocation2 + $0x36] sm:$0xff] }
 0x14c   :  { %6481 = vmatprep.subr.bf16.mxu1 %v8022_v40  ;;  %v4244_v39 = vpack.c.bf16 %v4237_v55, %v4236_v36 }
 0x14e   :  { %6462 = vmatmul.mubr.bf16.gmra.mrb[8].mxu1 %v3920_v18  ;;  %6164 = vmatpush3.bf16.msra.mxu0 %v6994_v56  ;;  %v8873_v18 = vld [vmem:[#allocation9_spill] sm:$0xff] }
 0x14f   :  { %6482 = vmatpush3.bf16.msra.mxu1 %v6989_v30  ;;  %6465 = vmatprep.mubr.msk.bf16.mxu1 %vm7015_vm0, %v8022_v40  ;;  %v1712_v30 = vpack.c.bf16 %v8873_v18, %v8872_v9  ;;  %v1708_v56 = vld [vmem:[#allocation2 + $0x5e] sm:$0xff] }
 0x150   :  { %6483 = vmatprep.subr.bf16.mxu1 %v8022_v40  ;;  %6185 = vmatprep.subr.bf16.mxu0 %v8022_v40 }
 0x151   :  { %6146 = vmatmul.mubr.bf16.gmra.mrb[16].mxu0 %v1387_v32  ;;  %v4239_v32 = vld [vmem:[#allocation2 + $0x4e] sm:$0xff] }
 0x152   :  { %6165 = vmatprep.mubr.msk.bf16.mxu0 %vm7015_vm0, %v8022_v40 }
 0x153   :  { %6484 = vmatpush3.bf16.msra.mxu1 %v6991_v6  ;;  %v4238_v6 = vld [vmem:[#allocation2 + $0x46] sm:$0xff] }
 0x154   :  { %6485 = vmatprep.subr.bf16.mxu1 %v8022_v40 }
 0x156   :  { %6466 = vmatmul.mubr.bf16.gmra.mrb[12].mxu1 %v3921_v14  ;;  %v1713_v14 = vpack.c.bf16 %v1708_v56, %v7659_v27 }
 0x157   :  { %6486 = vmatpush3.bf16.msra.mxu1 %v6993_v12  ;;  %6469 = vmatprep.mubr.msk.bf16.mxu1 %vm7015_vm0, %v8022_v40  ;;  %v4245_v12 = vpack.c.bf16 %v4239_v32, %v4238_v6 }
 0x158   :  { %6487 = vmatprep.subr.bf16.mxu1 %v8022_v40 }
 0x159   :  { %6166 = vmatmul.mubr.bf16.vlgmr.msra.gmra.mrb[0].mxu0 %v1546_v60  ;;  %v4240_v60 = vld [vmem:[#allocation2 + $0x56] sm:$0xff] }
 0x15a   :  { %6186 = vmatpush3.bf16.msra.mxu0 %v6996_v7  ;;  %6169 = vmatprep.mubr.msk.bf16.mxu0 %vm7015_vm0, %v8022_v40  ;;  %v5327_v7 = vld [vmem:[%s8846_s3] ss:$0 sm:$0xff] }
 0x15b   :  { %6488 = vmatpush3.bf16.msra.mxu1 %v6995_v57  ;;  %6187 = vmatprep.subr.bf16.mxu0 %v8022_v40  ;;  %v4246_v57 = vpack.c.bf16 %v1708_v56, %v4240_v60 }
 0x15c   :  { %6509 = vmatprep.subr.bf16.mxu1 %v8022_v40 }
 0x15e   :  { %6470 = vmatmul.mubr.bf16.gmra.mrb[16].mxu1 %v3922_v23  ;;  %6188 = vmatpush3.bf16.msra.mxu0 %v6998_v37  ;;  %v2076_v23 = vcombine.high %v5327_v7, %v5327_v7  ;;  %v8874_v37 = vld [vmem:[#allocation3_spill] sm:$0xff] }
 0x15f   :  { %6489 = vmatprep.mubr.msk.bf16.mxu1 %vm7015_vm0, %v8022_v40  ;;  %6189 = vmatprep.subr.bf16.mxu0 %v8022_v40  ;;  %v8448_v13 = vrot.slane %v5327_v7, %v8874_v37 }
 0x160   :  { %v8451_v47 = vrot.slane %v2076_v23, %v8874_v37 }
 0x161   :  { %6170 = vmatmul.mubr.bf16.gmra.mrb[4].mxu0 %v1547_v19 }
 0x162   :  { %6173 = vmatprep.mubr.msk.bf16.mxu0 %vm7015_vm0, %v8022_v40  ;;  %6190 = vmatpush3.bf16.msra.mxu0 %v7000_v25 }
 0x163   :  { %6191 = vmatprep.subr.bf16.mxu0 %v8022_v40 }
 0x166   :  { %6490 = vmatmul.mubr.bf16.vlgmr.msra.gmra.mrb[0].mxu1 %v4080_v5  ;;  %6192 = vmatpush3.bf16.msra.mxu0 %v7002_v0 }
 0x167   :  { %6510 = vmatpush3.bf16.msra.mxu1 %v6997_v2  ;;  %6493 = vmatprep.mubr.msk.bf16.mxu1 %vm7015_vm0, %v8022_v40  ;;  %v8460_v2 = vcombine.high %v8451_v47, %v8451_v47 }
 0x168   :  { %6511 = vmatprep.subr.bf16.mxu1 %v8022_v40  ;;  %6193 = vmatprep.subr.bf16.mxu0 %v8022_v40 }
 0x169   :  { %6174 = vmatmul.mubr.bf16.gmra.mrb[8].mxu0 %v1548_v26 }
 0x16a   :  { %6177 = vmatprep.mubr.msk.bf16.mxu0 %vm7015_vm0, %v8022_v40  ;;  %6194 = vmatpush3.bf16.msra.mxu0 %v7004_v46 }
 0x16b   :  { %6512 = vmatpush3.bf16.msra.mxu1 %v6999_v35  ;;  %6195 = vmatprep.subr.bf16.mxu0 %v8022_v40 }
 0x16c   :  { %6513 = vmatprep.subr.bf16.mxu1 %v8022_v40 }
 0x16e   :  { %6494 = vmatmul.mubr.bf16.gmra.mrb[4].mxu1 %v4081_v22  ;;  %6196 = vmatpush3.bf16.msra.mxu0 %v7006_v41 }
 0x16f   :  { %6514 = vmatpush3.bf16.msra.mxu1 %v7001_v49  ;;  %6497 = vmatprep.mubr.msk.bf16.mxu1 %vm7015_vm0, %v8022_v40 }
 0x170   :  { %6515 = vmatprep.subr.bf16.mxu1 %v8022_v40  ;;  %6197 = vmatprep.subr.bf16.mxu0 %v8022_v40 }
 0x171   :  { %6178 = vmatmul.mubr.bf16.gmra.mrb[12].mxu0 %v1549_v45 }
 0x172   :  { %6181 = vmatprep.mubr.msk.bf16.mxu0 %vm7015_vm0, %v8022_v40  ;;  %6198 = vmatpush3.bf16.msra.mxu0 %v7008_v38 }
 0x173   :  { %6516 = vmatpush3.bf16.msra.mxu1 %v7003_v21  ;;  %6199 = vmatprep.subr.bf16.mxu0 %v8022_v40 }
 0x174   :  { %6517 = vmatprep.subr.bf16.mxu1 %v8022_v40 }
 0x176   :  { %6498 = vmatmul.mubr.bf16.gmra.mrb[8].mxu1 %v4082_v29  ;;  %6200 = vmatpush3.bf16.msra.mxu0 %v7010_v48 }
 0x177   :  { %6518 = vmatpush3.bf16.msra.mxu1 %v7005_v54  ;;  %6501 = vmatprep.mubr.msk.bf16.mxu1 %vm7015_vm0, %v8022_v40 }
 0x178   :  { %6519 = vmatprep.subr.bf16.mxu1 %v8022_v40 }
 0x179   :  { %6182 = vmatmul.mubr.bf16.gmra.mrb[16].mxu0 %v1550_v51 }
 0x17a   :  { %6201 = vmatprep.mubr.msk.bf16.mxu0 %vm7015_vm0, %v8022_v40 }
 0x17b   :  { %6520 = vmatpush3.bf16.msra.mxu1 %v7007_v53 }
 0x17c   :  { %6521 = vmatprep.subr.bf16.mxu1 %v8022_v40 }
 0x17e   :  { %6502 = vmatmul.mubr.bf16.gmra.mrb[12].mxu1 %v4083_v8 }
 0x17f   :  { %6522 = vmatpush3.bf16.msra.mxu1 %v7009_v15  ;;  %6505 = vmatprep.mubr.msk.bf16.mxu1 %vm7015_vm0, %v8022_v40 }
 0x180   :  { %6523 = vmatprep.subr.bf16.mxu1 %v8022_v40 }
 0x181   :  { %6202 = vmatmul.mubr.bf16.vlgmr.msra.gmra.mrb[0].mxu0 %v1709_v62 }
 0x182   :  { %6205 = vmatprep.mubr.msk.bf16.mxu0 %vm7015_vm0, %v8022_v40 }
 0x183   :  { %6524 = vmatpush3.bf16.msra.mxu1 %v7011_v50 }
 0x186   :  { %6506 = vmatmul.mubr.bf16.gmra.mrb[16].mxu1 %v4084_v61 }
 0x187   :  { %6525 = vmatprep.mubr.msk.bf16.mxu1 %vm7015_vm0, %v8022_v40 }
 0x189   :  { %6206 = vmatmul.mubr.bf16.gmra.mrb[4].mxu0 %v1710_v17 }
 0x18a   :  { %6209 = vmatprep.mubr.msk.bf16.mxu0 %vm7015_vm0, %v8022_v40 }
 0x18e   :  { %6526 = vmatmul.mubr.bf16.vlgmr.msra.gmra.mrb[0].mxu1 %v4242_v24 }
 0x18f   :  { %6529 = vmatprep.mubr.msk.bf16.mxu1 %vm7015_vm0, %v8022_v40 }
 0x191   :  { %6210 = vmatmul.mubr.bf16.gmra.mrb[8].mxu0 %v1711_v11 }
 0x192   :  { %6213 = vmatprep.mubr.msk.bf16.mxu0 %vm7015_vm0, %v8022_v40 }
 0x196   :  { %6530 = vmatmul.mubr.bf16.gmra.mrb[4].mxu1 %v4243_v44 }
 0x197   :  { %6533 = vmatprep.mubr.msk.bf16.mxu1 %vm7015_vm0, %v8022_v40 }
 0x199   :  { %6214 = vmatmul.mubr.bf16.gmra.mrb[12].mxu0 %v1712_v30 }
 0x19a   :  { %6217 = vmatprep.mubr.msk.bf16.mxu0 %vm7015_vm0, %v8022_v40 }
 0x19e   :  { %6534 = vmatmul.mubr.bf16.gmra.mrb[8].mxu1 %v4244_v39 }
 0x19f   :  { %6537 = vmatprep.mubr.msk.bf16.mxu1 %vm7015_vm0, %v8022_v40 }
 0x1a1   :  { %6218 = vmatmul.mubr.bf16.gmra.mrb[16].mxu0 %v1713_v14 }
 0x1a6   :  { %6538 = vmatmul.mubr.bf16.gmra.mrb[12].mxu1 %v4245_v12 }
 0x1a7   :  { %6541 = vmatprep.mubr.msk.bf16.mxu1 %vm7015_vm0, %v8022_v40  ;;  %v8456_v40 = vcombine.high %v8448_v13, %v8448_v13 }
 0x1ae   :  { %6542 = vmatmul.mubr.bf16.gmra.mrb[16].mxu1 %v4246_v57 }
 0x254   :  { %v1813_v27 = vpop.f32.mrb[0].mxu0 }
 0x255   :  { %v1872_v19 = vcombine.high %v1813_v27, %v1813_v27  ;;  %v1879_v25 = vrot.slane %v1813_v27, %v8874_v37  ;;  %v6203_v5 = vpop.f32.mrb[1].mxu0 }
 0x256   :  { %v1816_v0 = vpop.f32.mrb[2].mxu0 }
 0x257   :  { %v1886_v35 = vrot.slane %v1872_v19, %v8874_v37  ;;  %v1887_v34 = vcombine.high %v1879_v25, %v1879_v25  ;;  %v2097_v1 = vadd.f32 %v8448_v13, %v1879_v25  ;;  %v1889_v26 = vcombine.high %v1816_v0, %v1816_v0  ;;  %v6204_v46 = vpop.f32.mrb[3].mxu0 }
 0x258   :  { %v1896_v22 = vrot.slane %v1816_v0, %v8874_v37 }
 0x259   :  { %v1888_v49 = vcombine.high %v1886_v35, %v1886_v35  ;;  %v2098_v41 = vadd.f32 %v8456_v40, %v1887_v34  ;;  %v2099_v21 = vadd.f32 %v8451_v47, %v1886_v35  ;;  %v1903_v31 = vrot.slane %v1889_v26, %v8874_v37 }
 0x25a   :  { %v1904_v43 = vcombine.high %v1896_v22, %v1896_v22  ;;  %v2359_v29 = vmul.f32 %v2097_v1, %v2097_v1 }
 0x25b   :  { %v2100_v45 = vadd.f32 %v8460_v2, %v1888_v49  ;;  %v2161_v38 = vcombine.low %v2097_v1, %v2098_v41  ;;  %v2360_v54 = vmul.f32 %v2098_v41, %v2098_v41  ;;  %v2361_v52 = vmul.f32 %v2099_v21, %v2099_v21 }
 0x25c   :  { %v1905_v48 = vcombine.high %v1903_v31, %v1903_v31  ;;  %v2101_v16 = vadd.f32 %v8448_v13, %v1904_v43  ;;  %v2102_v58 = vadd.f32 %v8456_v40, %v1903_v31  ;;  %v1821_v53 = vpop.f32.mrb[4].mxu0 }
 0x25d   :  { %v2162_v51 = vcombine.low %v2099_v21, %v2100_v45  ;;  %v2169_v8 = vrot.slane %v2161_v38, %v8874_v37  ;;  %v2362_v15 = vmul.f32 %v2100_v45, %v2100_v45  ;;  %v2423_v42 = vcombine.low %v2359_v29, %v2360_v54  ;;  %v6207_v62 = vpop.f32.mrb[5].mxu0 }
 0x25e   :  { %v2178_v50 = vcombine.low %v2101_v16, %v2102_v58  ;;  %v2363_v61 = vmul.f32 %v2101_v16, %v2101_v16  ;;  %v2364_v28 = vmul.f32 %v2102_v58, %v2102_v58  ;;  %v1906_v4 = vcombine.high %v1821_v53, %v1821_v53  ;;  %v8472_v63 = vpop.f32.mrb[6].mxu0 }
 0x25f   :  { %v2176_v59 = vrot.slane %v2162_v51, %v8874_v37  ;;  %v2424_v17 = vcombine.low %v2361_v52, %v2362_v15  ;;  %v8476_v24 = vrot.slane %v2423_v42, %v8874_v37  ;;  %v1913_v3 = vrot.slane %v1821_v53, %v8874_v37  ;;  %v6208_v33 = vpop.f32.mrb[7].mxu0 }
 0x260   :  { %v8480_v10 = vrot.slane %v2178_v50, %v8874_v37  ;;  %v2440_v11 = vcombine.low %v2363_v61, %v2364_v28  ;;  %v1920_v39 = vrot.slane %v1906_v4, %v8874_v37  ;;  %v2103_v56 = vadd.f32 %v8451_v47, %v1905_v48 }
 0x261   :  { %v4345_v20 = vpop.f32.mrb[0].mxu1  ;;  %v8483_v9 = vcombine.low %v2169_v8, %v2176_v59  ;;  %v8486_v18 = vrot.slane %v2424_v17, %v8874_v37  ;;  %v2104_v26 = vadd.f32 %v8460_v2, %v1913_v3 }
 0x262   :  { %v4404_v44 = vcombine.high %v4345_v20, %v4345_v20  ;;  %v4411_v36 = vrot.slane %v4345_v20, %v8874_v37  ;;  %v6527_v55 = vpop.f32.mrb[1].mxu1  ;;  %v8491_v6 = vrot.slane %v2440_v11, %v8874_v37  ;;  %v1921_v27 = vcombine.high %v1920_v39, %v1920_v39 }
 0x263   :  { %v4348_v30 = vpop.f32.mrb[2].mxu1  ;;  %v2439_v57 = vcombine.low %v8476_v24, %v8486_v18  ;;  %v2105_v46 = vadd.f32 %v8448_v13, %v1920_v39  ;;  %v2179_v50 = vcombine.low %v2103_v56, %v2104_v26  ;;  %v2366_v39 = vmul.f32 %v2104_v26, %v2104_v26 }
 0x264   :  { %v4418_v32 = vrot.slane %v4404_v44, %v8874_v37  ;;  %v4419_v14 = vcombine.high %v4411_v36, %v4411_v36  ;;  %v4629_v12 = vadd.f32 %v4411_v36, %v8448_v13  ;;  %v6528_v60 = vpop.f32.mrb[3].mxu1  ;;  %v4421_v7 = vcombine.high %v4348_v30, %v4348_v30  ;;  %v8500_v35 = vpop.f32.mrb[8].mxu0 }
 0x265   :  { %v4428_v23 = vrot.slane %v4348_v30, %v8874_v37  ;;  %v6211_v22 = vpop.f32.mrb[9].mxu0  ;;  %v2106_v54 = vadd.f32 %v8456_v40, %v1921_v27  ;;  %v2193_v11 = vrot.slane %v2179_v50, %v8874_v37  ;;  %v2365_v44 = vmul.f32 %v2103_v56, %v2103_v56 }
 0x266   :  { %v4420_v19 = vcombine.high %v4418_v32, %v4418_v32  ;;  %v4630_v25 = vadd.f32 %v4419_v14, %v8456_v40  ;;  %v4631_v5 = vadd.f32 %v4418_v32, %v8451_v47  ;;  %v4892_v0 = vmul.f32 %v4629_v12, %v4629_v12  ;;  %v8508_v43 = vpop.f32.mrb[10].mxu0 }
 0x267   :  { %v8503_v34 = vrot.slane %v4421_v7, %v8874_v37  ;;  %v4436_v1 = vcombine.high %v4428_v23, %v4428_v23  ;;  %v6212_v48 = vpop.f32.mrb[11].mxu0  ;;  %v2195_v17 = vcombine.low %v2105_v46, %v2106_v54  ;;  %v2367_v60 = vmul.f32 %v2105_v46, %v2105_v46 }
 0x268   :  { %v4632_v49 = vadd.f32 %v4420_v19, %v8460_v2  ;;  %v4693_v41 = vcombine.low %v4629_v12, %v4630_v25  ;;  %v4893_v21 = vmul.f32 %v4630_v25, %v4630_v25  ;;  %v4894_v31 = vmul.f32 %v4631_v5, %v4631_v5 }
 0x269   :  { %v4437_v45 = vcombine.high %v8503_v34, %v8503_v34  ;;  %v4633_v38 = vadd.f32 %v4436_v1, %v8448_v13  ;;  %v4634_v29 = vadd.f32 %v8503_v34, %v8456_v40  ;;  %v4353_v52 = vpop.f32.mrb[4].mxu1  ;;  %v2203_v30 = vrot.slane %v2195_v17, %v8874_v37 }
 0x26a   :  { %v4694_v16 = vcombine.low %v4631_v5, %v4632_v49  ;;  %v4701_v58 = vrot.slane %v4693_v41, %v8874_v37  ;;  %v4895_v53 = vmul.f32 %v4632_v49, %v4632_v49  ;;  %v4956_v51 = vcombine.low %v4892_v0, %v4893_v21  ;;  %v6531_v8 = vpop.f32.mrb[5].mxu1 }
 0x26b   :  { %v4710_v15 = vcombine.low %v4633_v38, %v4634_v29  ;;  %v4896_v42 = vmul.f32 %v4633_v38, %v4633_v38  ;;  %v4897_v62 = vmul.f32 %v4634_v29, %v4634_v29  ;;  %v8517_v61 = vpop.f32.mrb[6].mxu1  ;;  %v2194_v12 = vcombine.low %v8480_v10, %v2193_v11 }
 0x26c   :  { %v4708_v28 = vrot.slane %v4694_v16, %v8874_v37  ;;  %v4957_v4 = vcombine.low %v4894_v31, %v4895_v53  ;;  %v8521_v59 = vrot.slane %v4956_v51, %v8874_v37  ;;  %v6532_v20 = vpop.f32.mrb[7].mxu1  ;;  %v8533_v32 = vpop.f32.mrb[12].mxu0  ;;  %v2368_v7 = vmul.f32 %v2106_v54, %v2106_v54 }
 0x26d   :  { %v8524_v3 = vrot.slane %v4710_v15, %v8874_v37  ;;  %v4973_v33 = vcombine.low %v4896_v42, %v4897_v62  ;;  %v6215_v23 = vpop.f32.mrb[13].mxu0  ;;  %v2441_v27 = vcombine.low %v2365_v44, %v2366_v39  ;;  %v1922_v19 = vcombine.high %v8472_v63, %v8472_v63 }
 0x26e   :  { %v8527_v36 = vcombine.low %v4701_v58, %v4708_v28  ;;  %v8530_v55 = vrot.slane %v4957_v4, %v8874_v37  ;;  %v1929_v25 = vrot.slane %v8472_v63, %v8874_v37  ;;  %v8545_v5 = vpop.f32.mrb[14].mxu0  ;;  %v5596_v0 = vpack.c.bf16 %v2194_v12, %v8483_v9 }
 0x26f   :  { %v8536_v14 = vrot.slane %v4973_v33, %v8874_v37  ;;  %v2345_v34 = vadd.f32 %v2194_v12, %v8483_v9  ;;  %v2457_v10 = vcombine.low %v2367_v60, %v2368_v7  ;;  %v4438_v1 = vcombine.high %v4353_v52, %v4353_v52  ;;  %v6216_v46 = vpop.f32.mrb[15].mxu0 }
 0x270   :  { %v4972_v56 = vcombine.low %v8521_v59, %v8530_v55  ;;  %v2455_v22 = vrot.slane %v2441_v27, %v8874_v37  ;;  %v1936_v49 = vrot.slane %v1922_v19, %v8874_v37  ;;  %v1937_v41 = vcombine.high %v1929_v25, %v1929_v25  ;;  %5597 = vst [vmem:[%s8847_s4] sm:$0xff] %v5596_v0  }
 0x271   :  { %v8549_v26 = vpop.f32.mrb[8].mxu1  ;;  %v2107_v21 = vadd.f32 %v8451_v47, %v1929_v25  ;;  %v2465_v63 = vrot.slane %v2457_v10, %v8874_v37  ;;  %v4445_v9 = vrot.slane %v4353_v52, %v8874_v37  ;;  %v4452_v38 = vrot.slane %v4438_v1, %v8874_v37 }
 0x272   :  { %v6535_v31 = vpop.f32.mrb[9].mxu1  ;;  %v4635_v29 = vadd.f32 %v4437_v45, %v8451_v47  ;;  %v2456_v48 = vcombine.low %v8491_v6, %v2455_v22  ;;  %v1938_v16 = vcombine.high %v1936_v49, %v1936_v49  ;;  %v2108_v58 = vadd.f32 %v8460_v2, %v1937_v41 }
 0x273   :  { %v8561_v54 = vpop.f32.mrb[10].mxu1  ;;  %v2369_v53 = vmul.f32 %v2107_v21, %v2107_v21  ;;  %v4453_v8 = vcombine.high %v4452_v38, %v4452_v38  ;;  %v4636_v15 = vadd.f32 %v4445_v9, %v8460_v2  ;;  %v4637_v42 = vadd.f32 %v4452_v38, %v8448_v13 }
 0x274   :  { %v6536_v51 = vpop.f32.mrb[11].mxu1  ;;  %v4898_v62 = vmul.f32 %v4635_v29, %v4635_v29  ;;  %v2567_v52 = vadd.f32 %v2456_v48, %v2439_v57  ;;  %v8571_v45 = vadd.f32 %v8448_v13, %v1938_v16  ;;  %v2196_v50 = vcombine.low %v2107_v21, %v2108_v58  ;;  %v8573_v28 = vpop.f32.mrb[16].mxu0 }
 0x275   :  { %v2370_v6 = vmul.f32 %v2108_v58, %v2108_v58  ;;  %v4638_v4 = vadd.f32 %v4453_v8, %v8456_v40  ;;  %v4711_v17 = vcombine.low %v4635_v29, %v4636_v15  ;;  %v4899_v20 = vmul.f32 %v4636_v15, %v4636_v15  ;;  %v6219_v11 = vpop.f32.mrb[17].mxu0 }
 0x276   :  { %v4900_v33 = vmul.f32 %v4637_v42, %v4637_v42  ;;  %v2210_v44 = vrot.slane %v2196_v50, %v8874_v37  ;;  %v8579_v39 = vmul.f32 %v8571_v45, %v8571_v45  ;;  %v4454_v18 = vcombine.high %v8517_v61, %v8517_v61  ;;  %v8583_v57 = vpop.f32.mrb[18].mxu0 }
 0x277   :  { %v2458_v24 = vcombine.low %v2369_v53, %v2370_v6  ;;  %v4725_v12 = vrot.slane %v4711_v17, %v8874_v37  ;;  %v4727_v60 = vcombine.low %v4637_v42, %v4638_v4  ;;  %v4901_v7 = vmul.f32 %v4638_v4, %v4638_v4  ;;  %v6220_v19 = vpop.f32.mrb[19].mxu0 }
 0x278   :  { %v4974_v23 = vcombine.low %v4898_v62, %v4899_v20  ;;  %v8588_v25 = vcombine.low %v2203_v30, %v2210_v44  ;;  %v4461_v10 = vrot.slane %v8517_v61, %v8874_v37  ;;  %v4468_v1 = vrot.slane %v4454_v18, %v8874_v37 }
 0x279   :  { %v8586_v27 = vpop.f32.mrb[12].mxu1  ;;  %v2472_v0 = vrot.slane %v2458_v24, %v8874_v37  ;;  %v4726_v22 = vcombine.low %v8524_v3, %v4725_v12  ;;  %v4735_v49 = vrot.slane %v4727_v60, %v8874_v37  ;;  %v4990_v21 = vcombine.low %v4900_v33, %v4901_v7 }
 0x27a   :  { %v6539_v46 = vpop.f32.mrb[13].mxu1  ;;  %v4988_v41 = vrot.slane %v4974_v23, %v8874_v37  ;;  %v8600_v30 = vadd.f32 %v2345_v34, %v8588_v25  ;;  %v4469_v38 = vcombine.high %v4461_v10, %v4461_v10  ;;  %v4470_v29 = vcombine.high %v4468_v1, %v4468_v1 }
 0x27b   :  { %v8597_v31 = vpop.f32.mrb[14].mxu1  ;;  %v2473_v9 = vcombine.low %v2465_v63, %v2472_v0  ;;  %v5632_v61 = vpack.c.bf16 %v4726_v22, %v8527_v36  ;;  %v4878_v16 = vadd.f32 %v4726_v22, %v8527_v36  ;;  %v4998_v58 = vrot.slane %v4990_v21, %v8874_v37 }
 0x27c   :  { %v6540_v48 = vpop.f32.mrb[15].mxu1  ;;  %v4989_v3 = vcombine.low %v8536_v14, %v4988_v41  ;;  %v4639_v51 = vadd.f32 %v4461_v10, %v8451_v47  ;;  %v4640_v8 = vadd.f32 %v4469_v38, %v8460_v2  ;;  %v8611_v34 = vadd.f32 %v4470_v29, %v8448_v13 }
 0x27d   :  { %v8606_v53 = vadd.f32 %v2567_v52, %v2473_v9  ;;  %5659 = vst [vmem:[%s8847_s4 + $0x20] sm:$0xff] %v5632_v61   ;;  %v1939_v14 = vcombine.high %v8500_v35, %v8500_v35  ;;  %v1946_v63 = vrot.slane %v8500_v35, %v8874_v37  ;;  %v1955_v15 = vcombine.high %v8508_v43, %v8508_v43 }
 0x27e   :  { %v5100_v36 = vadd.f32 %v4989_v3, %v4972_v56  ;;  %v4728_v42 = vcombine.low %v4639_v51, %v4640_v8  ;;  %v4902_v62 = vmul.f32 %v4639_v51, %v4639_v51  ;;  %v4903_v52 = vmul.f32 %v4640_v8, %v4640_v8 }
 0x27f   :  { %v8627_v50 = vmul.f32 %v8611_v34, %v8611_v34  ;;  %v1953_v6 = vrot.slane %v1939_v14, %v8874_v37  ;;  %v1954_v59 = vcombine.high %v1946_v63, %v1946_v63  ;;  %v2110_v55 = vadd.f32 %v8456_v40, %v1946_v63 }
 0x280   :  { %v1962_v56 = vrot.slane %v8508_v43, %v8874_v37  ;;  %v4742_v35 = vrot.slane %v4728_v42, %v8874_v37  ;;  %v4991_v17 = vcombine.low %v4902_v62, %v4903_v52  ;;  %v1969_v20 = vrot.slane %v1955_v15, %v8874_v37 }
 0x281   :  { %v8633_v4 = vpop.f32.mrb[16].mxu1  ;;  %v4471_v33 = vcombine.high %v8549_v26, %v8549_v26  ;;  %v2111_v44 = vadd.f32 %v8451_v47, %v1954_v59  ;;  %v2112_v24 = vadd.f32 %v8460_v2, %v1953_v6  ;;  %v2212_v18 = vcombine.low %v8571_v45, %v2110_v55 }
 0x282   :  { %v6543_v11 = vpop.f32.mrb[17].mxu1  ;;  %v2372_v12 = vmul.f32 %v2110_v55, %v2110_v55  ;;  %v8644_v43 = vcombine.low %v4735_v49, %v4742_v35  ;;  %v5005_v7 = vrot.slane %v4991_v17, %v8874_v37  ;;  %v1970_v23 = vcombine.high %v1962_v56, %v1962_v56 }
 0x283   :  { %v8642_v60 = vpop.f32.mrb[18].mxu1  ;;  %v1971_v19 = vcombine.high %v1969_v20, %v1969_v20  ;;  %v2213_v10 = vcombine.low %v2111_v44, %v2112_v24  ;;  %v2220_v1 = vrot.slane %v2212_v18, %v8874_v37  ;;  %v2373_v46 = vmul.f32 %v2111_v44, %v2111_v44 }
 0x284   :  { %v6544_v0 = vpop.f32.mrb[19].mxu1  ;;  %v2374_v22 = vmul.f32 %v2112_v24, %v2112_v24  ;;  %v8649_v41 = vadd.f32 %v4878_v16, %v8644_v43  ;;  %v5006_v21 = vcombine.low %v4998_v58, %v5005_v7  ;;  %v2474_v45 = vcombine.low %v8579_v39, %v2372_v12 }
 0x285   :  { %v2113_v9 = vadd.f32 %v8448_v13, %v1962_v56  ;;  %v2227_v49 = vrot.slane %v2213_v10, %v8874_v37  ;;  %v2114_v29 = vadd.f32 %v8456_v40, %v1970_v23  ;;  %v2115_v48 = vadd.f32 %v8451_v47, %v1969_v20 }
 0x286   :  { %v2475_v38 = vcombine.low %v2373_v46, %v2374_v22  ;;  %v8656_v61 = vadd.f32 %v5100_v36, %v5006_v21  ;;  %v2482_v3 = vrot.slane %v2474_v45, %v8874_v37  ;;  %v2116_v51 = vadd.f32 %v8460_v2, %v1971_v19 }
 0x287   :  { %v2375_v16 = vmul.f32 %v2113_v9, %v2113_v9  ;;  %v2228_v8 = vcombine.low %v2220_v1, %v2227_v49  ;;  %v2229_v39 = vcombine.low %v2113_v9, %v2114_v29  ;;  %v2376_v14 = vmul.f32 %v2114_v29, %v2114_v29 }
 0x288   :  { %v2489_v58 = vrot.slane %v2475_v38, %v8874_v37  ;;  %v2230_v63 = vcombine.low %v2115_v48, %v2116_v51  ;;  %v2377_v15 = vmul.f32 %v2115_v48, %v2115_v48  ;;  %v2378_v42 = vmul.f32 %v2116_v51, %v2116_v51 }
 0x289   :  { %v4478_v62 = vrot.slane %v8549_v26, %v8874_v37  ;;  %v5601_v52 = vpack.c.bf16 %v2228_v8, %v8588_v25  ;;  %v2347_v36 = vadd.f32 %v8600_v30, %v2228_v8  ;;  %v2237_v59 = vrot.slane %v2229_v39, %v8874_v37 }
 0x28a   :  { %v2490_v6 = vcombine.low %v2482_v3, %v2489_v58  ;;  %v2244_v55 = vrot.slane %v2230_v63, %v8874_v37  ;;  %v2491_v56 = vcombine.low %v2375_v16, %v2376_v14  ;;  %v2492_v35 = vcombine.low %v2377_v15, %v2378_v42 }
 0x28b   :  { %v4485_v17 = vrot.slane %v4471_v33, %v8874_v37  ;;  %5652 = vst [vmem:[%s8847_s4 + $0x8] sm:$0xff] %v5601_v52   ;;  %v4486_v26 = vcombine.high %v4478_v62, %v4478_v62  ;;  %v4642_v25 = vadd.f32 %v4478_v62, %v8456_v40  ;;  %v4487_v30 = vcombine.high %v8561_v54, %v8561_v54 }
 0x28c   :  { %v2569_v20 = vadd.f32 %v8606_v53, %v2490_v6  ;;  %v8675_v11 = vcombine.low %v2237_v59, %v2244_v55  ;;  %v2499_v44 = vrot.slane %v2491_v56, %v8874_v37  ;;  %v2506_v24 = vrot.slane %v2492_v35, %v8874_v37 }
 0x28d   :  { %v4644_v33 = vadd.f32 %v4485_v17, %v8460_v2  ;;  %v4643_v18 = vadd.f32 %v4486_v26, %v8451_v47  ;;  %v4744_v12 = vcombine.low %v8611_v34, %v4642_v25  ;;  %v4905_v7 = vmul.f32 %v4642_v25, %v4642_v25 }
 0x28e   :  { %v4494_v53 = vrot.slane %v8561_v54, %v8874_v37  ;;  %v8685_v23 = vadd.f32 %v2347_v36, %v8675_v11  ;;  %v2507_v19 = vcombine.low %v2499_v44, %v2506_v24  ;;  %v4501_v10 = vrot.slane %v4487_v30, %v8874_v37 }
 0x28f   :  { %v4907_v0 = vmul.f32 %v4644_v33, %v4644_v33  ;;  %v4745_v1 = vcombine.low %v4643_v18, %v4644_v33  ;;  %v4752_v46 = vrot.slane %v4744_v12, %v8874_v37  ;;  %v4906_v22 = vmul.f32 %v4643_v18, %v4643_v18 }
 0x290   :  { %v5007_v21 = vcombine.low %v8627_v50, %v4905_v7  ;;  %v8690_v45 = vadd.f32 %v2569_v20, %v2507_v19  ;;  %v4502_v34 = vcombine.high %v4494_v53, %v4494_v53  ;;  %v4503_v9 = vcombine.high %v4501_v10, %v4501_v10 }
 0x291   :  { %v4645_v49 = vadd.f32 %v4494_v53, %v8448_v13  ;;  %v4759_v54 = vrot.slane %v4745_v1, %v8874_v37  ;;  %v5008_v38 = vcombine.low %v4906_v22, %v4907_v0  ;;  %v4647_v48 = vadd.f32 %v4501_v10, %v8451_v47 }
 0x292   :  { %v5015_v29 = vrot.slane %v5007_v21, %v8874_v37  ;;  %v4646_v3 = vadd.f32 %v4502_v34, %v8456_v40  ;;  %v4648_v51 = vadd.f32 %v4503_v9, %v8460_v2  ;;  %v1972_v50 = vcombine.high %v8533_v32, %v8533_v32 }
 0x293   :  { %v4908_v16 = vmul.f32 %v4645_v49, %v4645_v49  ;;  %v4760_v8 = vcombine.low %v4752_v46, %v4759_v54  ;;  %v5022_v58 = vrot.slane %v5008_v38, %v8874_v37  ;;  %v4910_v39 = vmul.f32 %v4647_v48, %v4647_v48 }
 0x294   :  { %v1979_v14 = vrot.slane %v8533_v32, %v8874_v37  ;;  %v4761_v63 = vcombine.low %v4645_v49, %v4646_v3  ;;  %v4762_v15 = vcombine.low %v4647_v48, %v4648_v51  ;;  %v4909_v42 = vmul.f32 %v4646_v3, %v4646_v3 }
 0x295   :  { %v4911_v62 = vmul.f32 %v4648_v51, %v4648_v51  ;;  %v5637_v52 = vpack.c.bf16 %v4760_v8, %v8644_v43  ;;  %v4880_v36 = vadd.f32 %v8649_v41, %v4760_v8  ;;  %v5023_v6 = vcombine.low %v5015_v29, %v5022_v58 }
 0x296   :  { %v1986_v59 = vrot.slane %v1972_v50, %v8874_v37  ;;  %v4769_v55 = vrot.slane %v4761_v63, %v8874_v37  ;;  %v4776_v56 = vrot.slane %v4762_v15, %v8874_v37  ;;  %v5024_v35 = vcombine.low %v4908_v16, %v4909_v42 }
 0x297   :  { %v5025_v17 = vcombine.low %v4910_v39, %v4911_v62  ;;  %5660 = vst [vmem:[%s8847_s4 + $0x28] sm:$0xff] %v5637_v52   ;;  %v5102_v32 = vadd.f32 %v8656_v61, %v5023_v6  ;;  %v1987_v20 = vcombine.high %v1979_v14, %v1979_v14  ;;  %v1989_v44 = vcombine.high %v8545_v5, %v8545_v5 }
 0x298   :  { %v1988_v26 = vcombine.high %v1986_v59, %v1986_v59  ;;  %v2118_v43 = vadd.f32 %v8456_v40, %v1986_v59  ;;  %v8713_v41 = vcombine.low %v4769_v55, %v4776_v56  ;;  %v5032_v25 = vrot.slane %v5024_v35, %v8874_v37 }
 0x299   :  { %v5039_v30 = vrot.slane %v5025_v17, %v8874_v37  ;;  %v2117_v24 = vadd.f32 %v8448_v13, %v1987_v20  ;;  %v1996_v18 = vrot.slane %v8545_v5, %v8874_v37  ;;  %v2003_v53 = vrot.slane %v1989_v44, %v8874_v37 }
 0x29a   :  { %v2380_v33 = vmul.f32 %v2118_v43, %v2118_v43  ;;  %v2119_v61 = vadd.f32 %v8451_v47, %v1988_v26  ;;  %v8724_v12 = vadd.f32 %v4880_v36, %v8713_v41  ;;  %v4504_v19 = vcombine.high %v8586_v27, %v8586_v27 }
 0x29b   :  { %v5040_v7 = vcombine.low %v5032_v25, %v5039_v30  ;;  %v2246_v0 = vcombine.low %v2117_v24, %v2118_v43  ;;  %v2379_v10 = vmul.f32 %v2117_v24, %v2117_v24  ;;  %v2120_v1 = vadd.f32 %v8460_v2, %v1996_v18 }
 0x29c   :  { %v2381_v46 = vmul.f32 %v2119_v61, %v2119_v61  ;;  %v2004_v21 = vcombine.high %v2003_v53, %v2003_v53  ;;  %v2121_v5 = vadd.f32 %v8448_v13, %v2003_v53  ;;  %v4511_v34 = vrot.slane %v8586_v27, %v8874_v37 }
 0x29d   :  { %v8730_v22 = vadd.f32 %v5102_v32, %v5040_v7  ;;  %v2254_v9 = vrot.slane %v2246_v0, %v8874_v37  ;;  %v2508_v49 = vcombine.low %v2379_v10, %v2380_v33  ;;  %v2247_v54 = vcombine.low %v2119_v61, %v2120_v1 }
 0x29e   :  { %v2382_v38 = vmul.f32 %v2120_v1, %v2120_v1  ;;  %v2122_v29 = vadd.f32 %v8456_v40, %v2004_v21  ;;  %v2383_v48 = vmul.f32 %v2121_v5, %v2121_v5  ;;  %v4518_v3 = vrot.slane %v4504_v19, %v8874_v37 }
 0x29f   :  { %v4519_v51 = vcombine.high %v4511_v34, %v4511_v34  ;;  %v2516_v16 = vrot.slane %v2508_v49, %v8874_v37  ;;  %v2261_v50 = vrot.slane %v2247_v54, %v8874_v37  ;;  %v4521_v58 = vcombine.high %v8597_v31, %v8597_v31 }
 0x2a0   :  { %v2509_v8 = vcombine.low %v2381_v46, %v2382_v38  ;;  %v2263_v27 = vcombine.low %v2121_v5, %v2122_v29  ;;  %v2384_v39 = vmul.f32 %v2122_v29, %v2122_v29  ;;  %v4520_v14 = vcombine.high %v4518_v3, %v4518_v3 }
 0x2a1   :  { %v4649_v63 = vadd.f32 %v4519_v51, %v8448_v13  ;;  %v2262_v15 = vcombine.low %v2254_v9, %v2261_v50  ;;  %v4650_v62 = vadd.f32 %v4518_v3, %v8456_v40  ;;  %v4528_v52 = vrot.slane %v8597_v31, %v8874_v37 }
 0x2a2   :  { %v2523_v42 = vrot.slane %v2509_v8, %v8874_v37  ;;  %v2525_v36 = vcombine.low %v2383_v48, %v2384_v39  ;;  %v4535_v59 = vrot.slane %v4521_v58, %v8874_v37  ;;  %v2271_v32 = vrot.slane %v2263_v27, %v8874_v37 }
 0x2a3   :  { %v4912_v6 = vmul.f32 %v4649_v63, %v4649_v63  ;;  %v5606_v55 = vpack.c.bf16 %v2262_v15, %v8675_v11  ;;  %v8750_v56 = vadd.f32 %v8685_v23, %v2262_v15  ;;  %v4778_v17 = vcombine.low %v4649_v63, %v4650_v62 }
 0x2a4   :  { %v2524_v35 = vcombine.low %v2516_v16, %v2523_v42  ;;  %v4913_v20 = vmul.f32 %v4650_v62, %v4650_v62  ;;  %v4536_v26 = vcombine.high %v4535_v59, %v4535_v59  ;;  %v4651_v43 = vadd.f32 %v4520_v14, %v8451_v47 }
 0x2a5   :  { %5653 = vst [vmem:[%s8847_s4 + $0x10] sm:$0xff] %v5606_v55   ;;  %v8758_v31 = vrot.slane %v2525_v36, %v8874_v37  ;;  %v4652_v23 = vadd.f32 %v4528_v52, %v8460_v2  ;;  %v4653_v25 = vadd.f32 %v4535_v59, %v8448_v13  ;;  %v2005_v33 = vcombine.high %v8573_v28, %v8573_v28 }
 0x2a6   :  { %v8761_v11 = vadd.f32 %v8690_v45, %v2524_v35  ;;  %v5041_v30 = vcombine.low %v4912_v6, %v4913_v20  ;;  %v4654_v44 = vadd.f32 %v4536_v26, %v8456_v40  ;;  %v4914_v24 = vmul.f32 %v4651_v43, %v4651_v43 }
 0x2a7   :  { %v4786_v18 = vrot.slane %v4778_v17, %v8874_v37  ;;  %v4779_v61 = vcombine.low %v4651_v43, %v4652_v23  ;;  %v4915_v7 = vmul.f32 %v4652_v23, %v4652_v23  ;;  %v2012_v53 = vrot.slane %v8573_v28, %v8874_v37 }
 0x2a8   :  { %v4795_v45 = vcombine.low %v4653_v25, %v4654_v44  ;;  %v4916_v19 = vmul.f32 %v4653_v25, %v4653_v25  ;;  %v4917_v0 = vmul.f32 %v4654_v44, %v4654_v44  ;;  %v2019_v10 = vrot.slane %v2005_v33, %v8874_v37 }
 0x2a9   :  { %v4793_v1 = vrot.slane %v4779_v61, %v8874_v37  ;;  %v5042_v46 = vcombine.low %v4914_v24, %v4915_v7  ;;  %v2020_v21 = vcombine.high %v2012_v53, %v2012_v53  ;;  %v2123_v5 = vadd.f32 %v8451_v47, %v2012_v53 }
 0x2aa   :  { %v5049_v34 = vrot.slane %v5041_v30, %v8874_v37  ;;  %v8776_v9 = vrot.slane %v4795_v45, %v8874_v37  ;;  %v2021_v49 = vcombine.high %v2019_v10, %v2019_v10  ;;  %v2022_v28 = vcombine.high %v8583_v57, %v8583_v57 }
 0x2ab   :  { %v4794_v54 = vcombine.low %v4786_v18, %v4793_v1  ;;  %v5056_v38 = vrot.slane %v5042_v46, %v8874_v37  ;;  %v5058_v29 = vcombine.low %v4916_v19, %v4917_v0  ;;  %v2124_v48 = vadd.f32 %v8460_v2, %v2020_v21 }
 0x2ac   :  { %v2125_v3 = vadd.f32 %v8448_v13, %v2021_v49  ;;  %v2385_v51 = vmul.f32 %v2123_v5, %v2123_v5  ;;  %v2029_v16 = vrot.slane %v8583_v57, %v8874_v37  ;;  %v2036_v50 = vrot.slane %v2022_v28, %v8874_v37 }
 0x2ad   :  { %v5642_v8 = vpack.c.bf16 %v4794_v54, %v8713_v41  ;;  %v8788_v58 = vadd.f32 %v8724_v12, %v4794_v54  ;;  %v5057_v27 = vcombine.low %v5049_v34, %v5056_v38  ;;  %v2264_v39 = vcombine.low %v2123_v5, %v2124_v48 }
 0x2ae   :  { %v2386_v14 = vmul.f32 %v2124_v48, %v2124_v48  ;;  %v2387_v63 = vmul.f32 %v2125_v3, %v2125_v3  ;;  %v2037_v15 = vcombine.high %v2029_v16, %v2029_v16  ;;  %v2126_v42 = vadd.f32 %v8456_v40, %v2029_v16 }
 0x2af   :  { %5661 = vst [vmem:[%s8847_s4 + $0x30] sm:$0xff] %v5642_v8   ;;  %v8795_v57 = vadd.f32 %v8730_v22, %v5057_v27  ;;  %v2278_v62 = vrot.slane %v2264_v39, %v8874_v37  ;;  %v2128_v41 = vadd.f32 %v8460_v2, %v2036_v50  ;;  %v4537_v12 = vcombine.high %v8633_v4, %v8633_v4 }
 0x2b0   :  { %v2526_v52 = vcombine.low %v2385_v51, %v2386_v14  ;;  %v2127_v36 = vadd.f32 %v8451_v47, %v2037_v15  ;;  %v2280_v6 = vcombine.low %v2125_v3, %v2126_v42  ;;  %v2388_v59 = vmul.f32 %v2126_v42, %v2126_v42 }
 0x2b1   :  { %v2279_v55 = vcombine.low %v2271_v32, %v2278_v62  ;;  %v2390_v35 = vmul.f32 %v2128_v41, %v2128_v41  ;;  %v4544_v17 = vrot.slane %v8633_v4, %v8874_v37  ;;  %v4551_v22 = vrot.slane %v4537_v12, %v8874_v37 }
 0x2b2   :  { %v2540_v20 = vrot.slane %v2526_v52, %v8874_v37  ;;  %v2281_v26 = vcombine.low %v2127_v36, %v2128_v41  ;;  %v2288_v43 = vrot.slane %v2280_v6, %v8874_v37  ;;  %v2389_v23 = vmul.f32 %v2127_v36, %v2127_v36 }
 0x2b3   :  { %v2350_v25 = vadd.f32 %v8750_v56, %v2279_v55  ;;  %v2542_v30 = vcombine.low %v2387_v63, %v2388_v59  ;;  %v4552_v44 = vcombine.high %v4544_v17, %v4544_v17  ;;  %v4553_v24 = vcombine.high %v4551_v22, %v4551_v22 }
 0x2b4   :  { %v2541_v33 = vcombine.low %v8758_v31, %v2540_v20  ;;  %v2295_v32 = vrot.slane %v2281_v26, %v8874_v37  ;;  %v2543_v18 = vcombine.low %v2389_v23, %v2390_v35  ;;  %v4655_v4 = vadd.f32 %v4544_v17, %v8451_v47 }
 0x2b5   :  { %v5066_v61 = vrot.slane %v5058_v29, %v8874_v37  ;;  %v2550_v7 = vrot.slane %v2542_v30, %v8874_v37  ;;  %v4656_v53 = vadd.f32 %v4552_v44, %v8460_v2  ;;  %v4554_v45 = vcombine.high %v8642_v60, %v8642_v60 }
 0x2b6   :  { %v2572_v56 = vadd.f32 %v8761_v11, %v2541_v33  ;;  %v2296_v19 = vcombine.low %v2288_v43, %v2295_v32  ;;  %v2557_v0 = vrot.slane %v2543_v18, %v8874_v37  ;;  %v4657_v31 = vadd.f32 %v4553_v24, %v8448_v13 }
 0x2b7   :  { %v4796_v10 = vcombine.low %v4655_v4, %v4656_v53  ;;  %v4918_v1 = vmul.f32 %v4655_v4, %v4655_v4  ;;  %v4919_v46 = vmul.f32 %v4656_v53, %v4656_v53  ;;  %v4561_v21 = vrot.slane %v8642_v60, %v8874_v37 }
 0x2b8   :  { %v5611_v5 = vpack.c.bf16 %v2296_v19, %v2279_v55  ;;  %v2351_v34 = vadd.f32 %v2350_v25, %v2296_v19  ;;  %v2558_v49 = vcombine.low %v2550_v7, %v2557_v0  ;;  %v4568_v28 = vrot.slane %v4554_v45, %v8874_v37 }
 0x2b9   :  { %v4810_v54 = vrot.slane %v4796_v10, %v8874_v37  ;;  %v5059_v38 = vcombine.low %v4918_v1, %v4919_v46  ;;  %v4569_v11 = vcombine.high %v4561_v21, %v4561_v21  ;;  %v4658_v29 = vadd.f32 %v4561_v21, %v8456_v40 }
 0x2ba   :  { %5654 = vst [vmem:[%s8847_s4 + $0x18] sm:$0xff] %v5611_v5   ;;  %v2352_v13 = vrot.slane %v2351_v34, 4  ;;  %v2573_v48 = vadd.f32 %v2572_v56, %v2558_v49  ;;  %v4920_v3 = vmul.f32 %v4657_v31, %v4657_v31  ;;  %v4660_v60 = vadd.f32 %v4568_v28, %v8460_v2 }
 0x2bb   :  { %v4811_v51 = vcombine.low %v8776_v9, %v4810_v54  ;;  %v5073_v16 = vrot.slane %v5059_v38, %v8874_v37  ;;  %v4659_v50 = vadd.f32 %v4569_v11, %v8451_v47  ;;  %v4812_v8 = vcombine.low %v4657_v31, %v4658_v29 }
 0x2bc   :  { %v4921_v27 = vmul.f32 %v4658_v29, %v4658_v29  ;;  %v4923_v39 = vmul.f32 %v4660_v60, %v4660_v60  ;;  %v2574_v42 = vrot.slane %v2573_v48, 4  ;;  %v2353_v12 = vadd.f32 %v2352_v13, %v2351_v34 }
 0x2bd   :  { %v4883_v40 = vadd.f32 %v8788_v58, %v4811_v51  ;;  %v5074_v14 = vcombine.low %v5066_v61, %v5073_v16  ;;  %v4813_v63 = vcombine.low %v4659_v50, %v4660_v60  ;;  %v4820_v15 = vrot.slane %v4812_v8, %v8874_v37 }
 0x2be   :  { %v4922_v62 = vmul.f32 %v4659_v50, %v4659_v50  ;;  %v5075_v41 = vcombine.low %v4920_v3, %v4921_v27  ;;  %v2575_v6 = vadd.f32 %v2574_v42, %v2573_v48  ;;  %v2354_v58 = vrot.slane %v2353_v12, 2 }
 0x2bf   :  { %v5105_v2 = vadd.f32 %v8795_v57, %v5074_v14  ;;  %v4827_v9 = vrot.slane %v4813_v63, %v8874_v37 }
 0x2c0   :  { %v5076_v52 = vcombine.low %v4922_v62, %v4923_v39  ;;  %v5083_v47 = vrot.slane %v5075_v41, %v8874_v37  ;;  %v2576_v20 = vrot.slane %v2575_v6, 2  ;;  %v2355_v26 = vadd.f32 %v2354_v58, %v2353_v12 }
 0x2c1   :  { %v4828_v36 = vcombine.low %v4820_v15, %v4827_v9 }
 0x2c2   :  { %v5090_v59 = vrot.slane %v5076_v52, %v8874_v37  ;;  %v2577_v30 = vadd.f32 %v2576_v20, %v2575_v6  ;;  %v2356_v24 = vrot.slane %v2355_v26, 1 }
 0x2c3   :  { %v5647_v55 = vpack.c.bf16 %v4828_v36, %v4811_v51  ;;  %v4884_v35 = vadd.f32 %v4883_v40, %v4828_v36 }
 0x2c4   :  { %v5091_v17 = vcombine.low %v5083_v47, %v5090_v59  ;;  %v2578_v18 = vrot.slane %v2577_v30, 1  ;;  %v2357_v61 = vadd.f32 %v2356_v24, %v2355_v26 }
 0x2c5   :  { %5662 = vst [vmem:[%s8847_s4 + $0x38] sm:$0xff] %v5647_v55   ;;  %v4885_v22 = vrot.slane %v4884_v35, 4 }
 0x2c6   :  { %v5106_v57 = vadd.f32 %v5105_v2, %v5091_v17  ;;  %v2579_v56 = vadd.f32 %v2578_v18, %v2577_v30 }
 0x2c7   :  { %v4886_v43 = vadd.f32 %v4885_v22, %v4884_v35 }
 0x2c8   :  { %v5107_v23 = vrot.slane %v5106_v57, 4 }
 0x2c9   :  { %v4887_v25 = vrot.slane %v4886_v43, 2 }
 0x2ca   :  { %v5108_v44 = vadd.f32 %v5107_v23, %v5106_v57 }
 0x2cb   :  { %v4888_v33 = vadd.f32 %v4887_v25, %v4886_v43 }
 0x2cc   :  { %v5109_v37 = vrot.slane %v5108_v44, 2 }
 0x2cd   :  { %v4889_v32 = vrot.slane %v4888_v33, 1 }
 0x2ce   :  { %v5110_v4 = vadd.f32 %v5109_v37, %v5108_v44 }
 0x2cf   :  { %v4890_v7 = vadd.f32 %v4889_v32, %v4888_v33 }
 0x2d0   :  { %v5111_v53 = vrot.slane %v5110_v4, 1 }
 0x2d1   :  { %v4891_v45 = vadd.f32 %v4890_v7, %v2357_v61 }
 0x2d2   :  { %v5112_v19 = vadd.f32 %v5111_v53, %v5110_v4 }
 0x2d4   :  { %v5113_v0 = vadd.f32 %v5112_v19, %v2579_v56 }
 0x2d6   :  { %v5115_v31 = vsel %vm5114_vm1, %v4891_v45, %v5113_v0 }
 0x2d7   :  { %5116 = vst [vmem:[%s8848_s5] sm:$0x3] %v5115_v31 }

// kernel: resblock_forward.3
= control target key start
LH: loop header
LB: loop body
LE: loop exit
PB: predicated region body
PF: predicated region fallthrough
CT: control target
= control target key end

     0   :  { %v11442_v0 = vmov 0.0   ;;  %vm11443_vm0 = vmmov 0   ;;  %vm114_vm1 = vsmask.f32 7424  ;;  %vm1458_vm2 = vcmask 1046528   ;;  %s14511_s1 = inlined_call_operand.vmem [shape: bf16[6,256,256], index: 1, kind: input, shape index: {}]   ;;  %s14512_s0 = inlined_call_operand.vmem [shape: bf16[176,512], index: 0, kind: input, shape index: {}]   ;;  %s14513_s3 = inlined_call_operand.vmem [shape: f32[1,128], index: 3, kind: input, shape index: {}]   ;;  %s14514_s5 = inlined_call_operand.vmem [shape: bf16[2,64,128], index: 5, kind: output, shape index: {1}]   ;;  %s14515_s2 = inlined_call_operand.vmem [shape: f32[1,128], index: 2, kind: input, shape index: {}]   ;;  %s14516_s4 = inlined_call_operand.vmem [shape: bf16[2,64,128], index: 4, kind: output, shape index: {0}]   ;;  %s14517_s6 = inlined_call_operand.vmem [shape: f32[1,4,128], index: 6, kind: output, shape index: {2}]  }
   0x1   :  { %10915 = vmatprep.subr.bf16.mxu0 %v11442_v0  ;;  %v11134_v1 = vld [vmem:[%s14511_s1 + $0x100] ss:$8 sps:$4 sm:$0xff]   ;;  %10931 = vmatprep.mubr.msk.bf16.mxu0 %vm11443_vm0, %v11442_v0  ;;  %v11137_v4 = vld [vmem:[%s14511_s1 + $0x110] ss:$8 sps:$4 sm:$0xff]   ;;  %v11164_v33 = vld [vmem:[%s14511_s1 + $0x204] ss:$8 sps:$4 sm:$0xff]  }
   0x2   :  { %v11135_v2 = vld [vmem:[%s14511_s1 + $0x80] ss:$8 sps:$4 sm:$0xff]   ;;  %10916 = vmatpush3.bf16.msra.mxu0 %v11134_v1  ;;  %v11138_v5 = vld [vmem:[%s14511_s1 + $0x90] ss:$8 sps:$4 sm:$0xff]   ;;  %v11167_v41 = vld [vmem:[%s14511_s1 + $0x214] ss:$8 sps:$4 sm:$0xff]  }
   0x3   :  { %v11136_v3 = vld [vmem:[%s14511_s1] ss:$8 sps:$4 sm:$0xff]   ;;  %10666 = vmatprep.subr.bf16.mxu1 %v11135_v2  ;;  %10917 = vmatprep.subr.bf16.mxu0 %v11442_v0  ;;  %v11139_v6 = vld [vmem:[%s14511_s1 + $0x10] ss:$8 sps:$4 sm:$0xff]   ;;  %v11172_v49 = vld [vmem:[%s14511_s1 + $0x224] ss:$8 sps:$4 sm:$0xff]  }
   0x4   :  { %10667 = vmatpush3.bf16.msra.mxu1 %v11136_v3  ;;  %v11140_v7 = vld [vmem:[%s14511_s1 + $0x120] ss:$8 sps:$4 sm:$0xff]   ;;  %v11143_v10 = vld [vmem:[%s14511_s1 + $0x130] ss:$8 sps:$4 sm:$0xff]   ;;  %v11176_v59 = vld [vmem:[%s14511_s1 + $0x234] ss:$8 sps:$4 sm:$0xff]  }
   0x5   :  { %10668 = vmatprep.subr.bf16.mxu1 %v11138_v5  ;;  %v11141_v8 = vld [vmem:[%s14511_s1 + $0xa0] ss:$8 sps:$4 sm:$0xff]   ;;  %v11144_v11 = vld [vmem:[%s14511_s1 + $0xb0] ss:$8 sps:$4 sm:$0xff]   ;;  %vm9966_vm3 = vcmask 1040384   ;;  %vm9968_vm4 = vcmask 1041408  }
   0x6   :  { %10918 = vmatpush3.bf16.msra.mxu0 %v11137_v4  ;;  %v11142_v9 = vld [vmem:[%s14511_s1 + $0x20] ss:$8 sps:$4 sm:$0xff]   ;;  %v11145_v12 = vld [vmem:[%s14511_s1 + $0x30] ss:$8 sps:$4 sm:$0xff]   ;;  %vm9970_vm5 = vcmask 1042432  }
   0x7   :  { %10919 = vmatprep.subr.bf16.mxu0 %v11442_v0  ;;  %v11147_v13 = vld [vmem:[%s14511_s1 + $0xc0] ss:$8 sps:$4 sm:$0xff]   ;;  %v11150_v16 = vld [vmem:[%s14511_s1 + $0xd0] ss:$8 sps:$4 sm:$0xff]  }
   0x8   :  { %10669 = vmatpush3.bf16.msra.mxu1 %v11139_v6  ;;  %v11146_v14 = vld [vmem:[%s14511_s1 + $0x140] ss:$8 sps:$4 sm:$0xff]   ;;  %v11149_v17 = vld [vmem:[%s14511_s1 + $0x150] ss:$8 sps:$4 sm:$0xff]  }
   0x9   :  { %10670 = vmatprep.subr.bf16.mxu1 %v11141_v8  ;;  %v11148_v15 = vld [vmem:[%s14511_s1 + $0x40] ss:$8 sps:$4 sm:$0xff]   ;;  %v11151_v18 = vld [vmem:[%s14511_s1 + $0x50] ss:$8 sps:$4 sm:$0xff]  }
   0xa   :  { %10920 = vmatpush3.bf16.msra.mxu0 %v11140_v7  ;;  %v11152_v19 = vld [vmem:[%s14511_s1 + $0x160] ss:$8 sps:$4 sm:$0xff]   ;;  %v11156_v22 = vld [vmem:[%s14511_s1 + $0xf0] ss:$8 sps:$4 sm:$0xff]  }
   0xb   :  { %10921 = vmatprep.subr.bf16.mxu0 %v11442_v0  ;;  %v11153_v20 = vld [vmem:[%s14511_s1 + $0xe0] ss:$8 sps:$4 sm:$0xff]   ;;  %v11155_v23 = vld [vmem:[%s14511_s1 + $0x170] ss:$8 sps:$4 sm:$0xff]  }
   0xc   :  { %10671 = vmatpush3.bf16.msra.mxu1 %v11142_v9  ;;  %v11154_v21 = vld [vmem:[%s14511_s1 + $0x60] ss:$8 sps:$4 sm:$0xff]   ;;  %v22_v27 = vld [vmem:[%s14512_s0 + $0x10] sm:$0xff] }
   0xd   :  { %10672 = vmatprep.subr.bf16.mxu1 %v11144_v11  ;;  %v11158_v24 = vld [vmem:[%s14512_s0] ss:$16 sps:$4 sm:$0xff]   ;;  %v11182_v11 = vld [vmem:[%s14511_s1 + $0x244] ss:$8 sps:$4 sm:$0xff]  }
   0xe   :  { %10922 = vmatpush3.bf16.msra.mxu0 %v11143_v10  ;;  %v11159_v25 = vld [vmem:[%s14512_s0 + $0x20] ss:$16 sps:$4 sm:$0xff]   ;;  %v116_v29 = vshrl.u32 %v11158_v24, 16  ;;  %v118_v30 = vshll.u32 %v11158_v24, 16 }
   0xf   :  { %10923 = vmatprep.subr.bf16.mxu0 %v11442_v0  ;;  %v21_v26 = vld [vmem:[%s14512_s0] sm:$0xff]  ;;  %v11157_v28 = vld [vmem:[%s14511_s1 + $0x70] ss:$8 sps:$4 sm:$0xff]   ;;  %v123_v31 = vshll.u32 %v11159_v25, 16  ;;  %v127_v47 = vshrl.u32 %v11159_v25, 16 }
  0x10   :  { %10673 = vmatpush3.bf16.msra.mxu1 %v11145_v12  ;;  %v10015_v32 = vcombine.high %v21_v26, %v22_v27  ;;  %v120_v34 = vrot.slane %v118_v30, 1  ;;  %v11162_v36 = vld [vmem:[%s14511_s1 + $0x200] ss:$8 sps:$4 sm:$0xff]   ;;  %v10014_v38 = vcombine.low %v21_v26, %v22_v27  ;;  %v24_v40 = vld [vmem:[%s14512_s0 + $0x30] sm:$0xff] }
  0x11   :  { %10674 = vmatprep.subr.bf16.mxu1 %v11147_v13  ;;  %v125_v35 = vrot.slane %v123_v31, 1  ;;  %v23_v39 = vld [vmem:[%s14512_s0 + $0x20] sm:$0xff]  ;;  %v11165_v48 = vld [vmem:[%s14511_s1 + $0x210] ss:$8 sps:$4 sm:$0xff]  }
  0x12   :  { %10924 = vmatpush3.bf16.msra.mxu0 %v11146_v14  ;;  %454 = vmatprep.mubr.bf16.mxu1 %v10015_v32  ;;  %v121_v37 = vor.u32 %v120_v34, %v116_v29  ;;  %v11168_v42 = vld [vmem:[%s14511_s1 + $0x300] ss:$8 sps:$4 sm:$0xff]   ;;  %v11592_v43 = vcombine.low %v22_v27, %v23_v39  ;;  %v11594_v44 = vcombine.high %v22_v27, %v23_v39  ;;  %v11177_v50 = vld [vmem:[%s14511_s1 + $0x310] ss:$8 sps:$4 sm:$0xff]   ;;  %v11193_v32 = vld [vmem:[%s14511_s1 + $0x264] ss:$8 sps:$4 sm:$0xff]  }
  0x13   :  { %10925 = vmatprep.subr.bf16.mxu0 %v11442_v0  ;;  %v10017_v46 = vcombine.high %v23_v39, %v24_v40  ;;  %v11178_v51 = vld [vmem:[%s14512_s0 + $0x40] ss:$16 sps:$4 sm:$0xff]   ;;  %v129_v55 = vor.u32 %v127_v47, %v125_v35  ;;  %v10016_v58 = vcombine.low %v23_v39, %v24_v40  ;;  %v11198_v39 = vld [vmem:[%s14511_s1 + $0x274] ss:$8 sps:$4 sm:$0xff]   ;;  %v11215_v47 = vld [vmem:[%s14512_s0 + $0x28] ss:$16 sps:$4 sm:$0xff]  }
  0x14   :  { %10675 = vmatpush3.bf16.msra.mxu1 %v11148_v15  ;;  %v126_v45 = vsel %vm114_vm1, %v121_v37, %v125_v35  ;;  %v25_v52 = vld [vmem:[%s14512_s0 + $0x40] sm:$0xff]  ;;  %v131_v56 = vshll.u32 %v11178_v51, 16  ;;  %v11624_v57 = vld [vmem:[%s14512_s0 + $0x50] sm:$0xff]  ;;  %v1156_v60 = vshll.u32 %v11594_v44, 16  ;;  %v135_v63 = vshrl.u32 %v11178_v51, 16 }
  0x15   :  { %10676 = vmatprep.subr.bf16.mxu1 %v11150_v16  ;;  %v11170_v53 = vld [vmem:[%s14511_s1 + $0x220] ss:$8 sps:$4 sm:$0xff]   ;;  %v11617_v54 = vcombine.low %v24_v40, %v25_v52  ;;  %v10019_v2 = vcombine.high %v25_v52, %v11624_v57  ;;  %v11174_v5 = vld [vmem:[%s14511_s1 + $0x230] ss:$8 sps:$4 sm:$0xff]   ;;  %v11651_v7 = vcombine.high %v24_v40, %v25_v52  ;;  %v1154_v9 = vshrl.u32 %v11594_v44, 16 }
  0x16   :  { %10926 = vmatpush3.bf16.msra.mxu0 %v11149_v17  ;;  %v133_v61 = vrot.slane %v131_v56, 1  ;;  %v11184_v62 = vld [vmem:[%s14511_s1 + $0x320] ss:$8 sps:$4 sm:$0xff]   ;;  %v1158_v10 = vrot.slane %v1156_v60, 1  ;;  %v11189_v15 = vld [vmem:[%s14511_s1 + $0x330] ss:$8 sps:$4 sm:$0xff]  }
  0x17   :  { %10927 = vmatprep.subr.bf16.mxu0 %v11442_v0  ;;  %v11636_v1 = vld [vmem:[%s14512_s0 + $0x60] sm:$0xff]  ;;  %v11187_v16 = vld [vmem:[%s14511_s1 + $0x254] ss:$8 sps:$4 sm:$0xff]   ;;  %v11185_v30 = vld [vmem:[%s14511_s1 + $0x250] ss:$8 sps:$4 sm:$0xff]   ;;  %v1144_v37 = vshll.u32 %v11592_v43, 16 }
  0x18   :  { %10677 = vmatpush3.bf16.msra.mxu1 %v11151_v18  ;;  %v11188_v3 = vld [vmem:[%s14512_s0 + $0x60] ss:$16 sps:$4 sm:$0xff]   ;;  %v11645_v4 = vcombine.low %v11624_v57, %v11636_v1  ;;  %v134_v6 = vsel %vm114_vm1, %v129_v55, %v133_v61  ;;  %v137_v13 = vor.u32 %v135_v63, %v133_v61  ;;  %v1161_v18 = vshll.u32 %v11651_v7, 16  ;;  %v11214_v40 = vld [vmem:[%s14512_s0 + $0x8] ss:$16 sps:$4 sm:$0xff]  }
  0x19   :  { %10678 = vmatprep.subr.bf16.mxu1 %v11153_v20  ;;  %v139_v8 = vshll.u32 %v11188_v3, 16  ;;  %v11180_v12 = vld [vmem:[%s14511_s1 + $0x240] ss:$8 sps:$4 sm:$0xff]   ;;  %v11672_v17 = vld [vmem:[%s14512_s0 + $0x70] sm:$0xff]  ;;  %v143_v25 = vshrl.u32 %v11188_v3, 16  ;;  %v888_v51 = vshll.u32 %v11214_v40, 16 }
  0x1a   :  { %10928 = vmatpush3.bf16.msra.mxu0 %v11152_v19  ;;  %v10018_v19 = vcombine.low %v25_v52, %v11624_v57  ;;  %v11195_v20 = vld [vmem:[%s14511_s1 + $0x340] ss:$8 sps:$4 sm:$0xff]   ;;  %v10021_v24 = vcombine.high %v11636_v1, %v11672_v17  ;;  %v11690_v27 = vrot.slane %v1161_v18, 1  ;;  %v1149_v52 = vshll.u32 %v11617_v54, 16  ;;  %v11210_v55 = vld [vmem:[%s14511_s1 + $0x370] ss:$8 sps:$4 sm:$0xff]  }
  0x1b   :  { %10929 = vmatprep.subr.bf16.mxu0 %v11442_v0  ;;  %v141_v14 = vrot.slane %v139_v8, 1  ;;  %v11688_v26 = vld [vmem:[%s14512_s0 + $0x80] sm:$0xff]  ;;  %v893_v60 = vshll.u32 %v11215_v47, 16  ;;  %v890_v63 = vrot.slane %v888_v51, 1  ;;  %v11207_v3 = vld [vmem:[%s14511_s1 + $0x290] ss:$8 sps:$4 sm:$0xff]  }
  0x1c   :  { %10679 = vmatpush3.bf16.msra.mxu1 %v11154_v21  ;;  %v1159_v21 = vor.u32 %v1158_v10, %v1154_v9  ;;  %v11695_v29 = vcombine.low %v11672_v17, %v11688_v26  ;;  %v10023_v44 = vcombine.high %v11688_v26, %v11688_v26  ;;  %v11219_v56 = vld [vmem:[%s14511_s1 + $0x480] ss:$8 sps:$4 sm:$0xff]   ;;  %v11216_v18 = vld [vmem:[%s14511_s1 + $0x2b0] ss:$8 sps:$4 sm:$0xff]  }
  0x1d   :  { %10680 = vmatprep.subr.bf16.mxu1 %v11156_v22  ;;  %v11199_v22 = vld [vmem:[%s14512_s0 + $0x80] ss:$16 sps:$4 sm:$0x1f]   ;;  %v145_v34 = vor.u32 %v143_v25, %v141_v14  ;;  %v895_v8 = vrot.slane %v893_v60, 1  ;;  %v11224_v10 = vld [vmem:[%s14512_s0 + $0x48] ss:$16 sps:$4 sm:$0xff]  }
  0x1e   :  { %10930 = vmatpush3.bf16.msra.mxu0 %v11155_v23  ;;  %v142_v23 = vsel %vm114_vm1, %v137_v13, %v141_v14  ;;  %v11702_v31 = vsel %vm114_vm1, %v1159_v21, %v11690_v27  ;;  %v11220_v14 = vld [vmem:[%s14511_s1 + $0x400] ss:$8 sps:$4 sm:$0xff]   ;;  %v11229_v21 = vld [vmem:[%s14511_s1 + $0x410] ss:$8 sps:$4 sm:$0xff]  }
  0x1f   :  { %743 = vmatprep.subr.bf16.mxu0 %v11164_v33  ;;  %v11200_v33 = vld [vmem:[%s14511_s1 + $0x350] ss:$8 sps:$4 sm:$0xff]  }
  0x20   :  { %10681 = vmatpush3.bf16.msra.mxu1 %v11157_v28  ;;  %v147_v28 = vshll.u32 %v11199_v22, 16 }
  0x21   :  { %10951 = vmatprep.subr.bf16.mxu1 %v11442_v0  ;;  %10932 = vmatmul.mubr.bf16.vlgmr.msra.gmra.mrb[0].mxu0 %v126_v45  ;;  %v11206_v45 = vld [vmem:[%s14511_s1 + $0x360] ss:$8 sps:$4 sm:$0xff]  }
  0x22   :  { %744 = vmatpush1.bf16.msra.mxu0 %v11162_v36  ;;  %10935 = vmatprep.mubr.msk.bf16.mxu0 %vm11443_vm0, %v11442_v0  ;;  %v149_v35 = vrot.slane %v147_v28, 1  ;;  %v11191_v36 = vld [vmem:[%s14511_s1 + $0x260] ss:$8 sps:$4 sm:$0xff]  }
  0x23   :  { %455 = vmatmul.mubr.bf16.vlgmr.msra.gmra.mrb[0].mxu1 %v10014_v38  ;;  %745 = vmatprep.subr.bf16.mxu0 %v11167_v41  ;;  %v10020_v38 = vcombine.low %v11636_v1, %v11672_v17  ;;  %v11196_v41 = vld [vmem:[%s14511_s1 + $0x270] ss:$8 sps:$4 sm:$0xff]   ;;  %v11233_v28 = vld [vmem:[%s14511_s1 + $0x4a0] ss:$8 sps:$4 sm:$0xff]  }
  0x24   :  { %10952 = vmatpush3.bf16.msra.mxu1 %v11168_v42  ;;  %462 = vmatprep.mubr.bf16.mxu1 %v10017_v46  ;;  %v150_v42 = vsel %vm114_vm1, %v145_v34, %v149_v35  ;;  %v11204_v46 = vld [vmem:[%s14511_s1 + $0x284] ss:$8 sps:$4 sm:$0xff]  }
  0x25   :  { %10953 = vmatprep.subr.bf16.mxu1 %v11442_v0 }
  0x26   :  { %746 = vmatpush1.bf16.msra.mxu0 %v11165_v48  ;;  %v1142_v48 = vshrl.u32 %v11592_v43, 16  ;;  %v11209_v43 = vld [vmem:[%s14511_s1 + $0x294] ss:$8 sps:$4 sm:$0xff]  }
  0x27   :  { %747 = vmatprep.subr.bf16.mxu0 %v11172_v49  ;;  %v1146_v49 = vrot.slane %v1144_v37, 1  ;;  %v11822_v37 = vcombine.high %v11624_v57, %v11636_v1  ;;  %v11232_v57 = vld [vmem:[%s14511_s1 + $0x2e4] ss:$8 sps:$4 sm:$0xff]  }
  0x28   :  { %10954 = vmatpush3.bf16.msra.mxu1 %v11177_v50  ;;  %v151_v50 = vshrl.u32 %v11199_v22, 16  ;;  %v11234_v22 = vld [vmem:[%s14512_s0 + $0x68] ss:$16 sps:$4 sm:$0xff]  }
  0x29   :  { %10955 = vmatprep.subr.bf16.mxu1 %v11442_v0  ;;  %10936 = vmatmul.mubr.bf16.gmra.mrb[4].mxu0 %v134_v6  ;;  %v11213_v6 = vld [vmem:[%s14511_s1 + $0x2a4] ss:$8 sps:$4 sm:$0xff]  }
  0x2a   :  { %748 = vmatpush1.bf16.msra.mxu0 %v11170_v53  ;;  %10939 = vmatprep.mubr.msk.bf16.mxu0 %vm11443_vm0, %v11442_v0  ;;  %v11202_v53 = vld [vmem:[%s14511_s1 + $0x280] ss:$8 sps:$4 sm:$0xff]   ;;  %v153_v61 = vor.u32 %v151_v50, %v149_v35  ;;  %v905_v35 = vshrl.u32 %v11224_v10, 16  ;;  %v913_v50 = vshrl.u32 %v11234_v22, 16 }
  0x2b   :  { %463 = vmatmul.mubr.bf16.gmra.mrb[4].mxu1 %v10016_v58  ;;  %749 = vmatprep.subr.bf16.mxu0 %v11176_v59  ;;  %v1147_v58 = vor.u32 %v1146_v49, %v1142_v48  ;;  %v10022_v59 = vcombine.low %v11688_v26, %v11688_v26 }
  0x2c   :  { %470 = vmatprep.mubr.bf16.mxu1 %v10019_v2  ;;  %10956 = vmatpush3.bf16.msra.mxu1 %v11184_v62  ;;  %v886_v62 = vshrl.u32 %v11214_v40, 16  ;;  %v11760_v2 = vrot.slane %v1149_v52, 1  ;;  %v11226_v40 = vld [vmem:[%s14511_s1 + $0x2d0] ss:$8 sps:$4 sm:$0xff]   ;;  %v1165_v52 = vshrl.u32 %v11617_v54, 16 }
  0x2d   :  { %10957 = vmatprep.subr.bf16.mxu1 %v11442_v0  ;;  %v11241_v54 = vld [vmem:[%s14512_s0 + $0x8] ss:$16 sps:$4 sm:$0xff]  }
  0x2e   :  { %750 = vmatpush1.bf16.msra.mxu0 %v11174_v5  ;;  %v11767_v5 = vsel %vm114_vm1, %v1147_v58, %v11760_v2  ;;  %v891_v9 = vor.u32 %v890_v63, %v886_v62  ;;  %v1167_v62 = vor.u32 %v1165_v52, %v11760_v2  ;;  %v1169_v63 = vshll.u32 %v11645_v4, 16  ;;  %v11287_v52 = vld [vmem:[%s14512_s0 + $0x30] ss:$16 sps:$4 sm:$0xff]  }
  0x2f   :  { %751 = vmatprep.subr.bf16.mxu0 %v11182_v11  ;;  %v11211_v11 = vld [vmem:[%s14511_s1 + $0x2a0] ss:$8 sps:$4 sm:$0xff]  }
  0x30   :  { %10958 = vmatpush3.bf16.msra.mxu1 %v11189_v15  ;;  %v896_v13 = vsel %vm114_vm1, %v891_v9, %v895_v8  ;;  %v897_v15 = vshrl.u32 %v11215_v47, 16  ;;  %v11238_v47 = vld [vmem:[%s14511_s1 + $0x2f4] ss:$8 sps:$4 sm:$0xff]  }
  0x31   :  { %10959 = vmatprep.subr.bf16.mxu1 %v11442_v0  ;;  %10940 = vmatmul.mubr.bf16.gmra.mrb[8].mxu0 %v142_v23  ;;  %v11243_v23 = vld [vmem:[%s14512_s0 + $0xc] ss:$16 sps:$4 sm:$0xff]  }
  0x32   :  { %752 = vmatpush1.bf16.msra.mxu0 %v11180_v12  ;;  %10943 = vmatprep.mubr.msk.bf16.mxu0 %vm11443_vm0, %v11442_v0  ;;  %v11218_v12 = vld [vmem:[%s14511_s1 + $0x2b4] ss:$8 sps:$4 sm:$0xff]  }
  0x33   :  { %471 = vmatmul.mubr.bf16.gmra.mrb[8].mxu1 %v10018_v19  ;;  %753 = vmatprep.subr.bf16.mxu0 %v11187_v16  ;;  %v901_v16 = vshll.u32 %v11224_v10, 16  ;;  %v11225_v19 = vld [vmem:[%s14511_s1 + $0x490] ss:$8 sps:$4 sm:$0xff]   ;;  %v1171_v10 = vrot.slane %v1169_v63, 1 }
  0x34   :  { %478 = vmatprep.mubr.bf16.mxu1 %v10021_v24  ;;  %10960 = vmatpush3.bf16.msra.mxu1 %v11195_v20  ;;  %v11223_v20 = vld [vmem:[%s14511_s1 + $0x2c4] ss:$8 sps:$4 sm:$0xff]   ;;  %v899_v24 = vor.u32 %v897_v15, %v895_v8  ;;  %v11246_v8 = vld [vmem:[%s14511_s1 + $0x500] ss:$8 sps:$4 sm:$0xff]  }
  0x35   :  { %10961 = vmatprep.subr.bf16.mxu1 %v11442_v0  ;;  %v903_v25 = vrot.slane %v901_v16, 1  ;;  %v1181_v16 = vshrl.u32 %v11645_v4, 16  ;;  %v11258_v4 = vld [vmem:[%s14511_s1 + $0x470] ss:$8 sps:$4 sm:$0xff]  }
  0x36   :  { %754 = vmatpush1.bf16.msra.mxu0 %v11185_v30  ;;  %v11221_v30 = vld [vmem:[%s14511_s1 + $0x2c0] ss:$8 sps:$4 sm:$0xff]  }
  0x37   :  { %755 = vmatprep.subr.bf16.mxu0 %v11193_v32  ;;  %v11228_v32 = vld [vmem:[%s14511_s1 + $0x2d4] ss:$8 sps:$4 sm:$0xff]   ;;  %v904_v34 = vsel %vm114_vm1, %v899_v24, %v903_v25  ;;  %v907_v1 = vor.u32 %v905_v35, %v903_v25 }
  0x38   :  { %10962 = vmatpush3.bf16.msra.mxu1 %v11200_v33  ;;  %v11235_v33 = vld [vmem:[%s14511_s1 + $0x420] ss:$8 sps:$4 sm:$0xff]   ;;  %v11268_v35 = vld [vmem:[%s14512_s0 + $0x6c] ss:$16 sps:$4 sm:$0xff]  }
  0x39   :  { %10963 = vmatprep.subr.bf16.mxu1 %v11442_v0  ;;  %10944 = vmatmul.mubr.bf16.gmra.mrb[12].mxu0 %v150_v42  ;;  %v1173_v42 = vshrl.u32 %v11651_v7, 16  ;;  %v11245_v7 = vld [vmem:[%s14511_s1 + $0x4c0] ss:$8 sps:$4 sm:$0xff]  }
  0x3a   :  { %756 = vmatpush1.bf16.msra.mxu0 %v11191_v36  ;;  %10947 = vmatprep.mubr.msk.bf16.mxu0 %vm11443_vm0, %v11442_v0  ;;  %v909_v36 = vshll.u32 %v11234_v22, 16 }
  0x3b   :  { %479 = vmatmul.mubr.bf16.gmra.mrb[12].mxu1 %v10020_v38  ;;  %757 = vmatprep.subr.bf16.mxu0 %v11198_v39  ;;  %v11827_v38 = vld [vmem:[%s14512_s0 + $0x88] ss:$16 sps:$4 sm:$0x1f]   ;;  %v1175_v51 = vor.u32 %v1173_v42, %v11690_v27 }
  0x3c   :  { %486 = vmatprep.mubr.bf16.mxu1 %v10023_v44  ;;  %10964 = vmatpush3.bf16.msra.mxu1 %v11206_v45  ;;  %v11239_v39 = vld [vmem:[%s14511_s1 + $0x4b0] ss:$8 sps:$4 sm:$0xff]   ;;  %v1177_v44 = vshll.u32 %v11822_v37, 16  ;;  %v11230_v45 = vld [vmem:[%s14511_s1 + $0x2e0] ss:$8 sps:$4 sm:$0xff]   ;;  %v917_v48 = vshll.u32 %v11827_v38, 16 }
  0x3d   :  { %10965 = vmatprep.subr.bf16.mxu1 %v11442_v0  ;;  %v921_v9 = vshrl.u32 %v11827_v38, 16  ;;  %v11963_v38 = vld [vmem:[%s14512_s0 + $0x94] ss:$16 sps:$4 sm:$0x1f]  }
  0x3e   :  { %758 = vmatpush1.bf16.msra.mxu0 %v11196_v41  ;;  %v911_v41 = vrot.slane %v909_v36, 1  ;;  %v919_v27 = vrot.slane %v917_v48, 1  ;;  %v11270_v36 = vld [vmem:[%s14511_s1 + $0x100] ss:$8 sps:$4 sm:$0xff]  }
  0x3f   :  { %759 = vmatprep.subr.bf16.mxu0 %v11204_v46  ;;  %v11240_v46 = vld [vmem:[%s14511_s1 + $0x430] ss:$8 sps:$4 sm:$0xff]   ;;  %v11288_v48 = vld [vmem:[%s14511_s1 + $0x80] ss:$8 sps:$4 sm:$0xff]  }
  0x40   :  { %10966 = vmatpush3.bf16.msra.mxu1 %v11210_v55  ;;  %v912_v49 = vsel %vm114_vm1, %v907_v1, %v911_v41  ;;  %v11236_v55 = vld [vmem:[%s14511_s1 + $0x2f0] ss:$8 sps:$4 sm:$0xff]   ;;  %v915_v58 = vor.u32 %v913_v50, %v911_v41  ;;  %v923_v25 = vor.u32 %v921_v9, %v919_v27  ;;  %v11281_v1 = vld [vmem:[%s14511_s1 + $0x120] ss:$8 sps:$4 sm:$0xff]   ;;  %v1209_v41 = vshll.u32 %v11963_v38, 16 }
  0x41   :  { %10725 = vmatprep.subr.bf16.mxu1 %v11219_v56  ;;  %10948 = vmatmul.mubr.bf16.gmra.mrb[16].mxu0 %v153_v61  ;;  %v1179_v56 = vrot.slane %v1177_v44, 1  ;;  %v11254_v61 = vld [vmem:[%s14511_s1 + $0x4e0] ss:$8 sps:$4 sm:$0xff]   ;;  %v11282_v44 = vld [vmem:[%s14511_s1 + $0x570] ss:$8 sps:$4 sm:$0xff]   ;;  %v1197_v50 = vshrl.u32 %v11695_v29, 16 }
  0x42   :  { %760 = vmatpush1.bf16.msra.mxu0 %v11202_v53  ;;  %775 = vmatprep.mubr.bf16.mxu0 %v11243_v23  ;;  %v11247_v53 = vld [vmem:[%s14511_s1 + $0x440] ss:$8 sps:$4 sm:$0xff]   ;;  %v920_v2 = vsel %vm114_vm1, %v915_v58, %v919_v27  ;;  %v1216_v58 = vshrl.u32 %v11963_v38, 16 }
  0x43   :  { %487 = vmatmul.mubr.bf16.gmra.mrb[16].mxu1 %v10022_v59  ;;  %761 = vmatprep.subr.bf16.mxu0 %v11209_v43  ;;  %v11248_v43 = vld [vmem:[%s14511_s1 + $0x4d0] ss:$8 sps:$4 sm:$0xff]   ;;  %v11876_v60 = vsel %vm114_vm1, %v1175_v51, %v1179_v56  ;;  %v11256_v23 = vld [vmem:[%s14511_s1 + $0x520] ss:$8 sps:$4 sm:$0xff]  }
  0x44   :  { %10967 = vmatprep.mubr.msk.bf16.mxu1 %vm11443_vm0, %v11442_v0  ;;  %v11249_v59 = vld [vmem:[%s14511_s1 + $0x450] ss:$8 sps:$4 sm:$0xff]   ;;  %v11296_v9 = vld [vmem:[%s14511_s1 + $0x160] ss:$8 sps:$4 sm:$0xff]  }
  0x45   :  { %v11286_v51 = vld [vmem:[%s14512_s0 + $0x10] ss:$16 sps:$4 sm:$0xfe]  }
  0x46   :  { %762 = vmatpush1.bf16.msra.mxu0 %v11207_v3  ;;  %v11885_v3 = vcombine.high %v11672_v17, %v11688_v26  ;;  %v11250_v17 = vld [vmem:[%s14511_s1 + $0x510] ss:$8 sps:$4 sm:$0xff]   ;;  %v11255_v26 = vld [vmem:[%s14511_s1 + $0x460] ss:$8 sps:$4 sm:$0xff]  }
  0x47   :  { %763 = vmatprep.subr.bf16.mxu0 %v11213_v6  ;;  %v1189_v6 = vshrl.u32 %v11822_v37, 16  ;;  %v502_v37 = vld [vmem:[%s14512_s0 + $0x88] sm:$0xff] }
  0x48   :  { %v1193_v15 = vshll.u32 %v11885_v3, 16  ;;  %v1205_v42 = vshrl.u32 %v11885_v3, 16  ;;  %v11293_v3 = vld [vmem:[%s14511_s1 + $0x90] ss:$8 sps:$4 sm:$0xff]  }
  0x4a   :  { %764 = vmatpush1.bf16.msra.mxu0 %v11211_v11  ;;  %v11251_v11 = vld [vmem:[%s14512_s0 + $0x2c] ss:$16 sps:$4 sm:$0xff]  }
  0x4b   :  { %10968 = vmatmul.mubr.bf16.vlgmr.msra.gmra.mrb[20].mxu1 %v896_v13  ;;  %765 = vmatprep.subr.bf16.mxu0 %v11218_v12  ;;  %v11904_v12 = vsel %vm114_vm1, %v1167_v62, %v1171_v10  ;;  %v11257_v13 = vld [vmem:[%s14511_s1 + $0x4f0] ss:$8 sps:$4 sm:$0xff]  }
  0x4c   :  { %10726 = vmatpush3.bf16.msra.mxu1 %v11220_v14  ;;  %10971 = vmatprep.mubr.msk.bf16.mxu1 %vm11443_vm0, %v11442_v0  ;;  %v1191_v14 = vor.u32 %v1189_v6, %v1179_v56  ;;  %v1460_v56 = vrot.slane %v11287_v52, 1  ;;  %v11295_v62 = vld [vmem:[%s14512_s0 + $0x50] ss:$16 sps:$4 sm:$0xff]  }
  0x4d   :  { %10727 = vmatprep.subr.bf16.mxu1 %v11225_v19  ;;  %v11253_v19 = vld [vmem:[%s14512_s0 + $0x28] ss:$16 sps:$4 sm:$0xff]   ;;  %v11306_v6 = vld [vmem:[%s14512_s0 + $0xb0] ss:$16 sps:$4 sm:$0xff]  }
  0x4e   :  { %766 = vmatpush1.bf16.msra.mxu0 %v11216_v18  ;;  %v1185_v18 = vshll.u32 %v11695_v29, 16  ;;  %v1459_v29 = vrot.slane %v11286_v51, 1  ;;  %v12161_v52 = vld [vmem:[%s14512_s0 + $0x100] sm:$0xff] }
  0x4f   :  { %767 = vmatprep.subr.bf16.mxu0 %v11223_v20  ;;  %v1195_v20 = vrot.slane %v1193_v15, 1  ;;  %v11305_v15 = vld [vmem:[%s14511_s1 + $0x204] ss:$8 sps:$4 sm:$0xff]  }
  0x50   :  { %10728 = vmatpush3.bf16.msra.mxu1 %v11229_v21  ;;  %v1183_v21 = vor.u32 %v1181_v16, %v1171_v10  ;;  %v11921_v22 = vrot.slane %v1185_v18, 1  ;;  %v11294_v10 = vld [vmem:[%s14511_s1 + $0x10] ss:$8 sps:$4 sm:$0xff]  }
  0x51   :  { %10729 = vmatprep.subr.bf16.mxu1 %v11233_v28  ;;  %v1196_v24 = vsel %vm114_vm1, %v1191_v14, %v1195_v20  ;;  %v11259_v28 = vld [vmem:[%s14512_s0 + $0x4c] ss:$16 sps:$4 sm:$0xff]   ;;  %v11298_v14 = vld [vmem:[%s14511_s1 + $0x20] ss:$8 sps:$4 sm:$0xff]  }
  0x52   :  { %768 = vmatpush1.bf16.msra.mxu0 %v11221_v30  ;;  %v11932_v30 = vsel %vm114_vm1, %v1183_v21, %v11921_v22  ;;  %v1199_v27 = vor.u32 %v1197_v50, %v11921_v22  ;;  %v5089_v21 = vshrl.u32 %v11306_v6, 16  ;;  %v11322_v50 = vld [vmem:[%s14511_s1 + $0xe0] ss:$8 sps:$4 sm:$0xff]  }
  0x53   :  { %10972 = vmatmul.mubr.bf16.gmra.mrb[24].mxu1 %v904_v34  ;;  %769 = vmatprep.subr.bf16.mxu0 %v11228_v32  ;;  %v11266_v32 = vld [vmem:[%s14511_s1 + $0x530] ss:$8 sps:$4 sm:$0xff]   ;;  %v11267_v34 = vld [vmem:[%s14511_s1 + $0x540] ss:$8 sps:$4 sm:$0xff]  }
  0x54   :  { %10975 = vmatprep.mubr.msk.bf16.mxu1 %vm11443_vm0, %v11442_v0  ;;  %10730 = vmatpush3.bf16.msra.mxu1 %v11235_v33  ;;  %v11261_v33 = vld [vmem:[%s14512_s0 + $0x48] ss:$16 sps:$4 sm:$0xff]  }
  0x55   :  { %10731 = vmatprep.subr.bf16.mxu1 %v11239_v39  ;;  %v11275_v39 = vld [vmem:[%s14511_s1 + $0x110] ss:$8 sps:$4 sm:$0xff]  }
  0x56   :  { %770 = vmatpush1.bf16.msra.mxu0 %v11226_v40  ;;  %v11271_v40 = vld [vmem:[%s14512_s0 + $0x68] ss:$16 sps:$4 sm:$0xff]  }
  0x57   :  { %771 = vmatprep.subr.bf16.mxu0 %v11232_v57  ;;  %v10081_v57 = vcombine.high %v502_v37, %v502_v37 }
  0x58   :  { %10732 = vmatpush3.bf16.msra.mxu1 %v11240_v46  ;;  %v11283_v46 = vld [vmem:[%s14511_s1 + $0x130] ss:$8 sps:$4 sm:$0xff]  }
  0x59   :  { %10733 = vmatprep.subr.bf16.mxu1 %v11245_v7  ;;  %v1207_v7 = vor.u32 %v1205_v42, %v1195_v20  ;;  %v11300_v20 = vld [vmem:[%s14511_s1 + $0xb0] ss:$8 sps:$4 sm:$0xff]  }
  0x5a   :  { %772 = vmatpush1.bf16.msra.mxu0 %v11230_v45  ;;  %v11991_v45 = vld [vmem:[%s14512_s0 + $0x90] ss:$16 sps:$4 sm:$0x1f]  }
  0x5b   :  { %10976 = vmatmul.mubr.bf16.gmra.mrb[28].mxu1 %v912_v49  ;;  %773 = vmatprep.subr.bf16.mxu0 %v11238_v47  ;;  %v1211_v47 = vrot.slane %v1209_v41, 1  ;;  %v10080_v49 = vcombine.low %v502_v37, %v502_v37  ;;  %v11312_v37 = vld [vmem:[%s14511_s1 + $0x40] ss:$8 sps:$4 sm:$0xff]  }
  0x5c   :  { %10979 = vmatprep.mubr.msk.bf16.mxu1 %vm11443_vm0, %v11442_v0  ;;  %10734 = vmatpush3.bf16.msra.mxu1 %v11247_v53  ;;  %v1201_v53 = vshll.u32 %v11991_v45, 16 }
  0x5d   :  { %10735 = vmatprep.subr.bf16.mxu1 %v11248_v43  ;;  %v11290_v43 = vld [vmem:[%s14511_s1 + $0x140] ss:$8 sps:$4 sm:$0xff]  }
  0x5e   :  { %774 = vmatpush1.bf16.msra.mxu0 %v11236_v55  ;;  %v1212_v55 = vsel %vm114_vm1, %v1207_v7, %v1211_v47 }
  0x5f   :  { %10987 = vmatprep.subr.bf16.mxu0 %v11442_v0 }
  0x60   :  { %10736 = vmatpush3.bf16.msra.mxu1 %v11249_v59  ;;  %v11292_v59 = vld [vmem:[%s14511_s1 + $0x150] ss:$8 sps:$4 sm:$0xff]  }
  0x61   :  { %776 = vmatmul.mubr.bf16.vlgmr.msra.gmra.mrb[20].mxu0 %v11241_v54  ;;  %10737 = vmatprep.subr.bf16.mxu1 %v11254_v61  ;;  %v1203_v54 = vrot.slane %v1201_v53, 1  ;;  %v1461_v61 = vsel %vm1458_vm2, %v1459_v29, %v1460_v56  ;;  %v12166_v53 = vld [vmem:[%s14512_s0 + $0x110] sm:$0xff] }
  0x62   :  { %10988 = vmatpush3.bf16.msra.mxu0 %v11246_v8  ;;  %785 = vmatprep.mubr.bf16.mxu0 %v11251_v11  ;;  %v1218_v8 = vor.u32 %v1216_v58, %v1211_v47  ;;  %v1213_v11 = vshrl.u32 %v11991_v45, 16  ;;  %v11309_v45 = vld [vmem:[%s14511_s1 + $0x210] ss:$8 sps:$4 sm:$0xff]   ;;  %v12179_v29 = vcombine.low %v12161_v52, %v12166_v53 }
  0x63   :  { %10980 = vmatmul.mubr.bf16.gmra.mrb[32].mxu1 %v920_v2  ;;  %10989 = vmatprep.subr.bf16.mxu0 %v11442_v0  ;;  %v1204_v63 = vsel %vm114_vm1, %v1199_v27, %v1203_v54  ;;  %v1462_v2 = vrot.slane %v11295_v62, 1 }
  0x64   :  { %10983 = vmatprep.mubr.msk.bf16.mxu1 %vm11443_vm0, %v11442_v0  ;;  %10738 = vmatpush3.bf16.msra.mxu1 %v11255_v26  ;;  %v12054_v26 = vld [vmem:[%s14512_s0 + $0xd0] ss:$16 sps:$4 sm:$0xff]   ;;  %v1215_v18 = vor.u32 %v1213_v11, %v1203_v54 }
  0x65   :  { %10739 = vmatprep.subr.bf16.mxu1 %v11257_v13  ;;  %v11299_v13 = vld [vmem:[%s14511_s1 + $0x170] ss:$8 sps:$4 sm:$0xff]   ;;  %v1463_v16 = vsel %vm1458_vm2, %v1460_v56, %v1462_v2  ;;  %v5096_v22 = vshll.u32 %v12054_v26, 16  ;;  %v11314_v56 = vld [vmem:[%s14511_s1 + $0x220] ss:$8 sps:$4 sm:$0xff]  }
  0x66   :  { %10990 = vmatpush3.bf16.msra.mxu0 %v11250_v17  ;;  %v11297_v17 = vld [vmem:[%s14511_s1 + $0xa0] ss:$8 sps:$4 sm:$0xff]   ;;  %v11328_v11 = vld [vmem:[%s14511_s1 + $0x70] ss:$8 sps:$4 sm:$0xff]  }
  0x67   :  { %10991 = vmatprep.subr.bf16.mxu0 %v11442_v0 }
  0x68   :  { %10740 = vmatpush3.bf16.msra.mxu1 %v11258_v4 }
  0x69   :  { %786 = vmatmul.mubr.bf16.gmra.mrb[24].mxu0 %v11253_v19  ;;  %11023 = vmatprep.subr.bf16.mxu1 %v11442_v0  ;;  %v12070_v19 = vld [vmem:[%s14512_s0 + $0x70] ss:$16 sps:$4 sm:$0xff]  }
  0x6a   :  { %10992 = vmatpush3.bf16.msra.mxu0 %v11256_v23  ;;  %795 = vmatprep.mubr.bf16.mxu0 %v11259_v28  ;;  %v12079_v23 = vld [vmem:[%s14512_s0 + $0xc0] sm:$0xff]  ;;  %v11302_v28 = vld [vmem:[%s14511_s1 + $0x30] ss:$8 sps:$4 sm:$0xff]  }
  0x6b   :  { %10984 = vmatmul.mubr.bf16.gmra.mrb[36].mxu1 %v923_v25  ;;  %10993 = vmatprep.subr.bf16.mxu0 %v11442_v0  ;;  %v1464_v25 = vrot.slane %v12070_v19, 1 }
  0x6c   :  { %1357 = vmatprep.mubr.bf16.mxu1 %v11702_v31  ;;  %v11274_v31 = vld [vmem:[%s14511_s1 + $0x550] ss:$8 sps:$4 sm:$0xff]  }
  0x6d   :  { %v1465_v38 = vsel %vm1458_vm2, %v1462_v2, %v1464_v25  ;;  %v11326_v2 = vld [vmem:[%s14511_s1 + $0x244] ss:$8 sps:$4 sm:$0xff]  }
  0x6e   :  { %10994 = vmatpush3.bf16.msra.mxu0 %v11266_v32 }
  0x6f   :  { %10995 = vmatprep.subr.bf16.mxu0 %v11442_v0 }
  0x71   :  { %796 = vmatmul.mubr.bf16.gmra.mrb[28].mxu0 %v11261_v33  ;;  %v5098_v33 = vrot.slane %v5096_v22, 1 }
  0x72   :  { %10996 = vmatpush3.bf16.msra.mxu0 %v11267_v34  ;;  %805 = vmatprep.mubr.bf16.mxu0 %v11268_v35  ;;  %v11308_v34 = vld [vmem:[%s14511_s1 + $0xc0] ss:$8 sps:$4 sm:$0xff]  }
  0x73   :  { %1358 = vmatmul.mubr.bf16.vlgmr.msra.gmra.mrb[40].mxu1 %v11767_v5  ;;  %10997 = vmatprep.subr.bf16.mxu0 %v11442_v0  ;;  %v11277_v5 = vld [vmem:[%s14511_s1 + $0x560] ss:$8 sps:$4 sm:$0xff]  }
  0x74   :  { %11024 = vmatpush3.bf16.msra.mxu1 %v11270_v36  ;;  %1365 = vmatprep.mubr.bf16.mxu1 %v11876_v60  ;;  %v11291_v60 = vld [vmem:[%s14511_s1] ss:$8 sps:$4 sm:$0xff]  }
  0x75   :  { %11025 = vmatprep.subr.bf16.mxu1 %v11442_v0  ;;  %v12102_v35 = vld [vmem:[%s14512_s0 + $0xf0] ss:$16 sps:$4 sm:$0xff]  }
  0x76   :  { %10998 = vmatpush3.bf16.msra.mxu0 %v11274_v31  ;;  %v11303_v31 = vld [vmem:[%s14511_s1 + $0x200] ss:$8 sps:$4 sm:$0xff]   ;;  %v5104_v41 = vshll.u32 %v12102_v35, 16 }
  0x77   :  { %10999 = vmatprep.subr.bf16.mxu0 %v11442_v0 }
  0x78   :  { %11026 = vmatpush3.bf16.msra.mxu1 %v11275_v39  ;;  %v11311_v39 = vld [vmem:[%s14511_s1 + $0x214] ss:$8 sps:$4 sm:$0xff]   ;;  %v5106_v51 = vrot.slane %v5104_v41, 1  ;;  %v11337_v41 = vld [vmem:[%s14511_s1 + $0x300] ss:$8 sps:$4 sm:$0xff]  }
  0x79   :  { %11027 = vmatprep.subr.bf16.mxu1 %v11442_v0  ;;  %806 = vmatmul.mubr.bf16.gmra.mrb[32].mxu0 %v11271_v40  ;;  %v12121_v40 = vld [vmem:[%s14512_s0 + $0x90] ss:$16 sps:$4 sm:$0x1f]  }
  0x7a   :  { %815 = vmatprep.mubr.bf16.mxu0 %v10081_v57  ;;  %11000 = vmatpush3.bf16.msra.mxu0 %v11277_v5  ;;  %v12126_v5 = vld [vmem:[%s14512_s0 + $0xe0] sm:$0xff]  ;;  %v12131_v57 = vld [vmem:[%s14512_s0 + $0xf0] sm:$0xff]  ;;  %v1466_v7 = vrot.slane %v12121_v40, 1 }
  0x7b   :  { %1366 = vmatmul.mubr.bf16.gmra.mrb[44].mxu1 %v11904_v12  ;;  %11001 = vmatprep.subr.bf16.mxu0 %v11442_v0  ;;  %v5091_v12 = vshll.u32 %v11306_v6, 16  ;;  %v12137_v42 = vcombine.low %v12126_v5, %v12131_v57  ;;  %v11319_v6 = vld [vmem:[%s14511_s1 + $0x230] ss:$8 sps:$4 sm:$0xff]  }
  0x7c   :  { %1373 = vmatprep.mubr.bf16.mxu1 %v1196_v24  ;;  %11028 = vmatpush3.bf16.msra.mxu1 %v11281_v1  ;;  %v12084_v24 = vld [vmem:[%s14512_s0 + $0xd0] sm:$0xff] }
  0x7d   :  { %11029 = vmatprep.subr.bf16.mxu1 %v11442_v0  ;;  %v5093_v4 = vrot.slane %v5091_v12, 1  ;;  %v10439_v36 = vcombine.high %v12079_v23, %v12084_v24 }
  0x7e   :  { %11002 = vmatpush3.bf16.msra.mxu0 %v11282_v44  ;;  %v11317_v44 = vld [vmem:[%s14511_s1 + $0xd0] ss:$8 sps:$4 sm:$0xff]  }
  0x7f   :  { %10797 = vmatprep.subr.bf16.mxu0 %v11288_v48  ;;  %v5094_v32 = vor.u32 %v5093_v4, %v5089_v21  ;;  %v6126_v47 = vshll.u32 %v10439_v36, 16  ;;  %v11316_v48 = vld [vmem:[%s14511_s1 + $0x224] ss:$8 sps:$4 sm:$0xff]   ;;  %v6124_v54 = vshrl.u32 %v10439_v36, 16 }
  0x80   :  { %11030 = vmatpush3.bf16.msra.mxu1 %v11283_v46  ;;  %v5100_v46 = vshrl.u32 %v12054_v26, 16 }
  0x81   :  { %816 = vmatmul.mubr.bf16.gmra.mrb[36].mxu0 %v10080_v49  ;;  %11031 = vmatprep.subr.bf16.mxu1 %v11442_v0  ;;  %v5099_v1 = vsel %vm114_vm1, %v5094_v32, %v5098_v33  ;;  %v11318_v49 = vld [vmem:[%s14511_s1 + $0x50] ss:$8 sps:$4 sm:$0xff]   ;;  %v6128_v58 = vrot.slane %v6126_v47, 1 }
  0x82   :  { %11003 = vmatprep.mubr.msk.bf16.mxu0 %vm11443_vm0, %v11442_v0  ;;  %v5102_v27 = vor.u32 %v5100_v46, %v5098_v33  ;;  %v11331_v33 = vld [vmem:[%s14511_s1 + $0x254] ss:$8 sps:$4 sm:$0xff]   ;;  %v11341_v47 = vld [vmem:[%s14511_s1 + $0x310] ss:$8 sps:$4 sm:$0xff]  }
  0x83   :  { %1374 = vmatmul.mubr.bf16.gmra.mrb[48].mxu1 %v11932_v30  ;;  %v12092_v30 = vcombine.low %v12079_v23, %v12084_v24 }
  0x84   :  { %1381 = vmatprep.mubr.bf16.mxu1 %v1212_v55  ;;  %11032 = vmatpush3.bf16.msra.mxu1 %v11290_v43  ;;  %v12170_v55 = vcombine.high %v12126_v5, %v12131_v57  ;;  %v12175_v43 = vld [vmem:[%s14512_s0 + $0x110] ss:$16 sps:$4 sm:$0xff]  }
  0x85   :  { %11033 = vmatprep.subr.bf16.mxu1 %v11442_v0  ;;  %v6112_v12 = vshrl.u32 %v12092_v30, 16 }
  0x86   :  { %v6131_v62 = vshll.u32 %v12170_v55, 16 }
  0x88   :  { %11034 = vmatpush3.bf16.msra.mxu1 %v11292_v59  ;;  %v1467_v59 = vsel %vm1458_vm2, %v1464_v25, %v1466_v7  ;;  %v12216_v26 = vrot.slane %v6131_v62, 1 }
  0x89   :  { %11004 = vmatmul.mubr.bf16.vlgmr.msra.gmra.mrb[40].mxu0 %v1461_v61  ;;  %11035 = vmatprep.subr.bf16.mxu1 %v11442_v0  ;;  %v11327_v61 = vld [vmem:[%s14511_s1 + $0xf0] ss:$8 sps:$4 sm:$0xff]  }
  0x8a   :  { %10798 = vmatpush3.bf16.msra.mxu0 %v11291_v60  ;;  %11007 = vmatprep.mubr.msk.bf16.mxu0 %vm11443_vm0, %v11442_v0  ;;  %v11323_v60 = vld [vmem:[%s14511_s1 + $0x60] ss:$8 sps:$4 sm:$0xff]  }
  0x8b   :  { %1382 = vmatmul.mubr.bf16.gmra.mrb[52].mxu1 %v1204_v63  ;;  %10799 = vmatprep.subr.bf16.mxu0 %v11293_v3  ;;  %v11321_v63 = vld [vmem:[%s14511_s1 + $0x234] ss:$8 sps:$4 sm:$0xff]   ;;  %v5108_v3 = vshrl.u32 %v12102_v35, 16  ;;  %v5116_v35 = vshrl.u32 %v12175_v43, 16 }
  0x8c   :  { %1389 = vmatprep.mubr.bf16.mxu1 %v1218_v8  ;;  %11036 = vmatpush3.bf16.msra.mxu1 %v11296_v9  ;;  %v5107_v8 = vsel %vm114_vm1, %v5102_v27, %v5106_v51  ;;  %v5112_v9 = vshll.u32 %v12175_v43, 16  ;;  %v10282_v43 = vcombine.high %v12131_v57, %v12161_v52 }
  0x8d   :  { %11037 = vmatprep.subr.bf16.mxu1 %v11442_v0 }
  0x8e   :  { %10800 = vmatpush3.bf16.msra.mxu0 %v11294_v10  ;;  %v6129_v10 = vor.u32 %v6128_v58, %v6124_v54  ;;  %v5114_v19 = vrot.slane %v5112_v9, 1  ;;  %v11385_v54 = vld [vmem:[%s14512_s0 + $0xbc] ss:$16 sps:$4 sm:$0xff]   ;;  %v11349_v58 = vld [vmem:[%s14511_s1 + $0x290] ss:$8 sps:$4 sm:$0xff]  }
  0x8f   :  { %10801 = vmatprep.subr.bf16.mxu0 %v11297_v17  ;;  %v4996_v17 = vld [vmem:[%s14512_s0 + $0xb0] sm:$0xff] }
  0x90   :  { %11038 = vmatpush3.bf16.msra.mxu1 %v11299_v13  ;;  %v6114_v13 = vshll.u32 %v12092_v30, 16  ;;  %v12238_v21 = vsel %vm114_vm1, %v6129_v10, %v12216_v26  ;;  %v10278_v25 = vcombine.high %v4996_v17, %v12079_v23  ;;  %v5118_v40 = vor.u32 %v5116_v35, %v5114_v19  ;;  %v11366_v10 = vld [vmem:[%s14511_s1 + $0x2c0] ss:$8 sps:$4 sm:$0xff]  }
  0x91   :  { %11008 = vmatmul.mubr.bf16.gmra.mrb[44].mxu0 %v1463_v16  ;;  %5715 = vmatprep.subr.bf16.mxu1 %v11305_v15  ;;  %v12223_v15 = vld [vmem:[%s14512_s0 + $0x120] sm:$0xff]  ;;  %v12228_v16 = vld [vmem:[%s14512_s0 + $0x130] sm:$0xff] }
  0x92   :  { %10802 = vmatpush3.bf16.msra.mxu0 %v11298_v14  ;;  %11011 = vmatprep.mubr.msk.bf16.mxu0 %vm11443_vm0, %v11442_v0  ;;  %v5110_v14 = vor.u32 %v5108_v3, %v5106_v51  ;;  %v6116_v4 = vrot.slane %v6114_v13, 1  ;;  %v12242_v22 = vcombine.low %v12223_v15, %v12228_v16  ;;  %v11348_v51 = vld [vmem:[%s14511_s1 + $0x320] ss:$8 sps:$4 sm:$0xff]   ;;  %v10284_v62 = vcombine.high %v12166_v53, %v12223_v15  ;;  %v11369_v3 = vld [vmem:[%s14511_s1 + $0x350] ss:$8 sps:$4 sm:$0xff]  }
  0x93   :  { %1390 = vmatmul.mubr.bf16.gmra.mrb[56].mxu1 %v1215_v18  ;;  %10803 = vmatprep.subr.bf16.mxu0 %v11300_v20  ;;  %v6119_v18 = vshll.u32 %v12137_v42, 16  ;;  %v11364_v20 = vld [vmem:[%s14512_s0 + $0x130] ss:$16 sps:$4 sm:$0x1f]   ;;  %v10283_v9 = vcombine.low %v12166_v53, %v12223_v15  ;;  %v11386_v13 = vld [vmem:[%s14512_s0 + $0xb8] ss:$16 sps:$4 sm:$0xff]  }
  0x94   :  { %11039 = vmatprep.mubr.msk.bf16.mxu1 %vm11443_vm0, %v11442_v0  ;;  %v6117_v30 = vor.u32 %v6116_v4, %v6112_v12  ;;  %v5120_v36 = vshll.u32 %v11364_v20, 16  ;;  %v10286_v12 = vcombine.high %v12228_v16, %v12228_v16  ;;  %v11388_v4 = vld [vmem:[%s14511_s1 + $0x480] ss:$8 sps:$4 sm:$0xff]  }
  0x95   :  { %v12249_v32 = vrot.slane %v6119_v18, 1  ;;  %v11370_v18 = vld [vmem:[%s14511_s1 + $0x2d0] ss:$8 sps:$4 sm:$0xff]  }
  0x96   :  { %10804 = vmatpush3.bf16.msra.mxu0 %v11302_v28  ;;  %v11324_v28 = vld [vmem:[%s14511_s1 + $0x240] ss:$8 sps:$4 sm:$0xff]  }
  0x97   :  { %10805 = vmatprep.subr.bf16.mxu0 %v11308_v34  ;;  %v5115_v34 = vsel %vm114_vm1, %v5110_v14, %v5114_v19  ;;  %v6143_v14 = vshrl.u32 %v12170_v55, 16  ;;  %v11378_v55 = vld [vmem:[%s14511_s1 + $0x2e4] ss:$8 sps:$4 sm:$0xff]  }
  0x99   :  { %11012 = vmatmul.mubr.bf16.gmra.mrb[48].mxu0 %v1465_v38  ;;  %v11336_v38 = vld [vmem:[%s14511_s1 + $0x264] ss:$8 sps:$4 sm:$0xff]  }
  0x9a   :  { %10806 = vmatpush3.bf16.msra.mxu0 %v11312_v37  ;;  %11015 = vmatprep.mubr.msk.bf16.mxu0 %vm11443_vm0, %v11442_v0  ;;  %v11329_v37 = vld [vmem:[%s14511_s1 + $0x250] ss:$8 sps:$4 sm:$0xff]  }
  0x9b   :  { %11040 = vmatmul.mubr.bf16.vlgmr.msra.gmra.mrb[60].mxu1 %v5099_v1  ;;  %10807 = vmatprep.subr.bf16.mxu0 %v11317_v44  ;;  %v5122_v1 = vrot.slane %v5120_v36, 1  ;;  %v10280_v44 = vcombine.high %v12084_v24, %v12126_v5 }
  0x9c   :  { %5716 = vmatpush1.bf16.msra.mxu1 %v11303_v31  ;;  %11043 = vmatprep.mubr.msk.bf16.mxu1 %vm11443_vm0, %v11442_v0  ;;  %v12260_v31 = vsel %vm114_vm1, %v6117_v30, %v12249_v32  ;;  %v5857_v30 = vshrl.u32 %v11386_v13, 16 }
  0x9d   :  { %5717 = vmatprep.subr.bf16.mxu1 %v11311_v39  ;;  %v10277_v39 = vcombine.low %v4996_v17, %v12079_v23  ;;  %v11340_v23 = vld [vmem:[%s14511_s1 + $0x274] ss:$8 sps:$4 sm:$0xff]   ;;  %v5123_v46 = vsel %vm114_vm1, %v5118_v40, %v5122_v1 }
  0x9e   :  { %10808 = vmatpush3.bf16.msra.mxu0 %v11318_v49  ;;  %v5124_v49 = vshrl.u32 %v11364_v20, 16  ;;  %v11372_v17 = vld [vmem:[%s14511_s1 + $0x2d4] ss:$8 sps:$4 sm:$0xff]   ;;  %v5859_v20 = vshll.u32 %v11386_v13, 16 }
  0x9f   :  { %10809 = vmatprep.subr.bf16.mxu0 %v11322_v50  ;;  %v10279_v50 = vcombine.low %v12084_v24, %v12126_v5  ;;  %v11351_v24 = vld [vmem:[%s14511_s1 + $0x294] ss:$8 sps:$4 sm:$0xff]   ;;  %v11358_v5 = vld [vmem:[%s14511_s1 + $0x330] ss:$8 sps:$4 sm:$0xff]  }
  0xa0   :  { %5718 = vmatpush1.bf16.msra.mxu1 %v11309_v45  ;;  %v11334_v45 = vld [vmem:[%s14511_s1 + $0x260] ss:$8 sps:$4 sm:$0xff]   ;;  %v5126_v27 = vor.u32 %v5124_v49, %v5122_v1 }
  0xa1   :  { %5719 = vmatprep.subr.bf16.mxu1 %v11316_v48  ;;  %11016 = vmatmul.mubr.bf16.gmra.mrb[52].mxu0 %v1467_v59  ;;  %v11347_v48 = vld [vmem:[%s14511_s1 + $0x284] ss:$8 sps:$4 sm:$0xff]  }
  0xa2   :  { %11019 = vmatprep.mubr.msk.bf16.mxu0 %vm11443_vm0, %v11442_v0  ;;  %10810 = vmatpush3.bf16.msra.mxu0 %v11323_v60  ;;  %v11357_v59 = vld [vmem:[%s14511_s1 + $0x2a4] ss:$8 sps:$4 sm:$0xff]   ;;  %v10281_v60 = vcombine.low %v12131_v57, %v12161_v52  ;;  %v11361_v57 = vld [vmem:[%s14511_s1 + $0x2b4] ss:$8 sps:$4 sm:$0xff]  }
  0xa3   :  { %10811 = vmatprep.subr.bf16.mxu0 %v11327_v61  ;;  %11044 = vmatmul.mubr.bf16.gmra.mrb[64].mxu1 %v5107_v8  ;;  %v11362_v61 = vld [vmem:[%s14511_s1 + $0x340] ss:$8 sps:$4 sm:$0xff]   ;;  %v11368_v8 = vld [vmem:[%s14511_s1 + $0x2c4] ss:$8 sps:$4 sm:$0xff]  }
  0xa4   :  { %5720 = vmatpush1.bf16.msra.mxu1 %v11314_v56  ;;  %11047 = vmatprep.mubr.msk.bf16.mxu1 %vm11443_vm0, %v11442_v0  ;;  %v11345_v56 = vld [vmem:[%s14511_s1 + $0x280] ss:$8 sps:$4 sm:$0xff]  }
  0xa5   :  { %5721 = vmatprep.subr.bf16.mxu1 %v11321_v63  ;;  %v11355_v63 = vld [vmem:[%s14511_s1 + $0x2a0] ss:$8 sps:$4 sm:$0xff]  }
  0xa6   :  { %10812 = vmatpush3.bf16.msra.mxu0 %v11328_v11  ;;  %v10443_v11 = vcombine.high %v12161_v52, %v12166_v53  ;;  %v11382_v52 = vld [vmem:[%s14511_s1 + $0x370] ss:$8 sps:$4 sm:$0xff]  }
  0xa7   :  { %11059 = vmatprep.subr.bf16.mxu0 %v11442_v0  ;;  %v12372_v53 = vld [vmem:[%s14512_s0 + $0xd8] ss:$16 sps:$4 sm:$0xff]  }
  0xa8   :  { %5722 = vmatpush1.bf16.msra.mxu1 %v11319_v6  ;;  %v11359_v6 = vld [vmem:[%s14511_s1 + $0x2b0] ss:$8 sps:$4 sm:$0xff]   ;;  %v6147_v19 = vshll.u32 %v10443_v11, 16  ;;  %v5864_v35 = vshll.u32 %v12372_v53, 16 }
  0xa9   :  { %5723 = vmatprep.subr.bf16.mxu1 %v11326_v2  ;;  %11020 = vmatmul.mubr.bf16.gmra.mrb[56].mxu0 %v1466_v7  ;;  %v11338_v7 = vld [vmem:[%s14511_s1 + $0x270] ss:$8 sps:$4 sm:$0xff]   ;;  %v11374_v2 = vld [vmem:[%s14511_s1 + $0x360] ss:$8 sps:$4 sm:$0xff]  }
  0xaa   :  { %5427 = vmatprep.mubr.bf16.mxu0 %v10278_v25  ;;  %v6145_v25 = vor.u32 %v6143_v14, %v12216_v26  ;;  %v6149_v36 = vrot.slane %v6147_v19, 1  ;;  %v6139_v26 = vshll.u32 %v12179_v29, 16  ;;  %v11409_v19 = vld [vmem:[%s14511_s1 + $0x530] ss:$8 sps:$4 sm:$0xff]  }
  0xab   :  { %11048 = vmatmul.mubr.bf16.gmra.mrb[68].mxu1 %v5115_v34  ;;  %v11376_v34 = vld [vmem:[%s14511_s1 + $0x2e0] ss:$8 sps:$4 sm:$0xff]  }
  0xac   :  { %5724 = vmatpush1.bf16.msra.mxu1 %v11324_v28  ;;  %11051 = vmatprep.mubr.msk.bf16.mxu1 %vm11443_vm0, %v11442_v0  ;;  %v10285_v28 = vcombine.low %v12228_v16, %v12228_v16  ;;  %v6141_v1 = vrot.slane %v6139_v26, 1  ;;  %v11415_v26 = vld [vmem:[%s14511_s1 + $0x450] ss:$8 sps:$4 sm:$0xff]  }
  0xad   :  { %5725 = vmatprep.subr.bf16.mxu1 %v11331_v33  ;;  %v12389_v33 = vcombine.high %v12223_v15, %v12228_v16  ;;  %v11381_v15 = vld [vmem:[%s14511_s1 + $0x2f4] ss:$8 sps:$4 sm:$0xff]   ;;  %v12401_v16 = vsel %vm114_vm1, %v6145_v25, %v6149_v36 }
  0xb0   :  { %5726 = vmatpush1.bf16.msra.mxu1 %v11329_v37  ;;  %v6135_v37 = vshrl.u32 %v12137_v42, 16  ;;  %v6163_v42 = vshll.u32 %v12389_v33, 16 }
  0xb1   :  { %5727 = vmatprep.subr.bf16.mxu1 %v11336_v38  ;;  %5428 = vmatmul.mubr.bf16.vlgmr.msra.gmra.mrb[60].mxu0 %v10277_v39  ;;  %v5861_v38 = vrot.slane %v5859_v20, 1  ;;  %v6159_v39 = vshrl.u32 %v10443_v11, 16  ;;  %v11400_v11 = vld [vmem:[%s14512_s0 + $0xfc] ss:$16 sps:$4 sm:$0xff]  }
  0xb2   :  { %11060 = vmatpush3.bf16.msra.mxu0 %v11337_v41  ;;  %5435 = vmatprep.mubr.bf16.mxu0 %v10280_v44  ;;  %v6137_v40 = vor.u32 %v6135_v37, %v12249_v32  ;;  %v6151_v44 = vshrl.u32 %v12179_v29, 16  ;;  %v11396_v32 = vld [vmem:[%s14512_s0 + $0xf8] ss:$16 sps:$4 sm:$0xff]  }
  0xb3   :  { %11061 = vmatprep.subr.bf16.mxu0 %v11442_v0  ;;  %11052 = vmatmul.mubr.bf16.gmra.mrb[72].mxu1 %v5123_v46  ;;  %v6161_v41 = vor.u32 %v6159_v39, %v6149_v36  ;;  %v11379_v29 = vld [vmem:[%s14511_s1 + $0x2f0] ss:$8 sps:$4 sm:$0xff]  }
  0xb4   :  { %5728 = vmatpush1.bf16.msra.mxu1 %v11334_v45  ;;  %11055 = vmatprep.mubr.msk.bf16.mxu1 %vm11443_vm0, %v11442_v0  ;;  %v6155_v45 = vshll.u32 %v12242_v22, 16  ;;  %v12408_v46 = vsel %vm114_vm1, %v6137_v40, %v6141_v1  ;;  %v5475_v39 = vld [vmem:[%s14512_s0 + $0x138] sm:$0xff] }
  0xb5   :  { %5729 = vmatprep.subr.bf16.mxu1 %v11340_v23  ;;  %v5866_v23 = vrot.slane %v5864_v35, 1  ;;  %v11416_v35 = vld [vmem:[%s14511_s1 + $0x540] ss:$8 sps:$4 sm:$0xff]  }
  0xb6   :  { %11062 = vmatpush3.bf16.msra.mxu0 %v11341_v47  ;;  %v5862_v47 = vor.u32 %v5861_v38, %v5857_v30  ;;  %v12417_v49 = vrot.slane %v6155_v45, 1  ;;  %v11410_v30 = vld [vmem:[%s14512_s0 + $0x11c] ss:$16 sps:$4 sm:$0xff]   ;;  %v11417_v38 = vld [vmem:[%s14511_s1 + $0x4e0] ss:$8 sps:$4 sm:$0xff]  }
  0xb7   :  { %11063 = vmatprep.subr.bf16.mxu0 %v11442_v0  ;;  %v11412_v40 = vld [vmem:[%s14512_s0 + $0x118] ss:$16 sps:$4 sm:$0xff]  }
  0xb8   :  { %5730 = vmatpush1.bf16.msra.mxu1 %v11338_v7  ;;  %v12415_v7 = vrot.slane %v6163_v42, 1  ;;  %v11419_v42 = vld [vmem:[%s14511_s1 + $0x460] ss:$8 sps:$4 sm:$0xff]  }
  0xb9   :  { %5731 = vmatprep.subr.bf16.mxu1 %v11347_v48  ;;  %5436 = vmatmul.mubr.bf16.gmra.mrb[64].mxu0 %v10279_v50  ;;  %v6153_v48 = vor.u32 %v6151_v44, %v6141_v1  ;;  %v11422_v44 = vld [vmem:[%s14511_s1 + $0x4f0] ss:$8 sps:$4 sm:$0xff]   ;;  %v11424_v45 = vld [vmem:[%s14511_s1 + $0x560] ss:$8 sps:$4 sm:$0xff]  }
  0xba   :  { %11064 = vmatpush3.bf16.msra.mxu0 %v11348_v51  ;;  %5443 = vmatprep.mubr.bf16.mxu0 %v10282_v43  ;;  %v12424_v50 = vsel %vm114_vm1, %v6161_v41, %v12415_v7  ;;  %v11383_v43 = vld [vmem:[%s14512_s0 + $0xb8] ss:$16 sps:$4 sm:$0xff]   ;;  %v10344_v41 = vcombine.high %v5475_v39, %v5475_v39 }
  0xbb   :  { %11065 = vmatprep.subr.bf16.mxu0 %v11442_v0  ;;  %11056 = vmatmul.mubr.bf16.gmra.mrb[76].mxu1 %v5126_v27  ;;  %v12428_v51 = vsel %vm114_vm1, %v6153_v48, %v12417_v49  ;;  %v5872_v27 = vshll.u32 %v11396_v32, 16  ;;  %v11429_v48 = vld [vmem:[%s14511_s1 + $0x570] ss:$8 sps:$4 sm:$0xff]  }
  0xbc   :  { %5732 = vmatpush1.bf16.msra.mxu1 %v11345_v56  ;;  %5747 = vmatprep.mubr.bf16.mxu1 %v11385_v54  ;;  %v5867_v56 = vsel %vm114_vm1, %v5862_v47, %v5866_v23  ;;  %v11390_v54 = vld [vmem:[%s14511_s1 + $0x490] ss:$8 sps:$4 sm:$0xff]  }
  0xbd   :  { %5733 = vmatprep.subr.bf16.mxu1 %v11351_v24  ;;  %v11389_v24 = vld [vmem:[%s14511_s1 + $0x400] ss:$8 sps:$4 sm:$0xff]   ;;  %v11423_v47 = vld [vmem:[%s14511_s1 + $0x470] ss:$8 sps:$4 sm:$0xff]  }
  0xbe   :  { %11066 = vmatpush3.bf16.msra.mxu0 %v11358_v5  ;;  %v5868_v5 = vshrl.u32 %v12372_v53, 16  ;;  %v11413_v53 = vld [vmem:[%s14512_s0 + $0x138] ss:$16 sps:$4 sm:$0x1f]  }
  0xbf   :  { %11067 = vmatprep.subr.bf16.mxu0 %v11442_v0 }
  0xc0   :  { %5734 = vmatpush1.bf16.msra.mxu1 %v11349_v58  ;;  %v11392_v58 = vld [vmem:[%s14511_s1 + $0x500] ss:$8 sps:$4 sm:$0xff]  }
  0xc1   :  { %5735 = vmatprep.subr.bf16.mxu1 %v11357_v59  ;;  %5444 = vmatmul.mubr.bf16.gmra.mrb[68].mxu0 %v10281_v60  ;;  %v11393_v59 = vld [vmem:[%s14512_s0 + $0xdc] ss:$16 sps:$4 sm:$0xff]   ;;  %v11391_v60 = vld [vmem:[%s14511_s1 + $0x410] ss:$8 sps:$4 sm:$0xff]  }
  0xc2   :  { %11068 = vmatpush3.bf16.msra.mxu0 %v11362_v61  ;;  %5451 = vmatprep.mubr.bf16.mxu0 %v10284_v62  ;;  %v5870_v61 = vor.u32 %v5868_v5, %v5866_v23  ;;  %v5874_v62 = vrot.slane %v5872_v27, 1  ;;  %v5892_v23 = vshrl.u32 %v11413_v53, 16  ;;  %v10343_v27 = vcombine.low %v5475_v39, %v5475_v39 }
  0xc3   :  { %11069 = vmatprep.subr.bf16.mxu0 %v11442_v0 }
  0xc4   :  { %5736 = vmatpush1.bf16.msra.mxu1 %v11355_v63  ;;  %v11404_v63 = vld [vmem:[%s14512_s0 + $0x118] ss:$16 sps:$4 sm:$0xff]  }
  0xc5   :  { %5737 = vmatprep.subr.bf16.mxu1 %v11361_v57  ;;  %v11397_v57 = vld [vmem:[%s14511_s1 + $0x4a0] ss:$8 sps:$4 sm:$0xff]   ;;  %v5884_v25 = vshrl.u32 %v11404_v63, 16 }
  0xc6   :  { %11070 = vmatpush3.bf16.msra.mxu0 %v11369_v3  ;;  %v11399_v3 = vld [vmem:[%s14511_s1 + $0x510] ss:$8 sps:$4 sm:$0xff]  }
  0xc7   :  { %11071 = vmatprep.subr.bf16.mxu0 %v11442_v0 }
  0xc8   :  { %5738 = vmatpush1.bf16.msra.mxu1 %v11359_v6  ;;  %v11395_v6 = vld [vmem:[%s14512_s0 + $0xd8] ss:$16 sps:$4 sm:$0xff]  }
  0xc9   :  { %5739 = vmatprep.subr.bf16.mxu1 %v11368_v8  ;;  %5452 = vmatmul.mubr.bf16.gmra.mrb[72].mxu0 %v10283_v9  ;;  %v5875_v8 = vsel %vm114_vm1, %v5870_v61, %v5874_v62  ;;  %v11398_v9 = vld [vmem:[%s14511_s1 + $0x420] ss:$8 sps:$4 sm:$0xff]  }
  0xca   :  { %5459 = vmatprep.mubr.bf16.mxu0 %v10286_v12  ;;  %11072 = vmatpush3.bf16.msra.mxu0 %v11374_v2  ;;  %v5880_v2 = vshll.u32 %v11404_v63, 16  ;;  %v11406_v12 = vld [vmem:[%s14511_s1 + $0x520] ss:$8 sps:$4 sm:$0xff]  }
  0xcb   :  { %11073 = vmatprep.subr.bf16.mxu0 %v11442_v0  ;;  %v11430_v61 = vld [vmem:[%s14512_s0 + $0xc0] ss:$16 sps:$4 sm:$0xfe]  }
  0xcc   :  { %5740 = vmatpush1.bf16.msra.mxu1 %v11366_v10  ;;  %v5876_v10 = vshrl.u32 %v11396_v32, 16  ;;  %v5882_v14 = vrot.slane %v5880_v2, 1 }
  0xcd   :  { %5741 = vmatprep.subr.bf16.mxu1 %v11372_v17  ;;  %v11402_v17 = vld [vmem:[%s14511_s1 + $0x4b0] ss:$8 sps:$4 sm:$0xff]  }
  0xce   :  { %11074 = vmatpush3.bf16.msra.mxu0 %v11382_v52  ;;  %v5878_v13 = vor.u32 %v5876_v10, %v5874_v62  ;;  %v11405_v52 = vld [vmem:[%s14511_s1 + $0x430] ss:$8 sps:$4 sm:$0xff]   ;;  %v5886_v36 = vor.u32 %v5884_v25, %v5882_v14 }
  0xcf   :  { %10856 = vmatprep.subr.bf16.mxu0 %v11388_v4  ;;  %v11408_v4 = vld [vmem:[%s14511_s1 + $0x440] ss:$8 sps:$4 sm:$0xff]  }
  0xd0   :  { %5742 = vmatpush1.bf16.msra.mxu1 %v11370_v18  ;;  %v11407_v18 = vld [vmem:[%s14511_s1 + $0x4c0] ss:$8 sps:$4 sm:$0xff]   ;;  %v5883_v20 = vsel %vm114_vm1, %v5878_v13, %v5882_v14 }
  0xd1   :  { %5743 = vmatprep.subr.bf16.mxu1 %v11378_v55  ;;  %5460 = vmatmul.mubr.bf16.gmra.mrb[76].mxu0 %v10285_v28  ;;  %v11403_v55 = vld [vmem:[%s14512_s0 + $0xf8] ss:$16 sps:$4 sm:$0xff]   ;;  %v5888_v28 = vshll.u32 %v11413_v53, 16  ;;  %v11434_v14 = vld [vmem:[%s14512_s0 + $0x100] ss:$16 sps:$4 sm:$0xff]  }
  0xd2   :  { %11075 = vmatprep.mubr.msk.bf16.mxu0 %vm11443_vm0, %v11442_v0 }
  0xd3   :  { %v5890_v37 = vrot.slane %v5888_v28, 1 }
  0xd4   :  { %5744 = vmatpush1.bf16.msra.mxu1 %v11376_v34  ;;  %v11414_v34 = vld [vmem:[%s14511_s1 + $0x4d0] ss:$8 sps:$4 sm:$0xff]  }
  0xd5   :  { %5745 = vmatprep.subr.bf16.mxu1 %v11381_v15  ;;  %v11420_v15 = vld [vmem:[%s14511_s1 + $0x550] ss:$8 sps:$4 sm:$0xff]   ;;  %v5891_v1 = vsel %vm114_vm1, %v5886_v36, %v5890_v37 }
  0xd8   :  { %5746 = vmatpush1.bf16.msra.mxu1 %v11379_v29 }
  0xd9   :  { %11095 = vmatprep.subr.bf16.mxu1 %v11442_v0  ;;  %11076 = vmatmul.mubr.bf16.vlgmr.msra.gmra.mrb[80].mxu0 %v5867_v56  ;;  %v5894_v56 = vor.u32 %v5892_v23, %v5890_v37  ;;  %v6175_v37 = vshrl.u32 %v12389_v33, 16 }
  0xda   :  { %10857 = vmatpush3.bf16.msra.mxu0 %v11389_v24  ;;  %11079 = vmatprep.mubr.msk.bf16.mxu0 %vm11443_vm0, %v11442_v0 }
  0xdb   :  { %5748 = vmatmul.mubr.bf16.vlgmr.msra.gmra.mrb[80].mxu1 %v11383_v43  ;;  %10858 = vmatprep.subr.bf16.mxu0 %v11390_v54  ;;  %v11431_v54 = vld [vmem:[%s14512_s0 + $0xe0] ss:$16 sps:$4 sm:$0xff]  }
  0xdc   :  { %11096 = vmatpush3.bf16.msra.mxu1 %v11392_v58  ;;  %5757 = vmatprep.mubr.bf16.mxu1 %v11393_v59 }
  0xdd   :  { %11097 = vmatprep.subr.bf16.mxu1 %v11442_v0 }
  0xde   :  { %10859 = vmatpush3.bf16.msra.mxu0 %v11391_v60 }
  0xdf   :  { %10860 = vmatprep.subr.bf16.mxu0 %v11397_v57 }
  0xe0   :  { %11098 = vmatpush3.bf16.msra.mxu1 %v11399_v3  ;;  %v6427_v3 = vrot.slane %v11430_v61, 1 }
  0xe1   :  { %11099 = vmatprep.subr.bf16.mxu1 %v11442_v0  ;;  %11080 = vmatmul.mubr.bf16.gmra.mrb[84].mxu0 %v5875_v8 }
  0xe2   :  { %10861 = vmatpush3.bf16.msra.mxu0 %v11398_v9  ;;  %11083 = vmatprep.mubr.msk.bf16.mxu0 %vm11443_vm0, %v11442_v0 }
  0xe3   :  { %5758 = vmatmul.mubr.bf16.gmra.mrb[84].mxu1 %v11395_v6  ;;  %10862 = vmatprep.subr.bf16.mxu0 %v11402_v17  ;;  %v6428_v6 = vrot.slane %v11431_v54, 1 }
  0xe4   :  { %5767 = vmatprep.mubr.bf16.mxu1 %v11400_v11  ;;  %11100 = vmatpush3.bf16.msra.mxu1 %v11406_v12 }
  0xe5   :  { %11101 = vmatprep.subr.bf16.mxu1 %v11442_v0  ;;  %v6429_v13 = vsel %vm1458_vm2, %v6427_v3, %v6428_v6 }
  0xe6   :  { %10863 = vmatpush3.bf16.msra.mxu0 %v11405_v52 }
  0xe7   :  { %10864 = vmatprep.subr.bf16.mxu0 %v11407_v18 }
  0xe8   :  { %11102 = vmatpush3.bf16.msra.mxu1 %v11409_v19 }
  0xe9   :  { %11084 = vmatmul.mubr.bf16.gmra.mrb[88].mxu0 %v5883_v20  ;;  %11103 = vmatprep.subr.bf16.mxu1 %v11442_v0  ;;  %v6430_v20 = vrot.slane %v11434_v14, 1 }
  0xea   :  { %10865 = vmatpush3.bf16.msra.mxu0 %v11408_v4  ;;  %11087 = vmatprep.mubr.msk.bf16.mxu0 %vm11443_vm0, %v11442_v0  ;;  %v11438_v4 = vld [vmem:[%s14512_s0 + $0x144] ss:$16 sps:$4 sm:$0x1f]  }
  0xeb   :  { %5768 = vmatmul.mubr.bf16.gmra.mrb[88].mxu1 %v11403_v55  ;;  %10866 = vmatprep.subr.bf16.mxu0 %v11414_v34  ;;  %v6431_v36 = vsel %vm1458_vm2, %v6428_v6, %v6430_v20  ;;  %v6186_v61 = vshrl.u32 %v11438_v4, 16 }
  0xec   :  { %5777 = vmatprep.mubr.bf16.mxu1 %v11410_v30  ;;  %11104 = vmatpush3.bf16.msra.mxu1 %v11416_v35 }
  0xed   :  { %11105 = vmatprep.subr.bf16.mxu1 %v11442_v0 }
  0xee   :  { %10867 = vmatpush3.bf16.msra.mxu0 %v11415_v26  ;;  %v6179_v26 = vshll.u32 %v11438_v4, 16 }
  0xef   :  { %10868 = vmatprep.subr.bf16.mxu0 %v11417_v38 }
  0xf0   :  { %11106 = vmatpush3.bf16.msra.mxu1 %v11420_v15 }
  0xf1   :  { %11088 = vmatmul.mubr.bf16.gmra.mrb[92].mxu0 %v5891_v1  ;;  %11107 = vmatprep.subr.bf16.mxu1 %v11442_v0 }
  0xf2   :  { %11091 = vmatprep.mubr.msk.bf16.mxu0 %vm11443_vm0, %v11442_v0  ;;  %10869 = vmatpush3.bf16.msra.mxu0 %v11419_v42 }
  0xf3   :  { %5778 = vmatmul.mubr.bf16.gmra.mrb[92].mxu1 %v11412_v40  ;;  %10870 = vmatprep.subr.bf16.mxu0 %v11422_v44  ;;  %v6177_v44 = vor.u32 %v6175_v37, %v12415_v7  ;;  %v10231_v37 = vld [vmem:[%s14513_s3] ss:$0 sm:$0xff] }
  0xf4   :  { %5787 = vmatprep.mubr.bf16.mxu1 %v10344_v41  ;;  %v241_v32 = vpop.f32.mrb[0].mxu0  ;;  %11108 = vmatpush3.bf16.msra.mxu1 %v11424_v45  ;;  %v11440_v41 = vld [vmem:[%s14512_s0 + $0x140] ss:$16 sps:$4 sm:$0x1f]  }
  0xf5   :  { %v10933_v29 = vpop.f32.mrb[1].mxu0  ;;  %11109 = vmatprep.subr.bf16.mxu1 %v11442_v0 }
  0xf6   :  { %v10682_v43 = vpop.f32.mrb[0].mxu1  ;;  %v244_v24 = vpop.f32.mrb[2].mxu0  ;;  %10871 = vmatpush3.bf16.msra.mxu0 %v11423_v47 }
  0xf7   :  { %v10683_v5 = vpop.f32.mrb[1].mxu1  ;;  %v10934_v59 = vpop.f32.mrb[3].mxu0 }
  0xf8   :  { %v10684_v58 = vadd.f32 %v10683_v5, %v10682_v43  ;;  %v10685_v60 = vpop.f32.mrb[2].mxu1  ;;  %11110 = vmatpush3.bf16.msra.mxu1 %v11429_v48  ;;  %v6171_v48 = vshll.u32 %v11440_v41, 16  ;;  %v11441_v5 = vld [vmem:[%s14512_s0 + $0x140] ss:$16 sps:$4 sm:$0x1f]  }
  0xf9   :  { %v10686_v62 = vpop.f32.mrb[3].mxu1  ;;  %11092 = vmatmul.mubr.bf16.gmra.mrb[96].mxu0 %v5894_v56 }
  0xfa   :  { %v10687_v63 = vadd.f32 %v10686_v62, %v10685_v60  ;;  %v12556_v57 = vadd.f32 %v10684_v58, %v241_v32  ;;  %6327 = vmatprep.mubr.bf16.mxu0 %v12238_v21  ;;  %v6167_v32 = vshrl.u32 %v12242_v22, 16  ;;  %v6173_v60 = vrot.slane %v6171_v48, 1 }
  0xfb   :  { %5788 = vmatmul.mubr.bf16.gmra.mrb[96].mxu1 %v10343_v27 }
  0xfc   :  { %11111 = vmatprep.mubr.msk.bf16.mxu1 %vm11443_vm0, %v11442_v0  ;;  %v12561_v8 = vadd.f32 %v10687_v63, %v244_v24  ;;  %v249_v2 = vpop.f32.mrb[4].mxu0  ;;  %v6169_v59 = vor.u32 %v6167_v32, %v12417_v49  ;;  %v6434_v63 = vrot.slane %v11441_v5, 1 }
  0xfd   :  { %v10937_v12 = vpop.f32.mrb[5].mxu0 }
  0xfe   :  { %v10688_v9 = vpop.f32.mrb[4].mxu1  ;;  %v252_v52 = vpop.f32.mrb[6].mxu0 }
  0xff   :  { %v10689_v10 = vpop.f32.mrb[5].mxu1  ;;  %v10938_v19 = vpop.f32.mrb[7].mxu0 }
 0x100   :  { %v10690_v11 = vadd.f32 %v10689_v10, %v10688_v9  ;;  %v10691_v17 = vpop.f32.mrb[6].mxu1 }
 0x101   :  { %v10692_v21 = vpop.f32.mrb[7].mxu1  ;;  %6328 = vmatmul.mubr.bf16.vlgmr.msra.gmra.mrb[100].mxu0 %v12260_v31 }
 0x102   :  { %v12568_v53 = vadd.f32 %v10690_v11, %v249_v2  ;;  %v10693_v18 = vadd.f32 %v10692_v21, %v10691_v17  ;;  %6335 = vmatprep.mubr.bf16.mxu0 %v12401_v16  ;;  %v11437_v16 = vld [vmem:[%s14512_s0 + $0x120] ss:$16 sps:$4 sm:$0xff]   ;;  %v6183_v21 = vshrl.u32 %v11440_v41, 16 }
 0x103   :  { %11112 = vmatmul.mubr.bf16.vlgmr.msra.gmra.mrb[100].mxu1 %v6429_v13  ;;  %v6432_v33 = vrot.slane %v11437_v16, 1 }
 0x104   :  { %v12571_v55 = vadd.f32 %v10693_v18, %v252_v52  ;;  %11115 = vmatprep.mubr.msk.bf16.mxu1 %vm11443_vm0, %v11442_v0  ;;  %v257_v31 = vpop.f32.mrb[8].mxu0  ;;  %v6185_v19 = vor.u32 %v6183_v21, %v6173_v60 }
 0x105   :  { %v10941_v35 = vpop.f32.mrb[9].mxu0  ;;  %v6433_v56 = vsel %vm1458_vm2, %v6430_v20, %v6432_v33  ;;  %v6435_v17 = vsel %vm1458_vm2, %v6432_v33, %v6434_v63 }
 0x106   :  { %v10694_v25 = vpop.f32.mrb[8].mxu1  ;;  %v260_v39 = vpop.f32.mrb[10].mxu0 }
 0x107   :  { %v10695_v28 = vpop.f32.mrb[9].mxu1  ;;  %v10942_v1 = vpop.f32.mrb[11].mxu0 }
 0x108   :  { %v10696_v30 = vadd.f32 %v10695_v28, %v10694_v25  ;;  %v10697_v34 = vpop.f32.mrb[10].mxu1  ;;  %v11444_v28 = vmov 1966171168  }
 0x109   :  { %v10698_v38 = vpop.f32.mrb[11].mxu1  ;;  %6336 = vmatmul.mubr.bf16.gmra.mrb[104].mxu0 %v12408_v46  ;;  %v6181_v46 = vrot.slane %v6179_v26, 1 }
 0x10a   :  { %v12584_v15 = vadd.f32 %v10696_v30, %v257_v31  ;;  %v10699_v40 = vadd.f32 %v10698_v38, %v10697_v34  ;;  %6343 = vmatprep.mubr.bf16.mxu0 %v12424_v50  ;;  %v1613_v31 = vunpack.c.l.s4 %v11444_v28  ;;  %v1615_v30 = vlaneseq }
 0x10b   :  { %11116 = vmatmul.mubr.bf16.gmra.mrb[104].mxu1 %v6431_v36  ;;  %v6182_v24 = vsel %vm114_vm1, %v6177_v44, %v6181_v46  ;;  %v6188_v10 = vor.u32 %v6186_v61, %v6181_v46 }
 0x10c   :  { %v12590_v42 = vadd.f32 %v10699_v40, %v260_v39  ;;  %11119 = vmatprep.mubr.msk.bf16.mxu1 %vm11443_vm0, %v11442_v0  ;;  %v265_v47 = vpop.f32.mrb[12].mxu0  ;;  %v1614_v35 = vunpack.c.0.s8 %v1613_v31  ;;  %v1616_v36 = vshrl.u32 %v1615_v30, 7  ;;  %v2755_v39 = vcombine.high %v10231_v37, %v10231_v37 }
 0x10d   :  { %v10945_v43 = vpop.f32.mrb[13].mxu0 }
 0x10e   :  { %v10700_v45 = vpop.f32.mrb[12].mxu1  ;;  %v268_v7 = vpop.f32.mrb[14].mxu0  ;;  %v12622_v38 = vsub.s32 %v1614_v35, %v1616_v36 }
 0x10f   :  { %v10701_v23 = vpop.f32.mrb[13].mxu1  ;;  %v10946_v22 = vpop.f32.mrb[15].mxu0 }
 0x110   :  { %v10702_v50 = vadd.f32 %v10701_v23, %v10700_v45  ;;  %v10703_v29 = vpop.f32.mrb[14].mxu1  ;;  %v2762_v1 = vrot.slane %v10231_v37, %v12622_v38  ;;  %v2769_v41 = vrot.slane %v2755_v39, %v12622_v38 }
 0x111   :  { %v10704_v27 = vpop.f32.mrb[15].mxu1  ;;  %6344 = vmatmul.mubr.bf16.gmra.mrb[108].mxu0 %v12428_v51  ;;  %v6174_v51 = vsel %vm114_vm1, %v6169_v59, %v6173_v60 }
 0x112   :  { %v12602_v54 = vadd.f32 %v10702_v50, %v265_v47  ;;  %v10705_v58 = vadd.f32 %v10704_v27, %v10703_v29  ;;  %6351 = vmatprep.mubr.bf16.mxu0 %v6182_v24  ;;  %v2770_v45 = vcombine.high %v2762_v1, %v2762_v1  ;;  %v2771_v23 = vcombine.high %v2769_v41, %v2769_v41 }
 0x113   :  { %11120 = vmatmul.mubr.bf16.gmra.mrb[108].mxu1 %v6433_v56  ;;  %v12631_v47 = vrot.slane %v2762_v1, %v12622_v38  ;;  %v12634_v32 = vrot.slane %v2769_v41, %v12622_v38 }
 0x114   :  { %v12605_v62 = vadd.f32 %v10705_v58, %v268_v7  ;;  %11123 = vmatprep.mubr.msk.bf16.mxu1 %vm11443_vm0, %v11442_v0  ;;  %v273_v9 = vpop.f32.mrb[16].mxu0  ;;  %v12638_v43 = vrot.slane %v2770_v45, %v12622_v38  ;;  %v12641_v56 = vrot.slane %v2771_v23, %v12622_v38 }
 0x115   :  { %v10949_v12 = vpop.f32.mrb[17].mxu0  ;;  %v12650_v59 = vcombine.high %v12631_v47, %v12631_v47 }
 0x116   :  { %v10706_v3 = vpop.f32.mrb[16].mxu1  ;;  %v276_v13 = vpop.f32.mrb[18].mxu0 }
 0x117   :  { %v10707_v6 = vpop.f32.mrb[17].mxu1  ;;  %v10950_v52 = vpop.f32.mrb[19].mxu0 }
 0x118   :  { %v10708_v2 = vadd.f32 %v10707_v6, %v10706_v3  ;;  %v10709_v11 = vpop.f32.mrb[18].mxu1 }
 0x119   :  { %v10710_v49 = vpop.f32.mrb[19].mxu1  ;;  %6352 = vmatmul.mubr.bf16.gmra.mrb[112].mxu0 %v6174_v51  ;;  %v12667_v11 = vcombine.high %v12641_v56, %v12641_v56 }
 0x11a   :  { %v12611_v14 = vadd.f32 %v10708_v2, %v273_v9  ;;  %6359 = vmatprep.mubr.bf16.mxu0 %v6188_v10  ;;  %v12663_v2 = vcombine.high %v12638_v43, %v12638_v43 }
 0x11b   :  { %11124 = vmatmul.mubr.bf16.gmra.mrb[112].mxu1 %v6435_v17 }
 0x11c   :  { %14532 = vst [vmem:[#allocation2_spill] sm:$0xff] %v12611_v14  ;;  %11127 = vmatprep.mubr.msk.bf16.mxu1 %vm11443_vm0, %v11442_v0 }
 0x11e   :  { %v1011_v18 = vpop.f32.mrb[20].mxu1 }
 0x11f   :  { %v10969_v20 = vpop.f32.mrb[21].mxu1 }
 0x120   :  { %v1014_v4 = vpop.f32.mrb[22].mxu1 }
 0x121   :  { %v10970_v25 = vpop.f32.mrb[23].mxu1  ;;  %6360 = vmatmul.mubr.bf16.gmra.mrb[116].mxu0 %v6185_v19 }
 0x123   :  { %11128 = vmatmul.mubr.bf16.gmra.mrb[116].mxu1 %v6434_v63 }
 0x126   :  { %v12615_v34 = vpop.f32.mrb[24].mxu1 }
 0x127   :  { %v10973_v16 = vpop.f32.mrb[25].mxu1 }
 0x128   :  { %v12620_v0 = vpop.f32.mrb[26].mxu1 }
 0x129   :  { %v10974_v26 = vpop.f32.mrb[27].mxu1 }
 0x12e   :  { %v12624_v40 = vpop.f32.mrb[28].mxu1 }
 0x12f   :  { %v10977_v33 = vpop.f32.mrb[29].mxu1 }
 0x130   :  { %v12628_v44 = vpop.f32.mrb[30].mxu1 }
 0x131   :  { %v10978_v46 = vpop.f32.mrb[31].mxu1 }
 0x134   :  { %v777_v48 = vpop.f32.mrb[20].mxu0 }
 0x135   :  { %v824_v50 = vadd.f32 %v777_v48, %v12556_v57  ;;  %v779_v29 = vpop.f32.mrb[21].mxu0  ;;  %v12654_v57 = vcombine.high %v12634_v32, %v12634_v32 }
 0x136   :  { %v12643_v24 = vpop.f32.mrb[32].mxu1  ;;  %v2248_v5 = vcombine.high %v779_v29, %v779_v29  ;;  %v2255_v27 = vrot.slane %v779_v29, %v12622_v38  ;;  %v781_v7 = vpop.f32.mrb[22].mxu0 }
 0x137   :  { %v10981_v58 = vpop.f32.mrb[33].mxu1  ;;  %v12646_v22 = vadd.f32 %v1011_v18, %v824_v50  ;;  %v825_v60 = vadd.f32 %v781_v7, %v12561_v8  ;;  %v783_v61 = vpop.f32.mrb[23].mxu0 }
 0x138   :  { %v12657_v63 = vpop.f32.mrb[34].mxu1  ;;  %v2262_v3 = vrot.slane %v2248_v5, %v12622_v38  ;;  %v2263_v6 = vcombine.high %v2255_v27, %v2255_v27  ;;  %v2271_v51 = vrot.slane %v2255_v27, %v12622_v38  ;;  %v2297_v9 = vcombine.high %v783_v61, %v783_v61 }
 0x139   :  { %14533 = vst [vmem:[#allocation3_spill] sm:$0xff] %v12646_v22  ;;  %14534 = vst [vmem:[#allocation4_spill] sm:$0xff] %v12657_v63  ;;  %v10982_v10 = vpop.f32.mrb[35].mxu1  ;;  %v12669_v17 = vadd.f32 %v1014_v4, %v825_v60  ;;  %v2304_v8 = vrot.slane %v783_v61, %v12622_v38 }
 0x13a   :  { %v2264_v12 = vcombine.high %v2262_v3, %v2262_v3  ;;  %v2278_v49 = vrot.slane %v2262_v3, %v12622_v38  ;;  %v2285_v13 = vrot.slane %v2263_v6, %v12622_v38  ;;  %v2293_v21 = vcombine.high %v2271_v51, %v2271_v51 }
 0x13b   :  { %14535 = vst [vmem:[#allocation5_spill] sm:$0xff] %v12669_v17  ;;  %v2812_v52 = vadd.f32 %v12631_v47, %v2271_v51  ;;  %v2311_v18 = vrot.slane %v2297_v9, %v12622_v38  ;;  %v2312_v19 = vcombine.high %v2304_v8, %v2304_v8  ;;  %v12677_v20 = vrot.slane %v2304_v8, %v12622_v38 }
 0x13c   :  { %v2292_v25 = vrot.slane %v2264_v12, %v12622_v38  ;;  %v2294_v4 = vcombine.high %v2278_v49, %v2278_v49  ;;  %v2295_v28 = vcombine.high %v2285_v13, %v2285_v13  ;;  %v2813_v31 = vadd.f32 %v12638_v43, %v2285_v13  ;;  %v12681_v30 = vpop.f32.mrb[24].mxu0 }
 0x13d   :  { %v2814_v35 = vadd.f32 %v12650_v59, %v2293_v21  ;;  %v2816_v36 = vadd.f32 %v12634_v32, %v2278_v49  ;;  %v4454_v16 = vmul.f32 %v2812_v52, %v2812_v52  ;;  %v2313_v37 = vcombine.high %v2311_v18, %v2311_v18  ;;  %v12685_v26 = vpop.f32.mrb[25].mxu0 }
 0x13e   :  { %v12687_v39 = vpop.f32.mrb[36].mxu1  ;;  %v2296_v1 = vcombine.high %v2292_v25, %v2292_v25  ;;  %v2815_v41 = vadd.f32 %v12663_v2, %v2295_v28  ;;  %v2817_v33 = vadd.f32 %v12641_v56, %v2292_v25  ;;  %v2818_v46 = vadd.f32 %v12654_v57, %v2294_v4  ;;  %v12692_v45 = vpop.f32.mrb[26].mxu0 }
 0x13f   :  { %14536 = vst [vmem:[#allocation6_spill] sm:$0xff] %v12687_v39  ;;  %v10985_v23 = vpop.f32.mrb[37].mxu1  ;;  %v3444_v48 = vcombine.low %v2812_v52, %v2813_v31  ;;  %v4455_v50 = vmul.f32 %v2813_v31, %v2813_v31  ;;  %v4456_v29 = vmul.f32 %v2814_v35, %v2814_v35  ;;  %v4458_v5 = vmul.f32 %v2816_v36, %v2816_v36  ;;  %v12694_v27 = vpop.f32.mrb[27].mxu0 }
 0x140   :  { %v1046_v7 = vpop.f32.mrb[38].mxu1  ;;  %v2819_v58 = vadd.f32 %v12667_v11, %v2296_v1  ;;  %v3445_v60 = vcombine.low %v2814_v35, %v2815_v41  ;;  %v3446_v61 = vcombine.low %v2816_v36, %v2817_v33  ;;  %v4457_v3 = vmul.f32 %v2815_v41, %v2815_v41 }
 0x141   :  { %v10986_v6 = vpop.f32.mrb[39].mxu1  ;;  %v3454_v51 = vrot.slane %v3444_v48, %v12622_v38  ;;  %v4459_v9 = vmul.f32 %v2817_v33, %v2817_v33  ;;  %v4460_v10 = vmul.f32 %v2818_v46, %v2818_v46  ;;  %v4582_v8 = vcombine.low %v4454_v16, %v4455_v50 }
 0x142   :  { %v3447_v12 = vcombine.low %v2818_v46, %v2819_v58  ;;  %v3461_v49 = vrot.slane %v3445_v60, %v12622_v38  ;;  %v3468_v13 = vrot.slane %v3446_v61, %v12622_v38  ;;  %v4461_v21 = vmul.f32 %v2819_v58, %v2819_v58 }
 0x143   :  { %v4583_v52 = vcombine.low %v4456_v29, %v4457_v3  ;;  %v4584_v25 = vcombine.low %v4458_v5, %v4459_v9  ;;  %v4592_v4 = vrot.slane %v4582_v8, %v12622_v38  ;;  %v2327_v28 = vrot.slane %v2311_v18, %v12622_v38 }
 0x144   :  { %v3475_v31 = vrot.slane %v3447_v12, %v12622_v38  ;;  %v3476_v35 = vcombine.low %v3454_v51, %v3461_v49  ;;  %v4585_v36 = vcombine.low %v4460_v10, %v4461_v21  ;;  %v2334_v1 = vrot.slane %v2312_v19, %v12622_v38  ;;  %v12704_v41 = vpop.f32.mrb[28].mxu0 }
 0x145   :  { %v4599_v16 = vrot.slane %v4583_v52, %v12622_v38  ;;  %v4606_v33 = vrot.slane %v4584_v25, %v12622_v38  ;;  %v2341_v46 = vrot.slane %v2313_v37, %v12622_v38  ;;  %v2342_v23 = vcombine.high %v12677_v20, %v12677_v20  ;;  %v12711_v48 = vpop.f32.mrb[29].mxu0 }
 0x146   :  { %v12713_v18 = vpop.f32.mrb[40].mxu1  ;;  %v3477_v50 = vcombine.low %v3468_v13, %v3475_v31  ;;  %v3484_v29 = vrot.slane %v3476_v35, %v12622_v38  ;;  %v4613_v19 = vrot.slane %v4585_v36, %v12622_v38  ;;  %v2343_v5 = vcombine.high %v2327_v28, %v2327_v28  ;;  %v12717_v7 = vpop.f32.mrb[30].mxu0 }
 0x147   :  { %v12719_v58 = vpop.f32.mrb[41].mxu1  ;;  %v4614_v60 = vcombine.low %v4592_v4, %v4599_v16  ;;  %v2344_v61 = vcombine.high %v2334_v1, %v2334_v1  ;;  %v2345_v37 = vcombine.high %v2341_v46, %v2341_v46  ;;  %v2820_v3 = vadd.f32 %v12631_v47, %v2334_v1  ;;  %v12722_v20 = vpop.f32.mrb[31].mxu0 }
 0x148   :  { %v12724_v6 = vpop.f32.mrb[42].mxu1  ;;  %v3491_v51 = vrot.slane %v3477_v50, %v12622_v38  ;;  %v4615_v9 = vcombine.low %v4606_v33, %v4613_v19  ;;  %v2821_v10 = vadd.f32 %v12638_v43, %v2342_v23  ;;  %v2823_v8 = vadd.f32 %v12663_v2, %v2327_v28 }
 0x149   :  { %v12729_v12 = vpop.f32.mrb[43].mxu1  ;;  %v12732_v49 = vrot.slane %v4614_v60, %v12622_v38  ;;  %v2822_v13 = vadd.f32 %v12650_v59, %v2344_v61  ;;  %v2824_v21 = vadd.f32 %v12634_v32, %v2341_v46  ;;  %v2825_v52 = vadd.f32 %v12641_v56, %v2343_v5 }
 0x14a   :  { %v12737_v25 = vcombine.low %v3484_v29, %v3491_v51  ;;  %v12740_v4 = vrot.slane %v4615_v9, %v12622_v38  ;;  %v3493_v31 = vcombine.low %v2820_v3, %v2821_v10  ;;  %v4462_v35 = vmul.f32 %v2820_v3, %v2820_v3 }
 0x14b   :  { %v3494_v36 = vcombine.low %v2822_v13, %v2823_v8  ;;  %v3495_v28 = vcombine.low %v2824_v21, %v2825_v52  ;;  %v4463_v1 = vmul.f32 %v2821_v10, %v2821_v10  ;;  %v4464_v16 = vmul.f32 %v2822_v13, %v2822_v13 }
 0x14c   :  { %v3503_v23 = vrot.slane %v3493_v31, %v12622_v38  ;;  %v4465_v50 = vmul.f32 %v2823_v8, %v2823_v8  ;;  %v4466_v46 = vmul.f32 %v2824_v21, %v2824_v21  ;;  %v12745_v19 = vpop.f32.mrb[32].mxu0  ;;  %v4467_v5 = vmul.f32 %v2825_v52, %v2825_v52 }
 0x14d   :  { %v3510_v29 = vrot.slane %v3494_v36, %v12622_v38  ;;  %v4631_v60 = vcombine.low %v4462_v35, %v4463_v1  ;;  %v826_v61 = vadd.f32 %v12681_v30, %v12568_v53  ;;  %v12750_v3 = vpop.f32.mrb[33].mxu0  ;;  %v2346_v10 = vcombine.high %v12685_v26, %v12685_v26 }
 0x14e   :  { %v12752_v51 = vpop.f32.mrb[44].mxu1  ;;  %v4632_v9 = vcombine.low %v4464_v16, %v4465_v50  ;;  %v2353_v8 = vrot.slane %v12685_v26, %v12622_v38  ;;  %v2826_v13 = vadd.f32 %v12654_v57, %v2345_v37  ;;  %v12759_v21 = vpop.f32.mrb[34].mxu0  ;;  %v4633_v35 = vcombine.low %v4466_v46, %v4467_v5 }
 0x14f   :  { %v12761_v52 = vpop.f32.mrb[45].mxu1  ;;  %v3525_v31 = vcombine.low %v3503_v23, %v3510_v29  ;;  %v4641_v53 = vrot.slane %v4631_v60, %v12622_v38  ;;  %v12765_v30 = vadd.f32 %v12615_v34, %v826_v61  ;;  %v12767_v36 = vpop.f32.mrb[35].mxu0  ;;  %v2360_v26 = vrot.slane %v2346_v10, %v12622_v38 }
 0x150   :  { %14537 = vst [vmem:[#allocation7_spill] sm:$0xff] %v12761_v52  ;;  %14539 = vst [vmem:[#allocation9_spill] sm:$0xff] %v12767_v36  ;;  %v12769_v1 = vpop.f32.mrb[46].mxu1  ;;  %v4648_v16 = vrot.slane %v4632_v9, %v12622_v38  ;;  %v2361_v37 = vcombine.high %v2353_v8, %v2353_v8  ;;  %v2369_v50 = vrot.slane %v2353_v8, %v12622_v38 }
 0x151   :  { %14538 = vst [vmem:[#allocation8_spill] sm:$0xff] %v12765_v30  ;;  %14540 = vst [vmem:[#allocation10_spill] sm:$0xff] %v12769_v1  ;;  %v12774_v33 = vpop.f32.mrb[47].mxu1  ;;  %v3533_v23 = vrot.slane %v3525_v31, %v12622_v38  ;;  %v3517_v46 = vrot.slane %v3495_v28, %v12622_v38  ;;  %v4468_v29 = vmul.f32 %v2826_v13, %v2826_v13 }
 0x152   :  { %14541 = vst [vmem:[#allocation11_spill] sm:$0xff] %v12774_v33  ;;  %v4655_v34 = vrot.slane %v4633_v35, %v12622_v38  ;;  %v4663_v5 = vcombine.low %v4641_v53, %v4648_v16  ;;  %v2362_v60 = vcombine.high %v2360_v26, %v2360_v26  ;;  %v2376_v61 = vrot.slane %v2360_v26, %v12622_v38 }
 0x153   :  { %v2383_v9 = vrot.slane %v2361_v37, %v12622_v38  ;;  %v2391_v30 = vcombine.high %v2369_v50, %v2369_v50  ;;  %v2827_v10 = vadd.f32 %v12667_v11, %v2369_v50  ;;  %v827_v8 = vadd.f32 %v12692_v45, %v12571_v55 }
 0x154   :  { %v2395_v31 = vcombine.high %v12694_v27, %v12694_v27  ;;  %v12787_v28 = vrot.slane %v4663_v5, %v12622_v38  ;;  %v2390_v35 = vrot.slane %v2362_v60, %v12622_v38  ;;  %v2392_v53 = vcombine.high %v2376_v61, %v2376_v61  ;;  %v12790_v17 = vpop.f32.mrb[36].mxu0 }
 0x155   :  { %v2393_v16 = vcombine.high %v2383_v9, %v2383_v9  ;;  %14542 = vst [vmem:[#allocation12_spill] sm:$0xff] %v12790_v17  ;;  %v2828_v26 = vadd.f32 %v12631_v47, %v2391_v30  ;;  %v2830_v37 = vadd.f32 %v12650_v59, %v2376_v61  ;;  %v3496_v50 = vcombine.low %v2826_v13, %v2827_v10  ;;  %v12794_v39 = vpop.f32.mrb[37].mxu0 }
 0x156   :  { %v4469_v22 = vmul.f32 %v2827_v10, %v2827_v10  ;;  %14543 = vst [vmem:[#allocation13_spill] sm:$0xff] %v12794_v39  ;;  %v12796_v55 = vpop.f32.mrb[48].mxu1  ;;  %v2394_v45 = vcombine.high %v2390_v35, %v2390_v35  ;;  %v2831_v14 = vadd.f32 %v12663_v2, %v2390_v35  ;;  %v2832_v60 = vadd.f32 %v12634_v32, %v2392_v53  ;;  %v821_v9 = vpop.f32.mrb[38].mxu0 }
 0x157   :  { %14544 = vst [vmem:[#allocation14_spill] sm:$0xff] %v12796_v55  ;;  %v2829_v5 = vadd.f32 %v12638_v43, %v2393_v16  ;;  %v12801_v33 = vpop.f32.mrb[49].mxu1  ;;  %v3524_v30 = vrot.slane %v3496_v50, %v12622_v38  ;;  %v4470_v17 = vmul.f32 %v2828_v26, %v2828_v26  ;;  %v4472_v61 = vmul.f32 %v2830_v37, %v2830_v37  ;;  %v822_v10 = vpop.f32.mrb[39].mxu0 }
 0x158   :  { %14545 = vst [vmem:[#allocation15_spill] sm:$0xff] %v12801_v33  ;;  %v4634_v13 = vcombine.low %v4468_v29, %v4469_v22  ;;  %v12804_v1 = vpop.f32.mrb[50].mxu1  ;;  %v2833_v55 = vadd.f32 %v12641_v56, %v2394_v45  ;;  %v3543_v36 = vcombine.low %v2830_v37, %v2831_v14  ;;  %v4473_v53 = vmul.f32 %v2831_v14, %v2831_v14 }
 0x159   :  { %14546 = vst [vmem:[#allocation16_spill] sm:$0xff] %v12804_v1  ;;  %v3542_v39 = vcombine.low %v2828_v26, %v2829_v5  ;;  %v4471_v16 = vmul.f32 %v2829_v5, %v2829_v5  ;;  %v12807_v63 = vpop.f32.mrb[51].mxu1  ;;  %v3526_v35 = vcombine.low %v3517_v46, %v3524_v30  ;;  %v4474_v9 = vmul.f32 %v2832_v60, %v2832_v60 }
 0x15a   :  { %14547 = vst [vmem:[#allocation17_spill] sm:$0xff] %v12807_v63  ;;  %v4662_v33 = vrot.slane %v4634_v13, %v12622_v38  ;;  %v3544_v52 = vcombine.low %v2832_v60, %v2833_v55  ;;  %v3559_v22 = vrot.slane %v3543_v36, %v12622_v38  ;;  %v4475_v29 = vmul.f32 %v2833_v55, %v2833_v55 }
 0x15b   :  { %v3552_v50 = vrot.slane %v3542_v39, %v12622_v38  ;;  %v3540_v10 = vrot.slane %v3526_v35, %v12622_v38  ;;  %v4680_v45 = vcombine.low %v4470_v17, %v4471_v16  ;;  %v4681_v26 = vcombine.low %v4472_v61, %v4473_v53 }
 0x15c   :  { %v4664_v1 = vcombine.low %v4655_v34, %v4662_v33  ;;  %v4682_v5 = vcombine.low %v4474_v9, %v4475_v29  ;;  %v12814_v63 = vadd.f32 %v12620_v0, %v827_v8  ;;  %v2402_v14 = vrot.slane %v12694_v27, %v12622_v38  ;;  %v12818_v46 = vpop.f32.mrb[40].mxu0 }
 0x15d   :  { %v3574_v37 = vcombine.low %v3552_v50, %v3559_v22  ;;  %v3541_v60 = vcombine.low %v3533_v23, %v3540_v10  ;;  %v4690_v36 = vrot.slane %v4680_v45, %v12622_v38  ;;  %v4697_v55 = vrot.slane %v4681_v26, %v12622_v38  ;;  %v11005_v17 = vpop.f32.mrb[41].mxu0 }
 0x15e   :  { %14548 = vst [vmem:[#allocation18_spill] sm:$0xff] %v12814_v63  ;;  %v4678_v39 = vrot.slane %v4664_v1, %v12622_v38  ;;  %v12823_v33 = vpop.f32.mrb[52].mxu1  ;;  %v2409_v0 = vrot.slane %v2395_v31, %v12622_v38  ;;  %v2410_v8 = vcombine.high %v2402_v14, %v2402_v14  ;;  %v2418_v27 = vrot.slane %v2402_v14, %v12622_v38  ;;  %v12832_v23 = vpop.f32.mrb[42].mxu0 }
 0x15f   :  { %v12826_v34 = vrot.slane %v3574_v37, %v12622_v38  ;;  %v12830_v30 = vpop.f32.mrb[53].mxu1  ;;  %v10582_v1 = vpack.c.bf16 %v3541_v60, %v12737_v25  ;;  %v12836_v61 = vadd.f32 %v3541_v60, %v12737_v25  ;;  %v4712_v16 = vcombine.low %v4690_v36, %v4697_v55  ;;  %v11006_v53 = vpop.f32.mrb[43].mxu0 }
 0x160   :  { %v4679_v13 = vcombine.low %v12787_v28, %v4678_v39  ;;  %v12839_v35 = vpop.f32.mrb[54].mxu1  ;;  %v2411_v9 = vcombine.high %v2409_v0, %v2409_v0  ;;  %v2425_v31 = vrot.slane %v2409_v0, %v12622_v38  ;;  %v2432_v50 = vrot.slane %v2410_v8, %v12622_v38 }
 0x161   :  { %v2834_v22 = vadd.f32 %v12654_v57, %v2418_v27  ;;  %v12844_v29 = vpop.f32.mrb[55].mxu1  ;;  %10583 = vst [vmem:[%s14514_s5] sm:$0xff] %v10582_v1   ;;  %v12850_v25 = vrot.slane %v4712_v16, %v12622_v38  ;;  %v14549_v28 = vcombine.low %v12732_v49, %v12740_v4  ;;  %v3566_v45 = vrot.slane %v3544_v52, %v12622_v38 }
 0x162   :  { %v4704_v26 = vrot.slane %v4682_v5, %v12622_v38  ;;  %v2439_v37 = vrot.slane %v2411_v9, %v12622_v38  ;;  %v2440_v14 = vcombine.high %v2425_v31, %v2425_v31  ;;  %v2441_v60 = vcombine.high %v2432_v50, %v2432_v50 }
 0x163   :  { %v12855_v10 = vadd.f32 %v4679_v13, %v14549_v28  ;;  %v2835_v39 = vadd.f32 %v12667_v11, %v2432_v50  ;;  %v2837_v36 = vadd.f32 %v12638_v43, %v2425_v31  ;;  %v4476_v55 = vmul.f32 %v2834_v22, %v2834_v22 }
 0x164   :  { %v828_v17 = vadd.f32 %v12704_v41, %v12584_v15  ;;  %v2443_v49 = vcombine.high %v12711_v48, %v12711_v48  ;;  %v2442_v4 = vcombine.high %v2439_v37, %v2439_v37  ;;  %v2836_v52 = vadd.f32 %v12631_v47, %v2441_v60  ;;  %v12869_v8 = vpop.f32.mrb[44].mxu0 }
 0x165   :  { %v2838_v5 = vadd.f32 %v12650_v59, %v2439_v37  ;;  %v2839_v0 = vadd.f32 %v12663_v2, %v2440_v14  ;;  %v3545_v27 = vcombine.low %v2834_v22, %v2835_v39  ;;  %v4477_v1 = vmul.f32 %v2835_v39, %v2835_v39  ;;  %v11009_v15 = vpop.f32.mrb[45].mxu0 }
 0x166   :  { %v4479_v13 = vmul.f32 %v2837_v36, %v2837_v36  ;;  %v12872_v16 = vadd.f32 %v12624_v40, %v828_v17  ;;  %v12874_v53 = vpop.f32.mrb[56].mxu1  ;;  %v3591_v41 = vcombine.low %v2836_v52, %v2837_v36  ;;  %v4478_v31 = vmul.f32 %v2836_v52, %v2836_v52  ;;  %v12878_v37 = vpop.f32.mrb[46].mxu0 }
 0x167   :  { %14551 = vst [vmem:[#allocation20_spill] sm:$0xff] %v12874_v53  ;;  %v3592_v9 = vcombine.low %v2838_v5, %v2839_v0  ;;  %v4480_v50 = vmul.f32 %v2838_v5, %v2838_v5  ;;  %v12876_v28 = vpop.f32.mrb[57].mxu1  ;;  %14553 = vst [vmem:[#allocation22_spill] sm:$0xff] %v12878_v37  ;;  %v3573_v14 = vrot.slane %v3545_v27, %v12622_v38  ;;  %v11010_v40 = vpop.f32.mrb[47].mxu0 }
 0x168   :  { %14550 = vst [vmem:[#allocation19_spill] sm:$0xff] %v12872_v16  ;;  %14552 = vst [vmem:[#allocation21_spill] sm:$0xff] %v12876_v28  ;;  %v4481_v60 = vmul.f32 %v2839_v0, %v2839_v0  ;;  %v4683_v22 = vcombine.low %v4476_v55, %v4477_v1  ;;  %v2450_v39 = vrot.slane %v12711_v48, %v12622_v38  ;;  %v10768_v17 = vpop.f32.mrb[58].mxu1 }
 0x169   :  { %v3601_v16 = vrot.slane %v3591_v41, %v12622_v38  ;;  %v3608_v36 = vrot.slane %v3592_v9, %v12622_v38  ;;  %v4729_v15 = vcombine.low %v4478_v31, %v4479_v13  ;;  %v2457_v52 = vrot.slane %v2443_v49, %v12622_v38  ;;  %v10769_v5 = vpop.f32.mrb[59].mxu1 }
 0x16a   :  { %v3575_v63 = vcombine.low %v3566_v45, %v3573_v14  ;;  %v4711_v37 = vrot.slane %v4683_v22, %v12622_v38  ;;  %v4730_v28 = vcombine.low %v4480_v50, %v4481_v60  ;;  %v2458_v27 = vcombine.high %v2450_v39, %v2450_v39 }
 0x16b   :  { %v3623_v0 = vcombine.low %v3601_v16, %v3608_v36  ;;  %v4739_v55 = vrot.slane %v4729_v15, %v12622_v38  ;;  %v2459_v1 = vcombine.high %v2457_v52, %v2457_v52  ;;  %v2466_v48 = vrot.slane %v2450_v39, %v12622_v38 }
 0x16c   :  { %v3589_v40 = vrot.slane %v3575_v63, %v12622_v38  ;;  %v4713_v41 = vcombine.low %v4704_v26, %v4711_v37  ;;  %v4746_v9 = vrot.slane %v4730_v28, %v12622_v38  ;;  %v2473_v13 = vrot.slane %v2457_v52, %v12622_v38 }
 0x16d   :  { %v3631_v49 = vrot.slane %v3623_v0, %v12622_v38  ;;  %v2480_v45 = vrot.slane %v2458_v27, %v12622_v38  ;;  %v2487_v31 = vrot.slane %v2459_v1, %v12622_v38  ;;  %v2488_v50 = vcombine.high %v2466_v48, %v2466_v48 }
 0x16e   :  { %v12896_v16 = vcombine.low %v12826_v34, %v3589_v40  ;;  %v4727_v14 = vrot.slane %v4713_v41, %v12622_v38  ;;  %v4761_v60 = vcombine.low %v4739_v55, %v4746_v9  ;;  %v2489_v22 = vcombine.high %v2473_v13, %v2473_v13 }
 0x16f   :  { %v2490_v63 = vcombine.high %v2487_v31, %v2487_v31  ;;  %v2840_v26 = vadd.f32 %v12634_v32, %v2442_v4  ;;  %v2841_v28 = vadd.f32 %v12641_v56, %v2466_v48  ;;  %v2842_v37 = vadd.f32 %v12654_v57, %v2480_v45 }
 0x170   :  { %v4441_v39 = vadd.f32 %v12836_v61, %v12896_v16  ;;  %v4728_v17 = vcombine.low %v12850_v25, %v4727_v14  ;;  %v12906_v36 = vrot.slane %v4761_v60, %v12622_v38  ;;  %v2843_v34 = vadd.f32 %v12667_v11, %v2488_v50 }
 0x171   :  { %v2844_v15 = vadd.f32 %v12631_v47, %v2473_v13  ;;  %v2845_v52 = vadd.f32 %v12638_v43, %v2487_v31  ;;  %v2846_v4 = vadd.f32 %v12650_v59, %v2489_v22  ;;  %v2847_v5 = vadd.f32 %v12663_v2, %v2490_v63  ;;  %v12918_v31 = vpop.f32.mrb[48].mxu0 }
 0x172   :  { %v12914_v27 = vadd.f32 %v12855_v10, %v4728_v17  ;;  %v3593_v0 = vcombine.low %v2840_v26, %v2841_v28  ;;  %v3594_v61 = vcombine.low %v2842_v37, %v2843_v34  ;;  %v4482_v55 = vmul.f32 %v2840_v26, %v2840_v26  ;;  %v11013_v22 = vpop.f32.mrb[49].mxu0 }
 0x173   :  { %v3640_v25 = vcombine.low %v2844_v15, %v2845_v52  ;;  %v3641_v1 = vcombine.low %v2846_v4, %v2847_v5  ;;  %v4483_v48 = vmul.f32 %v2841_v28, %v2841_v28  ;;  %v4484_v40 = vmul.f32 %v2842_v37, %v2842_v37  ;;  %v12922_v37 = vpop.f32.mrb[50].mxu0 }
 0x174   :  { %v3615_v41 = vrot.slane %v3593_v0, %v12622_v38  ;;  %v3622_v9 = vrot.slane %v3594_v61, %v12622_v38  ;;  %v4485_v13 = vmul.f32 %v2843_v34, %v2843_v34  ;;  %v4486_v45 = vmul.f32 %v2844_v15, %v2844_v15  ;;  %v11014_v61 = vpop.f32.mrb[51].mxu0 }
 0x175   :  { %v3650_v50 = vrot.slane %v3640_v25, %v12622_v38  ;;  %v3657_v10 = vrot.slane %v3641_v1, %v12622_v38  ;;  %v4487_v14 = vmul.f32 %v2845_v52, %v2845_v52  ;;  %v4488_v60 = vmul.f32 %v2846_v4, %v2846_v4 }
 0x176   :  { %v3624_v63 = vcombine.low %v3615_v41, %v3622_v9  ;;  %v4489_v26 = vmul.f32 %v2847_v5, %v2847_v5  ;;  %v4731_v17 = vcombine.low %v4482_v55, %v4483_v48  ;;  %v4732_v28 = vcombine.low %v4484_v40, %v4485_v13  ;;  %v12945_v41 = vpop.f32.mrb[60].mxu1 }
 0x177   :  { %v3672_v0 = vcombine.low %v3650_v50, %v3657_v10  ;;  %v4778_v53 = vcombine.low %v4486_v45, %v4487_v14  ;;  %v829_v34 = vadd.f32 %v12717_v7, %v12590_v42  ;;  %v12928_v15 = vadd.f32 %v12719_v58, %v12713_v18  ;;  %14554 = vst [vmem:[#allocation23_spill] sm:$0xff] %v12945_v41  ;;  %v11041_v13 = vpop.f32.mrb[61].mxu1 }
 0x178   :  { %v3638_v52 = vrot.slane %v3624_v63, %v12622_v38  ;;  %v4753_v4 = vrot.slane %v4731_v17, %v12622_v38  ;;  %v4760_v5 = vrot.slane %v4732_v28, %v12622_v38  ;;  %v4779_v55 = vcombine.low %v4488_v60, %v4489_v26  ;;  %v12960_v14 = vpop.f32.mrb[62].mxu1 }
 0x179   :  { %v12934_v25 = vrot.slane %v3672_v0, %v12622_v38  ;;  %v4788_v1 = vrot.slane %v4778_v53, %v12622_v38  ;;  %v12938_v48 = vadd.f32 %v12628_v44, %v829_v34  ;;  %v2491_v42 = vcombine.high %v12722_v20, %v12722_v20  ;;  %14555 = vst [vmem:[#allocation24_spill] sm:$0xff] %v12960_v14 }
 0x17a   :  { %v3639_v18 = vcombine.low %v3631_v49, %v3638_v52  ;;  %v4762_v7 = vcombine.low %v4753_v4, %v4760_v5  ;;  %v4795_v58 = vrot.slane %v4779_v55, %v12622_v38  ;;  %v2498_v40 = vrot.slane %v12722_v20, %v12622_v38 }
 0x17b   :  { %v2505_v9 = vrot.slane %v2491_v42, %v12622_v38  ;;  %v12950_v53 = vadd.f32 %v12729_v12, %v12724_v6  ;;  %v830_v44 = vadd.f32 %v12745_v19, %v12602_v54  ;;  %v2540_v49 = vcombine.high %v12750_v3, %v12750_v3  ;;  %v11042_v54 = vpop.f32.mrb[63].mxu1 }
 0x17c   :  { %v10587_v45 = vpack.c.bf16 %v3639_v18, %v12896_v16  ;;  %v12957_v50 = vadd.f32 %v4441_v39, %v3639_v18  ;;  %v4776_v20 = vrot.slane %v4762_v7, %v12622_v38  ;;  %v4810_v10 = vcombine.low %v4788_v1, %v4795_v58 }
 0x17d   :  { %v2506_v60 = vcombine.high %v2498_v40, %v2498_v40  ;;  %v2507_v22 = vcombine.high %v2505_v9, %v2505_v9  ;;  %v2514_v6 = vrot.slane %v2498_v40, %v12622_v38  ;;  %v2521_v12 = vrot.slane %v2505_v9, %v12622_v38 }
 0x17e   :  { %10642 = vst [vmem:[%s14514_s5 + $0x8] sm:$0xff] %v10587_v45   ;;  %v4777_v19 = vcombine.low %v12906_v36, %v4776_v20  ;;  %v12969_v16 = vrot.slane %v4810_v10, %v12622_v38  ;;  %v12972_v39 = vadd.f32 %v12643_v24, %v830_v44  ;;  %v2547_v63 = vrot.slane %v12750_v3, %v12622_v38 }
 0x17f   :  { %v2528_v26 = vrot.slane %v2506_v60, %v12622_v38  ;;  %v2535_v17 = vrot.slane %v2507_v22, %v12622_v38  ;;  %v2536_v28 = vcombine.high %v2514_v6, %v2514_v6  ;;  %v2537_v0 = vcombine.high %v2521_v12, %v2521_v12 }
 0x180   :  { %v12979_v34 = vadd.f32 %v12914_v27, %v4777_v19  ;;  %v2848_v36 = vadd.f32 %v12634_v32, %v2514_v6  ;;  %v2554_v61 = vrot.slane %v2540_v49, %v12622_v38  ;;  %v2555_v52 = vcombine.high %v2547_v63, %v2547_v63 }
 0x181   :  { %v2538_v4 = vcombine.high %v2528_v26, %v2528_v26  ;;  %v2539_v24 = vcombine.high %v2535_v17, %v2535_v17  ;;  %v2849_v5 = vadd.f32 %v12641_v56, %v2528_v26  ;;  %v2850_v3 = vadd.f32 %v12654_v57, %v2536_v28 }
 0x182   :  { %v2852_v55 = vadd.f32 %v12631_v47, %v2535_v17  ;;  %v2853_v1 = vadd.f32 %v12638_v43, %v2537_v0  ;;  %v4490_v42 = vmul.f32 %v2848_v36, %v2848_v36  ;;  %v2556_v18 = vcombine.high %v2554_v61, %v2554_v61 }
 0x183   :  { %v2851_v27 = vadd.f32 %v12667_v11, %v2538_v4  ;;  %v3642_v7 = vcombine.low %v2848_v36, %v2849_v5  ;;  %v4491_v58 = vmul.f32 %v2849_v5, %v2849_v5  ;;  %v4492_v40 = vmul.f32 %v2850_v3, %v2850_v3 }
 0x184   :  { %v3689_v9 = vcombine.low %v2852_v55, %v2853_v1  ;;  %v4494_v44 = vmul.f32 %v2852_v55, %v2852_v55  ;;  %v4495_v49 = vmul.f32 %v2853_v1, %v2853_v1  ;;  %v2563_v13 = vrot.slane %v2547_v63, %v12622_v38 }
 0x185   :  { %v3643_v45 = vcombine.low %v2850_v3, %v2851_v27  ;;  %v3664_v20 = vrot.slane %v3642_v7, %v12622_v38  ;;  %v4493_v10 = vmul.f32 %v2851_v27, %v2851_v27  ;;  %v4780_v60 = vcombine.low %v4490_v42, %v4491_v58 }
 0x186   :  { %v3699_v22 = vrot.slane %v3689_v9, %v12622_v38  ;;  %v4827_v6 = vcombine.low %v4494_v44, %v4495_v49  ;;  %v2570_v12 = vrot.slane %v2554_v61, %v12622_v38  ;;  %v2577_v54 = vrot.slane %v2555_v52, %v12622_v38 }
 0x187   :  { %v3671_v19 = vrot.slane %v3643_v45, %v12622_v38  ;;  %v4781_v26 = vcombine.low %v4492_v40, %v4493_v10  ;;  %v4802_v17 = vrot.slane %v4780_v60, %v12622_v38  ;;  %v2584_v28 = vrot.slane %v2556_v18, %v12622_v38 }
 0x188   :  { %v12997_v63 = vrot.slane %v4827_v6, %v12622_v38  ;;  %v2585_v0 = vcombine.high %v2563_v13, %v2563_v13  ;;  %v2586_v36 = vcombine.high %v2570_v12, %v2570_v12  ;;  %v2587_v4 = vcombine.high %v2577_v54, %v2577_v54 }
 0x189   :  { %v3673_v5 = vcombine.low %v3664_v20, %v3671_v19  ;;  %v4809_v3 = vrot.slane %v4781_v26, %v12622_v38  ;;  %v2588_v55 = vcombine.high %v2584_v28, %v2584_v28  ;;  %v2854_v61 = vadd.f32 %v12650_v59, %v2539_v24 }
 0x18a   :  { %v2855_v52 = vadd.f32 %v12663_v2, %v2563_v13  ;;  %v2856_v1 = vadd.f32 %v12634_v32, %v2577_v54  ;;  %v2857_v42 = vadd.f32 %v12641_v56, %v2585_v0  ;;  %v2858_v18 = vadd.f32 %v12654_v57, %v2587_v4  ;;  %v13016_v0 = vpop.f32.mrb[52].mxu0 }
 0x18b   :  { %v3687_v27 = vrot.slane %v3673_v5, %v12622_v38  ;;  %v4811_v7 = vcombine.low %v4802_v17, %v4809_v3  ;;  %v2859_v58 = vadd.f32 %v12667_v11, %v2570_v12  ;;  %v2860_v40 = vadd.f32 %v12631_v47, %v2586_v36  ;;  %v11017_v3 = vpop.f32.mrb[53].mxu0 }
 0x18c   :  { %v2861_v9 = vadd.f32 %v12638_v43, %v2588_v55  ;;  %v3690_v44 = vcombine.low %v2854_v61, %v2855_v52  ;;  %v3691_v49 = vcombine.low %v2856_v1, %v2857_v42  ;;  %v4496_v24 = vmul.f32 %v2854_v61, %v2854_v61 }
 0x18d   :  { %v3688_v13 = vcombine.low %v12934_v25, %v3687_v27  ;;  %v4825_v45 = vrot.slane %v4811_v7, %v12622_v38  ;;  %v3692_v20 = vcombine.low %v2858_v18, %v2859_v58  ;;  %v4497_v10 = vmul.f32 %v2855_v52, %v2855_v52 }
 0x18e   :  { %v3706_v60 = vrot.slane %v3690_v44, %v12622_v38  ;;  %v3713_v6 = vrot.slane %v3691_v49, %v12622_v38  ;;  %v3738_v54 = vcombine.low %v2860_v40, %v2861_v9  ;;  %v4498_v19 = vmul.f32 %v2856_v1, %v2856_v1  ;;  %v14557_v44 = vld [vmem:[#allocation4_spill] sm:$0xff] }
 0x18f   :  { %v4443_v12 = vadd.f32 %v12957_v50, %v3688_v13  ;;  %v4826_v26 = vcombine.low %v12969_v16, %v4825_v45  ;;  %v3720_v17 = vrot.slane %v3692_v20, %v12622_v38  ;;  %v4499_v28 = vmul.f32 %v2857_v42, %v2857_v42 }
 0x190   :  { %v3721_v25 = vcombine.low %v3699_v22, %v3706_v60  ;;  %v4500_v36 = vmul.f32 %v2858_v18, %v2858_v18  ;;  %v4501_v4 = vmul.f32 %v2859_v58, %v2859_v58  ;;  %v4502_v5 = vmul.f32 %v2860_v40, %v2860_v40  ;;  %v14556_v58 = vld [vmem:[#allocation7_spill] sm:$0xff] }
 0x191   :  { %v4985_v55 = vadd.f32 %v12979_v34, %v4826_v26  ;;  %v3722_v61 = vcombine.low %v3713_v6, %v3720_v17  ;;  %v4503_v52 = vmul.f32 %v2861_v9, %v2861_v9  ;;  %v4828_v27 = vcombine.low %v4496_v24, %v4497_v10  ;;  %v14558_v24 = vld [vmem:[#allocation9_spill] sm:$0xff]  ;;  %v14560_v26 = vld [vmem:[#allocation11_spill] sm:$0xff] }
 0x192   :  { %v3729_v1 = vrot.slane %v3721_v25, %v12622_v38  ;;  %v4829_v50 = vcombine.low %v4498_v19, %v4499_v28  ;;  %v4830_v7 = vcombine.low %v4500_v36, %v4501_v4  ;;  %v831_v16 = vadd.f32 %v12759_v21, %v12605_v62  ;;  %v14559_v19 = vld [vmem:[#allocation10_spill] sm:$0xff] }
 0x193   :  { %v3736_v42 = vrot.slane %v3722_v61, %v12622_v38  ;;  %v4844_v22 = vrot.slane %v4828_v27, %v12622_v38  ;;  %v4876_v18 = vcombine.low %v4502_v5, %v4503_v52  ;;  %v13026_v40 = vadd.f32 %v14556_v58, %v12752_v51  ;;  %v14561_v52 = vld [vmem:[#allocation2_spill] sm:$0xff]  ;;  %v14563_v27 = vld [vmem:[#allocation13_spill] sm:$0xff] }
 0x194   :  { %v4851_v34 = vrot.slane %v4829_v50, %v12622_v38  ;;  %v4858_v9 = vrot.slane %v4830_v7, %v12622_v38  ;;  %v13031_v49 = vadd.f32 %v14557_v44, %v831_v16  ;;  %v2589_v45 = vcombine.high %v14558_v24, %v14558_v24  ;;  %v14564_v44 = vld [vmem:[#allocation6_spill] sm:$0xff] }
 0x195   :  { %v3737_v62 = vcombine.low %v3729_v1, %v3736_v42  ;;  %v4859_v21 = vcombine.low %v12997_v63, %v4844_v22  ;;  %v2596_v20 = vrot.slane %v14558_v24, %v12622_v38  ;;  %v3748_v10 = vrot.slane %v3738_v54, %v12622_v38 }
 0x196   :  { %v4860_v51 = vcombine.low %v4851_v34, %v4858_v9  ;;  %v2603_v60 = vrot.slane %v2589_v45, %v12622_v38  ;;  %v13041_v6 = vrot.slane %v4876_v18, %v12622_v38  ;;  %v13045_v17 = vadd.f32 %v14560_v26, %v14559_v19  ;;  %v13065_v18 = vpop.f32.mrb[54].mxu0 }
 0x197   :  { %v10592_v28 = vpack.c.bf16 %v3737_v62, %v3688_v13  ;;  %v13047_v25 = vadd.f32 %v4443_v12, %v3737_v62  ;;  %v4867_v63 = vrot.slane %v4859_v21, %v12622_v38  ;;  %v2604_v36 = vcombine.high %v2596_v20, %v2596_v20  ;;  %v14562_v13 = vld [vmem:[#allocation12_spill] sm:$0xff]  ;;  %v11018_v45 = vpop.f32.mrb[55].mxu0 }
 0x198   :  { %v4874_v4 = vrot.slane %v4860_v51, %v12622_v38  ;;  %v2605_v5 = vcombine.high %v2603_v60, %v2603_v60  ;;  %v2612_v54 = vrot.slane %v2596_v20, %v12622_v38  ;;  %v2619_v3 = vrot.slane %v2603_v60, %v12622_v38 }
 0x199   :  { %10643 = vst [vmem:[%s14514_s5 + $0x10] sm:$0xff] %v10592_v28   ;;  %v2626_v61 = vrot.slane %v2604_v36, %v12622_v38  ;;  %v832_v12 = vadd.f32 %v14562_v13, %v14561_v52  ;;  %v2637_v1 = vcombine.high %v14563_v27, %v14563_v27  ;;  %v2644_v50 = vrot.slane %v14563_v27, %v12622_v38 }
 0x19a   :  { %v4875_v7 = vcombine.low %v4867_v63, %v4874_v4  ;;  %v2633_v16 = vrot.slane %v2605_v5, %v12622_v38  ;;  %v2634_v42 = vcombine.high %v2612_v54, %v2612_v54  ;;  %v2862_v22 = vadd.f32 %v12650_v59, %v2612_v54 }
 0x19b   :  { %v2635_v58 = vcombine.high %v2626_v61, %v2626_v61  ;;  %v2863_v34 = vadd.f32 %v12663_v2, %v2626_v61  ;;  %v2866_v9 = vadd.f32 %v12654_v57, %v2619_v3  ;;  %v13070_v24 = vadd.f32 %v14564_v44, %v832_v12 }
 0x19c   :  { %v13072_v62 = vadd.f32 %v4985_v55, %v4875_v7  ;;  %v2636_v21 = vcombine.high %v2633_v16, %v2633_v16  ;;  %v2864_v20 = vadd.f32 %v12634_v32, %v2634_v42  ;;  %v2867_v51 = vadd.f32 %v12667_v11, %v2633_v16  ;;  %v13080_v7 = vpop.f32.mrb[56].mxu0 }
 0x19d   :  { %v2865_v60 = vadd.f32 %v12641_v56, %v2635_v58  ;;  %v3739_v19 = vcombine.low %v2862_v22, %v2863_v34  ;;  %v4504_v26 = vmul.f32 %v2862_v22, %v2862_v22  ;;  %v4505_v28 = vmul.f32 %v2863_v34, %v2863_v34  ;;  %v11021_v34 = vpop.f32.mrb[57].mxu0 }
 0x19e   :  { %v3741_v63 = vcombine.low %v2866_v9, %v2867_v51  ;;  %v4506_v36 = vmul.f32 %v2864_v20, %v2864_v20  ;;  %v4508_v4 = vmul.f32 %v2866_v9, %v2866_v9  ;;  %v4509_v5 = vmul.f32 %v2867_v51, %v2867_v51  ;;  %v1590_v51 = vpop.f32.mrb[58].mxu0 }
 0x19f   :  { %v3740_v54 = vcombine.low %v2864_v20, %v2865_v60  ;;  %v3755_v3 = vrot.slane %v3739_v19, %v12622_v38  ;;  %v4507_v61 = vmul.f32 %v2865_v60, %v2865_v60  ;;  %v4877_v55 = vcombine.low %v4504_v26, %v4505_v28 }
 0x1a0   :  { %v3769_v52 = vrot.slane %v3741_v63, %v12622_v38  ;;  %v4879_v13 = vcombine.low %v4508_v4, %v4509_v5  ;;  %v2651_v12 = vrot.slane %v2637_v1, %v12622_v38  ;;  %v2652_v27 = vcombine.high %v2644_v50, %v2644_v50 }
 0x1a1   :  { %v3762_v16 = vrot.slane %v3740_v54, %v12622_v38  ;;  %v3770_v42 = vcombine.low %v3748_v10, %v3755_v3  ;;  %v4878_v22 = vcombine.low %v4506_v36, %v4507_v61  ;;  %v4893_v58 = vrot.slane %v4877_v55, %v12622_v38  ;;  %v11022_v10 = vpop.f32.mrb[59].mxu0 }
 0x1a2   :  { %v4907_v9 = vrot.slane %v4879_v13, %v12622_v38  ;;  %v2653_v44 = vcombine.high %v2651_v12, %v2651_v12  ;;  %v2660_v45 = vrot.slane %v2644_v50, %v12622_v38  ;;  %v2667_v20 = vrot.slane %v2651_v12, %v12622_v38 }
 0x1a3   :  { %v3771_v60 = vcombine.low %v3762_v16, %v3769_v52  ;;  %v3778_v1 = vrot.slane %v3770_v42, %v12622_v38  ;;  %v4900_v19 = vrot.slane %v4878_v22, %v12622_v38  ;;  %v4908_v26 = vcombine.low %v13041_v6, %v4893_v58 }
 0x1a4   :  { %v2674_v28 = vrot.slane %v2652_v27, %v12622_v38  ;;  %v2681_v63 = vrot.slane %v2653_v44, %v12622_v38  ;;  %v2682_v36 = vcombine.high %v2660_v45, %v2660_v45  ;;  %v2683_v4 = vcombine.high %v2667_v20, %v2667_v20 }
 0x1a5   :  { %v3785_v5 = vrot.slane %v3771_v60, %v12622_v38  ;;  %v4909_v50 = vcombine.low %v4900_v19, %v4907_v9  ;;  %v4916_v54 = vrot.slane %v4908_v26, %v12622_v38  ;;  %v2868_v3 = vadd.f32 %v12631_v47, %v2636_v21 }
 0x1a6   :  { %v2684_v61 = vcombine.high %v2674_v28, %v2674_v28  ;;  %v2869_v55 = vadd.f32 %v12638_v43, %v2660_v45  ;;  %v2870_v52 = vadd.f32 %v12650_v59, %v2674_v28  ;;  %v2871_v6 = vadd.f32 %v12663_v2, %v2682_v36 }
 0x1a7   :  { %v13098_v13 = vcombine.low %v3778_v1, %v3785_v5  ;;  %v4923_v12 = vrot.slane %v4909_v50, %v12622_v38  ;;  %v2873_v27 = vadd.f32 %v12641_v56, %v2667_v20  ;;  %v2874_v16 = vadd.f32 %v12654_v57, %v2681_v63  ;;  %v13112_v20 = vpop.f32.mrb[60].mxu0 }
 0x1a8   :  { %v2872_v42 = vadd.f32 %v12634_v32, %v2684_v61  ;;  %v2875_v22 = vadd.f32 %v12667_v11, %v2683_v4  ;;  %v3787_v47 = vcombine.low %v2868_v3, %v2869_v55  ;;  %v3788_v21 = vcombine.low %v2870_v52, %v2871_v6  ;;  %v13116_v19 = vpop.f32.mrb[61].mxu0 }
 0x1a9   :  { %v4445_v43 = vadd.f32 %v13047_v25, %v13098_v13  ;;  %v4924_v59 = vcombine.low %v4916_v54, %v4923_v12  ;;  %v4510_v58 = vmul.f32 %v2868_v3, %v2868_v3  ;;  %v4511_v2 = vmul.f32 %v2869_v55, %v2869_v55  ;;  %v13121_v36 = vpop.f32.mrb[62].mxu0  ;;  %v14565_v54 = vld [vmem:[#allocation14_spill] sm:$0xff]  ;;  %v14566_v3 = vld [vmem:[#allocation15_spill] sm:$0xff] }
 0x1aa   :  { %v3789_v34 = vcombine.low %v2872_v42, %v2873_v27  ;;  %v3790_v9 = vcombine.low %v2874_v16, %v2875_v22  ;;  %v3797_v44 = vrot.slane %v3787_v47, %v12622_v38  ;;  %v3804_v56 = vrot.slane %v3788_v21, %v12622_v38  ;;  %v13128_v55 = vpop.f32.mrb[63].mxu0  ;;  %v14569_v21 = vld [vmem:[#allocation3_spill] sm:$0xff] }
 0x1ab   :  { %v13110_v57 = vadd.f32 %v13072_v62, %v4924_v59  ;;  %v4512_v32 = vmul.f32 %v2870_v52, %v2870_v52  ;;  %v4513_v45 = vmul.f32 %v2871_v6, %v2871_v6  ;;  %v4514_v11 = vmul.f32 %v2872_v42, %v2872_v42  ;;  %v10230_v62 = vld [vmem:[%s14515_s2] ss:$0 sm:$0xff] }
 0x1ac   :  { %v3811_v51 = vrot.slane %v3789_v34, %v12622_v38  ;;  %v3818_v25 = vrot.slane %v3790_v9, %v12622_v38  ;;  %v3819_v60 = vcombine.low %v3797_v44, %v3804_v56  ;;  %v4515_v1 = vmul.f32 %v2873_v27, %v2873_v27  ;;  %v14567_v27 = vld [vmem:[#allocation16_spill] sm:$0xff] }
 0x1ad   :  { %v4516_v26 = vmul.f32 %v2874_v16, %v2874_v16  ;;  %v4517_v10 = vmul.f32 %v2875_v22, %v2875_v22  ;;  %v4925_v28 = vcombine.low %v4510_v58, %v4511_v2  ;;  %v4926_v63 = vcombine.low %v4512_v32, %v4513_v45  ;;  %v14568_v16 = vld [vmem:[#allocation17_spill] sm:$0xff] }
 0x1ae   :  { %v3820_v4 = vcombine.low %v3811_v51, %v3818_v25  ;;  %v3827_v5 = vrot.slane %v3819_v60, %v12622_v38  ;;  %v4927_v50 = vcombine.low %v4514_v11, %v4515_v1  ;;  %v13126_v61 = vadd.f32 %v14566_v3, %v14565_v54  ;;  %v14570_v11 = vld [vmem:[#allocation5_spill] sm:$0xff] }
 0x1af   :  { %v4928_v52 = vcombine.low %v4516_v26, %v4517_v10  ;;  %v4935_v6 = vrot.slane %v4925_v28, %v12622_v38  ;;  %v4942_v12 = vrot.slane %v4926_v63, %v12622_v38  ;;  %v13134_v42 = vadd.f32 %v14568_v16, %v14567_v27  ;;  %v13156_v26 = vpop.f32.mrb[64].mxu0 }
 0x1b0   :  { %v3834_v22 = vrot.slane %v3820_v4, %v12622_v38  ;;  %v4949_v47 = vrot.slane %v4927_v50, %v12622_v38  ;;  %v1397_v59 = vadd.f32 %v12928_v15, %v14569_v21  ;;  %v2118_v58 = vcombine.high %v10230_v62, %v10230_v62  ;;  %v13160_v28 = vpop.f32.mrb[65].mxu0  ;;  %v13171_v50 = vpop.f32.mrb[64].mxu1 }
 0x1b1   :  { %v4956_v2 = vrot.slane %v4928_v52, %v12622_v38  ;;  %v4957_v34 = vcombine.low %v4935_v6, %v4942_v12  ;;  %v2125_v9 = vrot.slane %v10230_v62, %v12622_v38  ;;  %v13144_v44 = vadd.f32 %v12830_v30, %v12823_v33  ;;  %14571 = vst [vmem:[#allocation7_spill] sm:$0xff] %v13160_v28  ;;  %v11045_v52 = vpop.f32.mrb[65].mxu1 }
 0x1b2   :  { %v3835_v56 = vcombine.low %v3827_v5, %v3834_v22  ;;  %v1593_v32 = vadd.f32 %v12818_v46, %v1397_v59  ;;  %v2132_v45 = vrot.slane %v2118_v58, %v12622_v38  ;;  %v13150_v51 = vadd.f32 %v12950_v53, %v14570_v11  ;;  %v13169_v5 = vpop.f32.mrb[66].mxu0  ;;  %14573 = vst [vmem:[#allocation9_spill] sm:$0xff] %v13171_v50  ;;  %v13183_v27 = vpop.f32.mrb[66].mxu1 }
 0x1b3   :  { %v4958_v15 = vcombine.low %v4949_v47, %v4956_v2  ;;  %v4965_v25 = vrot.slane %v4957_v34, %v12622_v38  ;;  %v2133_v60 = vcombine.high %v2125_v9, %v2125_v9  ;;  %v13154_v1 = vrot.slane %v2125_v9, %v12622_v38  ;;  %14572 = vst [vmem:[#allocation4_spill] sm:$0xff] %v13169_v5  ;;  %v13178_v3 = vpop.f32.mrb[67].mxu0  ;;  %v11046_v59 = vpop.f32.mrb[67].mxu1 }
 0x1b4   :  { %v10597_v33 = vpack.c.bf16 %v3835_v56, %v13098_v13  ;;  %v4446_v30 = vadd.f32 %v4445_v43, %v3835_v56  ;;  %v1611_v10 = vcombine.high %v1593_v32, %v1593_v32  ;;  %v1618_v46 = vrot.slane %v1593_v32, %v12622_v38  ;;  %14574 = vst [vmem:[#allocation10_spill] sm:$0xff] %v13178_v3 }
 0x1b5   :  { %v4972_v53 = vrot.slane %v4958_v15, %v12622_v38  ;;  %v2134_v63 = vcombine.high %v2132_v45, %v2132_v45  ;;  %v13164_v62 = vrot.slane %v2132_v45, %v12622_v38  ;;  %v13167_v4 = vrot.slane %v2133_v60, %v12622_v38  ;;  %14575 = vst [vmem:[#allocation11_spill] sm:$0xff] %v13183_v27  ;;  %v13207_v60 = vpop.f32.mrb[68].mxu0 }
 0x1b6   :  { %10644 = vst [vmem:[%s14514_s5 + $0x18] sm:$0xff] %v10597_v33   ;;  %v1625_v13 = vrot.slane %v1611_v10, %v12622_v38  ;;  %v1626_v43 = vcombine.high %v1618_v46, %v1618_v46  ;;  %v1634_v54 = vrot.slane %v1618_v46, %v12622_v38  ;;  %v13189_v21 = vcombine.high %v13154_v1, %v13154_v1 }
 0x1b7   :  { %v4973_v6 = vcombine.low %v4965_v25, %v4972_v53  ;;  %v13181_v12 = vrot.slane %v2134_v63, %v12622_v38  ;;  %v13194_v34 = vcombine.high %v13164_v62, %v13164_v62  ;;  %v13198_v9 = vcombine.high %v13167_v4, %v13167_v4  ;;  %14576 = vst [vmem:[#allocation2_spill] sm:$0xff] %v13207_v60  ;;  %v13211_v53 = vpop.f32.mrb[69].mxu0 }
 0x1b8   :  { %v1627_v16 = vcombine.high %v1625_v13, %v1625_v13  ;;  %v1641_v22 = vrot.slane %v1625_v13, %v12622_v38  ;;  %v1648_v47 = vrot.slane %v1626_v43, %v12622_v38  ;;  %v1656_v2 = vcombine.high %v1634_v54, %v1634_v54  ;;  %14577 = vst [vmem:[#allocation12_spill] sm:$0xff] %v13211_v53  ;;  %v13215_v52 = vpop.f32.mrb[70].mxu0 }
 0x1b9   :  { %v4988_v58 = vadd.f32 %v13110_v57, %v4973_v6  ;;  %v13203_v11 = vcombine.high %v13181_v12, %v13181_v12  ;;  %v4447_v15 = vrot.slane %v4446_v30, 4  ;;  %v2175_v57 = vadd.f32 %v13154_v1, %v1634_v54  ;;  %14578 = vst [vmem:[#allocation13_spill] sm:$0xff] %v13215_v52  ;;  %v13217_v6 = vpop.f32.mrb[68].mxu1  ;;  %v13221_v59 = vpop.f32.mrb[71].mxu0 }
 0x1ba   :  { %v1655_v56 = vrot.slane %v1627_v16, %v12622_v38  ;;  %v1657_v32 = vcombine.high %v1641_v22, %v1641_v22  ;;  %v1658_v45 = vcombine.high %v1648_v47, %v1648_v47  ;;  %v2176_v25 = vadd.f32 %v13167_v4, %v1648_v47  ;;  %14579 = vst [vmem:[#allocation6_spill] sm:$0xff] %v13217_v6  ;;  %v13231_v50 = vpop.f32.mrb[72].mxu0 }
 0x1bb   :  { %v2177_v10 = vadd.f32 %v13189_v21, %v1656_v2  ;;  %v2179_v63 = vadd.f32 %v13164_v62, %v1641_v22  ;;  %14580 = vst [vmem:[#allocation14_spill] sm:$0xff] %v13221_v59  ;;  %v11049_v2 = vpop.f32.mrb[69].mxu1  ;;  %14583 = vst [vmem:[#allocation17_spill] sm:$0xff] %v13231_v50 }
 0x1bc   :  { %v1659_v33 = vcombine.high %v1655_v56, %v1655_v56  ;;  %v2178_v46 = vadd.f32 %v13198_v9, %v1658_v45  ;;  %v2180_v13 = vadd.f32 %v13181_v12, %v1655_v56  ;;  %v2940_v43 = vcombine.low %v2175_v57, %v2176_v25  ;;  %v13225_v22 = vpop.f32.mrb[70].mxu1 }
 0x1bd   :  { %v2181_v54 = vadd.f32 %v13194_v34, %v1657_v32  ;;  %v13223_v45 = vadd.f32 %v4447_v15, %v4446_v30  ;;  %v3899_v41 = vmul.f32 %v2176_v25, %v2176_v25  ;;  %14582 = vst [vmem:[#allocation16_spill] sm:$0xff] %v13225_v22  ;;  %v4989_v56 = vrot.slane %v4988_v58, 4  ;;  %v11050_v53 = vpop.f32.mrb[71].mxu1 }
 0x1be   :  { %v2182_v16 = vadd.f32 %v13203_v11, %v1659_v33  ;;  %v2941_v47 = vcombine.low %v2177_v10, %v2178_v46  ;;  %v2942_v14 = vcombine.low %v2179_v63, %v2180_v13  ;;  %v2950_v52 = vrot.slane %v2940_v43, %v12622_v38 }
 0x1bf   :  { %14581 = vst [vmem:[#allocation15_spill] sm:$0xff] %v13223_v45  ;;  %v3898_v33 = vmul.f32 %v2175_v57, %v2175_v57  ;;  %v3900_v60 = vmul.f32 %v2177_v10, %v2177_v10  ;;  %v3901_v3 = vmul.f32 %v2178_v46, %v2178_v46  ;;  %v3902_v15 = vmul.f32 %v2179_v63, %v2179_v63  ;;  %v13237_v57 = vpop.f32.mrb[73].mxu0 }
 0x1c0   :  { %v2943_v27 = vcombine.low %v2181_v54, %v2182_v16  ;;  %v2957_v6 = vrot.slane %v2941_v47, %v12622_v38  ;;  %v2964_v32 = vrot.slane %v2942_v14, %v12622_v38  ;;  %v3903_v45 = vmul.f32 %v2180_v13, %v2180_v13  ;;  %14585 = vst [vmem:[#allocation5_spill] sm:$0xff] %v13237_v57 }
 0x1c1   :  { %v3904_v25 = vmul.f32 %v2181_v54, %v2181_v54  ;;  %v3905_v59 = vmul.f32 %v2182_v16, %v2182_v16  ;;  %v4026_v22 = vcombine.low %v3898_v33, %v3899_v41  ;;  %v4027_v5 = vcombine.low %v3900_v60, %v3901_v3  ;;  %v13242_v41 = vpop.f32.mrb[74].mxu0  ;;  %v13244_v3 = vpop.f32.mrb[72].mxu1  ;;  %v14589_v16 = vld [vmem:[#allocation8_spill] sm:$0xff] }
 0x1c2   :  { %v2971_v2 = vrot.slane %v2943_v27, %v12622_v38  ;;  %v2972_v30 = vcombine.low %v2950_v52, %v2957_v6  ;;  %v13233_v43 = vadd.f32 %v4989_v56, %v4988_v58  ;;  %v4028_v53 = vcombine.low %v3902_v15, %v3903_v45  ;;  %14586 = vst [vmem:[#allocation25_spill] sm:$0xff] %v13242_v41  ;;  %v11053_v52 = vpop.f32.mrb[73].mxu1 }
 0x1c3   :  { %v1594_v14 = vadd.f32 %v12832_v23, %v13150_v51  ;;  %v4029_v10 = vcombine.low %v3904_v25, %v3905_v59  ;;  %v4036_v46 = vrot.slane %v4026_v22, %v12622_v38  ;;  %v4043_v63 = vrot.slane %v4027_v5, %v12622_v38  ;;  %14587 = vst [vmem:[#allocation26_spill] sm:$0xff] %v13244_v3  ;;  %v13249_v51 = vpop.f32.mrb[75].mxu0  ;;  %v13258_v45 = vpop.f32.mrb[74].mxu1 }
 0x1c4   :  { %14584 = vst [vmem:[#allocation3_spill] sm:$0xff] %v13233_v43  ;;  %v2973_v47 = vcombine.low %v2964_v32, %v2971_v2  ;;  %v2980_v27 = vrot.slane %v2972_v30, %v12622_v38  ;;  %v4050_v60 = vrot.slane %v4028_v53, %v12622_v38  ;;  %14588 = vst [vmem:[#allocation27_spill] sm:$0xff] %v13249_v51  ;;  %v13260_v22 = vpop.f32.mrb[76].mxu0  ;;  %v11054_v30 = vpop.f32.mrb[75].mxu1 }
 0x1c5   :  { %v1660_v13 = vcombine.high %v1594_v14, %v1594_v14  ;;  %v1667_v23 = vrot.slane %v1594_v14, %v12622_v38  ;;  %v4057_v6 = vrot.slane %v4029_v10, %v12622_v38  ;;  %v4058_v54 = vcombine.low %v4036_v46, %v4043_v63  ;;  %14590 = vst [vmem:[#allocation8_spill] sm:$0xff] %v13258_v45  ;;  %v13266_v15 = vpop.f32.mrb[77].mxu0 }
 0x1c6   :  { %v2987_v58 = vrot.slane %v2973_v47, %v12622_v38  ;;  %v13254_v5 = vadd.f32 %v12844_v29, %v12839_v35  ;;  %v1399_v59 = vadd.f32 %v13026_v40, %v14589_v16  ;;  %14591 = vst [vmem:[#allocation28_spill] sm:$0xff] %v13260_v22  ;;  %14592 = vst [vmem:[#allocation29_spill] sm:$0xff] %v13266_v15  ;;  %v14593_v40 = vld [vmem:[#allocation20_spill] sm:$0xff]  ;;  %v14594_v47 = vld [vmem:[#allocation21_spill] sm:$0xff]  ;;  %v10840_v14 = vpop.f32.mrb[78].mxu0 }
 0x1c7   :  { %v1674_v32 = vrot.slane %v1660_v13, %v12622_v38  ;;  %v1675_v33 = vcombine.high %v1667_v23, %v1667_v23  ;;  %v1683_v2 = vrot.slane %v1667_v23, %v12622_v38  ;;  %v4059_v25 = vcombine.low %v4050_v60, %v4057_v6  ;;  %v10841_v13 = vpop.f32.mrb[79].mxu0  ;;  %v14596_v6 = vld [vmem:[#allocation18_spill] sm:$0xff] }
 0x1c8   :  { %v13262_v56 = vcombine.low %v2980_v27, %v2987_v58  ;;  %v13269_v35 = vrot.slane %v4058_v54, %v12622_v38  ;;  %v1595_v29 = vadd.f32 %v12869_v8, %v1399_v59  ;;  %v13274_v53 = vadd.f32 %v14594_v47, %v14593_v40  ;;  %v13276_v27 = vpop.f32.mrb[76].mxu1  ;;  %v13288_v59 = vpop.f32.mrb[80].mxu0 }
 0x1c9   :  { %14595 = vst [vmem:[#allocation20_spill] sm:$0xff] %v13276_v27  ;;  %v1676_v10 = vcombine.high %v1674_v32, %v1674_v32  ;;  %v1690_v46 = vrot.slane %v1674_v32, %v12622_v38  ;;  %v1697_v63 = vrot.slane %v1675_v33, %v12622_v38  ;;  %v1705_v58 = vcombine.high %v1683_v2, %v1683_v2  ;;  %v11057_v60 = vpop.f32.mrb[77].mxu1  ;;  %v11077_v47 = vpop.f32.mrb[81].mxu0 }
 0x1ca   :  { %v13281_v23 = vrot.slane %v4059_v25, %v12622_v38  ;;  %v1709_v52 = vcombine.high %v1595_v29, %v1595_v29  ;;  %v1716_v8 = vrot.slane %v1595_v29, %v12622_v38  ;;  %v13286_v54 = vadd.f32 %v13045_v17, %v14596_v6  ;;  %v5249_v16 = vpop.f32.mrb[78].mxu1  ;;  %14597 = vst [vmem:[#allocation21_spill] sm:$0xff] %v13288_v59 }
 0x1cb   :  { %v1704_v32 = vrot.slane %v1676_v10, %v12622_v38  ;;  %v1706_v30 = vcombine.high %v1690_v46, %v1690_v46  ;;  %v1707_v33 = vcombine.high %v1697_v63, %v1697_v63  ;;  %v2183_v2 = vadd.f32 %v13154_v1, %v1697_v63  ;;  %v11058_v40 = vpop.f32.mrb[79].mxu1 }
 0x1cc   :  { %v2184_v29 = vadd.f32 %v13167_v4, %v1705_v58  ;;  %v2186_v14 = vadd.f32 %v13198_v9, %v1690_v46  ;;  %v1723_v17 = vrot.slane %v1709_v52, %v12622_v38  ;;  %v13297_v13 = vpop.f32.mrb[80].mxu1  ;;  %v1724_v3 = vcombine.high %v1716_v8, %v1716_v8 }
 0x1cd   :  { %14598 = vst [vmem:[#allocation18_spill] sm:$0xff] %v13297_v13  ;;  %v1708_v60 = vcombine.high %v1704_v32, %v1704_v32  ;;  %v2185_v10 = vadd.f32 %v13189_v21, %v1707_v33  ;;  %v2187_v6 = vadd.f32 %v13164_v62, %v1704_v32  ;;  %v2188_v63 = vadd.f32 %v13181_v12, %v1706_v30  ;;  %v13302_v16 = vpop.f32.mrb[81].mxu1  ;;  %v13307_v32 = vpop.f32.mrb[82].mxu0 }
 0x1ce   :  { %14599 = vst [vmem:[#allocation30_spill] sm:$0xff] %v13302_v16  ;;  %v2989_v40 = vcombine.low %v2183_v2, %v2184_v29  ;;  %v3906_v47 = vmul.f32 %v2183_v2, %v2183_v2  ;;  %v3907_v25 = vmul.f32 %v2184_v29, %v2184_v29  ;;  %v3909_v43 = vmul.f32 %v2186_v14, %v2186_v14  ;;  %v13305_v33 = vpop.f32.mrb[82].mxu1 }
 0x1cf   :  { %v2990_v58 = vcombine.low %v2185_v10, %v2186_v14  ;;  %v2991_v59 = vcombine.low %v2187_v6, %v2188_v63  ;;  %v3908_v46 = vmul.f32 %v2185_v10, %v2185_v10  ;;  %v3910_v27 = vmul.f32 %v2187_v6, %v2187_v6  ;;  %14600 = vst [vmem:[#allocation31_spill] sm:$0xff] %v13305_v33  ;;  %v13311_v29 = vpop.f32.mrb[83].mxu1  ;;  %v11078_v14 = vpop.f32.mrb[83].mxu0 }
 0x1d0   :  { %v2999_v52 = vrot.slane %v2989_v40, %v12622_v38  ;;  %v3911_v13 = vmul.f32 %v2188_v63, %v2188_v63  ;;  %v4075_v45 = vcombine.low %v3906_v47, %v3907_v25  ;;  %14601 = vst [vmem:[#allocation32_spill] sm:$0xff] %v13307_v32  ;;  %v1725_v15 = vcombine.high %v1723_v17, %v1723_v17  ;;  %v13335_v28 = vpop.f32.mrb[84].mxu1 }
 0x1d1   :  { %v3006_v30 = vrot.slane %v2990_v58, %v12622_v38  ;;  %v4076_v16 = vcombine.low %v3908_v46, %v3909_v43  ;;  %v1732_v2 = vrot.slane %v1716_v8, %v12622_v38  ;;  %14602 = vst [vmem:[#allocation33_spill] sm:$0xff] %v13311_v29  ;;  %v1739_v63 = vrot.slane %v1723_v17, %v12622_v38 }
 0x1d2   :  { %v4077_v10 = vcombine.low %v3910_v27, %v3911_v13  ;;  %v4085_v6 = vrot.slane %v4075_v45, %v12622_v38  ;;  %v1746_v25 = vrot.slane %v1724_v3, %v12622_v38  ;;  %v1753_v32 = vrot.slane %v1725_v15, %v12622_v38 }
 0x1d3   :  { %v3021_v40 = vcombine.low %v2999_v52, %v3006_v30  ;;  %v4092_v47 = vrot.slane %v4076_v16, %v12622_v38  ;;  %v1754_v58 = vcombine.high %v1732_v2, %v1732_v2  ;;  %v1755_v43 = vcombine.high %v1739_v63, %v1739_v63 }
 0x1d4   :  { %v1756_v46 = vcombine.high %v1746_v25, %v1746_v25  ;;  %v2189_v8 = vadd.f32 %v13194_v34, %v1708_v60  ;;  %v2190_v29 = vadd.f32 %v13203_v11, %v1732_v2  ;;  %v1757_v45 = vcombine.high %v1753_v32, %v1753_v32 }
 0x1d5   :  { %v3029_v27 = vrot.slane %v3021_v40, %v12622_v38  ;;  %v4107_v13 = vcombine.low %v4085_v6, %v4092_v47  ;;  %v2191_v17 = vadd.f32 %v13154_v1, %v1754_v58  ;;  %v2193_v52 = vadd.f32 %v13189_v21, %v1739_v63 }
 0x1d6   :  { %v2192_v3 = vadd.f32 %v13167_v4, %v1756_v46  ;;  %v2194_v16 = vadd.f32 %v13198_v9, %v1753_v32  ;;  %v2195_v15 = vadd.f32 %v13164_v62, %v1755_v43  ;;  %v2196_v60 = vadd.f32 %v13181_v12, %v1757_v45 }
 0x1d7   :  { %v13327_v30 = vrot.slane %v4107_v13, %v12622_v38  ;;  %v2992_v2 = vcombine.low %v2189_v8, %v2190_v29  ;;  %v3013_v14 = vrot.slane %v2991_v59, %v12622_v38  ;;  %v3912_v40 = vmul.f32 %v2189_v8, %v2189_v8 }
 0x1d8   :  { %v3038_v6 = vcombine.low %v2191_v17, %v2192_v3  ;;  %v3039_v25 = vcombine.low %v2193_v52, %v2194_v16  ;;  %v3913_v47 = vmul.f32 %v2190_v29, %v2190_v29  ;;  %v3040_v46 = vcombine.low %v2195_v15, %v2196_v60 }
 0x1d9   :  { %v3020_v58 = vrot.slane %v2992_v2, %v12622_v38  ;;  %v3914_v63 = vmul.f32 %v2191_v17, %v2191_v17  ;;  %v3915_v33 = vmul.f32 %v2192_v3, %v2192_v3  ;;  %v3916_v13 = vmul.f32 %v2193_v52, %v2193_v52  ;;  %v13337_v2 = vpop.f32.mrb[84].mxu0  ;;  %v14603_v52 = vld [vmem:[#allocation22_spill] sm:$0xff] }
 0x1da   :  { %v3048_v32 = vrot.slane %v3038_v6, %v12622_v38  ;;  %v3055_v43 = vrot.slane %v3039_v25, %v12622_v38  ;;  %v3917_v22 = vmul.f32 %v2194_v16, %v2194_v16  ;;  %v3918_v45 = vmul.f32 %v2195_v15, %v2195_v15  ;;  %v13343_v15 = vpop.f32.mrb[85].mxu1 }
 0x1db   :  { %v3022_v51 = vcombine.low %v3013_v14, %v3020_v58  ;;  %v3919_v41 = vmul.f32 %v2196_v60, %v2196_v60  ;;  %v4078_v57 = vcombine.low %v3912_v40, %v3913_v47  ;;  %v4099_v50 = vrot.slane %v4077_v10, %v12622_v38  ;;  %v11081_v60 = vpop.f32.mrb[85].mxu0  ;;  %v14604_v47 = vld [vmem:[#allocation19_spill] sm:$0xff] }
 0x1dc   :  { %v3070_v59 = vcombine.low %v3048_v32, %v3055_v43  ;;  %v4124_v8 = vcombine.low %v3914_v63, %v3915_v33  ;;  %v4125_v29 = vcombine.low %v3916_v13, %v3917_v22  ;;  %v1596_v16 = vadd.f32 %v14603_v52, %v13286_v54 }
 0x1dd   :  { %v3036_v17 = vrot.slane %v3022_v51, %v12622_v38  ;;  %v4106_v3 = vrot.slane %v4078_v57, %v12622_v38  ;;  %v4126_v6 = vcombine.low %v3918_v45, %v3919_v41  ;;  %v13351_v10 = vrot.slane %v3040_v46, %v12622_v38 }
 0x1de   :  { %v13346_v14 = vrot.slane %v3070_v59, %v12622_v38  ;;  %v4134_v22 = vrot.slane %v4124_v8, %v12622_v38  ;;  %v4141_v33 = vrot.slane %v4125_v29, %v12622_v38  ;;  %v1758_v57 = vcombine.high %v1596_v16, %v1596_v16 }
 0x1df   :  { %v3037_v51 = vcombine.low %v3029_v27, %v3036_v17  ;;  %v4108_v25 = vcombine.low %v4099_v50, %v4106_v3  ;;  %v1765_v41 = vrot.slane %v1596_v16, %v12622_v38  ;;  %v13355_v54 = vrot.slane %v4126_v6, %v12622_v38 }
 0x1e0   :  { %v4156_v40 = vcombine.low %v4134_v22, %v4141_v33  ;;  %v1401_v58 = vadd.f32 %v13126_v61, %v14604_v47  ;;  %v1402_v63 = vadd.f32 %v13134_v42, %v12938_v48  ;;  %v1772_v27 = vrot.slane %v1758_v57, %v12622_v38 }
 0x1e1   :  { %v10562_v32 = vpack.c.bf16 %v3037_v51, %v13262_v56  ;;  %v13363_v46 = vadd.f32 %v3037_v51, %v13262_v56  ;;  %v4122_v50 = vrot.slane %v4108_v25, %v12622_v38  ;;  %v1773_v13 = vcombine.high %v1765_v41, %v1765_v41 }
 0x1e2   :  { %v13368_v43 = vrot.slane %v4156_v40, %v12622_v38  ;;  %v1781_v45 = vrot.slane %v1765_v41, %v12622_v38  ;;  %v1597_v61 = vadd.f32 %v12918_v31, %v1401_v58  ;;  %v1774_v42 = vcombine.high %v1772_v27, %v1772_v27 }
 0x1e3   :  { %10563 = vst [vmem:[%s14516_s4] sm:$0xff] %v10562_v32   ;;  %v4123_v48 = vcombine.low %v13327_v30, %v4122_v50  ;;  %v1788_v56 = vrot.slane %v1772_v27, %v12622_v38  ;;  %v13378_v59 = vadd.f32 %v12922_v37, %v1402_v63  ;;  %v1795_v8 = vrot.slane %v1773_v13, %v12622_v38  ;;  %v13395_v27 = vpop.f32.mrb[86].mxu1  ;;  %v13397_v13 = vpop.f32.mrb[86].mxu0 }
 0x1e4   :  { %v2197_v29 = vadd.f32 %v13194_v34, %v1781_v45  ;;  %v1806_v17 = vcombine.high %v1597_v61, %v1597_v61  ;;  %v1813_v3 = vrot.slane %v1597_v61, %v12622_v38  ;;  %v14605_v31 = vcombine.low %v13269_v35, %v13281_v23 }
 0x1e5   :  { %v1802_v30 = vrot.slane %v1774_v42, %v12622_v38  ;;  %v1803_v52 = vcombine.high %v1788_v56, %v1788_v56  ;;  %v2200_v16 = vadd.f32 %v13167_v4, %v1788_v56  ;;  %v1804_v60 = vcombine.high %v1795_v8, %v1795_v8  ;;  %v11082_v56 = vpop.f32.mrb[87].mxu0 }
 0x1e6   :  { %v13386_v6 = vadd.f32 %v4123_v48, %v14605_v31  ;;  %v2198_v37 = vadd.f32 %v13203_v11, %v1795_v8  ;;  %v3920_v22 = vmul.f32 %v2197_v29, %v2197_v29  ;;  %v1820_v33 = vrot.slane %v1806_v17, %v12622_v38  ;;  %v13400_v8 = vpop.f32.mrb[87].mxu1 }
 0x1e7   :  { %v1805_v51 = vcombine.high %v1802_v30, %v1802_v30  ;;  %v2201_v25 = vadd.f32 %v13189_v21, %v1802_v30  ;;  %v2202_v57 = vadd.f32 %v13198_v9, %v1803_v52  ;;  %v3923_v41 = vmul.f32 %v2200_v16, %v2200_v16 }
 0x1e8   :  { %v2199_v35 = vadd.f32 %v13154_v1, %v1804_v60  ;;  %v3041_v23 = vcombine.low %v2197_v29, %v2198_v37  ;;  %v3921_v40 = vmul.f32 %v2198_v37, %v2198_v37  ;;  %v1821_v47 = vcombine.high %v1813_v3, %v1813_v3 }
 0x1e9   :  { %v3088_v58 = vcombine.low %v2201_v25, %v2202_v57  ;;  %v3924_v63 = vmul.f32 %v2201_v25, %v2201_v25  ;;  %v3925_v32 = vmul.f32 %v2202_v57, %v2202_v57  ;;  %v1822_v50 = vcombine.high %v1820_v33, %v1820_v33 }
 0x1ea   :  { %v3069_v45 = vrot.slane %v3041_v23, %v12622_v38  ;;  %v3087_v61 = vcombine.low %v2199_v35, %v2200_v16  ;;  %v3922_v48 = vmul.f32 %v2199_v35, %v2199_v35  ;;  %v4127_v42 = vcombine.low %v3920_v22, %v3921_v40 }
 0x1eb   :  { %v3104_v29 = vrot.slane %v3088_v58, %v12622_v38  ;;  %v4174_v17 = vcombine.low %v3924_v63, %v3925_v32  ;;  %v1829_v31 = vrot.slane %v1813_v3, %v12622_v38  ;;  %v1836_v30 = vrot.slane %v1820_v33, %v12622_v38  ;;  %v13416_v32 = vpop.f32.mrb[88].mxu1 }
 0x1ec   :  { %v3071_v52 = vcombine.low %v13351_v10, %v3069_v45  ;;  %v3097_v60 = vrot.slane %v3087_v61, %v12622_v38  ;;  %v4155_v37 = vrot.slane %v4127_v42, %v12622_v38  ;;  %v4173_v25 = vcombine.low %v3922_v48, %v3923_v41  ;;  %v13418_v45 = vpop.f32.mrb[88].mxu0  ;;  %v13425_v48 = vpop.f32.mrb[89].mxu1 }
 0x1ed   :  { %v4190_v16 = vrot.slane %v4174_v17, %v12622_v38  ;;  %v1843_v22 = vrot.slane %v1821_v47, %v12622_v38  ;;  %v1850_v57 = vrot.slane %v1822_v50, %v12622_v38  ;;  %v1851_v35 = vcombine.high %v1829_v31, %v1829_v31  ;;  %14606 = vst [vmem:[#allocation22_spill] sm:$0xff] %v13418_v45  ;;  %v11085_v42 = vpop.f32.mrb[89].mxu0 }
 0x1ee   :  { %v3085_v23 = vrot.slane %v3071_v52, %v12622_v38  ;;  %v3119_v40 = vcombine.low %v3097_v60, %v3104_v29  ;;  %v4157_v3 = vcombine.low %v13355_v54, %v4155_v37  ;;  %v4183_v33 = vrot.slane %v4173_v25, %v12622_v38  ;;  %14607 = vst [vmem:[#allocation19_spill] sm:$0xff] %v13425_v48 }
 0x1ef   :  { %v1852_v10 = vcombine.high %v1836_v30, %v1836_v30  ;;  %v1853_v58 = vcombine.high %v1850_v57, %v1850_v57  ;;  %v2203_v63 = vadd.f32 %v13164_v62, %v1805_v51  ;;  %v2204_v41 = vadd.f32 %v13181_v12, %v1829_v31  ;;  %v13431_v31 = vpop.f32.mrb[90].mxu1 }
 0x1f0   :  { %v13421_v47 = vcombine.low %v13346_v14, %v3085_v23  ;;  %v3127_v50 = vrot.slane %v3119_v40, %v12622_v38  ;;  %v4171_v61 = vrot.slane %v4157_v3, %v12622_v38  ;;  %v4205_v54 = vcombine.low %v4183_v33, %v4190_v16  ;;  %14608 = vst [vmem:[#allocation34_spill] sm:$0xff] %v13431_v31 }
 0x1f1   :  { %v2205_v56 = vadd.f32 %v13194_v34, %v1843_v22  ;;  %v2206_v51 = vadd.f32 %v13203_v11, %v1851_v35  ;;  %v2207_v29 = vadd.f32 %v13154_v1, %v1836_v30  ;;  %v2208_v17 = vadd.f32 %v13167_v4, %v1850_v57 }
 0x1f2   :  { %v3885_v14 = vadd.f32 %v13363_v46, %v13421_v47  ;;  %v4172_v52 = vcombine.low %v13368_v43, %v4171_v61  ;;  %v13437_v60 = vrot.slane %v4205_v54, %v12622_v38  ;;  %v2209_v37 = vadd.f32 %v13189_v21, %v1852_v10 }
 0x1f3   :  { %v2210_v25 = vadd.f32 %v13198_v9, %v1853_v58  ;;  %v3089_v16 = vcombine.low %v2203_v63, %v2204_v41  ;;  %v3090_v22 = vcombine.low %v2205_v56, %v2206_v51  ;;  %v3136_v35 = vcombine.low %v2207_v29, %v2208_v17 }
 0x1f4   :  { %v4427_v30 = vadd.f32 %v13386_v6, %v4172_v52  ;;  %v3926_v57 = vmul.f32 %v2203_v63, %v2203_v63  ;;  %v3927_v23 = vmul.f32 %v2204_v41, %v2204_v41  ;;  %v3928_v40 = vmul.f32 %v2205_v56, %v2205_v56 }
 0x1f5   :  { %v3111_v3 = vrot.slane %v3089_v16, %v12622_v38  ;;  %v3118_v46 = vrot.slane %v3090_v22, %v12622_v38  ;;  %v3137_v43 = vcombine.low %v2209_v37, %v2210_v25  ;;  %v3146_v33 = vrot.slane %v3136_v35, %v12622_v38 }
 0x1f6   :  { %v3929_v61 = vmul.f32 %v2206_v51, %v2206_v51  ;;  %v3930_v54 = vmul.f32 %v2207_v29, %v2207_v29  ;;  %v3931_v10 = vmul.f32 %v2208_v17, %v2208_v17  ;;  %v3932_v42 = vmul.f32 %v2209_v37, %v2209_v37 }
 0x1f7   :  { %v3120_v58 = vcombine.low %v3111_v3, %v3118_v46  ;;  %v3153_v31 = vrot.slane %v3137_v43, %v12622_v38  ;;  %v3933_v48 = vmul.f32 %v2210_v25, %v2210_v25  ;;  %v4175_v45 = vcombine.low %v3926_v57, %v3927_v23  ;;  %v13464_v46 = vpop.f32.mrb[91].mxu1 }
 0x1f8   :  { %v4176_v6 = vcombine.low %v3928_v40, %v3929_v61  ;;  %v4222_v63 = vcombine.low %v3930_v54, %v3931_v10  ;;  %v1854_v41 = vcombine.high %v13378_v59, %v13378_v59  ;;  %v1861_v56 = vrot.slane %v13378_v59, %v12622_v38  ;;  %v13460_v40 = vpop.f32.mrb[90].mxu0 }
 0x1f9   :  { %v3134_v52 = vrot.slane %v3120_v58, %v12622_v38  ;;  %v3168_v16 = vcombine.low %v3146_v33, %v3153_v31  ;;  %v4197_v51 = vrot.slane %v4175_v45, %v12622_v38  ;;  %v4223_v29 = vcombine.low %v3932_v42, %v3933_v48  ;;  %v11086_v43 = vpop.f32.mrb[91].mxu0 }
 0x1fa   :  { %v4204_v17 = vrot.slane %v4176_v6, %v12622_v38  ;;  %v4232_v37 = vrot.slane %v4222_v63, %v12622_v38  ;;  %v1868_v25 = vrot.slane %v1854_v41, %v12622_v38  ;;  %v1869_v22 = vcombine.high %v1861_v56, %v1861_v56  ;;  %v13487_v43 = vpop.f32.mrb[92].mxu0 }
 0x1fb   :  { %v3135_v35 = vcombine.low %v3127_v50, %v3134_v52  ;;  %v13456_v57 = vrot.slane %v3168_v16, %v12622_v38  ;;  %v4239_v23 = vrot.slane %v4223_v29, %v12622_v38  ;;  %v1877_v59 = vrot.slane %v1861_v56, %v12622_v38 }
 0x1fc   :  { %v4206_v31 = vcombine.low %v4197_v51, %v4204_v17  ;;  %v1870_v45 = vcombine.high %v1868_v25, %v1868_v25  ;;  %v1884_v48 = vrot.slane %v1868_v25, %v12622_v38  ;;  %v1891_v3 = vrot.slane %v1869_v22, %v12622_v38 }
 0x1fd   :  { %v10567_v50 = vpack.c.bf16 %v3135_v35, %v13421_v47  ;;  %v13467_v33 = vadd.f32 %v3885_v14, %v3135_v35  ;;  %v4254_v61 = vcombine.low %v4232_v37, %v4239_v23  ;;  %v1899_v54 = vcombine.high %v1877_v59, %v1877_v59 }
 0x1fe   :  { %v4220_v10 = vrot.slane %v4206_v31, %v12622_v38  ;;  %v1898_v42 = vrot.slane %v1870_v45, %v12622_v38  ;;  %v1900_v58 = vcombine.high %v1884_v48, %v1884_v48  ;;  %v1901_v6 = vcombine.high %v1891_v3, %v1891_v3 }
 0x1ff   :  { %10639 = vst [vmem:[%s14516_s4 + $0x8] sm:$0xff] %v10567_v50   ;;  %v13475_v63 = vrot.slane %v4254_v61, %v12622_v38  ;;  %v2211_v41 = vadd.f32 %v13164_v62, %v1877_v59  ;;  %v2212_v47 = vadd.f32 %v13181_v12, %v1891_v3  ;;  %v2213_v14 = vadd.f32 %v13194_v34, %v1899_v54 }
 0x200   :  { %v4221_v56 = vcombine.low %v13437_v60, %v4220_v10  ;;  %v1902_v52 = vcombine.high %v1898_v42, %v1898_v42  ;;  %v2214_v16 = vadd.f32 %v13203_v11, %v1901_v6  ;;  %v2215_v51 = vadd.f32 %v13154_v1, %v1898_v42  ;;  %v13485_v60 = vpop.f32.mrb[92].mxu1  ;;  %v11089_v42 = vpop.f32.mrb[93].mxu0 }
 0x201   :  { %v2216_v29 = vadd.f32 %v13167_v4, %v1900_v58  ;;  %v3138_v17 = vcombine.low %v2211_v41, %v2212_v47  ;;  %v3934_v37 = vmul.f32 %v2211_v41, %v2211_v41  ;;  %v3935_v25 = vmul.f32 %v2212_v47, %v2212_v47 }
 0x202   :  { %v4428_v22 = vadd.f32 %v4427_v30, %v4221_v56  ;;  %v3139_v35 = vcombine.low %v2213_v14, %v2214_v16  ;;  %v3936_v23 = vmul.f32 %v2213_v14, %v2213_v14  ;;  %v3937_v59 = vmul.f32 %v2214_v16, %v2214_v16  ;;  %v13492_v30 = vpop.f32.mrb[93].mxu1 }
 0x203   :  { %v3160_v31 = vrot.slane %v3138_v17, %v12622_v38  ;;  %v3185_v45 = vcombine.low %v2215_v51, %v2216_v29  ;;  %v3938_v48 = vmul.f32 %v2215_v51, %v2215_v51  ;;  %v3939_v3 = vmul.f32 %v2216_v29, %v2216_v29 }
 0x204   :  { %v3167_v50 = vrot.slane %v3139_v35, %v12622_v38  ;;  %v4224_v61 = vcombine.low %v3934_v37, %v3935_v25  ;;  %v4225_v54 = vcombine.low %v3936_v23, %v3937_v59  ;;  %v1403_v10 = vadd.f32 %v13144_v44, %v12972_v39 }
 0x205   :  { %v13495_v58 = vrot.slane %v3185_v45, %v12622_v38  ;;  %v4271_v6 = vcombine.low %v3938_v48, %v3939_v3  ;;  %v2217_v41 = vadd.f32 %v13189_v21, %v1902_v52  ;;  %v1404_v47 = vadd.f32 %v13254_v5, %v13031_v49 }
 0x206   :  { %v3169_v14 = vcombine.low %v3160_v31, %v3167_v50  ;;  %v4246_v56 = vrot.slane %v4224_v61, %v12622_v38  ;;  %v4253_v16 = vrot.slane %v4225_v54, %v12622_v38  ;;  %v1599_v51 = vadd.f32 %v13016_v0, %v1403_v10 }
 0x207   :  { %v13504_v39 = vrot.slane %v4271_v6, %v12622_v38  ;;  %v3940_v44 = vmul.f32 %v2217_v41, %v2217_v41  ;;  %v1600_v29 = vadd.f32 %v13065_v18, %v1404_v47  ;;  %v1405_v17 = vadd.f32 %v13274_v53, %v13070_v24 }
 0x208   :  { %v3183_v52 = vrot.slane %v3169_v14, %v12622_v38  ;;  %v4255_v37 = vcombine.low %v4246_v56, %v4253_v16  ;;  %v1903_v49 = vcombine.high %v1599_v51, %v1599_v51  ;;  %v1910_v5 = vrot.slane %v1599_v51, %v12622_v38  ;;  %v13543_v14 = vpop.f32.mrb[94].mxu1 }
 0x209   :  { %v1952_v25 = vcombine.high %v1600_v29, %v1600_v29  ;;  %v1959_v35 = vrot.slane %v1600_v29, %v12622_v38  ;;  %v13513_v0 = vadd.f32 %v13080_v7, %v1405_v17  ;;  %v13517_v23 = vadd.f32 %v13116_v19, %v13112_v20 }
 0x20a   :  { %v13520_v18 = vcombine.low %v13456_v57, %v3183_v52  ;;  %v4269_v24 = vrot.slane %v4255_v37, %v12622_v38  ;;  %v1917_v53 = vrot.slane %v1903_v49, %v12622_v38  ;;  %v1918_v59 = vcombine.high %v1910_v5, %v1910_v5 }
 0x20b   :  { %v1926_v31 = vrot.slane %v1910_v5, %v12622_v38  ;;  %v13526_v45 = vrot.slane %v1952_v25, %v12622_v38  ;;  %v1967_v48 = vcombine.high %v1959_v35, %v1959_v35  ;;  %v1975_v7 = vrot.slane %v1959_v35, %v12622_v38 }
 0x20c   :  { %v13531_v20 = vadd.f32 %v13467_v33, %v13520_v18  ;;  %v4270_v19 = vcombine.low %v13475_v63, %v4269_v24  ;;  %v1919_v57 = vcombine.high %v1917_v53, %v1917_v53  ;;  %v1933_v3 = vrot.slane %v1917_v53, %v12622_v38 }
 0x20d   :  { %v1940_v50 = vrot.slane %v1918_v59, %v12622_v38  ;;  %v1948_v61 = vcombine.high %v1926_v31, %v1926_v31  ;;  %v2218_v54 = vadd.f32 %v13198_v9, %v1926_v31  ;;  %v1968_v10 = vcombine.high %v13526_v45, %v13526_v45 }
 0x20e   :  { %v13539_v42 = vadd.f32 %v4428_v22, %v4270_v19  ;;  %v1947_v6 = vrot.slane %v1919_v57, %v12622_v38  ;;  %v1949_v47 = vcombine.high %v1933_v3, %v1933_v3  ;;  %v2222_v33 = vadd.f32 %v13203_v11, %v1933_v3 }
 0x20f   :  { %v1950_v63 = vcombine.high %v1940_v50, %v1940_v50  ;;  %v2219_v56 = vadd.f32 %v13164_v62, %v1940_v50  ;;  %v2220_v16 = vadd.f32 %v13181_v12, %v1948_v61  ;;  %v3186_v51 = vcombine.low %v2217_v41, %v2218_v54 }
 0x210   :  { %v1951_v29 = vcombine.high %v1947_v6, %v1947_v6  ;;  %v2223_v17 = vadd.f32 %v13154_v1, %v1949_v47  ;;  %v3941_v52 = vmul.f32 %v2218_v54, %v2218_v54  ;;  %v3945_v37 = vmul.f32 %v2222_v33, %v2222_v33 }
 0x211   :  { %v2221_v22 = vadd.f32 %v13194_v34, %v1950_v63  ;;  %v3187_v49 = vcombine.low %v2219_v56, %v2220_v16  ;;  %v3202_v5 = vrot.slane %v3186_v51, %v12622_v38  ;;  %v3942_v25 = vmul.f32 %v2219_v56, %v2219_v56 }
 0x212   :  { %v2224_v35 = vadd.f32 %v13167_v4, %v1951_v29  ;;  %v3943_v24 = vmul.f32 %v2220_v16, %v2220_v16  ;;  %v13551_v53 = vmul.f32 %v2223_v17, %v2223_v17  ;;  %v4272_v59 = vcombine.low %v3940_v44, %v3941_v52  ;;  %v13560_v44 = vpop.f32.mrb[94].mxu0  ;;  %v13566_v29 = vpop.f32.mrb[95].mxu1 }
 0x213   :  { %v3188_v31 = vcombine.low %v2221_v22, %v2222_v33  ;;  %v3209_v41 = vrot.slane %v3187_v49, %v12622_v38  ;;  %v3217_v19 = vcombine.low %v13495_v58, %v3202_v5  ;;  %v3944_v57 = vmul.f32 %v2221_v22, %v2221_v22 }
 0x214   :  { %v3234_v3 = vcombine.low %v2223_v17, %v2224_v35  ;;  %v3947_v50 = vmul.f32 %v2224_v35, %v2224_v35  ;;  %v4273_v61 = vcombine.low %v3942_v25, %v3943_v24  ;;  %v4288_v54 = vrot.slane %v4272_v59, %v12622_v38  ;;  %v11090_v17 = vpop.f32.mrb[95].mxu0 }
 0x215   :  { %v3216_v6 = vrot.slane %v3188_v31, %v12622_v38  ;;  %v3225_v47 = vrot.slane %v3217_v19, %v12622_v38  ;;  %v4274_v63 = vcombine.low %v3944_v57, %v3945_v37  ;;  %v1982_v56 = vrot.slane %v13526_v45, %v12622_v38 }
 0x216   :  { %v4295_v33 = vrot.slane %v4273_v61, %v12622_v38  ;;  %v4303_v58 = vcombine.low %v13504_v39, %v4288_v54  ;;  %v4320_v16 = vcombine.low %v13551_v53, %v3947_v50  ;;  %v1989_v51 = vrot.slane %v1967_v48, %v12622_v38 }
 0x217   :  { %v3218_v52 = vcombine.low %v3209_v41, %v3216_v6  ;;  %v4302_v22 = vrot.slane %v4274_v63, %v12622_v38  ;;  %v1996_v37 = vrot.slane %v1968_v10, %v12622_v38  ;;  %v1997_v49 = vcombine.high %v1975_v7, %v1975_v7 }
 0x218   :  { %v4311_v45 = vrot.slane %v4303_v58, %v12622_v38  ;;  %v1998_v5 = vcombine.high %v1989_v51, %v1989_v51  ;;  %v2225_v25 = vadd.f32 %v13189_v21, %v1975_v7  ;;  %v2226_v39 = vadd.f32 %v13198_v9, %v1989_v51 }
 0x219   :  { %v3232_v35 = vrot.slane %v3218_v52, %v12622_v38  ;;  %v4304_v24 = vcombine.low %v4295_v33, %v4302_v22  ;;  %v1999_v48 = vcombine.high %v1996_v37, %v1996_v37  ;;  %v2227_v53 = vadd.f32 %v13164_v62, %v1997_v49 }
 0x21a   :  { %v2228_v59 = vadd.f32 %v13181_v12, %v1998_v5  ;;  %v2229_v31 = vadd.f32 %v13194_v34, %v1982_v56  ;;  %v2230_v10 = vadd.f32 %v13203_v11, %v1996_v37  ;;  %v3235_v41 = vcombine.low %v2225_v25, %v2226_v39  ;;  %v13585_v37 = vpop.f32.mrb[96].mxu1 }
 0x21b   :  { %v3233_v19 = vcombine.low %v3225_v47, %v3232_v35  ;;  %v4318_v57 = vrot.slane %v4304_v24, %v12622_v38  ;;  %v3244_v7 = vrot.slane %v3234_v3, %v12622_v38  ;;  %v3948_v50 = vmul.f32 %v2225_v25, %v2225_v25  ;;  %v13587_v3 = vpop.f32.mrb[96].mxu0  ;;  %v13593_v5 = vpop.f32.mrb[97].mxu1 }
 0x21c   :  { %v3236_v61 = vcombine.low %v2227_v53, %v2228_v59  ;;  %v3237_v54 = vcombine.low %v2229_v31, %v2230_v10  ;;  %v3251_v6 = vrot.slane %v3235_v41, %v12622_v38  ;;  %v3949_v63 = vmul.f32 %v2226_v39, %v2226_v39  ;;  %14609 = vst [vmem:[#allocation35_spill] sm:$0xff] %v13593_v5  ;;  %v11093_v25 = vpop.f32.mrb[97].mxu0  ;;  %v5793_v41 = vpop.f32.mrb[98].mxu1  ;;  %v14649_v5 = vld [vmem:[#allocation33_spill] sm:$0xff] }
 0x21d   :  { %v10572_v33 = vpack.c.bf16 %v3233_v19, %v13520_v18  ;;  %v3888_v58 = vadd.f32 %v13531_v20, %v3233_v19  ;;  %v4319_v51 = vcombine.low %v4311_v45, %v4318_v57  ;;  %v3950_v56 = vmul.f32 %v2227_v53, %v2227_v53 }
 0x21e   :  { %v3258_v17 = vrot.slane %v3236_v61, %v12622_v38  ;;  %v3265_v47 = vrot.slane %v3237_v54, %v12622_v38  ;;  %v3266_v52 = vcombine.low %v3244_v7, %v3251_v6  ;;  %v3951_v22 = vmul.f32 %v2228_v59, %v2228_v59  ;;  %v6017_v59 = vpop.f32.mrb[98].mxu0  ;;  %v5794_v7 = vpop.f32.mrb[99].mxu1 }
 0x21f   :  { %10640 = vst [vmem:[%s14516_s4 + $0x10] sm:$0xff] %v10572_v33   ;;  %v4430_v18 = vadd.f32 %v13539_v42, %v4319_v51  ;;  %v3952_v49 = vmul.f32 %v2229_v31, %v2229_v31  ;;  %v3953_v20 = vmul.f32 %v2230_v10, %v2230_v10  ;;  %v4321_v45 = vcombine.low %v3948_v50, %v3949_v63  ;;  %v11094_v10 = vpop.f32.mrb[99].mxu0 }
 0x220   :  { %v3267_v39 = vcombine.low %v3258_v17, %v3265_v47  ;;  %v3274_v35 = vrot.slane %v3266_v52, %v12622_v38  ;;  %v4322_v24 = vcombine.low %v3950_v56, %v3951_v22  ;;  %v4330_v53 = vrot.slane %v4320_v16, %v12622_v38  ;;  %v14610_v47 = vld [vmem:[#allocation7_spill] sm:$0xff] }
 0x221   :  { %v4323_v19 = vcombine.low %v3952_v49, %v3953_v20  ;;  %v4337_v57 = vrot.slane %v4321_v45, %v12622_v38  ;;  %v2000_v42 = vcombine.high %v13513_v0, %v13513_v0  ;;  %v2007_v31 = vrot.slane %v13513_v0, %v12622_v38 }
 0x222   :  { %v3281_v50 = vrot.slane %v3267_v39, %v12622_v38  ;;  %v4344_v61 = vrot.slane %v4322_v24, %v12622_v38  ;;  %v2231_v54 = vadd.f32 %v13154_v1, %v1999_v48  ;;  %v13607_v16 = vadd.f32 %v13128_v55, %v13121_v36 }
 0x223   :  { %v4351_v6 = vrot.slane %v4323_v19, %v12622_v38  ;;  %v4352_v63 = vcombine.low %v4330_v53, %v4337_v57  ;;  %v2014_v33 = vrot.slane %v2000_v42, %v12622_v38  ;;  %v2015_v51 = vcombine.high %v2007_v31, %v2007_v31 }
 0x224   :  { %v13611_v56 = vcombine.low %v3274_v35, %v3281_v50  ;;  %v2023_v0 = vrot.slane %v2007_v31, %v12622_v38  ;;  %v3954_v17 = vmul.f32 %v2231_v54, %v2231_v54  ;;  %v10821_v52 = vadd.f32 %v14610_v47, %v13156_v26 }
 0x225   :  { %v4353_v22 = vcombine.low %v4344_v61, %v4351_v6  ;;  %v4360_v1 = vrot.slane %v4352_v63, %v12622_v38  ;;  %v2016_v48 = vcombine.high %v2014_v33, %v2014_v33  ;;  %v2030_v36 = vrot.slane %v2014_v33, %v12622_v38 }
 0x226   :  { %v13619_v55 = vadd.f32 %v3888_v58, %v13611_v56  ;;  %v2037_v49 = vrot.slane %v2015_v51, %v12622_v38  ;;  %v2045_v20 = vcombine.high %v2023_v0, %v2023_v0  ;;  %v2232_v45 = vadd.f32 %v13167_v4, %v2023_v0 }
 0x227   :  { %v4367_v25 = vrot.slane %v4353_v22, %v12622_v38  ;;  %v2044_v39 = vrot.slane %v2016_v48, %v12622_v38  ;;  %v2046_v35 = vcombine.high %v2030_v36, %v2030_v36  ;;  %v2236_v26 = vadd.f32 %v13181_v12, %v2030_v36  ;;  %v14612_v22 = vld [vmem:[#allocation9_spill] sm:$0xff] }
 0x228   :  { %v2047_v24 = vcombine.high %v2037_v49, %v2037_v49  ;;  %v2233_v53 = vadd.f32 %v13189_v21, %v2037_v49  ;;  %v2234_v59 = vadd.f32 %v13198_v9, %v2045_v20  ;;  %v3283_v41 = vcombine.low %v2231_v54, %v2232_v45 }
 0x229   :  { %v4368_v58 = vcombine.low %v4360_v1, %v4367_v25  ;;  %v2237_v19 = vadd.f32 %v13194_v34, %v2044_v39  ;;  %v2238_v57 = vadd.f32 %v13203_v11, %v2046_v35  ;;  %v3955_v42 = vmul.f32 %v2232_v45, %v2232_v45  ;;  %v14614_v45 = vld [vmem:[#allocation4_spill] sm:$0xff]  ;;  %v14615_v25 = vld [vmem:[#allocation10_spill] sm:$0xff] }
 0x22a   :  { %v2235_v4 = vadd.f32 %v13164_v62, %v2047_v24  ;;  %v3284_v31 = vcombine.low %v2233_v53, %v2234_v59  ;;  %v3293_v10 = vrot.slane %v3283_v41, %v12622_v38  ;;  %v3956_v7 = vmul.f32 %v2233_v53, %v2233_v53  ;;  %v13636_v62 = vpop.f32.mrb[100].mxu0  ;;  %v14616_v24 = vld [vmem:[#allocation2_spill] sm:$0xff]  ;;  %v14617_v53 = vld [vmem:[#allocation12_spill] sm:$0xff] }
 0x22b   :  { %v13632_v50 = vadd.f32 %v4430_v18, %v4368_v58  ;;  %v3286_v12 = vcombine.low %v2237_v19, %v2238_v57  ;;  %v3957_v61 = vmul.f32 %v2234_v59, %v2234_v59  ;;  %v3959_v21 = vmul.f32 %v2236_v26, %v2236_v26  ;;  %14611 = vst [vmem:[#allocation7_spill] sm:$0xff] %v13636_v62  ;;  %v13642_v48 = vpop.f32.mrb[101].mxu0  ;;  %v14618_v58 = vld [vmem:[#allocation11_spill] sm:$0xff] }
 0x22c   :  { %v3285_v6 = vcombine.low %v2235_v4, %v2236_v26  ;;  %v3300_v9 = vrot.slane %v3284_v31, %v12622_v38  ;;  %v3958_v54 = vmul.f32 %v2235_v4, %v2235_v4  ;;  %v3960_v63 = vmul.f32 %v2237_v19, %v2237_v19  ;;  %14613 = vst [vmem:[#allocation9_spill] sm:$0xff] %v13642_v48  ;;  %v13658_v31 = vpop.f32.mrb[102].mxu0  ;;  %v14648_v62 = vld [vmem:[#allocation31_spill] sm:$0xff] }
 0x22d   :  { %v3314_v34 = vrot.slane %v3286_v12, %v12622_v38  ;;  %v3961_v11 = vmul.f32 %v2238_v57, %v2238_v57  ;;  %v4369_v33 = vcombine.low %v3954_v17, %v3955_v42  ;;  %v4370_v51 = vcombine.low %v3956_v7, %v3957_v61  ;;  %v14619_v57 = vld [vmem:[#allocation13_spill] sm:$0xff]  ;;  %v14620_v42 = vld [vmem:[#allocation14_spill] sm:$0xff]  ;;  %14621 = vst [vmem:[#allocation4_spill] sm:$0xff] %v13658_v31 }
 0x22e   :  { %v3307_v0 = vrot.slane %v3285_v6, %v12622_v38  ;;  %v3315_v47 = vcombine.low %v3293_v10, %v3300_v9  ;;  %v4371_v18 = vcombine.low %v3958_v54, %v3959_v21  ;;  %v13640_v1 = vadd.f32 %v10821_v52, %v14612_v22  ;;  %v13660_v10 = vpop.f32.mrb[100].mxu1  ;;  %v14623_v12 = vld [vmem:[#allocation6_spill] sm:$0xff]  ;;  %v14624_v21 = vld [vmem:[#allocation17_spill] sm:$0xff]  ;;  %v14630_v22 = vld [vmem:[#allocation28_spill] sm:$0xff] }
 0x22f   :  { %v4372_v36 = vcombine.low %v3960_v63, %v3961_v11  ;;  %v4379_v49 = vrot.slane %v4369_v33, %v12622_v38  ;;  %v4386_v20 = vrot.slane %v4370_v51, %v12622_v38  ;;  %v10824_v17 = vadd.f32 %v14615_v25, %v14614_v45  ;;  %14622 = vst [vmem:[#allocation10_spill] sm:$0xff] %v13660_v10  ;;  %v14625_v6 = vld [vmem:[#allocation5_spill] sm:$0xff]  ;;  %v14627_v63 = vld [vmem:[#allocation27_spill] sm:$0xff]  ;;  %v13670_v11 = vpop.f32.mrb[103].mxu0  ;;  %v11113_v33 = vpop.f32.mrb[101].mxu1  ;;  %v14632_v25 = vld [vmem:[#allocation26_spill] sm:$0xff] }
 0x230   :  { %v3316_v39 = vcombine.low %v3307_v0, %v3314_v34  ;;  %v3323_v35 = vrot.slane %v3315_v47, %v12622_v38  ;;  %v4393_v26 = vrot.slane %v4371_v18, %v12622_v38  ;;  %v10827_v59 = vadd.f32 %v14617_v53, %v14616_v24  ;;  %v14626_v54 = vld [vmem:[#allocation25_spill] sm:$0xff]  ;;  %14628 = vst [vmem:[#allocation2_spill] sm:$0xff] %v13670_v11  ;;  %v14629_v47 = vld [vmem:[#allocation16_spill] sm:$0xff] }
 0x231   :  { %v4400_v52 = vrot.slane %v4372_v36, %v12622_v38  ;;  %v4401_v41 = vcombine.low %v4379_v49, %v4386_v20  ;;  %v13654_v19 = vadd.f32 %v10824_v17, %v14618_v58  ;;  %v10830_v4 = vadd.f32 %v14620_v42, %v14619_v57  ;;  %v14631_v36 = vld [vmem:[#allocation29_spill] sm:$0xff]  ;;  %v10494_v20 = vld [vmem:[%s14513_s3] ss:$0 sm:$0xff] }
 0x232   :  { %v3330_v7 = vrot.slane %v3316_v39, %v12622_v38  ;;  %v13664_v61 = vadd.f32 %v10827_v59, %v14623_v12  ;;  %v10833_v9 = vadd.f32 %v14625_v6, %v14624_v21  ;;  %v10836_v34 = vadd.f32 %v14627_v63, %v14626_v54  ;;  %v14633_v39 = vld [vmem:[#allocation8_spill] sm:$0xff]  ;;  %v14636_v58 = vld [vmem:[#allocation30_spill] sm:$0xff]  ;;  %v14639_v63 = vld [vmem:[#allocation21_spill] sm:$0xff] }
 0x233   :  { %v4402_v51 = vcombine.low %v4393_v26, %v4400_v52  ;;  %v4409_v0 = vrot.slane %v4401_v41, %v12622_v38  ;;  %v13674_v18 = vadd.f32 %v10830_v4, %v14629_v47  ;;  %v10839_v49 = vadd.f32 %v14631_v36, %v14630_v22  ;;  %v14634_v26 = vld [vmem:[#allocation23_spill] sm:$0xff]  ;;  %v14635_v52 = vld [vmem:[#allocation20_spill] sm:$0xff]  ;;  %v13717_v22 = vpop.f32.mrb[102].mxu1 }
 0x234   :  { %v3331_v45 = vcombine.low %v3323_v35, %v3330_v7  ;;  %v13682_v17 = vadd.f32 %v10833_v9, %v14632_v25  ;;  %v13685_v24 = vadd.f32 %v10836_v34, %v14633_v39  ;;  %v5430_v53 = vadd.f32 %v13517_v23, %v14634_v26  ;;  %v14638_v7 = vld [vmem:[#allocation18_spill] sm:$0xff]  ;;  %14642 = vst [vmem:[#allocation14_spill] sm:$0xff] %v13717_v22  ;;  %v14643_v36 = vld [vmem:[#allocation15_spill] sm:$0xff]  ;;  %v11114_v39 = vpop.f32.mrb[103].mxu1 }
 0x235   :  { %v4416_v59 = vrot.slane %v4402_v51, %v12622_v38  ;;  %v13691_v41 = vadd.f32 %v10839_v49, %v14635_v52  ;;  %v7216_v57 = vcombine.high %v14636_v58, %v14636_v58  ;;  %v7223_v35 = vrot.slane %v14636_v58, %v12622_v38  ;;  %v14644_v26 = vld [vmem:[#allocation3_spill] sm:$0xff] }
 0x236   :  { %v10577_v42 = vpack.c.bf16 %v3331_v45, %v13611_v56  ;;  %v13699_v4 = vadd.f32 %v13619_v55, %v3331_v45  ;;  %v5796_v12 = vadd.f32 %v14638_v7, %v5430_v53  ;;  %v7723_v21 = vcombine.high %v10494_v20, %v10494_v20 }
 0x237   :  { %v4417_v23 = vcombine.low %v4409_v0, %v4416_v59  ;;  %v7230_v6 = vrot.slane %v7216_v57, %v12622_v38  ;;  %v7231_v9 = vcombine.high %v7223_v35, %v7223_v35  ;;  %v7239_v54 = vrot.slane %v7223_v35, %v12622_v38 }
 0x238   :  { %14637 = vst [vmem:[#allocation12_spill] sm:$0xff] %v13699_v4  ;;  %10641 = vst [vmem:[%s14516_s4 + $0x18] sm:$0xff] %v10577_v42   ;;  %v13708_v34 = vadd.f32 %v14639_v63, %v5796_v12  ;;  %v7730_v56 = vrot.slane %v10494_v20, %v12622_v38  ;;  %v7737_v55 = vrot.slane %v7723_v21, %v12622_v38  ;;  %v4449_v49 = vrot.slane %v14643_v36, 2  ;;  %v14645_v12 = vld [vmem:[#allocation24_spill] sm:$0xff] }
 0x239   :  { %v13713_v33 = vadd.f32 %v13632_v50, %v4417_v23  ;;  %v7232_v51 = vcombine.high %v7230_v6, %v7230_v6  ;;  %v7246_v0 = vrot.slane %v7230_v6, %v12622_v38  ;;  %v7253_v47 = vrot.slane %v7231_v9, %v12622_v38 }
 0x23a   :  { %14640 = vst [vmem:[#allocation11_spill] sm:$0xff] %v13708_v34  ;;  %v7738_v45 = vcombine.high %v7730_v56, %v7730_v56  ;;  %v7739_v25 = vcombine.high %v7737_v55, %v7737_v55  ;;  %v4991_v53 = vrot.slane %v14644_v26, 2  ;;  %v7261_v59 = vcombine.high %v7239_v54, %v7239_v54 }
 0x23b   :  { %14641 = vst [vmem:[#allocation13_spill] sm:$0xff] %v13713_v33  ;;  %v7260_v20 = vrot.slane %v7232_v51, %v12622_v38  ;;  %v7263_v52 = vcombine.high %v7253_v47, %v7253_v47  ;;  %v13723_v50 = vrot.slane %v7730_v56, %v12622_v38  ;;  %v13726_v58 = vrot.slane %v7737_v55, %v12622_v38 }
 0x23c   :  { %v13729_v57 = vrot.slane %v7738_v45, %v12622_v38  ;;  %v7262_v35 = vcombine.high %v7246_v0, %v7246_v0  ;;  %v13732_v7 = vrot.slane %v7739_v25, %v12622_v38  ;;  %v5433_v21 = vadd.f32 %v13607_v16, %v14645_v12 }
 0x23d   :  { %v7264_v42 = vcombine.high %v7260_v20, %v7260_v20  ;;  %v13737_v23 = vadd.f32 %v4449_v49, %v14643_v36  ;;  %v13741_v6 = vcombine.high %v13723_v50, %v13723_v50  ;;  %v13745_v9 = vcombine.high %v13726_v58, %v13726_v58 }
 0x23e   :  { %v13749_v63 = vcombine.high %v13729_v57, %v13729_v57  ;;  %v13753_v56 = vcombine.high %v13732_v7, %v13732_v7  ;;  %v7780_v16 = vadd.f32 %v13723_v50, %v7239_v54  ;;  %v7781_v55 = vadd.f32 %v13729_v57, %v7253_v47 }
 0x23f   :  { %14646 = vst [vmem:[#allocation6_spill] sm:$0xff] %v13737_v23  ;;  %v7782_v51 = vadd.f32 %v13741_v6, %v7261_v59  ;;  %v7784_v49 = vadd.f32 %v13726_v58, %v7246_v0  ;;  %v13761_v45 = vadd.f32 %v4991_v53, %v14644_v26  ;;  %v7785_v25 = vadd.f32 %v13732_v7, %v7260_v20 }
 0x240   :  { %v7783_v36 = vadd.f32 %v13749_v63, %v7263_v52  ;;  %v7786_v39 = vadd.f32 %v13745_v9, %v7262_v35  ;;  %v7787_v12 = vadd.f32 %v13753_v56, %v7264_v42  ;;  %v8413_v54 = vcombine.low %v7780_v16, %v7781_v55 }
 0x241   :  { %14647 = vst [vmem:[#allocation17_spill] sm:$0xff] %v13761_v45  ;;  %v8415_v47 = vcombine.low %v7784_v49, %v7785_v25  ;;  %v9424_v59 = vmul.f32 %v7780_v16, %v7780_v16  ;;  %v9425_v10 = vmul.f32 %v7781_v55, %v7781_v55  ;;  %v9426_v26 = vmul.f32 %v7782_v51, %v7782_v51 }
 0x242   :  { %v8414_v4 = vcombine.low %v7782_v51, %v7783_v36  ;;  %v8416_v22 = vcombine.low %v7786_v39, %v7787_v12  ;;  %v8423_v52 = vrot.slane %v8413_v54, %v12622_v38  ;;  %v9427_v53 = vmul.f32 %v7783_v36, %v7783_v36 }
 0x243   :  { %v8437_v35 = vrot.slane %v8415_v47, %v12622_v38  ;;  %v9428_v34 = vmul.f32 %v7784_v49, %v7784_v49  ;;  %v9429_v23 = vmul.f32 %v7785_v25, %v7785_v25  ;;  %v9430_v11 = vmul.f32 %v7786_v39, %v7786_v39  ;;  %v14650_v25 = vld [vmem:[#allocation32_spill] sm:$0xff] }
 0x244   :  { %v8430_v0 = vrot.slane %v8414_v4, %v12622_v38  ;;  %v8444_v42 = vrot.slane %v8416_v22, %v12622_v38  ;;  %v9431_v31 = vmul.f32 %v7787_v12, %v7787_v12  ;;  %v9552_v16 = vcombine.low %v9424_v59, %v9425_v10  ;;  %v13782_v10 = vpop.f32.mrb[104].mxu0 }
 0x245   :  { %v9553_v55 = vcombine.low %v9426_v26, %v9427_v53  ;;  %v5797_v54 = vadd.f32 %v14648_v62, %v5433_v21  ;;  %v9554_v51 = vcombine.low %v9428_v34, %v9429_v23  ;;  %v7265_v20 = vcombine.high %v14649_v5, %v14649_v5  ;;  %14652 = vst [vmem:[#allocation25_spill] sm:$0xff] %v13782_v10  ;;  %v13789_v34 = vpop.f32.mrb[105].mxu0 }
 0x246   :  { %v8445_v33 = vcombine.low %v8423_v52, %v8430_v0  ;;  %v8446_v48 = vcombine.low %v8437_v35, %v8444_v42  ;;  %v9555_v36 = vcombine.low %v9430_v11, %v9431_v31  ;;  %v9562_v22 = vrot.slane %v9552_v16, %v12622_v38  ;;  %14653 = vst [vmem:[#allocation27_spill] sm:$0xff] %v13789_v34  ;;  %v13797_v59 = vpop.f32.mrb[106].mxu0  ;;  %v13799_v52 = vpop.f32.mrb[104].mxu1 }
 0x247   :  { %v9569_v49 = vrot.slane %v9553_v55, %v12622_v38  ;;  %v13780_v39 = vadd.f32 %v14650_v25, %v5797_v54  ;;  %v9576_v62 = vrot.slane %v9554_v51, %v12622_v38  ;;  %v7272_v31 = vrot.slane %v14649_v5, %v12622_v38  ;;  %14654 = vst [vmem:[#allocation16_spill] sm:$0xff] %v13797_v59  ;;  %v11117_v35 = vpop.f32.mrb[105].mxu1 }
 0x248   :  { %v8453_v4 = vrot.slane %v8445_v33, %v12622_v38  ;;  %v8460_v47 = vrot.slane %v8446_v48, %v12622_v38  ;;  %v9583_v33 = vrot.slane %v9555_v36, %v12622_v38  ;;  %v7279_v11 = vrot.slane %v7265_v20, %v12622_v38  ;;  %14655 = vst [vmem:[#allocation28_spill] sm:$0xff] %v13799_v52  ;;  %v13802_v20 = vpop.f32.mrb[107].mxu0 }
 0x249   :  { %14651 = vst [vmem:[#allocation5_spill] sm:$0xff] %v13780_v39  ;;  %v9584_v21 = vcombine.low %v9562_v22, %v9569_v49  ;;  %v5798_v23 = vadd.f32 %v13335_v28, %v13640_v1  ;;  %v7314_v12 = vcombine.high %v13343_v15, %v13343_v15  ;;  %v7280_v26 = vcombine.high %v7272_v31, %v7272_v31 }
 0x24a   :  { %v13791_v48 = vcombine.low %v8453_v4, %v8460_v47  ;;  %v9585_v0 = vcombine.low %v9576_v62, %v9583_v33  ;;  %v7281_v5 = vcombine.high %v7279_v11, %v7279_v11  ;;  %v7288_v53 = vrot.slane %v7272_v31, %v12622_v38  ;;  %14656 = vst [vmem:[#allocation29_spill] sm:$0xff] %v13802_v20  ;;  %v13832_v20 = vpop.f32.mrb[106].mxu1 }
 0x24b   :  { %v13805_v42 = vrot.slane %v9584_v21, %v12622_v38  ;;  %v7295_v28 = vrot.slane %v7279_v11, %v12622_v38  ;;  %v13809_v1 = vadd.f32 %v13337_v2, %v5798_v23  ;;  %v7321_v16 = vrot.slane %v13343_v15, %v12622_v38  ;;  %14658 = vst [vmem:[#allocation8_spill] sm:$0xff] %v13832_v20 }
 0x24c   :  { %v13814_v55 = vrot.slane %v9585_v0, %v12622_v38  ;;  %v7302_v54 = vrot.slane %v7280_v26, %v12622_v38  ;;  %v7309_v4 = vrot.slane %v7281_v5, %v12622_v38  ;;  %v7310_v51 = vcombine.high %v7288_v53, %v7288_v53 }
 0x24d   :  { %14657 = vst [vmem:[#allocation26_spill] sm:$0xff] %v13809_v1  ;;  %v7311_v36 = vcombine.high %v7295_v28, %v7295_v28  ;;  %v7791_v47 = vadd.f32 %v13749_v63, %v7295_v28  ;;  %v7328_v22 = vrot.slane %v7314_v12, %v12622_v38  ;;  %v7329_v49 = vcombine.high %v7321_v16, %v7321_v16 }
 0x24e   :  { %v7312_v25 = vcombine.high %v7302_v54, %v7302_v54  ;;  %v7313_v62 = vcombine.high %v7309_v4, %v7309_v4  ;;  %v7788_v15 = vadd.f32 %v13723_v50, %v7302_v54  ;;  %v7789_v33 = vadd.f32 %v13729_v57, %v7310_v51 }
 0x24f   :  { %v7792_v31 = vadd.f32 %v13726_v58, %v7309_v4  ;;  %v7793_v11 = vadd.f32 %v13732_v7, %v7311_v36  ;;  %v9435_v21 = vmul.f32 %v7791_v47, %v7791_v47  ;;  %v7330_v26 = vcombine.high %v7328_v22, %v7328_v22 }
 0x250   :  { %v7790_v23 = vadd.f32 %v13741_v6, %v7312_v25  ;;  %v9432_v0 = vmul.f32 %v7788_v15, %v7788_v15  ;;  %v7337_v12 = vrot.slane %v7321_v16, %v12622_v38  ;;  %v8462_v5 = vcombine.low %v7788_v15, %v7789_v33 }
 0x251   :  { %v8464_v53 = vcombine.low %v7792_v31, %v7793_v11  ;;  %v9433_v35 = vmul.f32 %v7789_v33, %v7789_v33  ;;  %v9436_v28 = vmul.f32 %v7792_v31, %v7792_v31  ;;  %v9437_v54 = vmul.f32 %v7793_v11, %v7793_v11  ;;  %v11118_v31 = vpop.f32.mrb[107].mxu1 }
 0x252   :  { %v8463_v2 = vcombine.low %v7790_v23, %v7791_v47  ;;  %v9434_v52 = vmul.f32 %v7790_v23, %v7790_v23  ;;  %v7344_v51 = vrot.slane %v7328_v22, %v12622_v38  ;;  %v8472_v4 = vrot.slane %v8462_v5, %v12622_v38 }
 0x253   :  { %v9601_v1 = vcombine.low %v9432_v0, %v9433_v35  ;;  %v7351_v36 = vrot.slane %v7329_v49, %v12622_v38  ;;  %v7358_v25 = vrot.slane %v7330_v26, %v12622_v38  ;;  %v9603_v59 = vcombine.low %v9436_v28, %v9437_v54 }
 0x254   :  { %v8479_v16 = vrot.slane %v8463_v2, %v12622_v38  ;;  %v9602_v15 = vcombine.low %v9434_v52, %v9435_v21  ;;  %v7359_v33 = vcombine.high %v7337_v12, %v7337_v12  ;;  %v7360_v11 = vcombine.high %v7344_v51, %v7344_v51 }
 0x255   :  { %v9611_v47 = vrot.slane %v9601_v1, %v12622_v38  ;;  %v7361_v23 = vcombine.high %v7351_v36, %v7351_v36  ;;  %v7362_v22 = vcombine.high %v7358_v25, %v7358_v25  ;;  %v7794_v49 = vadd.f32 %v13745_v9, %v7313_v62 }
 0x256   :  { %v8494_v34 = vcombine.low %v8472_v4, %v8479_v16  ;;  %v9618_v0 = vrot.slane %v9602_v15, %v12622_v38  ;;  %v7795_v26 = vadd.f32 %v13753_v56, %v7337_v12  ;;  %v7796_v5 = vadd.f32 %v13723_v50, %v7359_v33 }
 0x257   :  { %v7797_v2 = vadd.f32 %v13729_v57, %v7361_v23  ;;  %v7798_v52 = vadd.f32 %v13741_v6, %v7344_v51  ;;  %v7799_v21 = vadd.f32 %v13749_v63, %v7358_v25  ;;  %v7800_v28 = vadd.f32 %v13726_v58, %v7360_v11 }
 0x258   :  { %v8502_v1 = vrot.slane %v8494_v34, %v12622_v38  ;;  %v9633_v35 = vcombine.low %v9611_v47, %v9618_v0  ;;  %v7801_v54 = vadd.f32 %v13732_v7, %v7362_v22  ;;  %v8465_v4 = vcombine.low %v7794_v49, %v7795_v26 }
 0x259   :  { %v8486_v62 = vrot.slane %v8464_v53, %v12622_v38  ;;  %v8511_v36 = vcombine.low %v7796_v5, %v7797_v2  ;;  %v8512_v12 = vcombine.low %v7798_v52, %v7799_v21  ;;  %v9438_v33 = vmul.f32 %v7794_v49, %v7794_v49 }
 0x25a   :  { %v9641_v16 = vrot.slane %v9633_v35, %v12622_v38  ;;  %v8513_v15 = vcombine.low %v7800_v28, %v7801_v54  ;;  %v9439_v31 = vmul.f32 %v7795_v26, %v7795_v26  ;;  %v8493_v51 = vrot.slane %v8465_v4, %v12622_v38 }
 0x25b   :  { %v8521_v25 = vrot.slane %v8511_v36, %v12622_v38  ;;  %v8528_v34 = vrot.slane %v8512_v12, %v12622_v38  ;;  %v9440_v47 = vmul.f32 %v7796_v5, %v7796_v5  ;;  %v9441_v11 = vmul.f32 %v7797_v2, %v7797_v2 }
 0x25c   :  { %v9442_v23 = vmul.f32 %v7798_v52, %v7798_v52  ;;  %v9443_v22 = vmul.f32 %v7799_v21, %v7799_v21  ;;  %v9444_v0 = vmul.f32 %v7800_v28, %v7800_v28  ;;  %v8495_v20 = vcombine.low %v8486_v62, %v8493_v51 }
 0x25d   :  { %v8543_v53 = vcombine.low %v8521_v25, %v8528_v34  ;;  %v9445_v10 = vmul.f32 %v7801_v54, %v7801_v54  ;;  %v9604_v45 = vcombine.low %v9438_v33, %v9439_v31  ;;  %v9625_v35 = vrot.slane %v9603_v59, %v12622_v38  ;;  %v13866_v54 = vpop.f32.mrb[108].mxu0 }
 0x25e   :  { %v9650_v39 = vcombine.low %v9440_v47, %v9441_v11  ;;  %v9651_v49 = vcombine.low %v9442_v23, %v9443_v22  ;;  %v5799_v26 = vadd.f32 %v13395_v27, %v13654_v19  ;;  %v8509_v4 = vrot.slane %v8495_v20, %v12622_v38  ;;  %v14659_v11 = vld [vmem:[#allocation22_spill] sm:$0xff]  ;;  %v14660_v22 = vld [vmem:[#allocation19_spill] sm:$0xff] }
 0x25f   :  { %v13856_v36 = vrot.slane %v8543_v53, %v12622_v38  ;;  %v9632_v5 = vrot.slane %v9604_v45, %v12622_v38  ;;  %v9652_v2 = vcombine.low %v9444_v0, %v9445_v10  ;;  %v7363_v59 = vcombine.high %v13400_v8, %v13400_v8  ;;  %v13871_v10 = vpop.f32.mrb[109].mxu0 }
 0x260   :  { %v9660_v52 = vrot.slane %v9650_v39, %v12622_v38  ;;  %v9667_v21 = vrot.slane %v9651_v49, %v12622_v38  ;;  %v13862_v28 = vadd.f32 %v13397_v13, %v5799_v26  ;;  %v8510_v27 = vcombine.low %v8502_v1, %v8509_v4  ;;  %v13879_v33 = vpop.f32.mrb[110].mxu0 }
 0x261   :  { %v9634_v19 = vcombine.low %v9625_v35, %v9632_v5  ;;  %v7370_v20 = vrot.slane %v13400_v8, %v12622_v38  ;;  %v8535_v45 = vrot.slane %v8513_v15, %v12622_v38  ;;  %v7377_v62 = vrot.slane %v7363_v59, %v12622_v38  ;;  %v13886_v51 = vpop.f32.mrb[111].mxu0 }
 0x262   :  { %v9682_v39 = vcombine.low %v9660_v52, %v9667_v21  ;;  %v13875_v13 = vrot.slane %v9652_v2, %v12622_v38  ;;  %v5800_v12 = vadd.f32 %v13416_v32, %v13664_v61  ;;  %v10622_v1 = vpack.c.bf16 %v8510_v27, %v13791_v48 }
 0x263   :  { %v13883_v31 = vadd.f32 %v8510_v27, %v13791_v48  ;;  %v9648_v8 = vrot.slane %v9634_v19, %v12622_v38  ;;  %v7378_v15 = vcombine.high %v7370_v20, %v7370_v20  ;;  %v7379_v34 = vcombine.high %v7377_v62, %v7377_v62 }
 0x264   :  { %v13889_v25 = vrot.slane %v9682_v39, %v12622_v38  ;;  %v7386_v47 = vrot.slane %v7370_v20, %v12622_v38  ;;  %v7393_v32 = vrot.slane %v7377_v62, %v12622_v38  ;;  %10649 = vst [vmem:[%s14514_s5 + $0x20] sm:$0xff] %v10622_v1   ;;  %v13898_v23 = vadd.f32 %v14659_v11, %v5800_v12 }
 0x265   :  { %v9649_v61 = vcombine.low %v9641_v16, %v9648_v8  ;;  %v7400_v48 = vrot.slane %v7378_v15, %v12622_v38  ;;  %v7411_v0 = vcombine.high %v14660_v22, %v14660_v22  ;;  %v7407_v53 = vrot.slane %v7379_v34, %v12622_v38  ;;  %v13915_v15 = vpop.f32.mrb[108].mxu1 }
 0x266   :  { %v7408_v35 = vcombine.high %v7393_v32, %v7393_v32  ;;  %v7802_v49 = vadd.f32 %v13745_v9, %v7386_v47  ;;  %v7805_v26 = vadd.f32 %v13729_v57, %v7393_v32  ;;  %v14661_v4 = vcombine.low %v13805_v42, %v13814_v55 }
 0x267   :  { %v7409_v16 = vcombine.high %v7400_v48, %v7400_v48  ;;  %v7803_v2 = vadd.f32 %v13753_v56, %v7400_v48  ;;  %v7418_v52 = vrot.slane %v14660_v22, %v12622_v38  ;;  %v7410_v21 = vcombine.high %v7407_v53, %v7407_v53  ;;  %v11121_v48 = vpop.f32.mrb[109].mxu1 }
 0x268   :  { %v9952_v5 = vadd.f32 %v9649_v61, %v14661_v4  ;;  %v7806_v59 = vadd.f32 %v13741_v6, %v7407_v53  ;;  %v7807_v27 = vadd.f32 %v13749_v63, %v7408_v35  ;;  %v9446_v19 = vmul.f32 %v7802_v49, %v7802_v49 }
 0x269   :  { %v7804_v20 = vadd.f32 %v13723_v50, %v7409_v16  ;;  %v8514_v39 = vcombine.low %v7802_v49, %v7803_v2  ;;  %v9447_v62 = vmul.f32 %v7803_v2, %v7803_v2  ;;  %v9449_v12 = vmul.f32 %v7805_v26, %v7805_v26 }
 0x26a   :  { %v8561_v1 = vcombine.low %v7806_v59, %v7807_v27  ;;  %v9450_v42 = vmul.f32 %v7806_v59, %v7806_v59  ;;  %v9451_v55 = vmul.f32 %v7807_v27, %v7807_v27  ;;  %v7425_v8 = vrot.slane %v7411_v0, %v12622_v38 }
 0x26b   :  { %v8542_v34 = vrot.slane %v8514_v39, %v12622_v38  ;;  %v8560_v47 = vcombine.low %v7804_v20, %v7805_v26  ;;  %v9448_v32 = vmul.f32 %v7804_v20, %v7804_v20  ;;  %v9653_v61 = vcombine.low %v9446_v19, %v9447_v62  ;;  %v13928_v62 = vpop.f32.mrb[110].mxu1 }
 0x26c   :  { %v8577_v11 = vrot.slane %v8561_v1, %v12622_v38  ;;  %v9700_v22 = vcombine.low %v9450_v42, %v9451_v55  ;;  %v7426_v53 = vcombine.high %v7418_v52, %v7418_v52  ;;  %v7427_v35 = vcombine.high %v7425_v8, %v7425_v8 }
 0x26d   :  { %v8544_v49 = vcombine.low %v8535_v45, %v8542_v34  ;;  %v8570_v4 = vrot.slane %v8560_v47, %v12622_v38  ;;  %v9681_v16 = vrot.slane %v9653_v61, %v12622_v38  ;;  %v9699_v2 = vcombine.low %v9448_v32, %v9449_v12 }
 0x26e   :  { %v9716_v0 = vrot.slane %v9700_v22, %v12622_v38  ;;  %v7434_v59 = vrot.slane %v7418_v52, %v12622_v38  ;;  %v7441_v26 = vrot.slane %v7425_v8, %v12622_v38  ;;  %v7448_v27 = vrot.slane %v7426_v53, %v12622_v38  ;;  %v11122_v52 = vpop.f32.mrb[111].mxu1 }
 0x26f   :  { %v8558_v19 = vrot.slane %v8544_v49, %v12622_v38  ;;  %v8592_v20 = vcombine.low %v8570_v4, %v8577_v11  ;;  %v9683_v39 = vcombine.low %v13875_v13, %v9681_v16  ;;  %v9709_v45 = vrot.slane %v9699_v2, %v12622_v38 }
 0x270   :  { %v7455_v1 = vrot.slane %v7427_v35, %v12622_v38  ;;  %v7456_v12 = vcombine.high %v7434_v59, %v7434_v59  ;;  %v7457_v42 = vcombine.high %v7441_v26, %v7441_v26  ;;  %v7808_v55 = vadd.f32 %v13726_v58, %v7410_v21 }
 0x271   :  { %v13933_v8 = vcombine.low %v13856_v36, %v8558_v19  ;;  %v8600_v34 = vrot.slane %v8592_v20, %v12622_v38  ;;  %v9697_v47 = vrot.slane %v9683_v39, %v12622_v38  ;;  %v9731_v32 = vcombine.low %v9709_v45, %v9716_v0 }
 0x272   :  { %v7458_v13 = vcombine.high %v7455_v1, %v7455_v1  ;;  %v7809_v61 = vadd.f32 %v13732_v7, %v7434_v59  ;;  %v7810_v48 = vadd.f32 %v13745_v9, %v7448_v27  ;;  %v7811_v11 = vadd.f32 %v13753_v56, %v7456_v12 }
 0x273   :  { %v9411_v22 = vadd.f32 %v13883_v31, %v13933_v8  ;;  %v9698_v21 = vcombine.low %v13889_v25, %v9697_v47  ;;  %v13944_v36 = vrot.slane %v9731_v32, %v12622_v38  ;;  %v7812_v53 = vadd.f32 %v13723_v50, %v7441_v26 }
 0x274   :  { %v7813_v35 = vadd.f32 %v13729_v57, %v7455_v1  ;;  %v7814_v49 = vadd.f32 %v13741_v6, %v7457_v42  ;;  %v7815_v4 = vadd.f32 %v13749_v63, %v7458_v13  ;;  %v8562_v16 = vcombine.low %v7808_v55, %v7809_v61 }
 0x275   :  { %v9953_v2 = vadd.f32 %v9952_v5, %v9698_v21  ;;  %v8563_v0 = vcombine.low %v7810_v48, %v7811_v11  ;;  %v9452_v59 = vmul.f32 %v7808_v55, %v7808_v55  ;;  %v9453_v27 = vmul.f32 %v7809_v61, %v7809_v61 }
 0x276   :  { %v8584_v31 = vrot.slane %v8562_v16, %v12622_v38  ;;  %v8609_v19 = vcombine.low %v7812_v53, %v7813_v35  ;;  %v8610_v25 = vcombine.low %v7814_v49, %v7815_v4  ;;  %v9454_v20 = vmul.f32 %v7810_v48, %v7810_v48  ;;  %v14662_v16 = vld [vmem:[#allocation34_spill] sm:$0xff] }
 0x277   :  { %v8591_v39 = vrot.slane %v8563_v0, %v12622_v38  ;;  %v9455_v45 = vmul.f32 %v7811_v11, %v7811_v11  ;;  %v9456_v26 = vmul.f32 %v7812_v53, %v7812_v53  ;;  %v9457_v12 = vmul.f32 %v7813_v35, %v7813_v35 }
 0x278   :  { %v8619_v1 = vrot.slane %v8609_v19, %v12622_v38  ;;  %v8626_v42 = vrot.slane %v8610_v25, %v12622_v38  ;;  %v9458_v52 = vmul.f32 %v7814_v49, %v7814_v49  ;;  %v9459_v47 = vmul.f32 %v7815_v4, %v7815_v4 }
 0x279   :  { %v8593_v5 = vcombine.low %v8584_v31, %v8591_v39  ;;  %v9701_v32 = vcombine.low %v9452_v59, %v9453_v27  ;;  %v9702_v55 = vcombine.low %v9454_v20, %v9455_v45  ;;  %v9748_v13 = vcombine.low %v9456_v26, %v9457_v12  ;;  %v13971_v31 = vpop.f32.mrb[112].mxu0 }
 0x27a   :  { %v8641_v61 = vcombine.low %v8619_v1, %v8626_v42  ;;  %v9749_v21 = vcombine.low %v9458_v52, %v9459_v47  ;;  %v5801_v48 = vadd.f32 %v14662_v16, %v13674_v18  ;;  %v7459_v11 = vcombine.high %v13464_v46, %v13464_v46  ;;  %v13976_v45 = vpop.f32.mrb[113].mxu0 }
 0x27b   :  { %v8607_v53 = vrot.slane %v8593_v5, %v12622_v38  ;;  %v9723_v35 = vrot.slane %v9701_v32, %v12622_v38  ;;  %v9730_v0 = vrot.slane %v9702_v55, %v12622_v38  ;;  %v9758_v49 = vrot.slane %v9748_v13, %v12622_v38 }
 0x27c   :  { %v13963_v4 = vrot.slane %v8641_v61, %v12622_v38  ;;  %v9765_v59 = vrot.slane %v9749_v21, %v12622_v38  ;;  %v13967_v27 = vadd.f32 %v13460_v40, %v5801_v48  ;;  %v7466_v18 = vrot.slane %v13464_v46, %v12622_v38 }
 0x27d   :  { %v8608_v19 = vcombine.low %v8600_v34, %v8607_v53  ;;  %v9732_v25 = vcombine.low %v9723_v35, %v9730_v0  ;;  %v7473_v20 = vrot.slane %v7459_v11, %v12622_v38  ;;  %v5802_v39 = vadd.f32 %v13485_v60, %v13682_v17 }
 0x27e   :  { %v9780_v26 = vcombine.low %v9758_v49, %v9765_v59  ;;  %v7474_v12 = vcombine.high %v7466_v18, %v7466_v18  ;;  %v7482_v1 = vrot.slane %v7466_v18, %v12622_v38  ;;  %v7508_v40 = vcombine.high %v13492_v30, %v13492_v30 }
 0x27f   :  { %v10627_v46 = vpack.c.bf16 %v8608_v19, %v13933_v8  ;;  %v13982_v42 = vadd.f32 %v9411_v22, %v8608_v19  ;;  %v9746_v34 = vrot.slane %v9732_v25, %v12622_v38  ;;  %v7475_v52 = vcombine.high %v7473_v20, %v7473_v20 }
 0x280   :  { %v13986_v47 = vrot.slane %v9780_v26, %v12622_v38  ;;  %v7489_v60 = vrot.slane %v7473_v20, %v12622_v38  ;;  %v7496_v17 = vrot.slane %v7474_v12, %v12622_v38  ;;  %v7504_v5 = vcombine.high %v7482_v1, %v7482_v1 }
 0x281   :  { %10650 = vst [vmem:[%s14514_s5 + $0x28] sm:$0xff] %v10627_v46   ;;  %v9747_v32 = vcombine.low %v13944_v36, %v9746_v34  ;;  %v7503_v8 = vrot.slane %v7475_v52, %v12622_v38  ;;  %v7816_v22 = vadd.f32 %v13726_v58, %v7482_v1  ;;  %v13997_v55 = vadd.f32 %v13487_v43, %v5802_v39 }
 0x282   :  { %v7505_v13 = vcombine.high %v7489_v60, %v7489_v60  ;;  %v7506_v61 = vcombine.high %v7496_v17, %v7496_v17  ;;  %v7817_v21 = vadd.f32 %v13732_v7, %v7496_v17  ;;  %v7818_v16 = vadd.f32 %v13745_v9, %v7504_v5 }
 0x283   :  { %v14001_v48 = vadd.f32 %v9953_v2, %v9747_v32  ;;  %v7507_v11 = vcombine.high %v7503_v8, %v7503_v8  ;;  %v7820_v53 = vadd.f32 %v13723_v50, %v7503_v8  ;;  %v9460_v35 = vmul.f32 %v7816_v22, %v7816_v22  ;;  %v14013_v32 = vpop.f32.mrb[114].mxu0 }
 0x284   :  { %v7819_v36 = vadd.f32 %v13753_v56, %v7506_v61  ;;  %v7821_v0 = vadd.f32 %v13729_v57, %v7505_v13  ;;  %v8611_v49 = vcombine.low %v7816_v22, %v7817_v21  ;;  %v9461_v59 = vmul.f32 %v7817_v21, %v7817_v21  ;;  %v14020_v61 = vpop.f32.mrb[115].mxu0 }
 0x285   :  { %v9462_v43 = vmul.f32 %v7818_v16, %v7818_v16  ;;  %v9464_v18 = vmul.f32 %v7820_v53, %v7820_v53  ;;  %v7515_v19 = vrot.slane %v13492_v30, %v12622_v38  ;;  %v7522_v25 = vrot.slane %v7508_v40, %v12622_v38  ;;  %v14015_v30 = vpop.f32.mrb[112].mxu1 }
 0x286   :  { %v8612_v20 = vcombine.low %v7818_v16, %v7819_v36  ;;  %v8633_v2 = vrot.slane %v8611_v49, %v12622_v38  ;;  %v8658_v39 = vcombine.low %v7820_v53, %v7821_v0  ;;  %v9463_v26 = vmul.f32 %v7819_v36, %v7819_v36  ;;  %14663 = vst [vmem:[#allocation23_spill] sm:$0xff] %v14015_v30  ;;  %v11125_v21 = vpop.f32.mrb[113].mxu1 }
 0x287   :  { %v9465_v12 = vmul.f32 %v7821_v0, %v7821_v0  ;;  %v9750_v1 = vcombine.low %v9460_v35, %v9461_v59  ;;  %v7523_v46 = vcombine.high %v7515_v19, %v7515_v19  ;;  %v7524_v34 = vcombine.high %v7522_v25, %v7522_v25 }
 0x288   :  { %v8640_v52 = vrot.slane %v8612_v20, %v12622_v38  ;;  %v8668_v60 = vrot.slane %v8658_v39, %v12622_v38  ;;  %v9751_v17 = vcombine.low %v9462_v43, %v9463_v26  ;;  %v7531_v5 = vrot.slane %v7515_v19, %v12622_v38 }
 0x289   :  { %v9772_v40 = vrot.slane %v9750_v1, %v12622_v38  ;;  %v9797_v8 = vcombine.low %v9464_v18, %v9465_v12  ;;  %v7538_v22 = vrot.slane %v7522_v25, %v12622_v38  ;;  %v7545_v13 = vrot.slane %v7523_v46, %v12622_v38  ;;  %v14034_v1 = vpop.f32.mrb[114].mxu1 }
 0x28a   :  { %v8642_v16 = vcombine.low %v8633_v2, %v8640_v52  ;;  %v9779_v53 = vrot.slane %v9751_v17, %v12622_v38  ;;  %v7552_v35 = vrot.slane %v7524_v34, %v12622_v38  ;;  %v7553_v36 = vcombine.high %v7531_v5, %v7531_v5  ;;  %14664 = vst [vmem:[#allocation20_spill] sm:$0xff] %v14034_v1  ;;  %v11126_v17 = vpop.f32.mrb[115].mxu1 }
 0x28b   :  { %v14025_v0 = vrot.slane %v9797_v8, %v12622_v38  ;;  %v7554_v49 = vcombine.high %v7538_v22, %v7538_v22  ;;  %v7555_v59 = vcombine.high %v7545_v13, %v7545_v13  ;;  %v7822_v43 = vadd.f32 %v13741_v6, %v7507_v11 }
 0x28c   :  { %v8656_v18 = vrot.slane %v8642_v16, %v12622_v38  ;;  %v9781_v19 = vcombine.low %v9772_v40, %v9779_v53  ;;  %v7556_v25 = vcombine.high %v7552_v35, %v7552_v35  ;;  %v7823_v20 = vadd.f32 %v13749_v63, %v7531_v5 }
 0x28d   :  { %v7824_v2 = vadd.f32 %v13726_v58, %v7545_v13  ;;  %v7825_v39 = vadd.f32 %v13732_v7, %v7553_v36  ;;  %v7826_v26 = vadd.f32 %v13745_v9, %v7555_v59  ;;  %v7827_v12 = vadd.f32 %v13753_v56, %v7538_v22 }
 0x28e   :  { %v8657_v46 = vcombine.low %v13963_v4, %v8656_v18  ;;  %v9795_v11 = vrot.slane %v9781_v19, %v12622_v38  ;;  %v7828_v34 = vadd.f32 %v13723_v50, %v7554_v49  ;;  %v7829_v52 = vadd.f32 %v13729_v57, %v7556_v25 }
 0x28f   :  { %v8659_v5 = vcombine.low %v7822_v43, %v7823_v20  ;;  %v8660_v40 = vcombine.low %v7824_v2, %v7825_v39  ;;  %v8661_v8 = vcombine.low %v7826_v26, %v7827_v12  ;;  %v9466_v13 = vmul.f32 %v7822_v43, %v7822_v43 }
 0x290   :  { %v9413_v21 = vadd.f32 %v13982_v42, %v8657_v46  ;;  %v9796_v16 = vcombine.low %v13986_v47, %v9795_v11  ;;  %v8707_v22 = vcombine.low %v7828_v34, %v7829_v52  ;;  %v9467_v53 = vmul.f32 %v7823_v20, %v7823_v20 }
 0x291   :  { %v8675_v35 = vrot.slane %v8659_v5, %v12622_v38  ;;  %v8682_v4 = vrot.slane %v8660_v40, %v12622_v38  ;;  %v8689_v36 = vrot.slane %v8661_v8, %v12622_v38  ;;  %v9468_v49 = vmul.f32 %v7824_v2, %v7824_v2 }
 0x292   :  { %v9955_v59 = vadd.f32 %v14001_v48, %v9796_v16  ;;  %v9469_v18 = vmul.f32 %v7825_v39, %v7825_v39  ;;  %v9470_v19 = vmul.f32 %v7826_v26, %v7826_v26  ;;  %v9471_v25 = vmul.f32 %v7827_v12, %v7827_v12 }
 0x293   :  { %v8690_v17 = vcombine.low %v8668_v60, %v8675_v35  ;;  %v8691_v43 = vcombine.low %v8682_v4, %v8689_v36  ;;  %v9472_v1 = vmul.f32 %v7828_v34, %v7828_v34  ;;  %v9473_v42 = vmul.f32 %v7829_v52, %v7829_v52  ;;  %v14076_v36 = vpop.f32.mrb[116].mxu0 }
 0x294   :  { %v9798_v30 = vcombine.low %v9466_v13, %v9467_v53  ;;  %v9799_v47 = vcombine.low %v9468_v49, %v9469_v18  ;;  %v9800_v11 = vcombine.low %v9470_v19, %v9471_v25  ;;  %v5803_v20 = vadd.f32 %v13543_v14, %v13685_v24  ;;  %v14088_v18 = vpop.f32.mrb[117].mxu0 }
 0x295   :  { %v8698_v5 = vrot.slane %v8690_v17, %v12622_v38  ;;  %v8705_v40 = vrot.slane %v8691_v43, %v12622_v38  ;;  %v9846_v2 = vcombine.low %v9472_v1, %v9473_v42  ;;  %v7557_v48 = vcombine.high %v13566_v29, %v13566_v29  ;;  %v10899_v42 = vpop.f32.mrb[118].mxu0 }
 0x296   :  { %v9814_v39 = vrot.slane %v9798_v30, %v12622_v38  ;;  %v9821_v60 = vrot.slane %v9799_v47, %v12622_v38  ;;  %v9828_v26 = vrot.slane %v9800_v11, %v12622_v38  ;;  %v14056_v12 = vadd.f32 %v13560_v44, %v5803_v20  ;;  %v14092_v47 = vpop.f32.mrb[116].mxu1 }
 0x297   :  { %v8706_v34 = vcombine.low %v8698_v5, %v8705_v40  ;;  %v7564_v14 = vrot.slane %v13566_v29, %v12622_v38  ;;  %v7571_v24 = vrot.slane %v7557_v48, %v12622_v38  ;;  %v14062_v1 = vrot.slane %v8707_v22, %v12622_v38  ;;  %v10900_v40 = vpop.f32.mrb[119].mxu0 }
 0x298   :  { %v9829_v52 = vcombine.low %v14025_v0, %v9814_v39  ;;  %v9830_v8 = vcombine.low %v9821_v60, %v9828_v26  ;;  %v14066_v30 = vrot.slane %v9846_v2, %v12622_v38  ;;  %v5804_v13 = vadd.f32 %v13585_v37, %v13691_v41  ;;  %v11129_v2 = vpop.f32.mrb[117].mxu1 }
 0x299   :  { %v10632_v44 = vpack.c.bf16 %v8706_v34, %v8657_v46  ;;  %v14070_v16 = vadd.f32 %v9413_v21, %v8706_v34  ;;  %v7572_v53 = vcombine.high %v7564_v14, %v7564_v14  ;;  %v7573_v35 = vcombine.high %v7571_v24, %v7571_v24  ;;  %v14665_v21 = vld [vmem:[#allocation35_spill] sm:$0xff]  ;;  %v6558_v34 = vpop.f32.mrb[118].mxu1 }
 0x29a   :  { %v9837_v29 = vrot.slane %v9829_v52, %v12622_v38  ;;  %v9844_v4 = vrot.slane %v9830_v8, %v12622_v38  ;;  %v7580_v22 = vrot.slane %v7564_v14, %v12622_v38  ;;  %v7587_v0 = vrot.slane %v7571_v24, %v12622_v38 }
 0x29b   :  { %10651 = vst [vmem:[%s14514_s5 + $0x30] sm:$0xff] %v10632_v44   ;;  %v7594_v37 = vrot.slane %v7572_v53, %v12622_v38  ;;  %v7601_v41 = vrot.slane %v7573_v35, %v12622_v38  ;;  %v14084_v46 = vadd.f32 %v13587_v3, %v5804_v13  ;;  %v7605_v49 = vcombine.high %v14665_v21, %v14665_v21  ;;  %v11130_v13 = vpop.f32.mrb[119].mxu1 }
 0x29c   :  { %v9845_v19 = vcombine.low %v9837_v29, %v9844_v4  ;;  %v7602_v25 = vcombine.high %v7580_v22, %v7580_v22  ;;  %v7830_v17 = vadd.f32 %v13741_v6, %v7580_v22  ;;  %v7834_v43 = vadd.f32 %v13745_v9, %v7587_v0 }
 0x29d   :  { %v7603_v11 = vcombine.high %v7594_v37, %v7594_v37  ;;  %v7604_v20 = vcombine.high %v7601_v41, %v7601_v41  ;;  %v7831_v5 = vadd.f32 %v13749_v63, %v7594_v37  ;;  %v7835_v3 = vadd.f32 %v13753_v56, %v7601_v41 }
 0x29e   :  { %v9956_v48 = vadd.f32 %v9955_v59, %v9845_v19  ;;  %v7832_v39 = vadd.f32 %v13726_v58, %v7602_v25  ;;  %v9474_v60 = vmul.f32 %v7830_v17, %v7830_v17  ;;  %v9478_v26 = vmul.f32 %v7834_v43, %v7834_v43 }
 0x29f   :  { %v7833_v14 = vadd.f32 %v13732_v7, %v7603_v11  ;;  %v8708_v24 = vcombine.low %v7830_v17, %v7831_v5  ;;  %v8710_v52 = vcombine.low %v7834_v43, %v7835_v3  ;;  %v9475_v8 = vmul.f32 %v7831_v5, %v7831_v5 }
 0x2a0   :  { %v9476_v44 = vmul.f32 %v7832_v39, %v7832_v39  ;;  %v9479_v53 = vmul.f32 %v7835_v3, %v7835_v3  ;;  %v7612_v35 = vrot.slane %v14665_v21, %v12622_v38  ;;  %v7619_v29 = vrot.slane %v7605_v49, %v12622_v38 }
 0x2a1   :  { %v8709_v4 = vcombine.low %v7832_v39, %v7833_v14  ;;  %v8724_v59 = vrot.slane %v8708_v24, %v12622_v38  ;;  %v8738_v22 = vrot.slane %v8710_v52, %v12622_v38  ;;  %v9477_v0 = vmul.f32 %v7833_v14, %v7833_v14 }
 0x2a2   :  { %v9847_v37 = vcombine.low %v9474_v60, %v9475_v8  ;;  %v9849_v41 = vcombine.low %v9478_v26, %v9479_v53  ;;  %v7620_v19 = vcombine.high %v7612_v35, %v7612_v35  ;;  %v7621_v25 = vcombine.high %v7619_v29, %v7619_v29 }
 0x2a3   :  { %v8731_v17 = vrot.slane %v8709_v4, %v12622_v38  ;;  %v8739_v43 = vcombine.low %v14062_v1, %v8724_v59  ;;  %v9848_v42 = vcombine.low %v9476_v44, %v9477_v0  ;;  %v7628_v11 = vrot.slane %v7612_v35, %v12622_v38 }
 0x2a4   :  { %v9863_v21 = vrot.slane %v9847_v37, %v12622_v38  ;;  %v9877_v49 = vrot.slane %v9849_v41, %v12622_v38  ;;  %v7635_v5 = vrot.slane %v7619_v29, %v12622_v38  ;;  %v7642_v3 = vrot.slane %v7620_v19, %v12622_v38 }
 0x2a5   :  { %v8740_v40 = vcombine.low %v8731_v17, %v8738_v22  ;;  %v8747_v2 = vrot.slane %v8739_v43, %v12622_v38  ;;  %v9870_v39 = vrot.slane %v9848_v42, %v12622_v38  ;;  %v7649_v60 = vrot.slane %v7621_v25, %v12622_v38 }
 0x2a6   :  { %v9878_v1 = vcombine.low %v14066_v30, %v9863_v21  ;;  %v7650_v26 = vcombine.high %v7628_v11, %v7628_v11  ;;  %v7651_v34 = vcombine.high %v7635_v5, %v7635_v5  ;;  %v7652_v14 = vcombine.high %v7642_v3, %v7642_v3 }
 0x2a7   :  { %v8754_v24 = vrot.slane %v8740_v40, %v12622_v38  ;;  %v9879_v52 = vcombine.low %v9870_v39, %v9877_v49  ;;  %v7836_v8 = vadd.f32 %v13723_v50, %v7604_v20  ;;  %v7837_v13 = vadd.f32 %v13729_v57, %v7628_v11  ;;  %v14666_v40 = vld [vmem:[#allocation7_spill] sm:$0xff] }
 0x2a8   :  { %v9886_v44 = vrot.slane %v9878_v1, %v12622_v38  ;;  %v7838_v53 = vadd.f32 %v13741_v6, %v7642_v3  ;;  %v7839_v35 = vadd.f32 %v13749_v63, %v7650_v26  ;;  %v7840_v29 = vadd.f32 %v13726_v58, %v7652_v14  ;;  %v14669_v14 = vld [vmem:[#allocation2_spill] sm:$0xff] }
 0x2a9   :  { %v8755_v4 = vcombine.low %v8747_v2, %v8754_v24  ;;  %v9893_v30 = vrot.slane %v9879_v52, %v12622_v38  ;;  %v7841_v59 = vadd.f32 %v13732_v7, %v7635_v5  ;;  %v7842_v22 = vadd.f32 %v13745_v9, %v7649_v60  ;;  %v14667_v2 = vld [vmem:[#allocation9_spill] sm:$0xff]  ;;  %v10493_v60 = vld [vmem:[%s14515_s2] ss:$0 sm:$0xff] }
 0x2aa   :  { %v7843_v0 = vadd.f32 %v13753_v56, %v7651_v34  ;;  %v8756_v50 = vcombine.low %v7836_v8, %v7837_v13  ;;  %v8757_v20 = vcombine.low %v7838_v53, %v7839_v35  ;;  %v9480_v57 = vmul.f32 %v7836_v8, %v7836_v8  ;;  %v14668_v34 = vld [vmem:[#allocation4_spill] sm:$0xff] }
 0x2ab   :  { %v9415_v37 = vadd.f32 %v14070_v16, %v8755_v4  ;;  %v9894_v41 = vcombine.low %v9886_v44, %v9893_v30  ;;  %v8758_v6 = vcombine.low %v7840_v29, %v7841_v59  ;;  %v9481_v19 = vmul.f32 %v7837_v13, %v7837_v13  ;;  %v14670_v44 = vld [vmem:[#allocation11_spill] sm:$0xff] }
 0x2ac   :  { %v8759_v63 = vcombine.low %v7842_v22, %v7843_v0  ;;  %v8766_v58 = vrot.slane %v8756_v50, %v12622_v38  ;;  %v8773_v25 = vrot.slane %v8757_v20, %v12622_v38  ;;  %v9482_v17 = vmul.f32 %v7838_v53, %v7838_v53  ;;  %v14671_v50 = vld [vmem:[#allocation10_spill] sm:$0xff] }
 0x2ad   :  { %v9957_v43 = vadd.f32 %v9956_v48, %v9894_v41  ;;  %v8780_v7 = vrot.slane %v8758_v6, %v12622_v38  ;;  %v9483_v9 = vmul.f32 %v7839_v35, %v7839_v35  ;;  %v9484_v42 = vmul.f32 %v7840_v29, %v7840_v29 }
 0x2ae   :  { %v8787_v56 = vrot.slane %v8759_v63, %v12622_v38  ;;  %v8788_v11 = vcombine.low %v8766_v58, %v8773_v25  ;;  %v9485_v21 = vmul.f32 %v7841_v59, %v7841_v59  ;;  %v9486_v49 = vmul.f32 %v7842_v22, %v7842_v22 }
 0x2af   :  { %v9487_v16 = vmul.f32 %v7843_v0, %v7843_v0  ;;  %v9895_v5 = vcombine.low %v9480_v57, %v9481_v19  ;;  %v9896_v3 = vcombine.low %v9482_v17, %v9483_v9  ;;  %v10874_v39 = vadd.f32 %v14667_v2, %v14666_v40  ;;  %v14672_v57 = vld [vmem:[#allocation5_spill] sm:$0xff] }
 0x2b0   :  { %v8789_v48 = vcombine.low %v8780_v7, %v8787_v56  ;;  %v8796_v1 = vrot.slane %v8788_v11, %v12622_v38  ;;  %v9897_v26 = vcombine.low %v9484_v42, %v9485_v21  ;;  %v10877_v24 = vadd.f32 %v14669_v14, %v14668_v34 }
 0x2b1   :  { %v9898_v52 = vcombine.low %v9486_v49, %v9487_v16  ;;  %v9905_v8 = vrot.slane %v9895_v5, %v12622_v38  ;;  %v9912_v13 = vrot.slane %v9896_v3, %v12622_v38  ;;  %v6367_v53 = vadd.f32 %v10874_v39, %v14670_v44 }
 0x2b2   :  { %v8803_v35 = vrot.slane %v8789_v48, %v12622_v38  ;;  %v9919_v29 = vrot.slane %v9897_v26, %v12622_v38  ;;  %v7086_v30 = vcombine.high %v10493_v60, %v10493_v60  ;;  %v7093_v59 = vrot.slane %v10493_v60, %v12622_v38 }
 0x2b3   :  { %v9926_v22 = vrot.slane %v9898_v52, %v12622_v38  ;;  %v9927_v0 = vcombine.low %v9905_v8, %v9912_v13  ;;  %v6561_v20 = vadd.f32 %v14671_v50, %v6367_v53  ;;  %v14147_v41 = vadd.f32 %v10877_v24, %v14672_v57 }
 0x2b4   :  { %v8804_v6 = vcombine.low %v8796_v1, %v8803_v35  ;;  %v7100_v19 = vrot.slane %v7086_v30, %v12622_v38  ;;  %v7101_v63 = vcombine.high %v7093_v59, %v7093_v59  ;;  %v14151_v58 = vrot.slane %v7093_v59, %v12622_v38 }
 0x2b5   :  { %v9928_v25 = vcombine.low %v9919_v29, %v9926_v22  ;;  %v9935_v17 = vrot.slane %v9927_v0, %v12622_v38  ;;  %v6579_v7 = vcombine.high %v6561_v20, %v6561_v20  ;;  %v6586_v9 = vrot.slane %v6561_v20, %v12622_v38 }
 0x2b6   :  { %v10637_v42 = vpack.c.bf16 %v8804_v6, %v8755_v4  ;;  %v9416_v56 = vadd.f32 %v9415_v37, %v8804_v6  ;;  %v7102_v11 = vcombine.high %v7100_v19, %v7100_v19  ;;  %v14156_v21 = vrot.slane %v7100_v19, %v12622_v38 }
 0x2b7   :  { %v9942_v49 = vrot.slane %v9928_v25, %v12622_v38  ;;  %v6593_v16 = vrot.slane %v6579_v7, %v12622_v38  ;;  %v6594_v5 = vcombine.high %v6586_v9, %v6586_v9  ;;  %v6602_v3 = vrot.slane %v6586_v9, %v12622_v38  ;;  %v14673_v7 = vld [vmem:[#allocation6_spill] sm:$0xff] }
 0x2b8   :  { %10652 = vst [vmem:[%s14514_s5 + $0x38] sm:$0xff] %v10637_v42   ;;  %v9417_v40 = vrot.slane %v9416_v56, 4  ;;  %v14165_v2 = vrot.slane %v7101_v63, %v12622_v38  ;;  %v14168_v4 = vrot.slane %v7102_v11, %v12622_v38  ;;  %v14172_v37 = vcombine.high %v14151_v58, %v14151_v58 }
 0x2b9   :  { %v9943_v39 = vcombine.low %v9935_v17, %v9942_v49  ;;  %v6595_v60 = vcombine.high %v6593_v16, %v6593_v16  ;;  %v6609_v48 = vrot.slane %v6593_v16, %v12622_v38  ;;  %v6616_v1 = vrot.slane %v6594_v5, %v12622_v38 }
 0x2ba   :  { %v9418_v26 = vadd.f32 %v9417_v40, %v9416_v56  ;;  %v6624_v34 = vcombine.high %v6602_v3, %v6602_v3  ;;  %v14178_v14 = vcombine.high %v14156_v21, %v14156_v21  ;;  %v14182_v24 = vcombine.high %v14165_v2, %v14165_v2  ;;  %v14675_v56 = vld [vmem:[#allocation17_spill] sm:$0xff] }
 0x2bb   :  { %v9958_v52 = vadd.f32 %v9957_v43, %v9943_v39  ;;  %v6623_v8 = vrot.slane %v6595_v60, %v12622_v38  ;;  %v6625_v13 = vcombine.high %v6609_v48, %v6609_v48  ;;  %v6626_v44 = vcombine.high %v6616_v1, %v6616_v1 }
 0x2bc   :  { %v9419_v53 = vrot.slane %v9418_v26, 2  ;;  %v14187_v35 = vcombine.high %v14168_v4, %v14168_v4  ;;  %v7143_v29 = vadd.f32 %v14151_v58, %v6602_v3  ;;  %v7144_v30 = vadd.f32 %v14165_v2, %v6616_v1 }
 0x2bd   :  { %v9959_v59 = vrot.slane %v9958_v52, 4  ;;  %v6627_v22 = vcombine.high %v6623_v8, %v6623_v8  ;;  %v7145_v0 = vadd.f32 %v14172_v37, %v6624_v34  ;;  %v7146_v50 = vadd.f32 %v14182_v24, %v6626_v44 }
 0x2be   :  { %v9420_v43 = vadd.f32 %v9419_v53, %v9418_v26  ;;  %v7147_v20 = vadd.f32 %v14156_v21, %v6609_v48  ;;  %v7148_v57 = vadd.f32 %v14168_v4, %v6623_v8  ;;  %v7149_v6 = vadd.f32 %v14178_v14, %v6625_v13 }
 0x2bf   :  { %v9960_v19 = vadd.f32 %v9959_v59, %v9958_v52  ;;  %v7150_v63 = vadd.f32 %v14187_v35, %v6627_v22  ;;  %v7908_v25 = vcombine.low %v7143_v29, %v7144_v30  ;;  %v7909_v17 = vcombine.low %v7145_v0, %v7146_v50 }
 0x2c0   :  { %v14674_v9 = vrot.slane %v14673_v7, 1  ;;  %v14676_v11 = vrot.slane %v14675_v56, 1  ;;  %v9421_v16 = vrot.slane %v9420_v43, 1  ;;  %v7910_v5 = vcombine.low %v7147_v20, %v7148_v57 }
 0x2c1   :  { %v9961_v3 = vrot.slane %v9960_v19, 2  ;;  %v7911_v40 = vcombine.low %v7149_v6, %v7150_v63  ;;  %v7925_v39 = vrot.slane %v7909_v17, %v12622_v38  ;;  %v8869_v60 = vmul.f32 %v7144_v30, %v7144_v30 }
 0x2c2   :  { %v4452_v42 = vadd.f32 %v14674_v9, %v14673_v7  ;;  %v4994_v49 = vadd.f32 %v14676_v11, %v14675_v56  ;;  %v9422_v48 = vadd.f32 %v9421_v16, %v9420_v43  ;;  %v7918_v1 = vrot.slane %v7908_v25, %v12622_v38 }
 0x2c3   :  { %v8868_v26 = vmul.f32 %v7143_v29, %v7143_v29  ;;  %v8871_v34 = vmul.f32 %v7146_v50, %v7146_v50  ;;  %v9962_v52 = vadd.f32 %v9961_v3, %v9960_v19  ;;  %v7939_v8 = vrot.slane %v7911_v40, %v12622_v38  ;;  %v14677_v29 = vld [vmem:[#allocation14_spill] sm:$0xff] }
 0x2c4   :  { %v8870_v13 = vmul.f32 %v7145_v0, %v7145_v0  ;;  %v8872_v44 = vmul.f32 %v7147_v20, %v7147_v20  ;;  %v14206_v53 = vadd.f32 %v9422_v48, %v4452_v42  ;;  %v8873_v59 = vmul.f32 %v7148_v57, %v7148_v57  ;;  %v14678_v20 = vld [vmem:[#allocation25_spill] sm:$0xff]  ;;  %v14679_v42 = vld [vmem:[#allocation27_spill] sm:$0xff] }
 0x2c5   :  { %v8874_v22 = vmul.f32 %v7149_v6, %v7149_v6  ;;  %v8875_v7 = vmul.f32 %v7150_v63, %v7150_v63  ;;  %v9963_v9 = vrot.slane %v9962_v52, 1  ;;  %v7932_v56 = vrot.slane %v7910_v5, %v12622_v38  ;;  %v14681_v48 = vld [vmem:[#allocation29_spill] sm:$0xff] }
 0x2c6   :  { %v7940_v17 = vcombine.low %v7918_v1, %v7925_v39  ;;  %v8996_v30 = vcombine.low %v8868_v26, %v8869_v60  ;;  %v8997_v43 = vcombine.low %v8870_v13, %v8871_v34  ;;  %v8998_v11 = vcombine.low %v8872_v44, %v8873_v59  ;;  %v14680_v60 = vld [vmem:[#allocation16_spill] sm:$0xff] }
 0x2c7   :  { %v8999_v25 = vcombine.low %v8874_v22, %v8875_v7  ;;  %v6562_v50 = vadd.f32 %v14677_v29, %v14147_v41  ;;  %v9964_v19 = vadd.f32 %v9963_v9, %v9962_v52  ;;  %v7941_v16 = vcombine.low %v7932_v56, %v7939_v8  ;;  %v14682_v8 = vld [vmem:[#allocation26_spill] sm:$0xff]  ;;  %v14684_v29 = vld [vmem:[#allocation8_spill] sm:$0xff] }
 0x2c8   :  { %v9006_v0 = vrot.slane %v8996_v30, %v12622_v38  ;;  %v10880_v57 = vadd.f32 %v14679_v42, %v14678_v20  ;;  %v9013_v6 = vrot.slane %v8997_v43, %v12622_v38  ;;  %v9020_v63 = vrot.slane %v8998_v11, %v12622_v38  ;;  %v14683_v11 = vld [vmem:[#allocation28_spill] sm:$0xff] }
 0x2c9   :  { %v9027_v5 = vrot.slane %v8999_v25, %v12622_v38  ;;  %v6628_v3 = vcombine.high %v6562_v50, %v6562_v50  ;;  %v14217_v40 = vadd.f32 %v9964_v19, %v4994_v49  ;;  %v7948_v39 = vrot.slane %v7940_v17, %v12622_v38 }
 0x2ca   :  { %v6635_v41 = vrot.slane %v6562_v50, %v12622_v38  ;;  %v10883_v1 = vadd.f32 %v14681_v48, %v14680_v60  ;;  %v9028_v26 = vcombine.low %v9006_v0, %v9013_v6  ;;  %v6369_v13 = vadd.f32 %v10880_v57, %v14682_v8 }
 0x2cb   :  { %v9029_v34 = vcombine.low %v9020_v63, %v9027_v5  ;;  %v6642_v52 = vrot.slane %v6628_v3, %v12622_v38  ;;  %v14229_v49 = vadd.f32 %v13871_v10, %v13866_v54  ;;  %v7955_v0 = vrot.slane %v7941_v16, %v12622_v38 }
 0x2cc   :  { %v6643_v44 = vcombine.high %v6635_v41, %v6635_v41  ;;  %v6651_v59 = vrot.slane %v6635_v41, %v12622_v38  ;;  %v6370_v22 = vadd.f32 %v10883_v1, %v13862_v28  ;;  %v14232_v7 = vrot.slane %v9028_v26, %v12622_v38 }
 0x2cd   :  { %v14235_v9 = vrot.slane %v9029_v34, %v12622_v38  ;;  %v6644_v56 = vcombine.high %v6642_v52, %v6642_v52  ;;  %v6658_v17 = vrot.slane %v6642_v52, %v12622_v38  ;;  %v6563_v25 = vadd.f32 %v14683_v11, %v6369_v13 }
 0x2ce   :  { %v6665_v30 = vrot.slane %v6643_v44, %v12622_v38  ;;  %v6673_v43 = vcombine.high %v6651_v59, %v6651_v59  ;;  %v14241_v28 = vadd.f32 %v14684_v29, %v6370_v22 }
 0x2cf   :  { %v9044_v54 = vcombine.low %v14232_v7, %v14235_v9  ;;  %v6672_v10 = vrot.slane %v6644_v56, %v12622_v38  ;;  %v6674_v50 = vcombine.high %v6658_v17, %v6658_v17  ;;  %v7154_v19 = vadd.f32 %v14182_v24, %v6658_v17 }
 0x2d0   :  { %v6675_v20 = vcombine.high %v6665_v30, %v6665_v30  ;;  %v7151_v42 = vadd.f32 %v14151_v58, %v6665_v30  ;;  %v7152_v57 = vadd.f32 %v14165_v2, %v6673_v43  ;;  %v6677_v3 = vcombine.high %v6563_v25, %v6563_v25 }
 0x2d1   :  { %v6676_v6 = vcombine.high %v6672_v10, %v6672_v10  ;;  %v7155_v63 = vadd.f32 %v14156_v21, %v6672_v10  ;;  %v7156_v5 = vadd.f32 %v14168_v4, %v6674_v50  ;;  %v8879_v26 = vmul.f32 %v7154_v19, %v7154_v19 }
 0x2d2   :  { %v7153_v41 = vadd.f32 %v14172_v37, %v6675_v20  ;;  %v7957_v60 = vcombine.low %v7151_v42, %v7152_v57  ;;  %v8876_v48 = vmul.f32 %v7151_v42, %v7151_v42  ;;  %v8877_v1 = vmul.f32 %v7152_v57, %v7152_v57 }
 0x2d3   :  { %v8880_v34 = vmul.f32 %v7155_v63, %v7155_v63  ;;  %v8881_v52 = vmul.f32 %v7156_v5, %v7156_v5  ;;  %v6684_v16 = vrot.slane %v6563_v25, %v12622_v38  ;;  %v7959_v13 = vcombine.low %v7155_v63, %v7156_v5 }
 0x2d4   :  { %v7958_v8 = vcombine.low %v7153_v41, %v7154_v19  ;;  %v8878_v44 = vmul.f32 %v7153_v41, %v7153_v41  ;;  %v9045_v59 = vcombine.low %v8876_v48, %v8877_v1  ;;  %v6691_v56 = vrot.slane %v6677_v3, %v12622_v38 }
 0x2d5   :  { %v9047_v22 = vcombine.low %v8880_v34, %v8881_v52  ;;  %v6692_v17 = vcombine.high %v6684_v16, %v6684_v16  ;;  %v6700_v30 = vrot.slane %v6684_v16, %v12622_v38  ;;  %v7967_v43 = vrot.slane %v7957_v60, %v12622_v38 }
 0x2d6   :  { %v7974_v11 = vrot.slane %v7958_v8, %v12622_v38  ;;  %v9046_v29 = vcombine.low %v8878_v44, %v8879_v26  ;;  %v7157_v10 = vadd.f32 %v14178_v14, %v6676_v6  ;;  %v6693_v50 = vcombine.high %v6691_v56, %v6691_v56 }
 0x2d7   :  { %v6707_v25 = vrot.slane %v6691_v56, %v12622_v38  ;;  %v6714_v19 = vrot.slane %v6692_v17, %v12622_v38  ;;  %v6722_v20 = vcombine.high %v6700_v30, %v6700_v30  ;;  %v9055_v57 = vrot.slane %v9045_v59, %v12622_v38 }
 0x2d8   :  { %v7989_v42 = vcombine.low %v7967_v43, %v7974_v11  ;;  %v9062_v63 = vrot.slane %v9046_v29, %v12622_v38  ;;  %v7158_v5 = vadd.f32 %v14187_v35, %v6700_v30  ;;  %v7956_v3 = vcombine.low %v7948_v39, %v7955_v0 }
 0x2d9   :  { %v6721_v41 = vrot.slane %v6693_v50, %v12622_v38  ;;  %v6723_v60 = vcombine.high %v6707_v25, %v6707_v25  ;;  %v6724_v48 = vcombine.high %v6714_v19, %v6714_v19  ;;  %v7159_v6 = vadd.f32 %v14151_v58, %v6722_v20 }
 0x2da   :  { %v9077_v1 = vcombine.low %v9055_v57, %v9062_v63  ;;  %v7960_v26 = vcombine.low %v7157_v10, %v7158_v5  ;;  %v7981_v34 = vrot.slane %v7959_v13, %v12622_v38  ;;  %v7161_v8 = vadd.f32 %v14172_v37, %v6707_v25 }
 0x2db   :  { %v6725_v52 = vcombine.high %v6721_v41, %v6721_v41  ;;  %v7160_v16 = vadd.f32 %v14165_v2, %v6724_v48  ;;  %v7162_v44 = vadd.f32 %v14182_v24, %v6721_v41  ;;  %v7997_v59 = vrot.slane %v7989_v42, %v12622_v38 }
 0x2dc   :  { %v7988_v39 = vrot.slane %v7960_v26, %v12622_v38  ;;  %v8882_v0 = vmul.f32 %v7157_v10, %v7157_v10  ;;  %v8883_v56 = vmul.f32 %v7158_v5, %v7158_v5  ;;  %v7163_v17 = vadd.f32 %v14156_v21, %v6723_v60 }
 0x2dd   :  { %v7164_v30 = vadd.f32 %v14168_v4, %v6725_v52  ;;  %v8006_v43 = vcombine.low %v7159_v6, %v7160_v16  ;;  %v8007_v11 = vcombine.low %v7161_v8, %v7162_v44  ;;  %v9085_v13 = vrot.slane %v9077_v1, %v12622_v38 }
 0x2de   :  { %v7990_v29 = vcombine.low %v7981_v34, %v7988_v39  ;;  %v8885_v50 = vmul.f32 %v7160_v16, %v7160_v16  ;;  %v8887_v19 = vmul.f32 %v7162_v44, %v7162_v44  ;;  %v8884_v42 = vmul.f32 %v7159_v6, %v7159_v6 }
 0x2df   :  { %v8008_v25 = vcombine.low %v7163_v17, %v7164_v30  ;;  %v14276_v20 = vrot.slane %v8006_v43, %v12622_v38  ;;  %v8886_v57 = vmul.f32 %v7161_v8, %v7161_v8  ;;  %v8023_v63 = vrot.slane %v8007_v11, %v12622_v38 }
 0x2e0   :  { %v8004_v10 = vrot.slane %v7990_v29, %v12622_v38  ;;  %v8889_v5 = vmul.f32 %v7164_v30, %v7164_v30  ;;  %v9048_v41 = vcombine.low %v8882_v0, %v8883_v56  ;;  %v8888_v60 = vmul.f32 %v7163_v17, %v7163_v17 }
 0x2e1   :  { %v9094_v48 = vcombine.low %v8884_v42, %v8885_v50  ;;  %v9095_v26 = vcombine.low %v8886_v57, %v8887_v19  ;;  %v6726_v1 = vcombine.high %v14241_v28, %v14241_v28  ;;  %v9069_v52 = vrot.slane %v9047_v22, %v12622_v38 }
 0x2e2   :  { %v8005_v34 = vcombine.low %v7997_v59, %v8004_v10  ;;  %v9076_v16 = vrot.slane %v9048_v41, %v12622_v38  ;;  %v6733_v6 = vrot.slane %v14241_v28, %v12622_v38  ;;  %v9096_v8 = vcombine.low %v8888_v60, %v8889_v5 }
 0x2e3   :  { %v9104_v44 = vrot.slane %v9094_v48, %v12622_v38  ;;  %v9111_v39 = vrot.slane %v9095_v26, %v12622_v38  ;;  %v6740_v0 = vrot.slane %v6726_v1, %v12622_v38  ;;  %v8038_v59 = vcombine.low %v14276_v20, %v8023_v63 }
 0x2e4   :  { %v10602_v56 = vpack.c.bf16 %v8005_v34, %v7956_v3  ;;  %v14289_v17 = vadd.f32 %v8005_v34, %v7956_v3  ;;  %v9078_v30 = vcombine.low %v9069_v52, %v9076_v16  ;;  %v6741_v43 = vcombine.high %v6733_v6, %v6733_v6 }
 0x2e5   :  { %v6742_v22 = vcombine.high %v6740_v0, %v6740_v0  ;;  %v6749_v11 = vrot.slane %v6733_v6, %v12622_v38  ;;  %v6756_v29 = vrot.slane %v6740_v0, %v12622_v38  ;;  %v9126_v50 = vcombine.low %v9104_v44, %v9111_v39 }
 0x2e6   :  { %10645 = vst [vmem:[%s14516_s4 + $0x20] sm:$0xff] %v10602_v56   ;;  %v9092_v28 = vrot.slane %v9078_v30, %v12622_v38  ;;  %v6763_v19 = vrot.slane %v6741_v43, %v12622_v38  ;;  %v8030_v3 = vrot.slane %v8008_v25, %v12622_v38  ;;  %v9118_v10 = vrot.slane %v9096_v8, %v12622_v38 }
 0x2e7   :  { %v6770_v42 = vrot.slane %v6742_v22, %v12622_v38  ;;  %v6771_v57 = vcombine.high %v6756_v29, %v6756_v29  ;;  %v7165_v20 = vadd.f32 %v14178_v14, %v6749_v11  ;;  %v7168_v60 = vadd.f32 %v14165_v2, %v6756_v29 }
 0x2e8   :  { %v9093_v63 = vcombine.low %v9085_v13, %v9092_v28  ;;  %v6772_v5 = vcombine.high %v6763_v19, %v6763_v19  ;;  %v7166_v41 = vadd.f32 %v14187_v35, %v6763_v19  ;;  %v10889_v7 = vadd.f32 %v13886_v51, %v13879_v33 }
 0x2e9   :  { %v6773_v48 = vcombine.high %v6770_v42, %v6770_v42  ;;  %v7169_v26 = vadd.f32 %v14172_v37, %v6770_v42  ;;  %v7170_v1 = vadd.f32 %v14182_v24, %v6771_v57  ;;  %v8890_v34 = vmul.f32 %v7165_v20, %v7165_v20 }
 0x2ea   :  { %v9396_v25 = vadd.f32 %v9093_v63, %v9044_v54  ;;  %v7167_v52 = vadd.f32 %v14151_v58, %v6772_v5  ;;  %v8009_v16 = vcombine.low %v7165_v20, %v7166_v41  ;;  %v8891_v6 = vmul.f32 %v7166_v41, %v7166_v41 }
 0x2eb   :  { %v8056_v13 = vcombine.low %v7169_v26, %v7170_v1  ;;  %v8893_v8 = vmul.f32 %v7168_v60, %v7168_v60  ;;  %v8894_v44 = vmul.f32 %v7169_v26, %v7169_v26  ;;  %v8895_v39 = vmul.f32 %v7170_v1, %v7170_v1 }
 0x2ec   :  { %v8037_v0 = vrot.slane %v8009_v16, %v12622_v38  ;;  %v8055_v56 = vcombine.low %v7167_v52, %v7168_v60  ;;  %v8892_v30 = vmul.f32 %v7167_v52, %v7167_v52  ;;  %v9097_v43 = vcombine.low %v8890_v34, %v8891_v6 }
 0x2ed   :  { %v8072_v22 = vrot.slane %v8056_v13, %v12622_v38  ;;  %v9144_v11 = vcombine.low %v8894_v44, %v8895_v39  ;;  %v6371_v9 = vadd.f32 %v14229_v49, %v13898_v23  ;;  %v8046_v42 = vrot.slane %v8038_v59, %v12622_v38 }
 0x2ee   :  { %v8039_v54 = vcombine.low %v8030_v3, %v8037_v0  ;;  %v8065_v29 = vrot.slane %v8055_v56, %v12622_v38  ;;  %v9125_v28 = vrot.slane %v9097_v43, %v12622_v38  ;;  %v9143_v19 = vcombine.low %v8892_v30, %v8893_v8 }
 0x2ef   :  { %v6565_v57 = vadd.f32 %v13915_v15, %v6371_v9  ;;  %v7171_v20 = vadd.f32 %v14156_v21, %v6773_v48  ;;  %v6372_v63 = vadd.f32 %v10889_v7, %v13967_v27  ;;  %v9134_v5 = vrot.slane %v9126_v50, %v12622_v38 }
 0x2f0   :  { %v8053_v33 = vrot.slane %v8039_v54, %v12622_v38  ;;  %v8087_v51 = vcombine.low %v8065_v29, %v8072_v22  ;;  %v9127_v23 = vcombine.low %v9118_v10, %v9125_v28  ;;  %v9160_v49 = vrot.slane %v9144_v11, %v12622_v38 }
 0x2f1   :  { %v6774_v3 = vcombine.high %v6565_v57, %v6565_v57  ;;  %v6781_v41 = vrot.slane %v6565_v57, %v12622_v38  ;;  %v6566_v60 = vadd.f32 %v13928_v62, %v6372_v63  ;;  %v9153_v48 = vrot.slane %v9143_v19, %v12622_v38 }
 0x2f2   :  { %v14328_v59 = vcombine.low %v8046_v42, %v8053_v33  ;;  %v9141_v15 = vrot.slane %v9127_v23, %v12622_v38  ;;  %v8896_v27 = vmul.f32 %v7171_v20, %v7171_v20  ;;  %v8095_v34 = vrot.slane %v8087_v51, %v12622_v38 }
 0x2f3   :  { %v6788_v50 = vrot.slane %v6774_v3, %v12622_v38  ;;  %v6789_v26 = vcombine.high %v6781_v41, %v6781_v41  ;;  %v6797_v1 = vrot.slane %v6781_v41, %v12622_v38  ;;  %v6822_v10 = vcombine.high %v6566_v60, %v6566_v60 }
 0x2f4   :  { %v8855_v52 = vadd.f32 %v14289_v17, %v14328_v59  ;;  %v9142_v16 = vcombine.low %v9134_v5, %v9141_v15  ;;  %v6829_v62 = vrot.slane %v6566_v60, %v12622_v38  ;;  %v9175_v39 = vcombine.low %v9153_v48, %v9160_v49 }
 0x2f5   :  { %v6790_v6 = vcombine.high %v6788_v50, %v6788_v50  ;;  %v6804_v13 = vrot.slane %v6788_v50, %v12622_v38  ;;  %v6811_v8 = vrot.slane %v6789_v26, %v12622_v38  ;;  %v6819_v44 = vcombine.high %v6797_v1, %v6797_v1 }
 0x2f6   :  { %v14340_v0 = vadd.f32 %v9396_v25, %v9142_v16  ;;  %v7172_v56 = vadd.f32 %v14168_v4, %v6797_v1  ;;  %v6836_v30 = vrot.slane %v6822_v10, %v12622_v38  ;;  %v6837_v29 = vcombine.high %v6829_v62, %v6829_v62 }
 0x2f7   :  { %v6818_v43 = vrot.slane %v6790_v6, %v12622_v38  ;;  %v6820_v22 = vcombine.high %v6804_v13, %v6804_v13  ;;  %v7173_v17 = vadd.f32 %v14178_v14, %v6811_v8  ;;  %v7174_v11 = vadd.f32 %v14187_v35, %v6819_v44 }
 0x2f8   :  { %v7175_v7 = vadd.f32 %v14151_v58, %v6804_v13  ;;  %v8057_v9 = vcombine.low %v7171_v20, %v7172_v56  ;;  %v8897_v54 = vmul.f32 %v7172_v56, %v7172_v56  ;;  %v6838_v33 = vcombine.high %v6836_v30, %v6836_v30 }
 0x2f9   :  { %v6821_v28 = vcombine.high %v6818_v43, %v6818_v43  ;;  %v7176_v25 = vadd.f32 %v14165_v2, %v6818_v43  ;;  %v7177_v19 = vadd.f32 %v14172_v37, %v6820_v22  ;;  %v8058_v42 = vcombine.low %v7173_v17, %v7174_v11 }
 0x2fa   :  { %v8079_v57 = vrot.slane %v8057_v9, %v12622_v38  ;;  %v8898_v63 = vmul.f32 %v7173_v17, %v7173_v17  ;;  %v8899_v5 = vmul.f32 %v7174_v11, %v7174_v11  ;;  %v8900_v49 = vmul.f32 %v7175_v7, %v7175_v7 }
 0x2fb   :  { %v7178_v51 = vadd.f32 %v14182_v24, %v6821_v28  ;;  %v8086_v23 = vrot.slane %v8058_v42, %v12622_v38  ;;  %v8901_v3 = vmul.f32 %v7176_v25, %v7176_v25  ;;  %v8104_v20 = vcombine.low %v7175_v7, %v7176_v25 }
 0x2fc   :  { %v9145_v41 = vcombine.low %v8896_v27, %v8897_v54  ;;  %v9146_v60 = vcombine.low %v8898_v63, %v8899_v5  ;;  %v6845_v15 = vrot.slane %v6829_v62, %v12622_v38  ;;  %v8902_v26 = vmul.f32 %v7177_v19, %v7177_v19 }
 0x2fd   :  { %v8088_v48 = vcombine.low %v8079_v57, %v8086_v23  ;;  %v8105_v50 = vcombine.low %v7177_v19, %v7178_v51  ;;  %v8903_v1 = vmul.f32 %v7178_v51, %v7178_v51  ;;  %v9192_v6 = vcombine.low %v8900_v49, %v8901_v3 }
 0x2fe   :  { %v9167_v10 = vrot.slane %v9145_v41, %v12622_v38  ;;  %v9174_v16 = vrot.slane %v9146_v60, %v12622_v38  ;;  %v6852_v13 = vrot.slane %v6836_v30, %v12622_v38  ;;  %v6859_v27 = vrot.slane %v6837_v29, %v12622_v38 }
 0x2ff   :  { %v8102_v8 = vrot.slane %v8088_v48, %v12622_v38  ;;  %v8121_v44 = vrot.slane %v8105_v50, %v12622_v38  ;;  %v9193_v56 = vcombine.low %v8902_v26, %v8903_v1  ;;  %v9183_v62 = vrot.slane %v9175_v39, %v12622_v38 }
 0x300   :  { %v9176_v43 = vcombine.low %v9167_v10, %v9174_v16  ;;  %v6867_v22 = vcombine.high %v6845_v15, %v6845_v15  ;;  %v8114_v11 = vrot.slane %v8104_v20, %v12622_v38  ;;  %v6866_v7 = vrot.slane %v6838_v33, %v12622_v38 }
 0x301   :  { %v8103_v17 = vcombine.low %v8095_v34, %v8102_v8  ;;  %v6868_v9 = vcombine.high %v6852_v13, %v6852_v13  ;;  %v9202_v30 = vrot.slane %v9192_v6, %v12622_v38  ;;  %v6869_v28 = vcombine.high %v6859_v27, %v6859_v27 }
 0x302   :  { %v9190_v54 = vrot.slane %v9176_v43, %v12622_v38  ;;  %v7179_v25 = vadd.f32 %v14156_v21, %v6845_v15  ;;  %v8136_v19 = vcombine.low %v8114_v11, %v8121_v44  ;;  %v9209_v39 = vrot.slane %v9193_v56, %v12622_v38 }
 0x303   :  { %v10607_v29 = vpack.c.bf16 %v8103_v17, %v14328_v59  ;;  %v8856_v42 = vadd.f32 %v8855_v52, %v8103_v17  ;;  %v7180_v34 = vadd.f32 %v14168_v4, %v6859_v27  ;;  %v7181_v63 = vadd.f32 %v14178_v14, %v6867_v22 }
 0x304   :  { %v9191_v57 = vcombine.low %v9183_v62, %v9190_v54  ;;  %v7182_v5 = vadd.f32 %v14187_v35, %v6869_v28  ;;  %v6870_v33 = vcombine.high %v6866_v7, %v6866_v7  ;;  %v7183_v51 = vadd.f32 %v14151_v58, %v6866_v7  ;;  %v14687_v28 = vld [vmem:[#allocation12_spill] sm:$0xff] }
 0x305   :  { %10646 = vst [vmem:[%s14516_s4 + $0x28] sm:$0xff] %v10607_v29   ;;  %v7184_v23 = vadd.f32 %v14165_v2, %v6868_v9  ;;  %v8904_v59 = vmul.f32 %v7179_v25, %v7179_v25  ;;  %v8106_v49 = vcombine.low %v7179_v25, %v7180_v34  ;;  %v8905_v20 = vmul.f32 %v7180_v34, %v7180_v34  ;;  %v14686_v9 = vld [vmem:[#allocation20_spill] sm:$0xff] }
 0x306   :  { %v9398_v52 = vadd.f32 %v14340_v0, %v9191_v57  ;;  %v8107_v3 = vcombine.low %v7181_v63, %v7182_v5  ;;  %v9224_v41 = vcombine.low %v9202_v30, %v9209_v39  ;;  %v8906_v60 = vmul.f32 %v7181_v63, %v7181_v63 }
 0x307   :  { %v8907_v15 = vmul.f32 %v7182_v5, %v7182_v5  ;;  %v8908_v48 = vmul.f32 %v7183_v51, %v7183_v51  ;;  %v8128_v50 = vrot.slane %v8106_v49, %v12622_v38  ;;  %v8909_v1 = vmul.f32 %v7184_v23, %v7184_v23 }
 0x308   :  { %v8135_v26 = vrot.slane %v8107_v3, %v12622_v38  ;;  %v9194_v10 = vcombine.low %v8904_v59, %v8905_v20  ;;  %v8144_v16 = vrot.slane %v8136_v19, %v12622_v38  ;;  %v10892_v13 = vadd.f32 %v13976_v45, %v13971_v31 }
 0x309   :  { %v9195_v6 = vcombine.low %v8906_v60, %v8907_v15  ;;  %v10895_v0 = vadd.f32 %v14020_v61, %v14013_v32  ;;  %v8153_v44 = vcombine.low %v7183_v51, %v7184_v23  ;;  %v9241_v27 = vcombine.low %v8908_v48, %v8909_v1  ;;  %v14685_v61 = vld [vmem:[#allocation23_spill] sm:$0xff] }
 0x30a   :  { %v8137_v8 = vcombine.low %v8128_v50, %v8135_v26  ;;  %v9216_v56 = vrot.slane %v9194_v10, %v12622_v38  ;;  %v6373_v43 = vadd.f32 %v10892_v13, %v13997_v55  ;;  %v10898_v17 = vadd.f32 %v14088_v18, %v14076_v36 }
 0x30b   :  { %v9223_v62 = vrot.slane %v9195_v6, %v12622_v38  ;;  %v6374_v22 = vadd.f32 %v10895_v0, %v14056_v12  ;;  %v9232_v11 = vrot.slane %v9224_v41, %v12622_v38  ;;  %v7185_v45 = vadd.f32 %v14172_v37, %v6870_v33 }
 0x30c   :  { %v8151_v31 = vrot.slane %v8137_v8, %v12622_v38  ;;  %v6567_v7 = vadd.f32 %v14685_v61, %v6373_v43  ;;  %v6375_v30 = vadd.f32 %v10898_v17, %v14084_v46  ;;  %v3891_v55 = vrot.slane %v14687_v28, 4 }
 0x30d   :  { %v9225_v32 = vcombine.low %v9216_v56, %v9223_v62  ;;  %v6568_v54 = vadd.f32 %v14686_v9, %v6374_v22  ;;  %v8163_v12 = vrot.slane %v8153_v44, %v12622_v38  ;;  %v14401_v36 = vrot.slane %v9241_v27, %v12622_v38 }
 0x30e   :  { %v14397_v25 = vcombine.low %v8144_v16, %v8151_v31  ;;  %v6871_v19 = vcombine.high %v6567_v7, %v6567_v7  ;;  %v6878_v29 = vrot.slane %v6567_v7, %v12622_v38  ;;  %v8910_v34 = vmul.f32 %v7185_v45, %v7185_v45 }
 0x30f   :  { %v9239_v18 = vrot.slane %v9225_v32, %v12622_v38  ;;  %v6920_v39 = vcombine.high %v6568_v54, %v6568_v54  ;;  %v6927_v46 = vrot.slane %v6568_v54, %v12622_v38  ;;  %v14410_v63 = vadd.f32 %v14092_v47, %v6375_v30 }
 0x310   :  { %v14406_v57 = vadd.f32 %v8856_v42, %v14397_v25  ;;  %v6885_v33 = vrot.slane %v6871_v19, %v12622_v38  ;;  %v6886_v51 = vcombine.high %v6878_v29, %v6878_v29  ;;  %v6894_v23 = vrot.slane %v6878_v29, %v12622_v38 }
 0x311   :  { %v9240_v5 = vcombine.low %v9232_v11, %v9239_v18  ;;  %v6934_v59 = vrot.slane %v6920_v39, %v12622_v38  ;;  %v6935_v49 = vcombine.high %v6927_v46, %v6927_v46  ;;  %v6943_v3 = vrot.slane %v6927_v46, %v12622_v38 }
 0x312   :  { %v6968_v42 = vcombine.high %v14410_v63, %v14410_v63  ;;  %v6887_v41 = vcombine.high %v6885_v33, %v6885_v33  ;;  %v6901_v47 = vrot.slane %v6885_v33, %v12622_v38  ;;  %v6908_v60 = vrot.slane %v6886_v51, %v12622_v38 }
 0x313   :  { %v14418_v20 = vadd.f32 %v9398_v52, %v9240_v5  ;;  %v6916_v15 = vcombine.high %v6894_v23, %v6894_v23  ;;  %v7186_v48 = vadd.f32 %v14182_v24, %v6894_v23  ;;  %v6936_v50 = vcombine.high %v6934_v59, %v6934_v59 }
 0x314   :  { %v6950_v26 = vrot.slane %v6934_v59, %v12622_v38  ;;  %v6915_v1 = vrot.slane %v6887_v41, %v12622_v38  ;;  %v6917_v10 = vcombine.high %v6901_v47, %v6901_v47  ;;  %v6918_v16 = vcombine.high %v6908_v60, %v6908_v60 }
 0x315   :  { %v7187_v6 = vadd.f32 %v14156_v21, %v6908_v60  ;;  %v7188_v52 = vadd.f32 %v14168_v4, %v6916_v15  ;;  %v7190_v13 = vadd.f32 %v14187_v35, %v6901_v47  ;;  %v8154_v0 = vcombine.low %v7185_v45, %v7186_v48 }
 0x316   :  { %v8911_v8 = vmul.f32 %v7186_v48, %v7186_v48  ;;  %v6919_v44 = vcombine.high %v6915_v1, %v6915_v1  ;;  %v7189_v56 = vadd.f32 %v14178_v14, %v6918_v16  ;;  %v7191_v27 = vadd.f32 %v14151_v58, %v6917_v10 }
 0x317   :  { %v8912_v62 = vmul.f32 %v7187_v6, %v7187_v6  ;;  %v8155_v43 = vcombine.low %v7187_v6, %v7188_v52  ;;  %v8170_v22 = vrot.slane %v8154_v0, %v12622_v38  ;;  %v8913_v17 = vmul.f32 %v7188_v52, %v7188_v52 }
 0x318   :  { %v8915_v11 = vmul.f32 %v7190_v13, %v7190_v13  ;;  %v7192_v31 = vadd.f32 %v14165_v2, %v6919_v44  ;;  %v8156_v32 = vcombine.low %v7189_v56, %v7190_v13  ;;  %v8914_v61 = vmul.f32 %v7189_v56, %v7189_v56 }
 0x319   :  { %v8916_v7 = vmul.f32 %v7191_v27, %v7191_v27  ;;  %v8177_v9 = vrot.slane %v8155_v43, %v12622_v38  ;;  %v8185_v45 = vcombine.low %v8163_v12, %v8170_v22  ;;  %v9242_v54 = vcombine.low %v8910_v34, %v8911_v8 }
 0x31a   :  { %v9243_v30 = vcombine.low %v8912_v62, %v8913_v17  ;;  %v8184_v18 = vrot.slane %v8156_v32, %v12622_v38  ;;  %v8202_v19 = vcombine.low %v7191_v27, %v7192_v31  ;;  %v8917_v29 = vmul.f32 %v7192_v31, %v7192_v31 }
 0x31b   :  { %v9244_v39 = vcombine.low %v8914_v61, %v8915_v11  ;;  %v8193_v46 = vrot.slane %v8185_v45, %v12622_v38  ;;  %v9258_v5 = vrot.slane %v9242_v54, %v12622_v38  ;;  %v6957_v51 = vrot.slane %v6935_v49, %v12622_v38 }
 0x31c   :  { %v9265_v33 = vrot.slane %v9243_v30, %v12622_v38  ;;  %v8186_v23 = vcombine.low %v8177_v9, %v8184_v18  ;;  %v9290_v41 = vcombine.low %v8916_v7, %v8917_v29  ;;  %v6964_v12 = vrot.slane %v6936_v50, %v12622_v38 }
 0x31d   :  { %v9272_v59 = vrot.slane %v9244_v39, %v12622_v38  ;;  %v9273_v34 = vcombine.low %v14401_v36, %v9258_v5  ;;  %v6965_v47 = vcombine.high %v6943_v3, %v6943_v3  ;;  %v6966_v60 = vcombine.high %v6957_v51, %v6957_v51 }
 0x31e   :  { %v7193_v15 = vadd.f32 %v14172_v37, %v6943_v3  ;;  %v8200_v48 = vrot.slane %v8186_v23, %v12622_v38  ;;  %v6967_v10 = vcombine.high %v6964_v12, %v6964_v12  ;;  %v7194_v16 = vadd.f32 %v14182_v24, %v6957_v51 }
 0x31f   :  { %v9274_v1 = vcombine.low %v9265_v33, %v9272_v59  ;;  %v9281_v49 = vrot.slane %v9273_v34, %v12622_v38  ;;  %v7195_v6 = vadd.f32 %v14156_v21, %v6965_v47  ;;  %v7196_v52 = vadd.f32 %v14168_v4, %v6966_v60 }
 0x320   :  { %v7197_v50 = vadd.f32 %v14178_v14, %v6950_v26  ;;  %v8201_v13 = vcombine.low %v8193_v46, %v8200_v48  ;;  %v7198_v0 = vadd.f32 %v14187_v35, %v6964_v12  ;;  %v8203_v3 = vcombine.low %v7193_v15, %v7194_v16 }
 0x321   :  { %v9288_v36 = vrot.slane %v9274_v1, %v12622_v38  ;;  %v8204_v8 = vcombine.low %v7195_v6, %v7196_v52  ;;  %v8212_v44 = vrot.slane %v8202_v19, %v12622_v38  ;;  %v8918_v56 = vmul.f32 %v7193_v15, %v7193_v15 }
 0x322   :  { %v8919_v27 = vmul.f32 %v7194_v16, %v7194_v16  ;;  %v10612_v62 = vpack.c.bf16 %v8201_v13, %v14397_v25  ;;  %v8858_v43 = vadd.f32 %v14406_v57, %v8201_v13  ;;  %v8205_v17 = vcombine.low %v7197_v50, %v7198_v0 }
 0x323   :  { %v9289_v22 = vcombine.low %v9281_v49, %v9288_v36  ;;  %v8219_v11 = vrot.slane %v8203_v3, %v12622_v38  ;;  %v8226_v26 = vrot.slane %v8204_v8, %v12622_v38  ;;  %v8920_v31 = vmul.f32 %v7195_v6, %v7195_v6 }
 0x324   :  { %v8921_v32 = vmul.f32 %v7196_v52, %v7196_v52  ;;  %10647 = vst [vmem:[%s14516_s4 + $0x30] sm:$0xff] %v10612_v62   ;;  %v8233_v7 = vrot.slane %v8205_v17, %v12622_v38  ;;  %v8922_v9 = vmul.f32 %v7197_v50, %v7197_v50  ;;  %v8923_v25 = vmul.f32 %v7198_v0, %v7198_v0 }
 0x325   :  { %v9400_v61 = vadd.f32 %v14418_v20, %v9289_v22  ;;  %v8234_v45 = vcombine.low %v8212_v44, %v8219_v11  ;;  %v9291_v57 = vcombine.low %v8918_v56, %v8919_v27  ;;  %v9300_v30 = vrot.slane %v9290_v41, %v12622_v38 }
 0x326   :  { %v9292_v54 = vcombine.low %v8920_v31, %v8921_v32  ;;  %v8235_v18 = vcombine.low %v8226_v26, %v8233_v7  ;;  %v9293_v19 = vcombine.low %v8922_v9, %v8923_v25  ;;  %v6975_v29 = vrot.slane %v14410_v63, %v12622_v38 }
 0x327   :  { %v6982_v39 = vrot.slane %v6968_v42, %v12622_v38  ;;  %v8242_v20 = vrot.slane %v8234_v45, %v12622_v38  ;;  %v9307_v46 = vrot.slane %v9291_v57, %v12622_v38  ;;  %v7199_v33 = vadd.f32 %v14151_v58, %v6967_v10 }
 0x328   :  { %v9314_v5 = vrot.slane %v9292_v54, %v12622_v38  ;;  %v8249_v51 = vrot.slane %v8235_v18, %v12622_v38  ;;  %v9321_v23 = vrot.slane %v9293_v19, %v12622_v38  ;;  %v6983_v59 = vcombine.high %v6975_v29, %v6975_v29  ;;  %v14688_v18 = vld [vmem:[#allocation13_spill] sm:$0xff] }
 0x329   :  { %v6984_v41 = vcombine.high %v6982_v39, %v6982_v39  ;;  %v9322_v12 = vcombine.low %v9300_v30, %v9307_v46  ;;  %v6991_v34 = vrot.slane %v6975_v29, %v12622_v38  ;;  %v6998_v63 = vrot.slane %v6982_v39, %v12622_v38 }
 0x32a   :  { %v8924_v42 = vmul.f32 %v7199_v33, %v7199_v33  ;;  %v8250_v47 = vcombine.low %v8242_v20, %v8249_v51  ;;  %v9323_v60 = vcombine.low %v9314_v5, %v9321_v23  ;;  %v7005_v15 = vrot.slane %v6983_v59, %v12622_v38 }
 0x32b   :  { %v7012_v48 = vrot.slane %v6984_v41, %v12622_v38  ;;  %v9330_v58 = vrot.slane %v9322_v12, %v12622_v38  ;;  %v7013_v1 = vcombine.high %v6991_v34, %v6991_v34  ;;  %v7014_v10 = vcombine.high %v6998_v63, %v6998_v63 }
 0x32c   :  { %v7200_v16 = vadd.f32 %v14165_v2, %v6991_v34  ;;  %v8859_v49 = vadd.f32 %v8858_v43, %v8250_v47  ;;  %v9337_v6 = vrot.slane %v9323_v60, %v12622_v38  ;;  %v7015_v52 = vcombine.high %v7005_v15, %v7005_v15 }
 0x32d   :  { %v7201_v50 = vadd.f32 %v14172_v37, %v7005_v15  ;;  %v7202_v13 = vadd.f32 %v14182_v24, %v7013_v1  ;;  %v7204_v36 = vadd.f32 %v14168_v4, %v6998_v63  ;;  %v7205_v0 = vadd.f32 %v14178_v14, %v7012_v48 }
 0x32e   :  { %v7206_v3 = vadd.f32 %v14187_v35, %v7014_v10  ;;  %v9338_v8 = vcombine.low %v9330_v58, %v9337_v6  ;;  %v7203_v44 = vadd.f32 %v14156_v21, %v7015_v52  ;;  %v8251_v56 = vcombine.low %v7199_v33, %v7200_v16 }
 0x32f   :  { %v8925_v27 = vmul.f32 %v7200_v16, %v7200_v16  ;;  %v8252_v2 = vcombine.low %v7201_v50, %v7202_v13  ;;  %v8926_v43 = vmul.f32 %v7201_v50, %v7201_v50  ;;  %v8927_v22 = vmul.f32 %v7202_v13, %v7202_v13 }
 0x330   :  { %v8254_v62 = vcombine.low %v7205_v0, %v7206_v3  ;;  %v9401_v17 = vadd.f32 %v9400_v61, %v9338_v8  ;;  %v8253_v11 = vcombine.low %v7203_v44, %v7204_v36  ;;  %v8261_v37 = vrot.slane %v8251_v56, %v12622_v38 }
 0x331   :  { %v8928_v24 = vmul.f32 %v7203_v44, %v7203_v44  ;;  %v8268_v4 = vrot.slane %v8252_v2, %v12622_v38  ;;  %v8929_v26 = vmul.f32 %v7204_v36, %v7204_v36  ;;  %v8930_v35 = vmul.f32 %v7205_v0, %v7205_v0 }
 0x332   :  { %v8282_v14 = vrot.slane %v8254_v62, %v12622_v38  ;;  %v8275_v31 = vrot.slane %v8253_v11, %v12622_v38  ;;  %v8931_v21 = vmul.f32 %v7206_v3, %v7206_v3  ;;  %v9339_v32 = vcombine.low %v8924_v42, %v8925_v27 }
 0x333   :  { %v9340_v7 = vcombine.low %v8926_v43, %v8927_v22  ;;  %v8283_v9 = vcombine.low %v8261_v37, %v8268_v4  ;;  %v9341_v25 = vcombine.low %v8928_v24, %v8929_v26  ;;  %v3892_v30 = vadd.f32 %v3891_v55, %v14687_v28 }
 0x334   :  { %v8284_v45 = vcombine.low %v8275_v31, %v8282_v14  ;;  %v9342_v57 = vcombine.low %v8930_v35, %v8931_v21  ;;  %v9349_v61 = vrot.slane %v9339_v32, %v12622_v38  ;;  %v4433_v19 = vrot.slane %v14688_v18, 4 }
 0x335   :  { %v9356_v54 = vrot.slane %v9340_v7, %v12622_v38  ;;  %v9363_v29 = vrot.slane %v9341_v25, %v12622_v38  ;;  %v8291_v39 = vrot.slane %v8283_v9, %v12622_v38  ;;  %v3893_v23 = vrot.slane %v3892_v30, 2 }
 0x336   :  { %v8298_v20 = vrot.slane %v8284_v45, %v12622_v38  ;;  %v9370_v46 = vrot.slane %v9342_v57, %v12622_v38  ;;  %v4434_v59 = vadd.f32 %v4433_v19, %v14688_v18 }
 0x337   :  { %v9371_v5 = vcombine.low %v9349_v61, %v9356_v54  ;;  %v3894_v42 = vadd.f32 %v3893_v23, %v3892_v30 }
 0x338   :  { %v8299_v33 = vcombine.low %v8291_v39, %v8298_v20  ;;  %v9372_v51 = vcombine.low %v9363_v29, %v9370_v46  ;;  %v4435_v60 = vrot.slane %v4434_v59, 2 }
 0x339   :  { %v9379_v28 = vrot.slane %v9371_v5, %v12622_v38  ;;  %v3895_v10 = vrot.slane %v3894_v42, 1 }
 0x33a   :  { %v10617_v41 = vpack.c.bf16 %v8299_v33, %v8250_v47  ;;  %v8860_v12 = vadd.f32 %v8859_v49, %v8299_v33  ;;  %v9386_v55 = vrot.slane %v9372_v51, %v12622_v38  ;;  %v4436_v16 = vadd.f32 %v4435_v60, %v4434_v59 }
 0x33b   :  { %v3896_v50 = vadd.f32 %v3895_v10, %v3894_v42 }
 0x33c   :  { %10648 = vst [vmem:[%s14516_s4 + $0x38] sm:$0xff] %v10617_v41   ;;  %v8861_v34 = vrot.slane %v8860_v12, 4  ;;  %v9387_v63 = vcombine.low %v9379_v28, %v9386_v55  ;;  %v4437_v38 = vrot.slane %v4436_v16, 1 }
 0x33e   :  { %v8862_v15 = vadd.f32 %v8861_v34, %v8860_v12  ;;  %v9402_v48 = vadd.f32 %v9401_v17, %v9387_v63  ;;  %v4438_v8 = vadd.f32 %v4437_v38, %v4436_v16 }
 0x340   :  { %v8863_v58 = vrot.slane %v8862_v15, 2  ;;  %v9403_v1 = vrot.slane %v9402_v48, 4 }
 0x342   :  { %v8864_v47 = vadd.f32 %v8863_v58, %v8862_v15  ;;  %v9404_v49 = vadd.f32 %v9403_v1, %v9402_v48 }
 0x344   :  { %v8865_v6 = vrot.slane %v8864_v47, 1  ;;  %v9405_v52 = vrot.slane %v9404_v49, 2 }
 0x346   :  { %v8866_v13 = vadd.f32 %v8865_v6, %v8864_v47  ;;  %v9406_v36 = vadd.f32 %v9405_v52, %v9404_v49 }
 0x348   :  { %v8867_v0 = vadd.f32 %v8866_v13, %v3896_v50  ;;  %v9407_v3 = vrot.slane %v9406_v36, 1 }
 0x34a   :  { %v9408_v44 = vadd.f32 %v9407_v3, %v9406_v36 }
 0x34c   :  { %v9409_v56 = vadd.f32 %v9408_v44, %v4438_v8 }
 0x34e   :  { %v9967_v27 = vsel %vm9966_vm3, %v8867_v0, %v9409_v56 }
 0x34f   :  { %v9969_v2 = vsel %vm9968_vm4, %v9967_v27, %v14206_v53 }
 0x350   :  { %v9971_v62 = vsel %vm9970_vm5, %v9969_v2, %v14217_v40 }
 0x351   :  { %9972 = vst [vmem:[%s14517_s6] sm:$0xf] %v9971_v62 }

</bundles_post_ra>
